<compile_context>
chip_gen: v6e
topology: v6e:2x2x1
jax: 0.10.0
libtpu: 0.0.40
codegen_flags: <defaults>
</compile_context>

<pallas_src>
import functools

import jax
import jax.numpy as jnp
from jax import lax
from jax.experimental import pallas as pl
from jax.experimental.pallas import tpu as pltpu

# ---- small, module-consistent sizes (defaults: 9 grid, 64 hd, 8 heads, 12 depth)
OUTER = 9
SEQ = OUTER * OUTER            # 81
HEAD_DIM = 8                   # small stand-in for 64
HEADS = 4                      # small stand-in for 8
DIM = HEAD_DIM * HEADS         # 32
DEPTH = 2                      # small stand-in for 12
NUM_CLASSES = OUTER + 1        # 10
MLP_DIM = 4 * DIM
C_PAD = 128                    # class dim padded to one full lane width
EPS = 1e-5


def _layer_norm(x, g, b):
    mu = jnp.mean(x, axis=-1, keepdims=True)
    var = jnp.mean((x - mu) ** 2, axis=-1, keepdims=True)
    return (x - mu) * lax.rsqrt(var + EPS) * g + b


# --------------------------------------------------------------------------
# Fused kernel: grid = (batch_blocks, DEPTH).
#   * depth axis streams per-layer weights (blocks indexed by program_id(1))
#   * activations live in an (M, DIM) f32 VMEM scratch across depth steps
#   * last depth step: final LN + padded logit head + masked CE partials
# --------------------------------------------------------------------------
def transformer_ce_kernel(x_ref, labels_ref,
                          ln1g_ref, ln1b_ref, wqkv_ref, bqkv_ref, wo_ref, bo_ref,
                          ln2g_ref, ln2b_ref, w1_ref, b1_ref, w2_ref, b2_ref,
                          lnfg_ref, lnfb_ref, wout_ref, bout_ref,
                          logits_ref, lsum_ref, lcnt_ref,
                          x_sc, attn_sc, *, bt):
    l = pl.program_id(1)
    m_rows = bt * SEQ
    scale = 1.0 / (HEAD_DIM ** 0.5)
    bf16 = jnp.bfloat16

    @pl.when(l == 0)
    def _():
        x_sc[...] = x_ref[...]

    x = x_sc[...]                                             # (M, D) f32

    # ---------------- attention block ----------------
    h = _layer_norm(x, ln1g_ref[0], ln1b_ref[0])
    qkv = jnp.dot(h.astype(bf16), wqkv_ref[0],
                  preferred_element_type=jnp.float32) + bqkv_ref[0]   # (M, 3D)

    for b in range(bt):                                        # static unroll
        r0 = b * SEQ
        qkv_b = qkv[r0:r0 + SEQ, :]                            # (SEQ, 3D)
        for hh in range(HEADS):                                # static unroll
            lo = hh * HEAD_DIM
            qh = qkv_b[:, lo:lo + HEAD_DIM].astype(bf16)
            kh = qkv_b[:, DIM + lo:DIM + lo + HEAD_DIM].astype(bf16)
            vh = qkv_b[:, 2 * DIM + lo:2 * DIM + lo + HEAD_DIM].astype(bf16)
            s = lax.dot_general(qh, kh, (((1,), (1,)), ((), ())),
                                preferred_element_type=jnp.float32) * scale
            s = s - jnp.max(s, axis=-1, keepdims=True)
            p = jnp.exp(s)
            p = p * pl.reciprocal(jnp.sum(p, axis=-1, keepdims=True), approx=True)
            oh = jnp.dot(p.astype(bf16), vh,
                         preferred_element_type=jnp.float32)           # (SEQ, hd)
            attn_sc[r0:r0 + SEQ, lo:lo + HEAD_DIM] = oh

    attn = attn_sc[...]                                        # (M, D) == concat heads
    x = x + jnp.dot(attn.astype(bf16), wo_ref[0],
                    preferred_element_type=jnp.float32) + bo_ref[0]

    # ---------------- MLP block ----------------
    h = _layer_norm(x, ln2g_ref[0], ln2b_ref[0])
    h = jnp.dot(h.astype(bf16), w1_ref[0],
                preferred_element_type=jnp.float32) + b1_ref[0]
    # TODO(synk): PyTorch nn.GELU default is exact erf; tanh-approx kept here
    # for guaranteed Mosaic lowering (tiny numerical difference).
    h = jax.nn.gelu(h)
    h = jnp.dot(h.astype(bf16), w2_ref[0],
                preferred_element_type=jnp.float32) + b2_ref[0]
    x = x + h
    x_sc[...] = x

    # ---------------- epilogue: final LN + head + fused masked CE ----------------
    @pl.when(l == DEPTH - 1)
    def _():
        hf = _layer_norm(x, lnfg_ref[...], lnfb_ref[...])
        logits = jnp.dot(hf.astype(bf16), wout_ref[...],
                         preferred_element_type=jnp.float32) + bout_ref[...]  # (M, 128)
        logits_ref[...] = logits

        labels = labels_ref[...]                               # (M, 1) int32
        cols = lax.broadcasted_iota(jnp.int32, (m_rows, C_PAD), 1)
        class_ok = cols < NUM_CLASSES                          # mask padded classes
        z = jnp.where(class_ok, logits, -1e30)
        zmax = jnp.max(z, axis=-1, keepdims=True)
        ez = jnp.where(class_ok, jnp.exp(z - zmax), 0.0)
        lse = jnp.log(jnp.sum(ez, axis=-1, keepdims=True)) + zmax
        valid = labels >= 0                                    # ignore_index = -1
        lab = jnp.where(valid, labels, 0)
        onehot = cols == lab
        picked = jnp.sum(jnp.where(onehot, logits, 0.0), axis=-1, keepdims=True)
        nll = jnp.where(valid, lse - picked, 0.0)              # (M, 1)
        lsum_ref[...] = jnp.sum(nll) + jnp.zeros((1, 8, 128), jnp.float32)
        lcnt_ref[...] = jnp.sum(valid.astype(jnp.float32)) + jnp.zeros((1, 8, 128),
                                                                       jnp.float32)


# --------------------------------------------------------------------------
# Wrapper / glue
# --------------------------------------------------------------------------
def _pick_block(B):
    """Bt sequences per grid block; Bt*SEQ must be a sublane multiple or full."""
    if B <= 8:
        return B, B                        # single block -> full-dim block shape
    bt = 8                                 # 8*81 = 648, a multiple of 8
    return bt, ((B + bt - 1) // bt) * bt


def _prep_params(params):
    """bf16 matmul weights, (DEPTH,1,X) per-layer vectors, class dim padded to 128."""
    bf = lambda w: w.astype(jnp.bfloat16)
    v3 = lambda p: p.reshape(DEPTH, 1, -1)
    wout_p = jnp.zeros((DIM, C_PAD), jnp.float32).at[:, :NUM_CLASSES].set(
        params["wout"]).astype(jnp.bfloat16)
    bout_p = jnp.zeros((1, C_PAD), jnp.float32).at[:, :NUM_CLASSES].set(params["bout"])
    return [
        v3(params["ln1g"]), v3(params["ln1b"]),
        bf(params["wqkv"]), v3(params["bqkv"]),
        bf(params["wo"]), v3(params["bo"]),
        v3(params["ln2g"]), v3(params["ln2b"]),
        bf(params["w1"]), v3(params["b1"]),
        bf(params["w2"]), v3(params["b2"]),
        params["lnfg"], params["lnfb"],
        wout_p, bout_p,
    ]


def discrete_diffusion_forward(params, board_bl, labels=None):
    """Equivalent of DiscreteDiffusion.forward: returns (preds_bld, loss)."""
    B, L = board_bl.shape
    assert L == SEQ
    bt, b_pad = _pick_block(B)
    nb = b_pad // bt
    m_rows = bt * SEQ
    pad = b_pad - B

    if pad:
        board_bl = jnp.concatenate(
            [board_bl, jnp.zeros((pad, SEQ), board_bl.dtype)], axis=0)
    if labels is None:
        lab = jnp.full((b_pad, SEQ), -1, jnp.int32)
    else:
        lab = labels.astype(jnp.int32)
        if pad:
            lab = jnp.concatenate([lab, jnp.full((pad, SEQ), -1, jnp.int32)], axis=0)

    # glue: embedding gather + positional embedding, flattened to (B_pad*SEQ, D)
    x = params["tok_emb"][board_bl] + params["pos_emb"][None]        # (B_pad, SEQ, D)
    x2 = x.reshape(b_pad * SEQ, DIM).astype(jnp.float32)
    lab2 = lab.reshape(b_pad * SEQ, 1)
    weights = _prep_params(params)

    xmap = lambda b, l: (b, 0)
    per_layer = lambda b, l: (l, 0, 0)
    const2 = lambda b, l: (0, 0)
    lossmap = lambda b, l: (b, 0, 0)

    in_specs = [
        pl.BlockSpec((m_rows, DIM), xmap),              # x
        pl.BlockSpec((m_rows, 1), xmap),                # labels
        pl.BlockSpec((1, 1, DIM), per_layer),           # ln1g
        pl.BlockSpec((1, 1, DIM), per_layer),           # ln1b
        pl.BlockSpec((1, DIM, 3 * DIM), per_layer),     # wqkv
        pl.BlockSpec((1, 1, 3 * DIM), per_layer),       # bqkv
        pl.BlockSpec((1, DIM, DIM), per_layer),         # wo
        pl.BlockSpec((1, 1, DIM), per_layer),           # bo
        pl.BlockSpec((1, 1, DIM), per_layer),           # ln2g
        pl.BlockSpec((1, 1, DIM), per_layer),           # ln2b
        pl.BlockSpec((1, DIM, MLP_DIM), per_layer),     # w1
        pl.BlockSpec((1, 1, MLP_DIM), per_layer),       # b1
        pl.BlockSpec((1, MLP_DIM, DIM), per_layer),     # w2
        pl.BlockSpec((1, 1, DIM), per_layer),           # b2
        pl.BlockSpec((1, DIM), const2),                 # lnfg
        pl.BlockSpec((1, DIM), const2),                 # lnfb
        pl.BlockSpec((DIM, C_PAD), const2),             # wout (padded)
        pl.BlockSpec((1, C_PAD), const2),               # bout (padded)
    ]
    out_specs = (
        pl.BlockSpec((m_rows, C_PAD), xmap),            # padded logits
        pl.BlockSpec((1, 8, 128), lossmap),             # per-block loss sum
        pl.BlockSpec((1, 8, 128), lossmap),             # per-block valid count
    )
    out_shape = (
        jax.ShapeDtypeStruct((b_pad * SEQ, C_PAD), jnp.float32),
        jax.ShapeDtypeStruct((nb, 8, 128), jnp.float32),
        jax.ShapeDtypeStruct((nb, 8, 128), jnp.float32),
    )

    kernel = functools.partial(transformer_ce_kernel, bt=bt)
    logits_p, lsum, lcnt = pl.pallas_call(
        kernel,
        out_shape=out_shape,
        grid=(nb, DEPTH),
        in_specs=in_specs,
        out_specs=out_specs,
        scratch_shapes=[pltpu.VMEM((m_rows, DIM), jnp.float32),   # residual stream
                        pltpu.VMEM((m_rows, DIM), jnp.float32)],  # concat'd heads
        compiler_params=pltpu.CompilerParams(
            dimension_semantics=("parallel", "arbitrary"),
            vmem_limit_bytes=48 * 1024 * 1024),
    )(x2, lab2, *weights)

    preds_bld = logits_p[:B * SEQ, :NUM_CLASSES].reshape(B, SEQ, NUM_CLASSES)
    if labels is None:
        return preds_bld, 0
    # NOTE: like torch.nn.functional.cross_entropy, all-ignored labels -> NaN.
    loss = jnp.sum(lsum[:, 0, 0]) / jnp.sum(lcnt[:, 0, 0])
    return preds_bld, loss


# TODO(synk): forward_loss / generate (random masking via argsort, bernoulli,
# top-k gumbel sampling loop) are host-side stochastic control flow around
# forward(); they are not translated into Pallas kernels here.


def init_params(key):
    ks = jax.random.split(key, 8)
    nrm = lambda k, shape: 0.02 * jax.random.normal(k, shape, jnp.float32)
    return dict(
        tok_emb=nrm(ks[0], (NUM_CLASSES, DIM)),
        pos_emb=nrm(ks[1], (SEQ, DIM)),
        ln1g=jnp.ones((DEPTH, DIM), jnp.float32),
        ln1b=jnp.zeros((DEPTH, DIM), jnp.float32),
        wqkv=nrm(ks[2], (DEPTH, DIM, 3 * DIM)),
        bqkv=jnp.zeros((DEPTH, 3 * DIM), jnp.float32),
        wo=nrm(ks[3], (DEPTH, DIM, DIM)),
        bo=jnp.zeros((DEPTH, DIM), jnp.float32),
        ln2g=jnp.ones((DEPTH, DIM), jnp.float32),
        ln2b=jnp.zeros((DEPTH, DIM), jnp.float32),
        w1=nrm(ks[4], (DEPTH, DIM, MLP_DIM)),
        b1=jnp.zeros((DEPTH, MLP_DIM), jnp.float32),
        w2=nrm(ks[5], (DEPTH, MLP_DIM, DIM)),
        b2=jnp.zeros((DEPTH, DIM), jnp.float32),
        lnfg=jnp.ones((1, DIM), jnp.float32),
        lnfb=jnp.zeros((1, DIM), jnp.float32),
        wout=nrm(ks[6], (DIM, NUM_CLASSES)),
        bout=jnp.zeros((1, NUM_CLASSES), jnp.float32),
    )


if __name__ == "__main__":
    key = jax.random.PRNGKey(0)
    pkey, bkey, mkey = jax.random.split(key, 3)
    params = init_params(pkey)

    B = 2
    board_bhw = jax.random.randint(bkey, (B, OUTER, OUTER), 1, NUM_CLASSES,
                                   dtype=jnp.int32)
    board_bl = board_bhw.reshape(B, SEQ)
    # deterministic masking (analogous to forward_loss masking, mask_id = 0)
    mask = jax.random.bernoulli(mkey, 0.5, (B, SEQ))
    labels = jnp.where(mask, board_bl, -1)          # ignore_index = -1
    board_masked = jnp.where(mask, 0, board_bl)     # mask_id = 0

    preds, loss = discrete_diffusion_forward(params, board_masked, labels=labels)
    preds, loss = jax.block_until_ready((preds, loss))

    assert preds.shape == (B, SEQ, NUM_CLASSES)
    assert bool(jnp.isfinite(loss))

    # labels=None path (loss == 0, as in the torch module)
    preds2, loss0 = discrete_diffusion_forward(params, board_masked, labels=None)
    preds2 = jax.block_until_ready(preds2)
    assert preds2.shape == (B, SEQ, NUM_CLASSES)
    assert loss0 == 0
    print("KERNEL_OK")
</pallas_src>

<mosaic_0001>
module attributes {stable_mosaic.version = 11 : i64} {
  func.func @transformer_ce_kernel(%arg0: i32, %arg1: i32, %arg2: memref<162x32xf32, #tpu.memory_space<vmem>>, %arg3: memref<162x1xi32, #tpu.memory_space<vmem>>, %arg4: memref<1x1x32xf32, #tpu.memory_space<vmem>>, %arg5: memref<1x1x32xf32, #tpu.memory_space<vmem>>, %arg6: memref<1x32x96xbf16, #tpu.memory_space<vmem>>, %arg7: memref<1x1x96xf32, #tpu.memory_space<vmem>>, %arg8: memref<1x32x32xbf16, #tpu.memory_space<vmem>>, %arg9: memref<1x1x32xf32, #tpu.memory_space<vmem>>, %arg10: memref<1x1x32xf32, #tpu.memory_space<vmem>>, %arg11: memref<1x1x32xf32, #tpu.memory_space<vmem>>, %arg12: memref<1x32x128xbf16, #tpu.memory_space<vmem>>, %arg13: memref<1x1x128xf32, #tpu.memory_space<vmem>>, %arg14: memref<1x128x32xbf16, #tpu.memory_space<vmem>>, %arg15: memref<1x1x32xf32, #tpu.memory_space<vmem>>, %arg16: memref<1x32xf32, #tpu.memory_space<vmem>>, %arg17: memref<1x32xf32, #tpu.memory_space<vmem>>, %arg18: memref<32x128xbf16, #tpu.memory_space<vmem>>, %arg19: memref<1x128xf32, #tpu.memory_space<vmem>>, %arg20: memref<162x128xf32, #tpu.memory_space<vmem>>, %arg21: memref<1x8x128xf32, #tpu.memory_space<vmem>>, %arg22: memref<1x8x128xf32, #tpu.memory_space<vmem>>, %arg23: memref<162x32xf32, #tpu.memory_space<vmem>>, %arg24: memref<162x32xf32, #tpu.memory_space<vmem>>) attributes {dimension_semantics = [#tpu.dimension_semantics<parallel>, #tpu.dimension_semantics<arbitrary>], iteration_bounds = array<i64: 1, 2>, scalar_prefetch = 0 : i64, scratch_operands = 2 : i64, tpu.core_type = #tpu.core_type<tc>, window_params = [{transform_indices = @transform_0, window_bounds = array<i64: 162, 32>}, {transform_indices = @transform_1, window_bounds = array<i64: 162, 1>}, {transform_indices = @transform_2, window_bounds = array<i64: 1, 1, 32>}, {transform_indices = @transform_3, window_bounds = array<i64: 1, 1, 32>}, {transform_indices = @transform_4, window_bounds = array<i64: 1, 32, 96>}, {transform_indices = @transform_5, window_bounds = array<i64: 1, 1, 96>}, {transform_indices = @transform_6, window_bounds = array<i64: 1, 32, 32>}, {transform_indices = @transform_7, window_bounds = array<i64: 1, 1, 32>}, {transform_indices = @transform_8, window_bounds = array<i64: 1, 1, 32>}, {transform_indices = @transform_9, window_bounds = array<i64: 1, 1, 32>}, {transform_indices = @transform_10, window_bounds = array<i64: 1, 32, 128>}, {transform_indices = @transform_11, window_bounds = array<i64: 1, 1, 128>}, {transform_indices = @transform_12, window_bounds = array<i64: 1, 128, 32>}, {transform_indices = @transform_13, window_bounds = array<i64: 1, 1, 32>}, {pipeline_mode = #tpu.pipeline_mode<synchronous>, transform_indices = @transform_14, window_bounds = array<i64: 1, 32>}, {pipeline_mode = #tpu.pipeline_mode<synchronous>, transform_indices = @transform_15, window_bounds = array<i64: 1, 32>}, {pipeline_mode = #tpu.pipeline_mode<synchronous>, transform_indices = @transform_16, window_bounds = array<i64: 32, 128>}, {pipeline_mode = #tpu.pipeline_mode<synchronous>, transform_indices = @transform_17, window_bounds = array<i64: 1, 128>}, {transform_indices = @transform_18, window_bounds = array<i64: 162, 128>}, {transform_indices = @transform_19, window_bounds = array<i64: 1, 8, 128>}, {transform_indices = @transform_20, window_bounds = array<i64: 1, 8, 128>}]} {
    %c0_i32 = arith.constant 0 : i32
    %0 = arith.cmpi eq, %arg1, %c0_i32 : i32
    %1 = arith.extui %0 : i1 to i32
    %c0_i32_0 = arith.constant 0 : i32
    %2 = arith.cmpi ne, %1, %c0_i32_0 : i32
    scf.if %2 {
      %c0_112 = arith.constant 0 : index
      %c0_113 = arith.constant 0 : index
      %286 = vector.load %arg2[%c0_112, %c0_113] : memref<162x32xf32, #tpu.memory_space<vmem>>, vector<162x32xf32>
      %c0_114 = arith.constant 0 : index
      %c0_115 = arith.constant 0 : index
      %287 = vector.load %arg23[%c0_114, %c0_115] : memref<162x32xf32, #tpu.memory_space<vmem>>, vector<162x32xf32>
      tpu.vector_store %arg23[%c0_114, %c0_115], %286 {strides = array<i32>} : memref<162x32xf32, #tpu.memory_space<vmem>>, vector<162x32xf32>,
    } else {
    }
    %c0 = arith.constant 0 : index
    %c0_1 = arith.constant 0 : index
    %3 = vector.load %arg23[%c0, %c0_1] : memref<162x32xf32, #tpu.memory_space<vmem>>, vector<162x32xf32>
    %c0_2 = arith.constant 0 : index
    %c0_3 = arith.constant 0 : index
    %c0_4 = arith.constant 0 : index
    %4 = vector.load %arg4[%c0_2, %c0_3, %c0_4] : memref<1x1x32xf32, #tpu.memory_space<vmem>>, vector<1x1x32xf32>
    %5 = vector.shape_cast %4 : vector<1x1x32xf32> to vector<1x32xf32>
    %c0_5 = arith.constant 0 : index
    %c0_6 = arith.constant 0 : index
    %c0_7 = arith.constant 0 : index
    %6 = vector.load %arg5[%c0_5, %c0_6, %c0_7] : memref<1x1x32xf32, #tpu.memory_space<vmem>>, vector<1x1x32xf32>
    %7 = vector.shape_cast %6 : vector<1x1x32xf32> to vector<1x32xf32>
    %cst = arith.constant dense<0.000000e+00> : vector<162xf32>
    %8 = vector.multi_reduction <add>, %3, %cst [1] : vector<162x32xf32> to vector<162xf32>
    %9 = vector.shape_cast %8 : vector<162xf32> to vector<162x1xf32>
    %cst_8 = arith.constant 3.200000e+01 : f32
    %10 = vector.broadcast %cst_8 : f32 to vector<162x1xf32>
    %11 = arith.divf %9, %10 : vector<162x1xf32>
    %12 = vector.broadcast %11 : vector<162x1xf32> to vector<162x32xf32>
    %13 = arith.subf %3, %12 : vector<162x32xf32>
    %14 = arith.mulf %13, %13 : vector<162x32xf32>
    %cst_9 = arith.constant dense<0.000000e+00> : vector<162xf32>
    %15 = vector.multi_reduction <add>, %14, %cst_9 [1] : vector<162x32xf32> to vector<162xf32>
    %16 = vector.shape_cast %15 : vector<162xf32> to vector<162x1xf32>
    %cst_10 = arith.constant 3.200000e+01 : f32
    %17 = vector.broadcast %cst_10 : f32 to vector<162x1xf32>
    %18 = arith.divf %16, %17 : vector<162x1xf32>
    %19 = vector.broadcast %11 : vector<162x1xf32> to vector<162x32xf32>
    %20 = arith.subf %3, %19 : vector<162x32xf32>
    %cst_11 = arith.constant 9.99999974E-6 : f32
    %21 = vector.broadcast %cst_11 : f32 to vector<162x1xf32>
    %22 = arith.addf %18, %21 : vector<162x1xf32>
    %23 = math.rsqrt %22 : vector<162x1xf32>
    %24 = vector.broadcast %23 : vector<162x1xf32> to vector<162x32xf32>
    %25 = arith.mulf %20, %24 : vector<162x32xf32>
    %26 = vector.broadcast %5 : vector<1x32xf32> to vector<162x32xf32>
    %27 = arith.mulf %25, %26 : vector<162x32xf32>
    %28 = vector.broadcast %7 : vector<1x32xf32> to vector<162x32xf32>
    %29 = arith.addf %27, %28 : vector<162x32xf32>
    %30 = arith.truncf %29 : vector<162x32xf32> to vector<162x32xbf16>
    %c0_12 = arith.constant 0 : index
    %c0_13 = arith.constant 0 : index
    %c0_14 = arith.constant 0 : index
    %31 = vector.load %arg6[%c0_12, %c0_13, %c0_14] : memref<1x32x96xbf16, #tpu.memory_space<vmem>>, vector<1x32x96xbf16>
    %32 = vector.shape_cast %31 : vector<1x32x96xbf16> to vector<32x96xbf16>
    %cst_15 = arith.constant dense<0.000000e+00> : vector<162x96xf32>
    %33 = tpu.matmul %30, %32, %cst_15 {dimension_numbers = #tpu.dot_dimension_numbers<[1], [0], [0], [1], [0, 0, 1, 1], [], []>} : vector<162x32xbf16>, vector<32x96xbf16>, vector<162x96xf32> -> vector<162x96xf32>
    %c0_16 = arith.constant 0 : index
    %c0_17 = arith.constant 0 : index
    %c0_18 = arith.constant 0 : index
    %34 = vector.load %arg7[%c0_16, %c0_17, %c0_18] : memref<1x1x96xf32, #tpu.memory_space<vmem>>, vector<1x1x96xf32>
    %35 = vector.shape_cast %34 : vector<1x1x96xf32> to vector<1x96xf32>
    %36 = vector.broadcast %35 : vector<1x96xf32> to vector<162x96xf32>
    %37 = arith.addf %33, %36 : vector<162x96xf32>
    %38 = vector.extract_strided_slice %37 {offsets = [0, 0], sizes = [81, 96], strides = [1, 1]} : vector<162x96xf32> to vector<81x96xf32>
    %39 = vector.extract_strided_slice %38 {offsets = [0, 0], sizes = [81, 8], strides = [1, 1]} : vector<81x96xf32> to vector<81x8xf32>
    %40 = arith.truncf %39 : vector<81x8xf32> to vector<81x8xbf16>
    %41 = vector.extract_strided_slice %38 {offsets = [0, 32], sizes = [81, 8], strides = [1, 1]} : vector<81x96xf32> to vector<81x8xf32>
    %42 = arith.truncf %41 : vector<81x8xf32> to vector<81x8xbf16>
    %43 = vector.extract_strided_slice %38 {offsets = [0, 64], sizes = [81, 8], strides = [1, 1]} : vector<81x96xf32> to vector<81x8xf32>
    %44 = arith.truncf %43 : vector<81x8xf32> to vector<81x8xbf16>
    %cst_19 = arith.constant dense<0.000000e+00> : vector<81x81xf32>
    %45 = tpu.matmul %40, %42, %cst_19 {dimension_numbers = #tpu.dot_dimension_numbers<[1], [1], [0], [0], [0, 0, 1, 0], [], []>} : vector<81x8xbf16>, vector<81x8xbf16>, vector<81x81xf32> -> vector<81x81xf32>
    %cst_20 = arith.constant 0.353553385 : f32
    %46 = vector.broadcast %cst_20 : f32 to vector<81x81xf32>
    %47 = arith.mulf %45, %46 : vector<81x81xf32>
    %cst_21 = arith.constant dense<0xFF800000> : vector<81xf32>
    %48 = vector.multi_reduction <maximumf>, %47, %cst_21 [1] : vector<81x81xf32> to vector<81xf32>
    %49 = vector.shape_cast %48 : vector<81xf32> to vector<81x1xf32>
    %50 = vector.broadcast %49 : vector<81x1xf32> to vector<81x81xf32>
    %51 = arith.subf %47, %50 : vector<81x81xf32>
    %52 = math.exp %51 : vector<81x81xf32>
    %cst_22 = arith.constant dense<0.000000e+00> : vector<81xf32>
    %53 = vector.multi_reduction <add>, %52, %cst_22 [1] : vector<81x81xf32> to vector<81xf32>
    %54 = vector.shape_cast %53 : vector<81xf32> to vector<81x1xf32>
    %55 = tpu.reciprocal %54 {approx = true} : vector<81x1xf32> -> vector<81x1xf32>
    %56 = vector.broadcast %55 : vector<81x1xf32> to vector<81x81xf32>
    %57 = arith.mulf %52, %56 : vector<81x81xf32>
    %58 = arith.truncf %57 : vector<81x81xf32> to vector<81x81xbf16>
    %cst_23 = arith.constant dense<0.000000e+00> : vector<81x8xf32>
    %59 = tpu.matmul %58, %44, %cst_23 {dimension_numbers = #tpu.dot_dimension_numbers<[1], [0], [0], [1], [0, 0, 1, 1], [], []>} : vector<81x81xbf16>, vector<81x8xbf16>, vector<81x8xf32> -> vector<81x8xf32>
    %c0_24 = arith.constant 0 : index
    %c0_25 = arith.constant 0 : index
    %60 = vector.load %arg24[%c0_24, %c0_25] : memref<162x32xf32, #tpu.memory_space<vmem>>, vector<81x8xf32>
    tpu.vector_store %arg24[%c0_24, %c0_25], %59 {strides = array<i32>} : memref<162x32xf32, #tpu.memory_space<vmem>>, vector<81x8xf32>,
    %61 = vector.extract_strided_slice %38 {offsets = [0, 8], sizes = [81, 8], strides = [1, 1]} : vector<81x96xf32> to vector<81x8xf32>
    %62 = arith.truncf %61 : vector<81x8xf32> to vector<81x8xbf16>
    %63 = vector.extract_strided_slice %38 {offsets = [0, 40], sizes = [81, 8], strides = [1, 1]} : vector<81x96xf32> to vector<81x8xf32>
    %64 = arith.truncf %63 : vector<81x8xf32> to vector<81x8xbf16>
    %65 = vector.extract_strided_slice %38 {offsets = [0, 72], sizes = [81, 8], strides = [1, 1]} : vector<81x96xf32> to vector<81x8xf32>
    %66 = arith.truncf %65 : vector<81x8xf32> to vector<81x8xbf16>
    %cst_26 = arith.constant dense<0.000000e+00> : vector<81x81xf32>
    %67 = tpu.matmul %62, %64, %cst_26 {dimension_numbers = #tpu.dot_dimension_numbers<[1], [1], [0], [0], [0, 0, 1, 0], [], []>} : vector<81x8xbf16>, vector<81x8xbf16>, vector<81x81xf32> -> vector<81x81xf32>
    %cst_27 = arith.constant 0.353553385 : f32
    %68 = vector.broadcast %cst_27 : f32 to vector<81x81xf32>
    %69 = arith.mulf %67, %68 : vector<81x81xf32>
    %cst_28 = arith.constant dense<0xFF800000> : vector<81xf32>
    %70 = vector.multi_reduction <maximumf>, %69, %cst_28 [1] : vector<81x81xf32> to vector<81xf32>
    %71 = vector.shape_cast %70 : vector<81xf32> to vector<81x1xf32>
    %72 = vector.broadcast %71 : vector<81x1xf32> to vector<81x81xf32>
    %73 = arith.subf %69, %72 : vector<81x81xf32>
    %74 = math.exp %73 : vector<81x81xf32>
    %cst_29 = arith.constant dense<0.000000e+00> : vector<81xf32>
    %75 = vector.multi_reduction <add>, %74, %cst_29 [1] : vector<81x81xf32> to vector<81xf32>
    %76 = vector.shape_cast %75 : vector<81xf32> to vector<81x1xf32>
    %77 = tpu.reciprocal %76 {approx = true} : vector<81x1xf32> -> vector<81x1xf32>
    %78 = vector.broadcast %77 : vector<81x1xf32> to vector<81x81xf32>
    %79 = arith.mulf %74, %78 : vector<81x81xf32>
    %80 = arith.truncf %79 : vector<81x81xf32> to vector<81x81xbf16>
    %cst_30 = arith.constant dense<0.000000e+00> : vector<81x8xf32>
    %81 = tpu.matmul %80, %66, %cst_30 {dimension_numbers = #tpu.dot_dimension_numbers<[1], [0], [0], [1], [0, 0, 1, 1], [], []>} : vector<81x81xbf16>, vector<81x8xbf16>, vector<81x8xf32> -> vector<81x8xf32>
    %c0_31 = arith.constant 0 : index
    %c8 = arith.constant 8 : index
    %82 = vector.load %arg24[%c0_31, %c8] : memref<162x32xf32, #tpu.memory_space<vmem>>, vector<81x8xf32>
    tpu.vector_store %arg24[%c0_31, %c8], %81 {strides = array<i32>} : memref<162x32xf32, #tpu.memory_space<vmem>>, vector<81x8xf32>,
    %83 = vector.extract_strided_slice %38 {offsets = [0, 16], sizes = [81, 8], strides = [1, 1]} : vector<81x96xf32> to vector<81x8xf32>
    %84 = arith.truncf %83 : vector<81x8xf32> to vector<81x8xbf16>
    %85 = vector.extract_strided_slice %38 {offsets = [0, 48], sizes = [81, 8], strides = [1, 1]} : vector<81x96xf32> to vector<81x8xf32>
    %86 = arith.truncf %85 : vector<81x8xf32> to vector<81x8xbf16>
    %87 = vector.extract_strided_slice %38 {offsets = [0, 80], sizes = [81, 8], strides = [1, 1]} : vector<81x96xf32> to vector<81x8xf32>
    %88 = arith.truncf %87 : vector<81x8xf32> to vector<81x8xbf16>
    %cst_32 = arith.constant dense<0.000000e+00> : vector<81x81xf32>
    %89 = tpu.matmul %84, %86, %cst_32 {dimension_numbers = #tpu.dot_dimension_numbers<[1], [1], [0], [0], [0, 0, 1, 0], [], []>} : vector<81x8xbf16>, vector<81x8xbf16>, vector<81x81xf32> -> vector<81x81xf32>
    %cst_33 = arith.constant 0.353553385 : f32
    %90 = vector.broadcast %cst_33 : f32 to vector<81x81xf32>
    %91 = arith.mulf %89, %90 : vector<81x81xf32>
    %cst_34 = arith.constant dense<0xFF800000> : vector<81xf32>
    %92 = vector.multi_reduction <maximumf>, %91, %cst_34 [1] : vector<81x81xf32> to vector<81xf32>
    %93 = vector.shape_cast %92 : vector<81xf32> to vector<81x1xf32>
    %94 = vector.broadcast %93 : vector<81x1xf32> to vector<81x81xf32>
    %95 = arith.subf %91, %94 : vector<81x81xf32>
    %96 = math.exp %95 : vector<81x81xf32>
    %cst_35 = arith.constant dense<0.000000e+00> : vector<81xf32>
    %97 = vector.multi_reduction <add>, %96, %cst_35 [1] : vector<81x81xf32> to vector<81xf32>
    %98 = vector.shape_cast %97 : vector<81xf32> to vector<81x1xf32>
    %99 = tpu.reciprocal %98 {approx = true} : vector<81x1xf32> -> vector<81x1xf32>
    %100 = vector.broadcast %99 : vector<81x1xf32> to vector<81x81xf32>
    %101 = arith.mulf %96, %100 : vector<81x81xf32>
    %102 = arith.truncf %101 : vector<81x81xf32> to vector<81x81xbf16>
    %cst_36 = arith.constant dense<0.000000e+00> : vector<81x8xf32>
    %103 = tpu.matmul %102, %88, %cst_36 {dimension_numbers = #tpu.dot_dimension_numbers<[1], [0], [0], [1], [0, 0, 1, 1], [], []>} : vector<81x81xbf16>, vector<81x8xbf16>, vector<81x8xf32> -> vector<81x8xf32>
    %c0_37 = arith.constant 0 : index
    %c16 = arith.constant 16 : index
    %104 = vector.load %arg24[%c0_37, %c16] : memref<162x32xf32, #tpu.memory_space<vmem>>, vector<81x8xf32>
    tpu.vector_store %arg24[%c0_37, %c16], %103 {strides = array<i32>} : memref<162x32xf32, #tpu.memory_space<vmem>>, vector<81x8xf32>,
    %105 = vector.extract_strided_slice %38 {offsets = [0, 24], sizes = [81, 8], strides = [1, 1]} : vector<81x96xf32> to vector<81x8xf32>
    %106 = arith.truncf %105 : vector<81x8xf32> to vector<81x8xbf16>
    %107 = vector.extract_strided_slice %38 {offsets = [0, 56], sizes = [81, 8], strides = [1, 1]} : vector<81x96xf32> to vector<81x8xf32>
    %108 = arith.truncf %107 : vector<81x8xf32> to vector<81x8xbf16>
    %109 = vector.extract_strided_slice %38 {offsets = [0, 88], sizes = [81, 8], strides = [1, 1]} : vector<81x96xf32> to vector<81x8xf32>
    %110 = arith.truncf %109 : vector<81x8xf32> to vector<81x8xbf16>
    %cst_38 = arith.constant dense<0.000000e+00> : vector<81x81xf32>
    %111 = tpu.matmul %106, %108, %cst_38 {dimension_numbers = #tpu.dot_dimension_numbers<[1], [1], [0], [0], [0, 0, 1, 0], [], []>} : vector<81x8xbf16>, vector<81x8xbf16>, vector<81x81xf32> -> vector<81x81xf32>
    %cst_39 = arith.constant 0.353553385 : f32
    %112 = vector.broadcast %cst_39 : f32 to vector<81x81xf32>
    %113 = arith.mulf %111, %112 : vector<81x81xf32>
    %cst_40 = arith.constant dense<0xFF800000> : vector<81xf32>
    %114 = vector.multi_reduction <maximumf>, %113, %cst_40 [1] : vector<81x81xf32> to vector<81xf32>
    %115 = vector.shape_cast %114 : vector<81xf32> to vector<81x1xf32>
    %116 = vector.broadcast %115 : vector<81x1xf32> to vector<81x81xf32>
    %117 = arith.subf %113, %116 : vector<81x81xf32>
    %118 = math.exp %117 : vector<81x81xf32>
    %cst_41 = arith.constant dense<0.000000e+00> : vector<81xf32>
    %119 = vector.multi_reduction <add>, %118, %cst_41 [1] : vector<81x81xf32> to vector<81xf32>
    %120 = vector.shape_cast %119 : vector<81xf32> to vector<81x1xf32>
    %121 = tpu.reciprocal %120 {approx = true} : vector<81x1xf32> -> vector<81x1xf32>
    %122 = vector.broadcast %121 : vector<81x1xf32> to vector<81x81xf32>
    %123 = arith.mulf %118, %122 : vector<81x81xf32>
    %124 = arith.truncf %123 : vector<81x81xf32> to vector<81x81xbf16>
    %cst_42 = arith.constant dense<0.000000e+00> : vector<81x8xf32>
    %125 = tpu.matmul %124, %110, %cst_42 {dimension_numbers = #tpu.dot_dimension_numbers<[1], [0], [0], [1], [0, 0, 1, 1], [], []>} : vector<81x81xbf16>, vector<81x8xbf16>, vector<81x8xf32> -> vector<81x8xf32>
    %c0_43 = arith.constant 0 : index
    %c24 = arith.constant 24 : index
    %126 = vector.load %arg24[%c0_43, %c24] : memref<162x32xf32, #tpu.memory_space<vmem>>, vector<81x8xf32>
    tpu.vector_store %arg24[%c0_43, %c24], %125 {strides = array<i32>} : memref<162x32xf32, #tpu.memory_space<vmem>>, vector<81x8xf32>,
    %127 = vector.extract_strided_slice %37 {offsets = [81, 0], sizes = [81, 96], strides = [1, 1]} : vector<162x96xf32> to vector<81x96xf32>
    %128 = vector.extract_strided_slice %127 {offsets = [0, 0], sizes = [81, 8], strides = [1, 1]} : vector<81x96xf32> to vector<81x8xf32>
    %129 = arith.truncf %128 : vector<81x8xf32> to vector<81x8xbf16>
    %130 = vector.extract_strided_slice %127 {offsets = [0, 32], sizes = [81, 8], strides = [1, 1]} : vector<81x96xf32> to vector<81x8xf32>
    %131 = arith.truncf %130 : vector<81x8xf32> to vector<81x8xbf16>
    %132 = vector.extract_strided_slice %127 {offsets = [0, 64], sizes = [81, 8], strides = [1, 1]} : vector<81x96xf32> to vector<81x8xf32>
    %133 = arith.truncf %132 : vector<81x8xf32> to vector<81x8xbf16>
    %cst_44 = arith.constant dense<0.000000e+00> : vector<81x81xf32>
    %134 = tpu.matmul %129, %131, %cst_44 {dimension_numbers = #tpu.dot_dimension_numbers<[1], [1], [0], [0], [0, 0, 1, 0], [], []>} : vector<81x8xbf16>, vector<81x8xbf16>, vector<81x81xf32> -> vector<81x81xf32>
    %cst_45 = arith.constant 0.353553385 : f32
    %135 = vector.broadcast %cst_45 : f32 to vector<81x81xf32>
    %136 = arith.mulf %134, %135 : vector<81x81xf32>
    %cst_46 = arith.constant dense<0xFF800000> : vector<81xf32>
    %137 = vector.multi_reduction <maximumf>, %136, %cst_46 [1] : vector<81x81xf32> to vector<81xf32>
    %138 = vector.shape_cast %137 : vector<81xf32> to vector<81x1xf32>
    %139 = vector.broadcast %138 : vector<81x1xf32> to vector<81x81xf32>
    %140 = arith.subf %136, %139 : vector<81x81xf32>
    %141 = math.exp %140 : vector<81x81xf32>
    %cst_47 = arith.constant dense<0.000000e+00> : vector<81xf32>
    %142 = vector.multi_reduction <add>, %141, %cst_47 [1] : vector<81x81xf32> to vector<81xf32>
    %143 = vector.shape_cast %142 : vector<81xf32> to vector<81x1xf32>
    %144 = tpu.reciprocal %143 {approx = true} : vector<81x1xf32> -> vector<81x1xf32>
    %145 = vector.broadcast %144 : vector<81x1xf32> to vector<81x81xf32>
    %146 = arith.mulf %141, %145 : vector<81x81xf32>
    %147 = arith.truncf %146 : vector<81x81xf32> to vector<81x81xbf16>
    %cst_48 = arith.constant dense<0.000000e+00> : vector<81x8xf32>
    %148 = tpu.matmul %147, %133, %cst_48 {dimension_numbers = #tpu.dot_dimension_numbers<[1], [0], [0], [1], [0, 0, 1, 1], [], []>} : vector<81x81xbf16>, vector<81x8xbf16>, vector<81x8xf32> -> vector<81x8xf32>
    %c81 = arith.constant 81 : index
    %c0_49 = arith.constant 0 : index
    %149 = vector.load %arg24[%c81, %c0_49] : memref<162x32xf32, #tpu.memory_space<vmem>>, vector<81x8xf32>
    tpu.vector_store %arg24[%c81, %c0_49], %148 {strides = array<i32>} : memref<162x32xf32, #tpu.memory_space<vmem>>, vector<81x8xf32>,
    %150 = vector.extract_strided_slice %127 {offsets = [0, 8], sizes = [81, 8], strides = [1, 1]} : vector<81x96xf32> to vector<81x8xf32>
    %151 = arith.truncf %150 : vector<81x8xf32> to vector<81x8xbf16>
    %152 = vector.extract_strided_slice %127 {offsets = [0, 40], sizes = [81, 8], strides = [1, 1]} : vector<81x96xf32> to vector<81x8xf32>
    %153 = arith.truncf %152 : vector<81x8xf32> to vector<81x8xbf16>
    %154 = vector.extract_strided_slice %127 {offsets = [0, 72], sizes = [81, 8], strides = [1, 1]} : vector<81x96xf32> to vector<81x8xf32>
    %155 = arith.truncf %154 : vector<81x8xf32> to vector<81x8xbf16>
    %cst_50 = arith.constant dense<0.000000e+00> : vector<81x81xf32>
    %156 = tpu.matmul %151, %153, %cst_50 {dimension_numbers = #tpu.dot_dimension_numbers<[1], [1], [0], [0], [0, 0, 1, 0], [], []>} : vector<81x8xbf16>, vector<81x8xbf16>, vector<81x81xf32> -> vector<81x81xf32>
    %cst_51 = arith.constant 0.353553385 : f32
    %157 = vector.broadcast %cst_51 : f32 to vector<81x81xf32>
    %158 = arith.mulf %156, %157 : vector<81x81xf32>
    %cst_52 = arith.constant dense<0xFF800000> : vector<81xf32>
    %159 = vector.multi_reduction <maximumf>, %158, %cst_52 [1] : vector<81x81xf32> to vector<81xf32>
    %160 = vector.shape_cast %159 : vector<81xf32> to vector<81x1xf32>
    %161 = vector.broadcast %160 : vector<81x1xf32> to vector<81x81xf32>
    %162 = arith.subf %158, %161 : vector<81x81xf32>
    %163 = math.exp %162 : vector<81x81xf32>
    %cst_53 = arith.constant dense<0.000000e+00> : vector<81xf32>
    %164 = vector.multi_reduction <add>, %163, %cst_53 [1] : vector<81x81xf32> to vector<81xf32>
    %165 = vector.shape_cast %164 : vector<81xf32> to vector<81x1xf32>
    %166 = tpu.reciprocal %165 {approx = true} : vector<81x1xf32> -> vector<81x1xf32>
    %167 = vector.broadcast %166 : vector<81x1xf32> to vector<81x81xf32>
    %168 = arith.mulf %163, %167 : vector<81x81xf32>
    %169 = arith.truncf %168 : vector<81x81xf32> to vector<81x81xbf16>
    %cst_54 = arith.constant dense<0.000000e+00> : vector<81x8xf32>
    %170 = tpu.matmul %169, %155, %cst_54 {dimension_numbers = #tpu.dot_dimension_numbers<[1], [0], [0], [1], [0, 0, 1, 1], [], []>} : vector<81x81xbf16>, vector<81x8xbf16>, vector<81x8xf32> -> vector<81x8xf32>
    %c81_55 = arith.constant 81 : index
    %c8_56 = arith.constant 8 : index
    %171 = vector.load %arg24[%c81_55, %c8_56] : memref<162x32xf32, #tpu.memory_space<vmem>>, vector<81x8xf32>
    tpu.vector_store %arg24[%c81_55, %c8_56], %170 {strides = array<i32>} : memref<162x32xf32, #tpu.memory_space<vmem>>, vector<81x8xf32>,
    %172 = vector.extract_strided_slice %127 {offsets = [0, 16], sizes = [81, 8], strides = [1, 1]} : vector<81x96xf32> to vector<81x8xf32>
    %173 = arith.truncf %172 : vector<81x8xf32> to vector<81x8xbf16>
    %174 = vector.extract_strided_slice %127 {offsets = [0, 48], sizes = [81, 8], strides = [1, 1]} : vector<81x96xf32> to vector<81x8xf32>
    %175 = arith.truncf %174 : vector<81x8xf32> to vector<81x8xbf16>
    %176 = vector.extract_strided_slice %127 {offsets = [0, 80], sizes = [81, 8], strides = [1, 1]} : vector<81x96xf32> to vector<81x8xf32>
    %177 = arith.truncf %176 : vector<81x8xf32> to vector<81x8xbf16>
    %cst_57 = arith.constant dense<0.000000e+00> : vector<81x81xf32>
    %178 = tpu.matmul %173, %175, %cst_57 {dimension_numbers = #tpu.dot_dimension_numbers<[1], [1], [0], [0], [0, 0, 1, 0], [], []>} : vector<81x8xbf16>, vector<81x8xbf16>, vector<81x81xf32> -> vector<81x81xf32>
    %cst_58 = arith.constant 0.353553385 : f32
    %179 = vector.broadcast %cst_58 : f32 to vector<81x81xf32>
    %180 = arith.mulf %178, %179 : vector<81x81xf32>
    %cst_59 = arith.constant dense<0xFF800000> : vector<81xf32>
    %181 = vector.multi_reduction <maximumf>, %180, %cst_59 [1] : vector<81x81xf32> to vector<81xf32>
    %182 = vector.shape_cast %181 : vector<81xf32> to vector<81x1xf32>
    %183 = vector.broadcast %182 : vector<81x1xf32> to vector<81x81xf32>
    %184 = arith.subf %180, %183 : vector<81x81xf32>
    %185 = math.exp %184 : vector<81x81xf32>
    %cst_60 = arith.constant dense<0.000000e+00> : vector<81xf32>
    %186 = vector.multi_reduction <add>, %185, %cst_60 [1] : vector<81x81xf32> to vector<81xf32>
    %187 = vector.shape_cast %186 : vector<81xf32> to vector<81x1xf32>
    %188 = tpu.reciprocal %187 {approx = true} : vector<81x1xf32> -> vector<81x1xf32>
    %189 = vector.broadcast %188 : vector<81x1xf32> to vector<81x81xf32>
    %190 = arith.mulf %185, %189 : vector<81x81xf32>
    %191 = arith.truncf %190 : vector<81x81xf32> to vector<81x81xbf16>
    %cst_61 = arith.constant dense<0.000000e+00> : vector<81x8xf32>
    %192 = tpu.matmul %191, %177, %cst_61 {dimension_numbers = #tpu.dot_dimension_numbers<[1], [0], [0], [1], [0, 0, 1, 1], [], []>} : vector<81x81xbf16>, vector<81x8xbf16>, vector<81x8xf32> -> vector<81x8xf32>
    %c81_62 = arith.constant 81 : index
    %c16_63 = arith.constant 16 : index
    %193 = vector.load %arg24[%c81_62, %c16_63] : memref<162x32xf32, #tpu.memory_space<vmem>>, vector<81x8xf32>
    tpu.vector_store %arg24[%c81_62, %c16_63], %192 {strides = array<i32>} : memref<162x32xf32, #tpu.memory_space<vmem>>, vector<81x8xf32>,
    %194 = vector.extract_strided_slice %127 {offsets = [0, 24], sizes = [81, 8], strides = [1, 1]} : vector<81x96xf32> to vector<81x8xf32>
    %195 = arith.truncf %194 : vector<81x8xf32> to vector<81x8xbf16>
    %196 = vector.extract_strided_slice %127 {offsets = [0, 56], sizes = [81, 8], strides = [1, 1]} : vector<81x96xf32> to vector<81x8xf32>
    %197 = arith.truncf %196 : vector<81x8xf32> to vector<81x8xbf16>
    %198 = vector.extract_strided_slice %127 {offsets = [0, 88], sizes = [81, 8], strides = [1, 1]} : vector<81x96xf32> to vector<81x8xf32>
    %199 = arith.truncf %198 : vector<81x8xf32> to vector<81x8xbf16>
    %cst_64 = arith.constant dense<0.000000e+00> : vector<81x81xf32>
    %200 = tpu.matmul %195, %197, %cst_64 {dimension_numbers = #tpu.dot_dimension_numbers<[1], [1], [0], [0], [0, 0, 1, 0], [], []>} : vector<81x8xbf16>, vector<81x8xbf16>, vector<81x81xf32> -> vector<81x81xf32>
    %cst_65 = arith.constant 0.353553385 : f32
    %201 = vector.broadcast %cst_65 : f32 to vector<81x81xf32>
    %202 = arith.mulf %200, %201 : vector<81x81xf32>
    %cst_66 = arith.constant dense<0xFF800000> : vector<81xf32>
    %203 = vector.multi_reduction <maximumf>, %202, %cst_66 [1] : vector<81x81xf32> to vector<81xf32>
    %204 = vector.shape_cast %203 : vector<81xf32> to vector<81x1xf32>
    %205 = vector.broadcast %204 : vector<81x1xf32> to vector<81x81xf32>
    %206 = arith.subf %202, %205 : vector<81x81xf32>
    %207 = math.exp %206 : vector<81x81xf32>
    %cst_67 = arith.constant dense<0.000000e+00> : vector<81xf32>
    %208 = vector.multi_reduction <add>, %207, %cst_67 [1] : vector<81x81xf32> to vector<81xf32>
    %209 = vector.shape_cast %208 : vector<81xf32> to vector<81x1xf32>
    %210 = tpu.reciprocal %209 {approx = true} : vector<81x1xf32> -> vector<81x1xf32>
    %211 = vector.broadcast %210 : vector<81x1xf32> to vector<81x81xf32>
    %212 = arith.mulf %207, %211 : vector<81x81xf32>
    %213 = arith.truncf %212 : vector<81x81xf32> to vector<81x81xbf16>
    %cst_68 = arith.constant dense<0.000000e+00> : vector<81x8xf32>
    %214 = tpu.matmul %213, %199, %cst_68 {dimension_numbers = #tpu.dot_dimension_numbers<[1], [0], [0], [1], [0, 0, 1, 1], [], []>} : vector<81x81xbf16>, vector<81x8xbf16>, vector<81x8xf32> -> vector<81x8xf32>
    %c81_69 = arith.constant 81 : index
    %c24_70 = arith.constant 24 : index
    %215 = vector.load %arg24[%c81_69, %c24_70] : memref<162x32xf32, #tpu.memory_space<vmem>>, vector<81x8xf32>
    tpu.vector_store %arg24[%c81_69, %c24_70], %214 {strides = array<i32>} : memref<162x32xf32, #tpu.memory_space<vmem>>, vector<81x8xf32>,
    %c0_71 = arith.constant 0 : index
    %c0_72 = arith.constant 0 : index
    %216 = vector.load %arg24[%c0_71, %c0_72] : memref<162x32xf32, #tpu.memory_space<vmem>>, vector<162x32xf32>
    %217 = arith.truncf %216 : vector<162x32xf32> to vector<162x32xbf16>
    %c0_73 = arith.constant 0 : index
    %c0_74 = arith.constant 0 : index
    %c0_75 = arith.constant 0 : index
    %218 = vector.load %arg8[%c0_73, %c0_74, %c0_75] : memref<1x32x32xbf16, #tpu.memory_space<vmem>>, vector<1x32x32xbf16>
    %219 = vector.shape_cast %218 : vector<1x32x32xbf16> to vector<32x32xbf16>
    %cst_76 = arith.constant dense<0.000000e+00> : vector<162x32xf32>
    %220 = tpu.matmul %217, %219, %cst_76 {dimension_numbers = #tpu.dot_dimension_numbers<[1], [0], [0], [1], [0, 0, 1, 1], [], []>} : vector<162x32xbf16>, vector<32x32xbf16>, vector<162x32xf32> -> vector<162x32xf32>
    %221 = arith.addf %3, %220 : vector<162x32xf32>
    %c0_77 = arith.constant 0 : index
    %c0_78 = arith.constant 0 : index
    %c0_79 = arith.constant 0 : index
    %222 = vector.load %arg9[%c0_77, %c0_78, %c0_79] : memref<1x1x32xf32, #tpu.memory_space<vmem>>, vector<1x1x32xf32>
    %223 = vector.shape_cast %222 : vector<1x1x32xf32> to vector<1x32xf32>
    %224 = vector.broadcast %223 : vector<1x32xf32> to vector<162x32xf32>
    %225 = arith.addf %221, %224 : vector<162x32xf32>
    %c0_80 = arith.constant 0 : index
    %c0_81 = arith.constant 0 : index
    %c0_82 = arith.constant 0 : index
    %226 = vector.load %arg10[%c0_80, %c0_81, %c0_82] : memref<1x1x32xf32, #tpu.memory_space<vmem>>, vector<1x1x32xf32>
    %227 = vector.shape_cast %226 : vector<1x1x32xf32> to vector<1x32xf32>
    %c0_83 = arith.constant 0 : index
    %c0_84 = arith.constant 0 : index
    %c0_85 = arith.constant 0 : index
    %228 = vector.load %arg11[%c0_83, %c0_84, %c0_85] : memref<1x1x32xf32, #tpu.memory_space<vmem>>, vector<1x1x32xf32>
    %229 = vector.shape_cast %228 : vector<1x1x32xf32> to vector<1x32xf32>
    %cst_86 = arith.constant dense<0.000000e+00> : vector<162xf32>
    %230 = vector.multi_reduction <add>, %225, %cst_86 [1] : vector<162x32xf32> to vector<162xf32>
    %231 = vector.shape_cast %230 : vector<162xf32> to vector<162x1xf32>
    %cst_87 = arith.constant 3.200000e+01 : f32
    %232 = vector.broadcast %cst_87 : f32 to vector<162x1xf32>
    %233 = arith.divf %231, %232 : vector<162x1xf32>
    %234 = vector.broadcast %233 : vector<162x1xf32> to vector<162x32xf32>
    %235 = arith.subf %225, %234 : vector<162x32xf32>
    %236 = arith.mulf %235, %235 : vector<162x32xf32>
    %cst_88 = arith.constant dense<0.000000e+00> : vector<162xf32>
    %237 = vector.multi_reduction <add>, %236, %cst_88 [1] : vector<162x32xf32> to vector<162xf32>
    %238 = vector.shape_cast %237 : vector<162xf32> to vector<162x1xf32>
    %cst_89 = arith.constant 3.200000e+01 : f32
    %239 = vector.broadcast %cst_89 : f32 to vector<162x1xf32>
    %240 = arith.divf %238, %239 : vector<162x1xf32>
    %241 = vector.broadcast %233 : vector<162x1xf32> to vector<162x32xf32>
    %242 = arith.subf %225, %241 : vector<162x32xf32>
    %cst_90 = arith.constant 9.99999974E-6 : f32
    %243 = vector.broadcast %cst_90 : f32 to vector<162x1xf32>
    %244 = arith.addf %240, %243 : vector<162x1xf32>
    %245 = math.rsqrt %244 : vector<162x1xf32>
    %246 = vector.broadcast %245 : vector<162x1xf32> to vector<162x32xf32>
    %247 = arith.mulf %242, %246 : vector<162x32xf32>
    %248 = vector.broadcast %227 : vector<1x32xf32> to vector<162x32xf32>
    %249 = arith.mulf %247, %248 : vector<162x32xf32>
    %250 = vector.broadcast %229 : vector<1x32xf32> to vector<162x32xf32>
    %251 = arith.addf %249, %250 : vector<162x32xf32>
    %252 = arith.truncf %251 : vector<162x32xf32> to vector<162x32xbf16>
    %c0_91 = arith.constant 0 : index
    %c0_92 = arith.constant 0 : index
    %c0_93 = arith.constant 0 : index
    %253 = vector.load %arg12[%c0_91, %c0_92, %c0_93] : memref<1x32x128xbf16, #tpu.memory_space<vmem>>, vector<1x32x128xbf16>
    %254 = vector.shape_cast %253 : vector<1x32x128xbf16> to vector<32x128xbf16>
    %cst_94 = arith.constant dense<0.000000e+00> : vector<162x128xf32>
    %255 = tpu.matmul %252, %254, %cst_94 {dimension_numbers = #tpu.dot_dimension_numbers<[1], [0], [0], [1], [0, 0, 1, 1], [], []>} : vector<162x32xbf16>, vector<32x128xbf16>, vector<162x128xf32> -> vector<162x128xf32>
    %c0_95 = arith.constant 0 : index
    %c0_96 = arith.constant 0 : index
    %c0_97 = arith.constant 0 : index
    %256 = vector.load %arg13[%c0_95, %c0_96, %c0_97] : memref<1x1x128xf32, #tpu.memory_space<vmem>>, vector<1x1x128xf32>
    %257 = vector.shape_cast %256 : vector<1x1x128xf32> to vector<1x128xf32>
    %258 = vector.broadcast %257 : vector<1x128xf32> to vector<162x128xf32>
    %259 = arith.addf %255, %258 : vector<162x128xf32>
    %260 = arith.mulf %259, %259 : vector<162x128xf32>
    %261 = arith.mulf %259, %260 : vector<162x128xf32>
    %cst_98 = arith.constant 4.471500e-02 : f32
    %262 = vector.broadcast %cst_98 : f32 to vector<162x128xf32>
    %263 = arith.mulf %262, %261 : vector<162x128xf32>
    %264 = arith.addf %259, %263 : vector<162x128xf32>
    %cst_99 = arith.constant 0.797884583 : f32
    %265 = vector.broadcast %cst_99 : f32 to vector<162x128xf32>
    %266 = arith.mulf %265, %264 : vector<162x128xf32>
    %267 = math.tanh %266 : vector<162x128xf32>
    %cst_100 = arith.constant 1.000000e+00 : f32
    %268 = vector.broadcast %cst_100 : f32 to vector<162x128xf32>
    %269 = arith.addf %268, %267 : vector<162x128xf32>
    %cst_101 = arith.constant 5.000000e-01 : f32
    %270 = vector.broadcast %cst_101 : f32 to vector<162x128xf32>
    %271 = arith.mulf %270, %269 : vector<162x128xf32>
    %272 = arith.mulf %259, %271 : vector<162x128xf32>
    %273 = arith.truncf %272 : vector<162x128xf32> to vector<162x128xbf16>
    %c0_102 = arith.constant 0 : index
    %c0_103 = arith.constant 0 : index
    %c0_104 = arith.constant 0 : index
    %274 = vector.load %arg14[%c0_102, %c0_103, %c0_104] : memref<1x128x32xbf16, #tpu.memory_space<vmem>>, vector<1x128x32xbf16>
    %275 = vector.shape_cast %274 : vector<1x128x32xbf16> to vector<128x32xbf16>
    %cst_105 = arith.constant dense<0.000000e+00> : vector<162x32xf32>
    %276 = tpu.matmul %273, %275, %cst_105 {dimension_numbers = #tpu.dot_dimension_numbers<[1], [0], [0], [1], [0, 0, 1, 1], [], []>} : vector<162x128xbf16>, vector<128x32xbf16>, vector<162x32xf32> -> vector<162x32xf32>
    %c0_106 = arith.constant 0 : index
    %c0_107 = arith.constant 0 : index
    %c0_108 = arith.constant 0 : index
    %277 = vector.load %arg15[%c0_106, %c0_107, %c0_108] : memref<1x1x32xf32, #tpu.memory_space<vmem>>, vector<1x1x32xf32>
    %278 = vector.shape_cast %277 : vector<1x1x32xf32> to vector<1x32xf32>
    %279 = vector.broadcast %278 : vector<1x32xf32> to vector<162x32xf32>
    %280 = arith.addf %276, %279 : vector<162x32xf32>
    %281 = arith.addf %225, %280 : vector<162x32xf32>
    %c0_109 = arith.constant 0 : index
    %c0_110 = arith.constant 0 : index
    %282 = vector.load %arg23[%c0_109, %c0_110] : memref<162x32xf32, #tpu.memory_space<vmem>>, vector<162x32xf32>
    tpu.vector_store %arg23[%c0_109, %c0_110], %281 {strides = array<i32>} : memref<162x32xf32, #tpu.memory_space<vmem>>, vector<162x32xf32>,
    %c1_i32 = arith.constant 1 : i32
    %283 = arith.cmpi eq, %arg1, %c1_i32 : i32
    %284 = arith.extui %283 : i1 to i32
    %c0_i32_111 = arith.constant 0 : i32
    %285 = arith.cmpi ne, %284, %c0_i32_111 : i32
    scf.if %285 {
      %c0_112 = arith.constant 0 : index
      %c0_113 = arith.constant 0 : index
      %286 = vector.load %arg16[%c0_112, %c0_113] : memref<1x32xf32, #tpu.memory_space<vmem>>, vector<1x32xf32>
      %c0_114 = arith.constant 0 : index
      %c0_115 = arith.constant 0 : index
      %287 = vector.load %arg17[%c0_114, %c0_115] : memref<1x32xf32, #tpu.memory_space<vmem>>, vector<1x32xf32>
      %cst_116 = arith.constant dense<0.000000e+00> : vector<162xf32>
      %288 = vector.multi_reduction <add>, %281, %cst_116 [1] : vector<162x32xf32> to vector<162xf32>
      %289 = vector.shape_cast %288 : vector<162xf32> to vector<162x1xf32>
      %cst_117 = arith.constant 3.200000e+01 : f32
      %290 = vector.broadcast %cst_117 : f32 to vector<162x1xf32>
      %291 = arith.divf %289, %290 : vector<162x1xf32>
      %292 = vector.broadcast %291 : vector<162x1xf32> to vector<162x32xf32>
      %293 = arith.subf %281, %292 : vector<162x32xf32>
      %294 = arith.mulf %293, %293 : vector<162x32xf32>
      %cst_118 = arith.constant dense<0.000000e+00> : vector<162xf32>
      %295 = vector.multi_reduction <add>, %294, %cst_118 [1] : vector<162x32xf32> to vector<162xf32>
      %296 = vector.shape_cast %295 : vector<162xf32> to vector<162x1xf32>
      %cst_119 = arith.constant 3.200000e+01 : f32
      %297 = vector.broadcast %cst_119 : f32 to vector<162x1xf32>
      %298 = arith.divf %296, %297 : vector<162x1xf32>
      %299 = vector.broadcast %291 : vector<162x1xf32> to vector<162x32xf32>
      %300 = arith.subf %281, %299 : vector<162x32xf32>
      %cst_120 = arith.constant 9.99999974E-6 : f32
      %301 = vector.broadcast %cst_120 : f32 to vector<162x1xf32>
      %302 = arith.addf %298, %301 : vector<162x1xf32>
      %303 = math.rsqrt %302 : vector<162x1xf32>
      %304 = vector.broadcast %303 : vector<162x1xf32> to vector<162x32xf32>
      %305 = arith.mulf %300, %304 : vector<162x32xf32>
      %306 = vector.broadcast %286 : vector<1x32xf32> to vector<162x32xf32>
      %307 = arith.mulf %305, %306 : vector<162x32xf32>
      %308 = vector.broadcast %287 : vector<1x32xf32> to vector<162x32xf32>
      %309 = arith.addf %307, %308 : vector<162x32xf32>
      %310 = arith.truncf %309 : vector<162x32xf32> to vector<162x32xbf16>
      %c0_121 = arith.constant 0 : index
      %c0_122 = arith.constant 0 : index
      %311 = vector.load %arg18[%c0_121, %c0_122] : memref<32x128xbf16, #tpu.memory_space<vmem>>, vector<32x128xbf16>
      %cst_123 = arith.constant dense<0.000000e+00> : vector<162x128xf32>
      %312 = tpu.matmul %310, %311, %cst_123 {dimension_numbers = #tpu.dot_dimension_numbers<[1], [0], [0], [1], [0, 0, 1, 1], [], []>} : vector<162x32xbf16>, vector<32x128xbf16>, vector<162x128xf32> -> vector<162x128xf32>
      %c0_124 = arith.constant 0 : index
      %c0_125 = arith.constant 0 : index
      %313 = vector.load %arg19[%c0_124, %c0_125] : memref<1x128xf32, #tpu.memory_space<vmem>>, vector<1x128xf32>
      %314 = vector.broadcast %313 : vector<1x128xf32> to vector<162x128xf32>
      %315 = arith.addf %312, %314 : vector<162x128xf32>
      %c0_126 = arith.constant 0 : index
      %c0_127 = arith.constant 0 : index
      %316 = vector.load %arg20[%c0_126, %c0_127] : memref<162x128xf32, #tpu.memory_space<vmem>>, vector<162x128xf32>
      tpu.vector_store %arg20[%c0_126, %c0_127], %315 {strides = array<i32>} : memref<162x128xf32, #tpu.memory_space<vmem>>, vector<162x128xf32>,
      %c0_128 = arith.constant 0 : index
      %c0_129 = arith.constant 0 : index
      %317 = vector.load %arg3[%c0_128, %c0_129] : memref<162x1xi32, #tpu.memory_space<vmem>>, vector<162x1xi32>
      %318 = tpu.iota {dimensions = array<i32: 1>} : vector<162x128xi32>
      %c10_i32 = arith.constant 10 : i32
      %319 = vector.broadcast %c10_i32 : i32 to vector<162x128xi32>
      %320 = arith.cmpi slt, %318, %319 : vector<162x128xi32>
      %cst_130 = arith.constant -1.000000e+30 : f32
      %321 = vector.broadcast %cst_130 : f32 to vector<162x128xf32>
      %322 = arith.select %320, %315, %321 : vector<162x128xi1>, vector<162x128xf32>
      %cst_131 = arith.constant dense<0xFF800000> : vector<162xf32>
      %323 = vector.multi_reduction <maximumf>, %322, %cst_131 [1] : vector<162x128xf32> to vector<162xf32>
      %324 = vector.shape_cast %323 : vector<162xf32> to vector<162x1xf32>
      %325 = vector.broadcast %324 : vector<162x1xf32> to vector<162x128xf32>
      %326 = arith.subf %322, %325 : vector<162x128xf32>
      %327 = math.exp %326 : vector<162x128xf32>
      %cst_132 = arith.constant 0.000000e+00 : f32
      %328 = vector.broadcast %cst_132 : f32 to vector<162x128xf32>
      %329 = arith.select %320, %327, %328 : vector<162x128xi1>, vector<162x128xf32>
      %cst_133 = arith.constant dense<0.000000e+00> : vector<162xf32>
      %330 = vector.multi_reduction <add>, %329, %cst_133 [1] : vector<162x128xf32> to vector<162xf32>
      %331 = vector.shape_cast %330 : vector<162xf32> to vector<162x1xf32>
      %332 = math.log %331 : vector<162x1xf32>
      %333 = arith.addf %332, %324 : vector<162x1xf32>
      %c0_i32_134 = arith.constant 0 : i32
      %334 = vector.broadcast %c0_i32_134 : i32 to vector<162x1xi32>
      %335 = arith.cmpi sge, %317, %334 : vector<162x1xi32>
      %c0_i32_135 = arith.constant 0 : i32
      %336 = vector.broadcast %c0_i32_135 : i32 to vector<162x1xi32>
      %337 = arith.select %335, %317, %336 : vector<162x1xi1>, vector<162x1xi32>
      %338 = vector.broadcast %337 : vector<162x1xi32> to vector<162x128xi32>
      %339 = arith.cmpi eq, %318, %338 : vector<162x128xi32>
      %cst_136 = arith.constant 0.000000e+00 : f32
      %340 = vector.broadcast %cst_136 : f32 to vector<162x128xf32>
      %341 = arith.select %339, %315, %340 : vector<162x128xi1>, vector<162x128xf32>
      %cst_137 = arith.constant dense<0.000000e+00> : vector<162xf32>
      %342 = vector.multi_reduction <add>, %341, %cst_137 [1] : vector<162x128xf32> to vector<162xf32>
      %343 = vector.shape_cast %342 : vector<162xf32> to vector<162x1xf32>
      %344 = arith.subf %333, %343 : vector<162x1xf32>
      %cst_138 = arith.constant 0.000000e+00 : f32
      %345 = vector.broadcast %cst_138 : f32 to vector<162x1xf32>
      %346 = arith.select %335, %344, %345 : vector<162x1xi1>, vector<162x1xf32>
      %347 = vector.shape_cast %346 : vector<162x1xf32> to vector<1x162x1xf32>
      %cst_139 = arith.constant dense<0.000000e+00> : vector<1xf32>
      %348 = vector.multi_reduction <add>, %347, %cst_139 [1, 2] : vector<1x162x1xf32> to vector<1xf32>
      %349 = vector.shape_cast %348 : vector<1xf32> to vector<1x1x1xf32>
      %350 = vector.extract %349[0, 0, 0] : f32 from vector<1x1x1xf32>
      %cst_140 = arith.constant 0.000000e+00 : f32
      %351 = vector.broadcast %cst_140 : f32 to vector<1x8x128xf32>
      %352 = vector.broadcast %350 : f32 to vector<1x8x128xf32>
      %353 = arith.addf %352, %351 : vector<1x8x128xf32>
      %c0_141 = arith.constant 0 : index
      %c0_142 = arith.constant 0 : index
      %c0_143 = arith.constant 0 : index
      %354 = vector.load %arg21[%c0_141, %c0_142, %c0_143] : memref<1x8x128xf32, #tpu.memory_space<vmem>>, vector<1x8x128xf32>
      tpu.vector_store %arg21[%c0_141, %c0_142, %c0_143], %353 {strides = array<i32>} : memref<1x8x128xf32, #tpu.memory_space<vmem>>, vector<1x8x128xf32>,
      %355 = arith.extui %335 : vector<162x1xi1> to vector<162x1xi32>
      %356 = arith.sitofp %355 : vector<162x1xi32> to vector<162x1xf32>
      %357 = vector.shape_cast %356 : vector<162x1xf32> to vector<1x162x1xf32>
      %cst_144 = arith.constant dense<0.000000e+00> : vector<1xf32>
      %358 = vector.multi_reduction <add>, %357, %cst_144 [1, 2] : vector<1x162x1xf32> to vector<1xf32>
      %359 = vector.shape_cast %358 : vector<1xf32> to vector<1x1x1xf32>
      %360 = vector.extract %359[0, 0, 0] : f32 from vector<1x1x1xf32>
      %cst_145 = arith.constant 0.000000e+00 : f32
      %361 = vector.broadcast %cst_145 : f32 to vector<1x8x128xf32>
      %362 = vector.broadcast %360 : f32 to vector<1x8x128xf32>
      %363 = arith.addf %362, %361 : vector<1x8x128xf32>
      %c0_146 = arith.constant 0 : index
      %c0_147 = arith.constant 0 : index
      %c0_148 = arith.constant 0 : index
      %364 = vector.load %arg22[%c0_146, %c0_147, %c0_148] : memref<1x8x128xf32, #tpu.memory_space<vmem>>, vector<1x8x128xf32>
      tpu.vector_store %arg22[%c0_146, %c0_147, %c0_148], %363 {strides = array<i32>} : memref<1x8x128xf32, #tpu.memory_space<vmem>>, vector<1x8x128xf32>,
    } else {
    }
    return
  }
  func.func @transform_0(%arg0: i32, %arg1: i32) -> (i32, i32) {
    %c0_i32 = arith.constant 0 : i32
    %c0_i32_0 = arith.constant 0 : i32
    return %arg0, %c0_i32 : i32, i32
  }
  func.func @transform_1(%arg0: i32, %arg1: i32) -> (i32, i32) {
    %c0_i32 = arith.constant 0 : i32
    %c0_i32_0 = arith.constant 0 : i32
    return %arg0, %c0_i32 : i32, i32
  }
  func.func @transform_2(%arg0: i32, %arg1: i32) -> (i32, i32, i32) {
    %c0_i32 = arith.constant 0 : i32
    %c0_i32_0 = arith.constant 0 : i32
    %c0_i32_1 = arith.constant 0 : i32
    return %arg1, %c0_i32, %c0_i32_0 : i32, i32, i32
  }
  func.func @transform_3(%arg0: i32, %arg1: i32) -> (i32, i32, i32) {
    %c0_i32 = arith.constant 0 : i32
    %c0_i32_0 = arith.constant 0 : i32
    %c0_i32_1 = arith.constant 0 : i32
    return %arg1, %c0_i32, %c0_i32_0 : i32, i32, i32
  }
  func.func @transform_4(%arg0: i32, %arg1: i32) -> (i32, i32, i32) {
    %c0_i32 = arith.constant 0 : i32
    %c0_i32_0 = arith.constant 0 : i32
    %c0_i32_1 = arith.constant 0 : i32
    return %arg1, %c0_i32, %c0_i32_0 : i32, i32, i32
  }
  func.func @transform_5(%arg0: i32, %arg1: i32) -> (i32, i32, i32) {
    %c0_i32 = arith.constant 0 : i32
    %c0_i32_0 = arith.constant 0 : i32
    %c0_i32_1 = arith.constant 0 : i32
    return %arg1, %c0_i32, %c0_i32_0 : i32, i32, i32
  }
  func.func @transform_6(%arg0: i32, %arg1: i32) -> (i32, i32, i32) {
    %c0_i32 = arith.constant 0 : i32
    %c0_i32_0 = arith.constant 0 : i32
    %c0_i32_1 = arith.constant 0 : i32
    return %arg1, %c0_i32, %c0_i32_0 : i32, i32, i32
  }
  func.func @transform_7(%arg0: i32, %arg1: i32) -> (i32, i32, i32) {
    %c0_i32 = arith.constant 0 : i32
    %c0_i32_0 = arith.constant 0 : i32
    %c0_i32_1 = arith.constant 0 : i32
    return %arg1, %c0_i32, %c0_i32_0 : i32, i32, i32
  }
  func.func @transform_8(%arg0: i32, %arg1: i32) -> (i32, i32, i32) {
    %c0_i32 = arith.constant 0 : i32
    %c0_i32_0 = arith.constant 0 : i32
    %c0_i32_1 = arith.constant 0 : i32
    return %arg1, %c0_i32, %c0_i32_0 : i32, i32, i32
  }
  func.func @transform_9(%arg0: i32, %arg1: i32) -> (i32, i32, i32) {
    %c0_i32 = arith.constant 0 : i32
    %c0_i32_0 = arith.constant 0 : i32
    %c0_i32_1 = arith.constant 0 : i32
    return %arg1, %c0_i32, %c0_i32_0 : i32, i32, i32
  }
  func.func @transform_10(%arg0: i32, %arg1: i32) -> (i32, i32, i32) {
    %c0_i32 = arith.constant 0 : i32
    %c0_i32_0 = arith.constant 0 : i32
    %c0_i32_1 = arith.constant 0 : i32
    return %arg1, %c0_i32, %c0_i32_0 : i32, i32, i32
  }
  func.func @transform_11(%arg0: i32, %arg1: i32) -> (i32, i32, i32) {
    %c0_i32 = arith.constant 0 : i32
    %c0_i32_0 = arith.constant 0 : i32
    %c0_i32_1 = arith.constant 0 : i32
    return %arg1, %c0_i32, %c0_i32_0 : i32, i32, i32
  }
  func.func @transform_12(%arg0: i32, %arg1: i32) -> (i32, i32, i32) {
    %c0_i32 = arith.constant 0 : i32
    %c0_i32_0 = arith.constant 0 : i32
    %c0_i32_1 = arith.constant 0 : i32
    return %arg1, %c0_i32, %c0_i32_0 : i32, i32, i32
  }
  func.func @transform_13(%arg0: i32, %arg1: i32) -> (i32, i32, i32) {
    %c0_i32 = arith.constant 0 : i32
    %c0_i32_0 = arith.constant 0 : i32
    %c0_i32_1 = arith.constant 0 : i32
    return %arg1, %c0_i32, %c0_i32_0 : i32, i32, i32
  }
  func.func @transform_14(%arg0: i32, %arg1: i32) -> (i32, i32) {
    %c0_i32 = arith.constant 0 : i32
    %c0_i32_0 = arith.constant 0 : i32
    %c0_i32_1 = arith.constant 0 : i32
    return %c0_i32, %c0_i32_0 : i32, i32
  }
  func.func @transform_15(%arg0: i32, %arg1: i32) -> (i32, i32) {
    %c0_i32 = arith.constant 0 : i32
    %c0_i32_0 = arith.constant 0 : i32
    %c0_i32_1 = arith.constant 0 : i32
    return %c0_i32, %c0_i32_0 : i32, i32
  }
  func.func @transform_16(%arg0: i32, %arg1: i32) -> (i32, i32) {
    %c0_i32 = arith.constant 0 : i32
    %c0_i32_0 = arith.constant 0 : i32
    %c0_i32_1 = arith.constant 0 : i32
    return %c0_i32, %c0_i32_0 : i32, i32
  }
  func.func @transform_17(%arg0: i32, %arg1: i32) -> (i32, i32) {
    %c0_i32 = arith.constant 0 : i32
    %c0_i32_0 = arith.constant 0 : i32
    %c0_i32_1 = arith.constant 0 : i32
    return %c0_i32, %c0_i32_0 : i32, i32
  }
  func.func @transform_18(%arg0: i32, %arg1: i32) -> (i32, i32) {
    %c0_i32 = arith.constant 0 : i32
    %c0_i32_0 = arith.constant 0 : i32
    return %arg0, %c0_i32 : i32, i32
  }
  func.func @transform_19(%arg0: i32, %arg1: i32) -> (i32, i32, i32) {
    %c0_i32 = arith.constant 0 : i32
    %c0_i32_0 = arith.constant 0 : i32
    %c0_i32_1 = arith.constant 0 : i32
    return %arg0, %c0_i32, %c0_i32_0 : i32, i32, i32
  }
  func.func @transform_20(%arg0: i32, %arg1: i32) -> (i32, i32, i32) {
    %c0_i32 = arith.constant 0 : i32
    %c0_i32_0 = arith.constant 0 : i32
    %c0_i32_1 = arith.constant 0 : i32
    return %arg0, %c0_i32, %c0_i32_0 : i32, i32, i32
  }
}

</mosaic_0001>

<bundles_post_ra>
// kernel: tpu_custom_call.1
= control target key start
LH: loop header
LB: loop body
LE: loop exit
PB: predicated region body
PF: predicated region fallthrough
CT: control target
= control target key end

     0   :  { %s13770_s0 = inlined_call_operand.vmem [shape: f32[162,32], index: 0, kind: input, shape index: {}]   ;;  %s13771_s1 = inlined_call_operand.vmem [shape: s32[162,1], index: 1, kind: input, shape index: {}]   ;;  %s13772_s2 = inlined_call_operand.vmem [shape: f32[2,1,32], index: 2, kind: input, shape index: {}]   ;;  %s13773_s3 = inlined_call_operand.vmem [shape: f32[2,1,32], index: 3, kind: input, shape index: {}]   ;;  %s13774_s4 = inlined_call_operand.vmem [shape: bf16[2,32,96], index: 4, kind: input, shape index: {}]   ;;  %s13775_s5 = inlined_call_operand.vmem [shape: f32[2,1,96], index: 5, kind: input, shape index: {}]   ;;  %s13776_s6 = inlined_call_operand.vmem [shape: bf16[2,32,32], index: 6, kind: input, shape index: {}]   ;;  %s13777_s7 = inlined_call_operand.vmem [shape: f32[2,1,32], index: 7, kind: input, shape index: {}]   ;;  %s13778_s8 = inlined_call_operand.vmem [shape: f32[2,1,32], index: 8, kind: input, shape index: {}]   ;;  %s13779_s9 = inlined_call_operand.vmem [shape: f32[2,1,32], index: 9, kind: input, shape index: {}]   ;;  %s13780_s10 = inlined_call_operand.vmem [shape: bf16[2,32,128], index: 10, kind: input, shape index: {}]   ;;  %s13781_s11 = inlined_call_operand.vmem [shape: f32[2,1,128], index: 11, kind: input, shape index: {}]   ;;  %s13782_s12 = inlined_call_operand.vmem [shape: bf16[2,128,32], index: 12, kind: input, shape index: {}]   ;;  %s13783_s13 = inlined_call_operand.vmem [shape: f32[2,1,32], index: 13, kind: input, shape index: {}]   ;;  %s13784_s14 = inlined_call_operand.vmem [shape: f32[1,32], index: 14, kind: input, shape index: {}]   ;;  %s13785_s15 = inlined_call_operand.vmem [shape: f32[1,32], index: 15, kind: input, shape index: {}]   ;;  %s13786_s16 = inlined_call_operand.vmem [shape: bf16[32,128], index: 16, kind: input, shape index: {}]   ;;  %s13787_s17 = inlined_call_operand.vmem [shape: f32[1,128], index: 17, kind: input, shape index: {}]   ;;  %s13788_s18 = inlined_call_operand.hbm [shape: f32[162,128], index: 18, kind: output, shape index: {0}]   ;;  %s13789_s19 = inlined_call_operand.hbm [shape: f32[1,8,128], index: 19, kind: output, shape index: {1}]   ;;  %s13790_s20 = inlined_call_operand.hbm [shape: f32[1,8,128], index: 20, kind: output, shape index: {2}]  }
   0x1   :  { %13844 = sst [smem:[#allocation55_spill]] %s13770_s0 }
   0x2   :  { %13845 = sst [smem:[#allocation56_spill]] %s13771_s1 }
   0x3   :  { %13846 = sst [smem:[#allocation57_spill]] %s13772_s2 }
   0x4   :  { %13847 = sst [smem:[#allocation58_spill]] %s13773_s3 }
   0x5   :  { %13848 = sst [smem:[#allocation59_spill]] %s13774_s4 }
   0x6   :  { %13849 = sst [smem:[#allocation60_spill]] %s13776_s6 }
   0x7   :  { %13850 = sst [smem:[#allocation61_spill]] %s13785_s15 }
   0x8   :  { %13851 = sst [smem:[#allocation62_spill]] %s13787_s17 }
   0x9   :  { %13852 = sst [smem:[#allocation63_spill]] %s13788_s18 }
   0xa   :  { %13853 = sst [smem:[#allocation64_spill]] %s13789_s19 }
   0xb   :  { %13854 = sst [smem:[#allocation65_spill]] %s13790_s20 }
   0xc   :  { %26 = vsyncpa [#allocation5], 0 }
   0xd   :  { %27 = vsyncpa [#allocation7], 0  ;;  %s9784_s1 = smov 0   ;;  %s9786_s22 = smov 0  }
   0xe   :  { %s9788_s23 = smov 0  }
   0xf LB: > { %13855 = sst [smem:[#allocation11_spill]] %s9649_s22  ;;  %s42_s2 = sadd.s32 1, %s9649_s22  ;;  %s9653_s23 = sphi %s9788_s23, %s33_s23   ;;  %s9649_s22 = sphi %s9786_s22, %s14012_s22   ;;  %s9645_s1 = sphi %s9784_s1, %s14011_s1  }
  0x10   : > { %13856 = sst [smem:[#allocation12_spill]] %s9653_s23  ;;  %p43_p0 = scmp.ge.s32.totalorder %s42_s2, 2 }
  0x11   : > { %p7676_p1 = scmp.ge.s32.totalorder %s9653_s23, 1  ;;  %p697_p2 = scmp.lt.s32.totalorder %s9653_s23, 3 }
  0x12   : > { %s14014_s2 = smov (%p43_p0, %s42_s2), 0 }
  0x13   : > { %13857 = sst [smem:[#allocation13_spill]] %s14014_s2  ;;  %p698_p3 = pnand %p7676_p1, %p697_p2 }
  0x15   : > { %701 = sbr.rel (%p698_p3) target bundleno = 6927 (0x1b0f), region = 92 }
  0x1a   : > { %p811_p4 = scmp.lt.s32.totalorder %s9645_s1, 1  ;;  %s13860_s20 = sld [smem:[#allocation59_spill]] }
  0x1b   : > { %s13861_s6 = sld [smem:[#allocation60_spill]]  ;;  %p7685_p5 = scmp.ne.s32.totalorder %s9645_s1, 0 }
  0x1c   : > { %s9807_s25 = scalar_select %p811_p4, %s9645_s1, 1 }
  0x1d   : > { %s13862_s3 = sld [smem:[#allocation55_spill]] (!%p7685_p5) }
  0x1e   : > { %s7883_s21 = sshll.u32 %s9807_s25, 4  ;;  %s835_s0 = scalar_lea.vmem %s13778_s8, %s9807_s25 }
  0x1f   : > { %s838_s22 = scalar_lea.vmem %s13779_s9, %s9807_s25  ;;  %s9847_s26 = scalar_lea.vmem %s13780_s10, %s7883_s21 }
  0x20   : > { %s9825_s18 = scalar_lea.vmem %s13860_s20, %s7883_s21  ;;  %s7886_s15 = sshll.u32 %s9807_s25, 6 }
  0x21   : > { %s9830_s17 = scalar_lea.vmem %s13861_s6, %s7883_s21  ;;  %s846_s6 = scalar_lea.vmem %s13781_s11, %s9807_s25 }
  0x22   : > { %s9857_s4 = scalar_lea.vmem %s13782_s12, %s7886_s15  ;;  %s854_s24 = scalar_lea.vmem %s13783_s13, %s9807_s25 }
  0x23   : > { %860 = sbr.rel (%p7685_p5) target bundleno = 52 (0x34), region = 96 }
  0x28   : > { %v861_v0 = vld [vmem:[%s13862_s3] sm:$0xff]  ;;  %vm882_vm0 = vcmask 261120   ;;  %v862_v1 = vld [vmem:[%s13862_s3 + $0x8] sm:$0xff]  ;;  %v863_v2 = vld [vmem:[%s13862_s3 + $0x10] sm:$0xff]  ;;  %vm903_vm1 = vcmask 254976  }
  0x29   : > { %883 = vst.msk [vmem:[#allocation2] sm:$0xff] %vm882_vm0, %v861_v0  ;;  %884 = vst.msk [vmem:[#allocation2 + $0x8] sm:$0xff] %vm882_vm0, %v862_v1  ;;  %v864_v3 = vld [vmem:[%s13862_s3 + $0x18] sm:$0xff]  ;;  %v865_v4 = vld [vmem:[%s13862_s3 + $0x20] sm:$0xff] }
  0x2a   : > { %885 = vst.msk [vmem:[#allocation2 + $0x10] sm:$0xff] %vm882_vm0, %v863_v2  ;;  %v866_v5 = vld [vmem:[%s13862_s3 + $0x28] sm:$0xff]  ;;  %886 = vst.msk [vmem:[#allocation2 + $0x18] sm:$0xff] %vm882_vm0, %v864_v3  ;;  %v867_v6 = vld [vmem:[%s13862_s3 + $0x30] sm:$0xff] }
  0x2b   : > { %887 = vst.msk [vmem:[#allocation2 + $0x20] sm:$0xff] %vm882_vm0, %v865_v4  ;;  %888 = vst.msk [vmem:[#allocation2 + $0x28] sm:$0xff] %vm882_vm0, %v866_v5  ;;  %v868_v7 = vld [vmem:[%s13862_s3 + $0x38] sm:$0xff]  ;;  %v869_v8 = vld [vmem:[%s13862_s3 + $0x40] sm:$0xff] }
  0x2c   : > { %889 = vst.msk [vmem:[#allocation2 + $0x30] sm:$0xff] %vm882_vm0, %v867_v6  ;;  %890 = vst.msk [vmem:[#allocation2 + $0x38] sm:$0xff] %vm882_vm0, %v868_v7  ;;  %v870_v9 = vld [vmem:[%s13862_s3 + $0x48] sm:$0xff]  ;;  %v871_v10 = vld [vmem:[%s13862_s3 + $0x50] sm:$0xff] }
  0x2d   : > { %891 = vst.msk [vmem:[#allocation2 + $0x40] sm:$0xff] %vm882_vm0, %v869_v8  ;;  %v872_v11 = vld [vmem:[%s13862_s3 + $0x58] sm:$0xff]  ;;  %892 = vst.msk [vmem:[#allocation2 + $0x48] sm:$0xff] %vm882_vm0, %v870_v9  ;;  %v873_v12 = vld [vmem:[%s13862_s3 + $0x60] sm:$0xff] }
  0x2e   : > { %893 = vst.msk [vmem:[#allocation2 + $0x50] sm:$0xff] %vm882_vm0, %v871_v10  ;;  %894 = vst.msk [vmem:[#allocation2 + $0x58] sm:$0xff] %vm882_vm0, %v872_v11  ;;  %v874_v13 = vld [vmem:[%s13862_s3 + $0x68] sm:$0xff]  ;;  %v875_v14 = vld [vmem:[%s13862_s3 + $0x70] sm:$0xff] }
  0x2f   : > { %895 = vst.msk [vmem:[#allocation2 + $0x60] sm:$0xff] %vm882_vm0, %v873_v12  ;;  %896 = vst.msk [vmem:[#allocation2 + $0x68] sm:$0xff] %vm882_vm0, %v874_v13  ;;  %v876_v15 = vld [vmem:[%s13862_s3 + $0x78] sm:$0xff]  ;;  %v877_v16 = vld [vmem:[%s13862_s3 + $0x80] sm:$0xff] }
  0x30   : > { %897 = vst.msk [vmem:[#allocation2 + $0x70] sm:$0xff] %vm882_vm0, %v875_v14  ;;  %v878_v17 = vld [vmem:[%s13862_s3 + $0x88] sm:$0xff]  ;;  %898 = vst.msk [vmem:[#allocation2 + $0x78] sm:$0xff] %vm882_vm0, %v876_v15  ;;  %v879_v18 = vld [vmem:[%s13862_s3 + $0x90] sm:$0xff] }
  0x31   : > { %899 = vst.msk [vmem:[#allocation2 + $0x80] sm:$0xff] %vm882_vm0, %v877_v16  ;;  %900 = vst.msk [vmem:[#allocation2 + $0x88] sm:$0xff] %vm882_vm0, %v878_v17  ;;  %v880_v19 = vld [vmem:[%s13862_s3 + $0x98] sm:$0xff]  ;;  %v881_v20 = vld [vmem:[%s13862_s3 + $0xa0] sm:$0x3] }
  0x32   : > { %901 = vst.msk [vmem:[#allocation2 + $0x90] sm:$0xff] %vm882_vm0, %v879_v18  ;;  %902 = vst.msk [vmem:[#allocation2 + $0x98] sm:$0xff] %vm882_vm0, %v880_v19 }
  0x33   : > { %904 = vst.msk [vmem:[#allocation2 + $0xa0] sm:$0x3] %vm903_vm1, %v881_v20 }
  0x34 PF: > { %v905_v21 = vld [vmem:[#allocation2] sm:$0xff]  ;;  %vm928_vm2 = vcmask 261120   ;;  %v907_v22 = vld [vmem:[#allocation2 + $0x10] sm:$0xff]  ;;  %v906_v23 = vld [vmem:[#allocation2 + $0x8] sm:$0xff]  ;;  %vm9656_vm3 = vmmov 0   ;;  %vm989_vm4 = vcmask 254976   ;;  %s13867_s21 = scalar_lea.vmem %s13775_s5, %s9807_s25 }
  0x35   : > { %v929_v24 = vsel %vm928_vm2, %v905_v21, 0.0  ;;  %v935_v25 = vsel %vm928_vm2, %v907_v22, 0.0  ;;  %v908_v26 = vld [vmem:[#allocation2 + $0x18] sm:$0xff]  ;;  %v909_v27 = vld [vmem:[#allocation2 + $0x20] sm:$0xff]  ;;  %v910_v28 = vld [vmem:[#allocation2 + $0x28] sm:$0xff]  ;;  %v932_v31 = vsel %vm928_vm2, %v906_v23, 0.0 }
  0x36   : > { %930 = vadd.xlane.f32.xlu0 %v929_v24  ;;  %936 = vadd.xlane.f32.xlu1 %v935_v25  ;;  %v911_v29 = vld [vmem:[#allocation2 + $0x30] sm:$0xff]  ;;  %v912_v30 = vld [vmem:[#allocation2 + $0x38] sm:$0xff]  ;;  %v938_v32 = vsel %vm928_vm2, %v908_v26, 0.0  ;;  %v941_v33 = vsel %vm928_vm2, %v909_v27, 0.0  ;;  %v944_v34 = vsel %vm928_vm2, %v910_v28, 0.0  ;;  %v913_v37 = vld [vmem:[#allocation2 + $0x40] sm:$0xff] }
  0x37   : > { %v947_v35 = vsel %vm928_vm2, %v911_v29, 0.0  ;;  %v950_v36 = vsel %vm928_vm2, %v912_v30, 0.0  ;;  %v914_v38 = vld [vmem:[#allocation2 + $0x48] sm:$0xff]  ;;  %v953_v39 = vsel %vm928_vm2, %v913_v37, 0.0  ;;  %v9957_v41 = vld [vmem:[#allocation2 + $0x50] sm:$0xff]  ;;  %v9959_v42 = vld [vmem:[#allocation2 + $0x58] sm:$0xff] }
  0x38   : > { %v956_v40 = vsel %vm928_vm2, %v914_v38, 0.0  ;;  %v959_v43 = vsel %vm928_vm2, %v9957_v41, 0.0  ;;  %v962_v44 = vsel %vm928_vm2, %v9959_v42, 0.0  ;;  %s13863_s19 = sld [smem:[#allocation57_spill]]  ;;  %s9658_s20 = smov 96   ;;  %vm1469_vm5 = vcmask 64512  }
  0x39   : > { %s13865_s27 = sld [smem:[#allocation58_spill]]  ;;  %s9661_s28 = smov 112   ;;  %vm3224_vm6 = vsmask.f32 7424  ;;  %vm1761_vm7 = vcmask 1040384   ;;  %vm1597_vm8 = vcmask 662528  }
  0x3a   : > { %933 = vadd.xlane.f32.xlu0 %v932_v31  ;;  %939 = vadd.xlane.f32.xlu1 %v938_v32  ;;  %s9662_s15 = smov 64   ;;  %vm1628_vm9 = vcmask 655360   ;;  %s9666_s30 = smov 72   ;;  %vm1857_vm10 = vcmask 57344   ;;  %vm2299_vm11 = vcmask 130112   ;;  %vm2752_vm12 = vcmask 195712  }
  0x3b   : > { %s9667_s2 = smov 104   ;;  %vm3205_vm13 = vcmask 261312   ;;  %vm2310_vm14 = vcmask 122944   ;;  %vm2763_vm15 = vcmask 188544   ;;  %vm3216_vm0 = vcmask 254144   ;;  %p7837_p6 = scmp.ne.s32.totalorder %s9645_s1, 1 }
  0x3e   : > { %942 = vadd.xlane.f32.xlu0 %v941_v33  ;;  %945 = vadd.xlane.f32.xlu1 %v944_v34  ;;  %s13864_s23 = scalar_lea.vmem %s13863_s19, %s9807_s25  ;;  %s9659_s19 = smov 120  }
  0x3f   : > { %s13866_s29 = scalar_lea.vmem %s13865_s27, %s9807_s25  ;;  %s9663_s27 = smov 56  }
  0x42   : > { %948 = vadd.xlane.f32.xlu0 %v947_v35  ;;  %951 = vadd.xlane.f32.xlu1 %v950_v36 }
  0x46   : > { %954 = vadd.xlane.f32.xlu0 %v953_v39  ;;  %957 = vadd.xlane.f32.xlu1 %v956_v40  ;;  %v10025_v39 = vld [vmem:[#allocation2 + $0x60] sm:$0xff] }
  0x4a   : > { %960 = vadd.xlane.f32.xlu0 %v959_v43  ;;  %963 = vadd.xlane.f32.xlu1 %v962_v44  ;;  %v10031_v43 = vld [vmem:[#allocation2 + $0x68] sm:$0xff]  ;;  %v10033_v44 = vld [vmem:[#allocation2 + $0x70] sm:$0xff] }
  0xbf   : > { %v931_v45 = vpop.xlane.xlu0 %930  ;;  %v937_v46 = vpop.xlane.xlu1 %936 }
  0xc0   : > { %v994_v47 = vmul.f32 0.03125, %v931_v45  ;;  %v996_v48 = vmul.f32 0.03125, %v937_v46  ;;  %v968_v45 = vsel %vm928_vm2, %v10031_v43, 0.0  ;;  %v971_v46 = vsel %vm928_vm2, %v10033_v44, 0.0 }
  0xc2   : > { %v9965_v49 = vsub.f32 %v905_v21, %v994_v47  ;;  %v9967_v50 = vsub.f32 %v907_v22, %v996_v48  ;;  %v10039_v47 = vld [vmem:[#allocation2 + $0x78] sm:$0xff]  ;;  %v10041_v48 = vld [vmem:[#allocation2 + $0x80] sm:$0xff] }
  0xc3   : > { %v934_v51 = vpop.xlane.xlu0 %933  ;;  %v940_v52 = vpop.xlane.xlu1 %939 }
  0xc4   : > { %v995_v53 = vmul.f32 0.03125, %v934_v51  ;;  %v997_v54 = vmul.f32 0.03125, %v940_v52  ;;  %v1036_v55 = vmul.f32 %v9965_v49, %v9965_v49  ;;  %v1038_v56 = vmul.f32 %v9967_v50, %v9967_v50 }
  0xc5   : > { %v974_v51 = vsel %vm928_vm2, %v10039_v47, 0.0  ;;  %v977_v52 = vsel %vm928_vm2, %v10041_v48, 0.0 }
  0xc6   : > { %v9973_v57 = vsub.f32 %v906_v23, %v995_v53  ;;  %v9975_v58 = vsub.f32 %v908_v26, %v997_v54  ;;  %v1057_v59 = vsel %vm928_vm2, %v1036_v55, 0.0  ;;  %v1063_v62 = vsel %vm928_vm2, %v1038_v56, 0.0  ;;  %v10047_v53 = vld [vmem:[#allocation2 + $0x88] sm:$0xff]  ;;  %v10049_v54 = vld [vmem:[#allocation2 + $0x90] sm:$0xff] }
  0xc7   : > { %1058 = vadd.xlane.f32.xlu0 %v1057_v59  ;;  %v943_v60 = vpop.xlane.xlu0 %942  ;;  %v946_v61 = vpop.xlane.xlu1 %945  ;;  %v8908_v55 = vld [vmem:[%s9825_s18 + $0x8] sm:$0xff]   ;;  %v980_v56 = vsel %vm928_vm2, %v10047_v53, 0.0  ;;  %v983_v59 = vsel %vm928_vm2, %v10049_v54, 0.0 }
  0xc8   : > { %v998_v63 = vmul.f32 0.03125, %v943_v60  ;;  %v999_v0 = vmul.f32 0.03125, %v946_v61  ;;  %v1037_v1 = vmul.f32 %v9973_v57, %v9973_v57  ;;  %v1039_v2 = vmul.f32 %v9975_v58, %v9975_v58  ;;  %v10057_v61 = vld [vmem:[#allocation2 + $0x98] sm:$0xff] }
  0xc9   : > { %v13795_v60 = vmov 0.0  }
  0xca   : > { %v9983_v3 = vsub.f32 %v909_v27, %v998_v63  ;;  %v9985_v4 = vsub.f32 %v910_v28, %v999_v0  ;;  %v1060_v5 = vsel %vm928_vm2, %v1037_v1, 0.0  ;;  %v1066_v8 = vsel %vm928_vm2, %v1039_v2, 0.0  ;;  %8150 = vmatprep.subr.bf16.mxu1 %v13795_v60  ;;  %8154 = vmatprep.mubr.msk.bf16.mxu1 %vm9656_vm3, %v13795_v60  ;;  %v10065_v0 = vld [vmem:[#allocation2 + $0xa0] sm:$0x3] }
  0xcb   : > { %1064 = vadd.xlane.f32.xlu0 %v1063_v62  ;;  %1061 = vadd.xlane.f32.xlu1 %v1060_v5  ;;  %v949_v6 = vpop.xlane.xlu0 %948  ;;  %v952_v7 = vpop.xlane.xlu1 %951  ;;  %v8909_v62 = vld [vmem:[%s9825_s18] sm:$0xff]   ;;  %v986_v63 = vsel %vm928_vm2, %v10057_v61, 0.0  ;;  %v990_v1 = vsel %vm989_vm4, %v10065_v0, 0.0  ;;  %s9657_s18 = smov 88  }
  0xcc   : > { %v1000_v9 = vmul.f32 0.03125, %v949_v6  ;;  %v1001_v10 = vmul.f32 0.03125, %v952_v7  ;;  %v1040_v11 = vmul.f32 %v9983_v3, %v9983_v3  ;;  %v1041_v12 = vmul.f32 %v9985_v4, %v9985_v4  ;;  %8151 = vmatpush3.bf16.msra.mxu1 %v8908_v55 }
  0xcd   : > { %8152 = vmatprep.subr.bf16.mxu1 %v13795_v60 }
  0xce   : > { %v9993_v13 = vsub.f32 %v911_v29, %v1000_v9  ;;  %v9995_v14 = vsub.f32 %v912_v30, %v1001_v10  ;;  %v1069_v15 = vsel %vm928_vm2, %v1040_v11, 0.0  ;;  %v1072_v18 = vsel %vm928_vm2, %v1041_v12, 0.0 }
  0xcf   : > { %1067 = vadd.xlane.f32.xlu1 %v1066_v8  ;;  %1070 = vadd.xlane.f32.xlu0 %v1069_v15  ;;  %v955_v16 = vpop.xlane.xlu0 %954  ;;  %v958_v17 = vpop.xlane.xlu1 %957 }
  0xd0   : > { %v1002_v19 = vmul.f32 0.03125, %v955_v16  ;;  %v1003_v20 = vmul.f32 0.03125, %v958_v17  ;;  %v1042_v21 = vmul.f32 %v9993_v13, %v9993_v13  ;;  %v1043_v22 = vmul.f32 %v9995_v14, %v9995_v14  ;;  %8153 = vmatpush3.bf16.msra.mxu1 %v8909_v62 }
  0xd2   : > { %v10003_v23 = vsub.f32 %v913_v37, %v1002_v19  ;;  %v10005_v24 = vsub.f32 %v914_v38, %v1003_v20  ;;  %v1075_v25 = vsel %vm928_vm2, %v1042_v21, 0.0  ;;  %v1078_v28 = vsel %vm928_vm2, %v1043_v22, 0.0 }
  0xd3   : > { %1073 = vadd.xlane.f32.xlu1 %v1072_v18  ;;  %1076 = vadd.xlane.f32.xlu0 %v1075_v25  ;;  %v961_v26 = vpop.xlane.xlu0 %960  ;;  %v964_v27 = vpop.xlane.xlu1 %963 }
  0xd4   : > { %v1004_v29 = vmul.f32 0.03125, %v961_v26  ;;  %v1005_v30 = vmul.f32 0.03125, %v964_v27  ;;  %v1044_v31 = vmul.f32 %v10003_v23, %v10003_v23  ;;  %v1045_v32 = vmul.f32 %v10005_v24, %v10005_v24 }
  0xd6   : > { %v10014_v33 = vsub.f32 %v9957_v41, %v1004_v29  ;;  %v10017_v34 = vsub.f32 %v9959_v42, %v1005_v30  ;;  %v1081_v35 = vsel %vm928_vm2, %v1044_v31, 0.0  ;;  %v1084_v36 = vsel %vm928_vm2, %v1045_v32, 0.0  ;;  %v10074_v32 = vld [vmem:[%s13864_s23] ss:$0 sm:$0xff]  ;;  %s9660_s23 = smov 80  }
  0xd7   : > { %1079 = vadd.xlane.f32.xlu1 %v1078_v28  ;;  %1082 = vadd.xlane.f32.xlu0 %v1081_v35  ;;  %v965_v42 = vsel %vm928_vm2, %v10025_v39, 0.0 }
  0xd8   : > { %v1046_v37 = vmul.f32 %v10014_v33, %v10014_v33  ;;  %v1047_v38 = vmul.f32 %v10017_v34, %v10017_v34 }
  0xda   : > { %v1087_v40 = vsel %vm928_vm2, %v1046_v37, 0.0  ;;  %v1090_v41 = vsel %vm928_vm2, %v1047_v38, 0.0 }
  0xdb   : > { %1085 = vadd.xlane.f32.xlu1 %v1084_v36  ;;  %1088 = vadd.xlane.f32.xlu0 %v1087_v40 }
  0xdf   : > { %1091 = vadd.xlane.f32.xlu1 %v1090_v41  ;;  %966 = vadd.xlane.f32.xlu0 %v965_v42 }
  0xe3   : > { %969 = vadd.xlane.f32.xlu1 %v968_v45  ;;  %972 = vadd.xlane.f32.xlu0 %v971_v46  ;;  %v10083_v45 = vld [vmem:[%s13866_s29] ss:$0 sm:$0xff]  ;;  %s9664_s29 = smov 48  }
  0xe7   : > { %975 = vadd.xlane.f32.xlu1 %v974_v51  ;;  %978 = vadd.xlane.f32.xlu0 %v977_v52 }
  0xeb   : > { %981 = vadd.xlane.f32.xlu1 %v980_v56  ;;  %984 = vadd.xlane.f32.xlu0 %v983_v59 }
  0xef   : > { %987 = vadd.xlane.f32.xlu1 %v986_v63  ;;  %991 = vadd.xlane.f32.xlu0 %v990_v1 }
 0x150   : > { %v1059_v2 = vpop.xlane.xlu0 %1058 }
 0x151   : > { %v1120_v5 = vmul.f32 0.03125, %v1059_v2 }
 0x153   : > { %v1141_v6 = vadd.f32 1e-05, %v1120_v5 }
 0x154   : > { %v1062_v7 = vpop.xlane.xlu1 %1061  ;;  %v1065_v8 = vpop.xlane.xlu0 %1064 }
 0x155   : > { %8922 = vrsqrt.f32 %v1141_v6  ;;  %v1121_v9 = vmul.f32 0.03125, %v1062_v7  ;;  %v1122_v10 = vmul.f32 0.03125, %v1065_v8 }
 0x157   : > { %v1142_v11 = vadd.f32 1e-05, %v1121_v9  ;;  %v1143_v12 = vadd.f32 1e-05, %v1122_v10 }
 0x158   : > { %v1068_v15 = vpop.xlane.xlu1 %1067  ;;  %v1071_v16 = vpop.xlane.xlu0 %1070 }
 0x159   : > { %8924 = vrsqrt.f32 %v1142_v11  ;;  %v1123_v17 = vmul.f32 0.03125, %v1068_v15  ;;  %v1124_v19 = vmul.f32 0.03125, %v1071_v16 }
 0x15a   : > { %8926 = vrsqrt.f32 %v1143_v12 }
 0x15b   : > { %v1144_v18 = vadd.f32 1e-05, %v1123_v17  ;;  %v1145_v25 = vadd.f32 1e-05, %v1124_v19 }
 0x15c   : > { %v1074_v20 = vpop.xlane.xlu1 %1073  ;;  %v1077_v21 = vpop.xlane.xlu0 %1076 }
 0x15d   : > { %8928 = vrsqrt.f32 %v1144_v18  ;;  %v1125_v22 = vmul.f32 0.03125, %v1074_v20  ;;  %v1126_v31 = vmul.f32 0.03125, %v1077_v21 }
 0x15f   : > { %v1146_v26 = vadd.f32 1e-05, %v1125_v22  ;;  %v1147_v41 = vadd.f32 1e-05, %v1126_v31 }
 0x160   : > { %v1080_v27 = vpop.xlane.xlu1 %1079  ;;  %v1083_v28 = vpop.xlane.xlu0 %1082 }
 0x161   : > { %8930 = vrsqrt.f32 %v1146_v26  ;;  %v1127_v29 = vmul.f32 0.03125, %v1080_v27  ;;  %v1128_v63 = vmul.f32 0.03125, %v1083_v28 }
 0x162   : > { %v8923_v30 = vpop.eup %8922  ;;  %8932 = vrsqrt.f32 %v1145_v25 }
 0x163   : > { %v1183_v35 = vmul.f32 %v8923_v30, %v9965_v49  ;;  %v1148_v38 = vadd.f32 1e-05, %v1127_v29  ;;  %v1149_v16 = vadd.f32 1e-05, %v1128_v63 }
 0x164   : > { %v1086_v36 = vpop.xlane.xlu1 %1085  ;;  %v1089_v37 = vpop.xlane.xlu0 %1088 }
 0x165   : > { %v1210_v42 = vmul.f32 %v10074_v32, %v1183_v35  ;;  %v1129_v52 = vmul.f32 0.03125, %v1086_v36  ;;  %8934 = vrsqrt.f32 %v1148_v38  ;;  %v1130_v29 = vmul.f32 0.03125, %v1089_v37 }
 0x166   : > { %v8925_v40 = vpop.eup %8924  ;;  %8936 = vrsqrt.f32 %v1147_v41 }
 0x167   : > { %v1184_v46 = vmul.f32 %v8925_v40, %v9973_v57  ;;  %v8927_v51 = vpop.eup %8926  ;;  %v1237_v1 = vadd.f32 %v10083_v45, %v1210_v42  ;;  %v1150_v7 = vadd.f32 1e-05, %v1129_v52 }
 0x168   : > { %v1092_v55 = vpop.xlane.xlu1 %1091  ;;  %v967_v56 = vpop.xlane.xlu0 %966  ;;  %v1185_v57 = vmul.f32 %v8927_v51, %v9967_v50 }
 0x169   : > { %v1006_v49 = vmul.f32 0.03125, %v967_v56  ;;  %v1211_v59 = vmul.f32 %v10074_v32, %v1184_v46  ;;  %8938 = vrsqrt.f32 %v1150_v7  ;;  %v1131_v20 = vmul.f32 0.03125, %v1092_v55 }
 0x16a   : > { %v8929_v62 = vpop.eup %8928  ;;  %8940 = vrsqrt.f32 %v1149_v16 }
 0x16b   : > { %v10089_v2 = vsub.f32 %v10025_v39, %v1006_v49  ;;  %v1238_v5 = vadd.f32 %v10083_v45, %v1211_v59  ;;  %v1186_v6 = vmul.f32 %v8929_v62, %v9975_v58  ;;  %v1212_v58 = vmul.f32 %v10074_v32, %v1185_v57 }
 0x16c   : > { %v970_v8 = vpop.xlane.xlu1 %969  ;;  %v973_v9 = vpop.xlane.xlu0 %972  ;;  %v1152_v40 = vadd.f32 1e-05, %v1131_v20 }
 0x16d   : > { %v1007_v10 = vmul.f32 0.03125, %v970_v8  ;;  %v1258_v11 = vpack.c.bf16 %v1238_v5, %v1237_v1  ;;  %v1048_v12 = vmul.f32 %v10089_v2, %v10089_v2  ;;  %v1213_v17 = vmul.f32 %v10074_v32, %v1186_v6 }
 0x16e   : > { %v8931_v15 = vpop.eup %8930  ;;  %v1008_v39 = vmul.f32 0.03125, %v973_v9  ;;  %8942 = vrsqrt.f32 %v1152_v40 }
 0x16f   : > { %v10098_v18 = vsub.f32 %v10031_v43, %v1007_v10  ;;  %8155 = vmatmul.mubr.msk.bf16.vlgmr.msra.gmra.mxu1 %vm928_vm2, %v1258_v11  ;;  %v1093_v50 = vsel %vm928_vm2, %v1048_v12, 0.0  ;;  %v8933_v19 = vpop.eup %8932  ;;  %v1240_v26 = vadd.f32 %v10083_v45, %v1213_v17  ;;  %v1188_v27 = vmul.f32 %v8931_v15, %v9985_v4 }
 0x170   : > { %1094 = vadd.xlane.f32.xlu1 %v1093_v50  ;;  %8158 = vmatprep.mubr.msk.bf16.mxu1 %vm9656_vm3, %v13795_v60  ;;  %v976_v21 = vpop.xlane.xlu1 %975  ;;  %v10106_v22 = vsub.f32 %v10033_v44, %v1008_v39  ;;  %v979_v25 = vpop.xlane.xlu0 %978  ;;  %v1239_v44 = vadd.f32 %v10083_v45, %v1212_v58  ;;  %v1187_v36 = vmul.f32 %v8933_v19, %v9983_v3 }
 0x171   : > { %v1049_v43 = vmul.f32 %v10098_v18, %v10098_v18  ;;  %v1009_v28 = vmul.f32 0.03125, %v976_v21  ;;  %v1010_v31 = vmul.f32 0.03125, %v979_v25  ;;  %v1215_v51 = vmul.f32 %v10074_v32, %v1188_v27 }
 0x172   : > { %v1050_v30 = vmul.f32 %v10106_v22, %v10106_v22  ;;  %v1259_v46 = vpack.c.bf16 %v1240_v26, %v1239_v44  ;;  %v8935_v3 = vpop.eup %8934 }
 0x173   : > { %v1096_v35 = vsel %vm928_vm2, %v1049_v43, 0.0  ;;  %v10118_v38 = vsub.f32 %v10039_v47, %v1009_v28  ;;  %v10122_v37 = vsub.f32 %v10041_v48, %v1010_v31  ;;  %v1151_v47 = vadd.f32 1e-05, %v1130_v29  ;;  %v8937_v59 = vpop.eup %8936 }
 0x174   : > { %1097 = vadd.xlane.f32.xlu0 %v1096_v35  ;;  %v982_v41 = vpop.xlane.xlu1 %981  ;;  %v1099_v4 = vsel %vm928_vm2, %v1050_v30, 0.0  ;;  %v985_v42 = vpop.xlane.xlu0 %984  ;;  %v1214_v48 = vmul.f32 %v10074_v32, %v1187_v36  ;;  %v1242_v6 = vadd.f32 %v10083_v45, %v1215_v51  ;;  %v1190_v7 = vmul.f32 %v8935_v3, %v9995_v14 }
 0x175   : > { %v1011_v52 = vmul.f32 0.03125, %v982_v41  ;;  %v1051_v55 = vmul.f32 %v10118_v38, %v10118_v38  ;;  %1100 = vadd.xlane.f32.xlu1 %v1099_v4  ;;  %v1052_v56 = vmul.f32 %v10122_v37, %v10122_v37  ;;  %v1012_v49 = vmul.f32 0.03125, %v985_v42 }
 0x176   : > { %8944 = vrsqrt.f32 %v1151_v47  ;;  %v1241_v10 = vadd.f32 %v10083_v45, %v1214_v48  ;;  %v1189_v11 = vmul.f32 %v8937_v59, %v9993_v13  ;;  %v8939_v15 = vpop.eup %8938  ;;  %v1217_v17 = vmul.f32 %v10074_v32, %v1190_v7 }
 0x177   : > { %8159 = vmatmul.mubr.msk.bf16.gmra.mxu1 %vm928_vm2, %v1259_v46  ;;  %v10132_v62 = vsub.f32 %v10047_v53, %v1011_v52  ;;  %v1102_v63 = vsel %vm928_vm2, %v1051_v55, 0.0  ;;  %v1105_v5 = vsel %vm928_vm2, %v1052_v56, 0.0  ;;  %v10139_v57 = vsub.f32 %v10049_v54, %v1012_v49  ;;  %v8941_v50 = vpop.eup %8940 }
 0x178   : > { %8162 = vmatprep.mubr.msk.bf16.mxu1 %vm9656_vm3, %v13795_v60  ;;  %1103 = vadd.xlane.f32.xlu0 %v1102_v63  ;;  %v988_v1 = vpop.xlane.xlu1 %987  ;;  %v1260_v16 = vpack.c.bf16 %v1242_v6, %v1241_v10  ;;  %v1216_v13 = vmul.f32 %v10074_v32, %v1189_v11  ;;  %v1244_v58 = vadd.f32 %v10083_v45, %v1217_v17 }
 0x179   : > { %v1013_v8 = vmul.f32 0.03125, %v988_v1  ;;  %v1053_v53 = vmul.f32 %v10132_v62, %v10132_v62  ;;  %1106 = vadd.xlane.f32.xlu1 %v1105_v5  ;;  %v1054_v9 = vmul.f32 %v10139_v57, %v10139_v57  ;;  %v1192_v19 = vmul.f32 %v8939_v15, %v10005_v24 }
 0x17a   : > { %v1243_v20 = vadd.f32 %v10083_v45, %v1216_v13  ;;  %v1191_v21 = vmul.f32 %v8941_v50, %v10003_v23 }
 0x17b   : > { %v10150_v54 = vsub.f32 %v10057_v61, %v1013_v8  ;;  %v1108_v12 = vsel %vm928_vm2, %v1053_v53, 0.0  ;;  %v1111_v14 = vsel %vm928_vm2, %v1054_v9, 0.0  ;;  %v8943_v25 = vpop.eup %8942  ;;  %v1219_v26 = vmul.f32 %v10074_v32, %v1192_v19 }
 0x17c   : > { %1109 = vadd.xlane.f32.xlu0 %v1108_v12  ;;  %v1261_v43 = vpack.c.bf16 %v1244_v58, %v1243_v20  ;;  %v1218_v28 = vmul.f32 %v10074_v32, %v1191_v21  ;;  %v1194_v24 = vmul.f32 %v8943_v25, %v10017_v34 }
 0x17d   : > { %v1055_v39 = vmul.f32 %v10150_v54, %v10150_v54  ;;  %1112 = vadd.xlane.f32.xlu1 %v1111_v14  ;;  %v1246_v29 = vadd.f32 %v10083_v45, %v1219_v26 }
 0x17e   : > { %v1245_v30 = vadd.f32 %v10083_v45, %v1218_v28  ;;  %v1221_v35 = vmul.f32 %v10074_v32, %v1194_v24 }
 0x17f   : > { %8163 = vmatmul.mubr.msk.bf16.gmra.mxu1 %vm928_vm2, %v1260_v16  ;;  %v1114_v61 = vsel %vm928_vm2, %v1055_v39, 0.0 }
 0x180   : > { %8166 = vmatprep.mubr.msk.bf16.mxu1 %vm9656_vm3, %v13795_v60  ;;  %1115 = vadd.xlane.f32.xlu0 %v1114_v61  ;;  %v1262_v31 = vpack.c.bf16 %v1246_v29, %v1245_v30  ;;  %v1248_v36 = vadd.f32 %v10083_v45, %v1221_v35 }
 0x183   : > { %v8945_v27 = vpop.eup %8944 }
 0x184   : > { %v1193_v23 = vmul.f32 %v8945_v27, %v10014_v33  ;;  %v10185_v33 = vpop.xlane.xlu0 %991 }
 0x186   : > { %v1220_v44 = vmul.f32 %v10074_v32, %v1193_v23 }
 0x187   : > { %8167 = vmatmul.mubr.msk.bf16.gmra.mxu1 %vm928_vm2, %v1261_v43 }
 0x188   : > { %8170 = vmatprep.mubr.msk.bf16.mxu1 %vm9656_vm3, %v13795_v60  ;;  %v1247_v40 = vadd.f32 %v10083_v45, %v1220_v44 }
 0x18a   : > { %v1263_v41 = vpack.c.bf16 %v1248_v36, %v1247_v40 }
 0x18f   : > { %8171 = vmatmul.mubr.msk.bf16.gmra.mxu1 %vm928_vm2, %v1262_v31 }
 0x190   : > { %8174 = vmatprep.mubr.msk.bf16.mxu1 %vm9656_vm3, %v13795_v60 }
 0x197   : > { %8175 = vmatmul.mubr.msk.bf16.gmra.mxu1 %vm928_vm2, %v1263_v41 }
 0x198   : > { %8178 = vmatprep.mubr.msk.bf16.mxu1 %vm9656_vm3, %v13795_v60 }
 0x1f9   : > { %v1095_v34 = vpop.xlane.xlu1 %1094 }
 0x1fa   : > { %v1132_v4 = vmul.f32 0.03125, %v1095_v34 }
 0x1fc   : > { %v1153_v42 = vadd.f32 1e-05, %v1132_v4 }
 0x1fd   : > { %v1098_v46 = vpop.xlane.xlu0 %1097 }
 0x1fe   : > { %8946 = vrsqrt.f32 %v1153_v42  ;;  %v1133_v51 = vmul.f32 0.03125, %v1098_v46  ;;  %v1101_v52 = vpop.xlane.xlu1 %1100 }
 0x1ff   : > { %v1134_v55 = vmul.f32 0.03125, %v1101_v52 }
 0x200   : > { %v1154_v3 = vadd.f32 1e-05, %v1133_v51 }
 0x201   : > { %v1155_v47 = vadd.f32 1e-05, %v1134_v55  ;;  %v1104_v56 = vpop.xlane.xlu0 %1103 }
 0x202   : > { %8948 = vrsqrt.f32 %v1154_v3  ;;  %v1135_v49 = vmul.f32 0.03125, %v1104_v56  ;;  %v1107_v59 = vpop.xlane.xlu1 %1106 }
 0x203   : > { %8950 = vrsqrt.f32 %v1155_v47  ;;  %v1136_v48 = vmul.f32 0.03125, %v1107_v59 }
 0x204   : > { %v1156_v63 = vadd.f32 1e-05, %v1135_v49 }
 0x205   : > { %v1157_v1 = vadd.f32 1e-05, %v1136_v48  ;;  %v1110_v5 = vpop.xlane.xlu0 %1109 }
 0x206   : > { %8952 = vrsqrt.f32 %v1156_v63  ;;  %v1137_v6 = vmul.f32 0.03125, %v1110_v5  ;;  %v1113_v7 = vpop.xlane.xlu1 %1112 }
 0x207   : > { %v1138_v8 = vmul.f32 0.03125, %v1113_v7  ;;  %8954 = vrsqrt.f32 %v1157_v1 }
 0x208   : > { %v1158_v53 = vadd.f32 1e-05, %v1137_v6 }
 0x209   : > { %v1116_v9 = vpop.xlane.xlu0 %1115  ;;  %v1159_v12 = vadd.f32 1e-05, %v1138_v8 }
 0x20a   : > { %8956 = vrsqrt.f32 %v1158_v53  ;;  %v1139_v10 = vmul.f32 0.03125, %v1116_v9 }
 0x20b   : > { %v8947_v11 = vpop.eup %8946  ;;  %8958 = vrsqrt.f32 %v1159_v12 }
 0x20c   : > { %v1195_v14 = vmul.f32 %v8947_v11, %v10089_v2  ;;  %v1160_v15 = vadd.f32 1e-05, %v1139_v10 }
 0x20e   : > { %v1222_v16 = vmul.f32 %v10074_v32, %v1195_v14  ;;  %8960 = vrsqrt.f32 %v1160_v15 }
 0x20f   : > { %v8949_v17 = vpop.eup %8948 }
 0x210   : > { %v8951_v39 = vpop.eup %8950  ;;  %v1196_v50 = vmul.f32 %v8949_v17, %v10098_v18  ;;  %v1249_v58 = vadd.f32 %v10083_v45, %v1222_v16 }
 0x211   : > { %v1197_v13 = vmul.f32 %v8951_v39, %v10106_v22 }
 0x212   : > { %v1223_v61 = vmul.f32 %v10074_v32, %v1196_v50 }
 0x213   : > { %v8953_v19 = vpop.eup %8952  ;;  %v1224_v21 = vmul.f32 %v10074_v32, %v1197_v13 }
 0x214   : > { %v1250_v20 = vadd.f32 %v10083_v45, %v1223_v61  ;;  %v1198_v2 = vmul.f32 %v8953_v19, %v10118_v38  ;;  %v8955_v25 = vpop.eup %8954 }
 0x215   : > { %v1251_v18 = vadd.f32 %v10083_v45, %v1224_v21  ;;  %v1199_v28 = vmul.f32 %v8955_v25, %v10122_v37 }
 0x216   : > { %v1264_v43 = vpack.c.bf16 %v1250_v20, %v1249_v58  ;;  %v1225_v26 = vmul.f32 %v10074_v32, %v1198_v2 }
 0x217   : > { %v8957_v27 = vpop.eup %8956  ;;  %v1226_v30 = vmul.f32 %v10074_v32, %v1199_v28 }
 0x218   : > { %8179 = vmatmul.mubr.msk.bf16.gmra.mxu1 %vm928_vm2, %v1264_v43  ;;  %v1252_v22 = vadd.f32 %v10083_v45, %v1225_v26  ;;  %v1200_v29 = vmul.f32 %v8957_v27, %v10132_v62  ;;  %v8959_v38 = vpop.eup %8958 }
 0x219   : > { %8182 = vmatprep.mubr.msk.bf16.mxu1 %vm9656_vm3, %v13795_v60  ;;  %v1253_v35 = vadd.f32 %v10083_v45, %v1226_v30  ;;  %v1201_v37 = vmul.f32 %v8959_v38, %v10139_v57 }
 0x21a   : > { %v1265_v24 = vpack.c.bf16 %v1252_v22, %v1251_v18  ;;  %v1227_v23 = vmul.f32 %v10074_v32, %v1200_v29  ;;  %v1014_v22 = vmul.f32 0.03125, %v10185_v33 }
 0x21b   : > { %v8961_v31 = vpop.eup %8960  ;;  %v1228_v40 = vmul.f32 %v10074_v32, %v1201_v37 }
 0x21c   : > { %v1254_v44 = vadd.f32 %v10083_v45, %v1227_v23  ;;  %v1202_v62 = vmul.f32 %v8961_v31, %v10150_v54  ;;  %v10226_v54 = vld [vmem:[%s13867_s21] ss:$0 sm:$0xff]  ;;  %v10272_v38 = vsub.f32 %v10065_v0, %v1014_v22  ;;  %s9668_s21 = smov 40  }
 0x21d   : > { %v1255_v34 = vadd.f32 %v10083_v45, %v1228_v40 }
 0x21e   : > { %v1266_v36 = vpack.c.bf16 %v1254_v44, %v1253_v35  ;;  %v1229_v41 = vmul.f32 %v10074_v32, %v1202_v62  ;;  %v1056_v30 = vmul.f32 %v10272_v38, %v10272_v38 }
 0x220   : > { %8183 = vmatmul.mubr.msk.bf16.gmra.mxu1 %vm928_vm2, %v1265_v24  ;;  %v1256_v4 = vadd.f32 %v10083_v45, %v1229_v41  ;;  %v1117_v33 = vsel %vm989_vm4, %v1056_v30, 0.0 }
 0x221   : > { %8186 = vmatprep.mubr.msk.bf16.mxu1 %vm9656_vm3, %v13795_v60 }
 0x222   : > { %v1267_v57 = vpack.c.bf16 %v1256_v4, %v1255_v34 }
 0x228   : > { %8187 = vmatmul.mubr.msk.bf16.gmra.mxu1 %vm928_vm2, %v1266_v36 }
 0x229   : > { %8190 = vmatprep.mubr.msk.bf16.mxu1 %vm9656_vm3, %v13795_v60 }
 0x22f   : > { %v1359_v42 = vpop.f32.mrf.mxu1 }
 0x230   : > { %8191 = vmatmul.mubr.msk.bf16.gmra.mxu1 %vm928_vm2, %v1267_v57  ;;  %v1360_v52 = vadd.f32 %v10226_v54, %v1359_v42 }
 0x231   : > { %v8156_v46 = vpop.f32.mrf.mxu1  ;;  %8194 = vmatprep.mubr.msk.bf16.mxu1 %vm9656_vm3, %v13795_v60 }
 0x233   : > { %v1362_v51 = vpop.f32.mrf.mxu1 }
 0x234   : > { %v1363_v55 = vadd.f32 %v10226_v54, %v1362_v51 }
 0x235   : > { %v8157_v3 = vpop.f32.mrf.mxu1 }
 0x236   : > { %v10232_v47 = vpack.c.bf16 %v1363_v55, %v1360_v52 }
 0x237   : > { %v1367_v56 = vpop.f32.mrf.mxu1 }
 0x238   : > { %v1368_v29 = vadd.f32 %v10226_v54, %v1367_v56 }
 0x239   : > { %v8160_v49 = vpop.f32.mrf.mxu1 }
 0x23b   : > { %v1370_v59 = vpop.f32.mrf.mxu1 }
 0x23c   : > { %v1371_v28 = vadd.f32 %v10226_v54, %v1370_v59 }
 0x23d   : > { %v8161_v48 = vpop.f32.mrf.mxu1 }
 0x23e   : > { %v10274_v24 = vpack.c.bf16 %v1371_v28, %v1368_v29 }
 0x23f   : > { %v1375_v63 = vpop.f32.mrf.mxu1 }
 0x240   : > { %v1376_v27 = vadd.f32 %v10226_v54, %v1375_v63 }
 0x241   : > { %v8164_v1 = vpop.f32.mrf.mxu1 }
 0x243   : > { %v1378_v5 = vpop.f32.mrf.mxu1 }
 0x244   : > { %v1379_v26 = vadd.f32 %v10226_v54, %v1378_v5 }
 0x245   : > { %v8165_v6 = vpop.f32.mrf.mxu1 }
 0x246   : > { %v10262_v18 = vpack.c.bf16 %v1379_v26, %v1376_v27 }
 0x247   : > { %v1383_v7 = vpop.f32.mrf.mxu1 }
 0x248   : > { %v1384_v25 = vadd.f32 %v10226_v54, %v1383_v7 }
 0x249   : > { %v8168_v8 = vpop.f32.mrf.mxu1 }
 0x24b   : > { %v1386_v53 = vpop.f32.mrf.mxu1 }
 0x24c   : > { %v1387_v21 = vadd.f32 %v10226_v54, %v1386_v53 }
 0x24d   : > { %v8169_v9 = vpop.f32.mrf.mxu1 }
 0x24e   : > { %v10254_v43 = vpack.c.bf16 %v1387_v21, %v1384_v25 }
 0x24f   : > { %v1391_v10 = vpop.f32.mrf.mxu1 }
 0x250   : > { %v1392_v61 = vadd.f32 %v10226_v54, %v1391_v10 }
 0x251   : > { %v8172_v11 = vpop.f32.mrf.mxu1 }
 0x253   : > { %v1394_v12 = vpop.f32.mrf.mxu1 }
 0x254   : > { %v1395_v39 = vadd.f32 %v10226_v54, %v1394_v12 }
 0x255   : > { %v8173_v14 = vpop.f32.mrf.mxu1 }
 0x256   : > { %v10244_v20 = vpack.c.bf16 %v1395_v39, %v1392_v61 }
 0x257   : > { %v1399_v15 = vpop.f32.mrf.mxu1 }
 0x258   : > { %v1400_v16 = vadd.f32 %v10226_v54, %v1399_v15 }
 0x259   : > { %v8176_v17 = vpop.f32.mrf.mxu1 }
 0x25a   : > { %v10236_v50 = vpack.c.bf16 %v1400_v16, %v1400_v16 }
 0x25b   : > { %v1402_v13 = vpop.f32.mrf.mxu1 }
 0x25c   : > { %v1403_v58 = vadd.f32 %v10226_v54, %v1402_v13  ;;  %1881 = vrot.lane.b32.xlu0 %v10236_v50, %s9657_s18  ;;  %1467 = vrot.lane.b32.xlu1 %v10236_v50, %s9658_s20 }
 0x25d   : > { %v8177_v19 = vpop.f32.mrf.mxu1 }
 0x25e   : > { %v10246_v2 = vpack.c.bf16 %v1403_v58, %v1400_v16 }
 0x260   : > { %1465 = vrot.lane.b32.xlu0 %v10244_v20, %s9658_s20  ;;  %v3228_v4 = vshll.u32 %v10246_v2, 16  ;;  %v3226_v48 = vshrl.u32 %v10246_v2, 16 }
 0x262   : > { %v3230_v55 = vrot.slane %v3228_v4, 1 }
 0x264   : > { %1879 = vrot.lane.b32.xlu0 %v10244_v20, %s9657_s18  ;;  %v3231_v6 = vor.u32 %v3230_v55, %v3226_v48 }
 0x268   : > { %1463 = vrot.lane.b32.xlu0 %v10254_v43, %s9658_s20 }
 0x26c   : > { %1877 = vrot.lane.b32.xlu0 %v10254_v43, %s9657_s18 }
 0x270   : > { %1461 = vrot.lane.b32.xlu0 %v10262_v18, %s9658_s20 }
 0x274   : > { %1875 = vrot.lane.b32.xlu0 %v10262_v18, %s9657_s18 }
 0x278   : > { %1459 = vrot.lane.b32.xlu0 %v10274_v24, %s9658_s20 }
 0x27c   : > { %1457 = vrot.lane.b32.xlu0 %v10232_v47, %s9658_s20 }
 0x280   : > { %1871 = vrot.lane.b32.xlu0 %v10232_v47, %s9657_s18  ;;  %1118 = vadd.xlane.f32.xlu1 %v1117_v33 }
 0x284   : > { %1859 = vrot.lane.b32.xlu0 %v10232_v47, %s9659_s19 }
 0x288   : > { %2334 = vrot.lane.b32.xlu0 %v10236_v50, %s9660_s23 }
 0x28c   : > { %1861 = vrot.lane.b32.xlu0 %v10274_v24, %s9659_s19 }
 0x290   : > { %2330 = vrot.lane.b32.xlu0 %v10254_v43, %s9660_s23 }
 0x291   : > { %1873 = vrot.lane.b32.xlu1 %v10274_v24, %s9657_s18 }
 0x294   : > { %1863 = vrot.lane.b32.xlu0 %v10262_v18, %s9659_s19 }
 0x295   : > { %2332 = vrot.lane.b32.xlu1 %v10244_v20, %s9660_s23 }
 0x298   : > { %2326 = vrot.lane.b32.xlu0 %v10274_v24, %s9660_s23 }
 0x299   : > { %2328 = vrot.lane.b32.xlu1 %v10262_v18, %s9660_s23 }
 0x29c   : > { %1869 = vrot.lane.b32.xlu0 %v10236_v50, %s9659_s19 }
 0x29d   : > { %1865 = vrot.lane.b32.xlu1 %v10254_v43, %s9659_s19 }
 0x2a0   : > { %2312 = vrot.lane.b32.xlu0 %v10232_v47, %s9661_s28 }
 0x2a1   : > { %1867 = vrot.lane.b32.xlu1 %v10244_v20, %s9659_s19 }
 0x2a4   : > { %2316 = vrot.lane.b32.xlu0 %v10262_v18, %s9661_s28 }
 0x2a5   : > { %2324 = vrot.lane.b32.xlu1 %v10232_v47, %s9660_s23 }
 0x2a8   : > { %2320 = vrot.lane.b32.xlu0 %v10244_v20, %s9661_s28 }
 0x2a9   : > { %2314 = vrot.lane.b32.xlu1 %v10274_v24, %s9661_s28 }
 0x2ac   : > { %1732 = vrot.lane.b32.xlu0 %v10254_v43, %s9662_s15 }
 0x2ad   : > { %2318 = vrot.lane.b32.xlu1 %v10254_v43, %s9661_s28 }
 0x2b0   : > { %1730 = vrot.lane.b32.xlu0 %v10262_v18, %s9662_s15 }
 0x2b1   : > { %2322 = vrot.lane.b32.xlu1 %v10236_v50, %s9661_s28 }
 0x2b4   : > { %1726 = vrot.lane.b32.xlu0 %v10232_v47, %s9662_s15 }
 0x2b5   : > { %1734 = vrot.lane.b32.xlu1 %v10244_v20, %s9662_s15 }
 0x2b8   : > { %2145 = vrot.lane.b32.xlu0 %v10244_v20, %s9663_s27 }
 0x2b9   : > { %1728 = vrot.lane.b32.xlu1 %v10274_v24, %s9662_s15 }
 0x2bc   : > { %2139 = vrot.lane.b32.xlu0 %v10274_v24, %s9663_s27 }
 0x2bd   : > { %2143 = vrot.lane.b32.xlu1 %v10254_v43, %s9663_s27 }
 0x2c0   : > { %2594 = vrot.lane.b32.xlu0 %v10262_v18, %s9664_s29 }
 0x2c1   : > { %2141 = vrot.lane.b32.xlu1 %v10262_v18, %s9663_s27 }
 0x2c4   : > { %1736 = vrot.lane.b32.xlu0 %v10236_v50, %s9662_s15 }
 0x2c5   : > { %2137 = vrot.lane.b32.xlu1 %v10232_v47, %s9663_s27 }
 0x2c8   : > { %2600 = vrot.lane.b32.xlu0 %v10236_v50, %s9664_s29 }
 0x2c9   : > { %2598 = vrot.lane.b32.xlu1 %v10244_v20, %s9664_s29 }
 0x2cd   : > { %2596 = vrot.lane.b32.xlu1 %v10254_v43, %s9664_s29 }
 0x2ce   : > { %v1468_v0 = vpop.permute.xlu1 %1467  ;;  %v1882_v23 = vpop.permute.xlu0 %1881 }
 0x2cf   : > { %8790 = vmatprep.subr.msk.bf16.mxu1 %vm1469_vm5, %v1468_v0  ;;  %8796 = vmatprep.subr.msk.bf16.mxu0 %vm1469_vm5, %v1882_v23  ;;  %v1504_v31 = vsel %vm1469_vm5, %v1468_v0, 0  ;;  %v1917_v35 = vsel %vm1469_vm5, %v1882_v23, 0 }
 0x2d0   : > { %8199 = vmatpush3.bf16.xpose.msra.mxu1 %v1504_v31  ;;  %8247 = vmatpush3.bf16.xpose.msra.mxu0 %v1917_v35 }
 0x2d1   : > { %2592 = vrot.lane.b32.xlu1 %v10274_v24, %s9664_s29 }
 0x2d2   : > { %v1466_v44 = vpop.permute.xlu0 %1465 }
 0x2d3   : > { %8791 = vmatprep.subr.msk.bf16.mxu1 %vm1469_vm5, %v1466_v44  ;;  %v1501_v62 = vsel %vm1469_vm5, %v1466_v44, 0 }
 0x2d5   : > { %2147 = vrot.lane.b32.xlu1 %v10236_v50, %s9663_s27 }
 0x2d6   : > { %v1880_v37 = vpop.permute.xlu0 %1879 }
 0x2d7   : > { %8797 = vmatprep.subr.msk.bf16.mxu0 %vm1469_vm5, %v1880_v37  ;;  %v1914_v36 = vsel %vm1469_vm5, %v1880_v37, 0 }
 0x2d8   : > { %v1407_v40 = vpop.f32.mrf.mxu1  ;;  %8201 = vmatpush3.bf16.xpose.msra.mxu1 %v1501_v62  ;;  %8249 = vmatpush3.bf16.xpose.msra.mxu0 %v1914_v36 }
 0x2d9   : > { %v1408_v57 = vadd.f32 %v10226_v54, %v1407_v40 }
 0x2da   : > { %v8180_v41 = vpop.f32.mrf.mxu1  ;;  %v1464_v34 = vpop.permute.xlu0 %1463 }
 0x2db   : > { %8792 = vmatprep.subr.msk.bf16.mxu1 %vm1469_vm5, %v1464_v34  ;;  %v1498_v56 = vsel %vm1469_vm5, %v1464_v34, 0 }
 0x2dc   : > { %v1410_v42 = vpop.f32.mrf.mxu1 }
 0x2dd   : > { %v1411_v46 = vadd.f32 %v10226_v54, %v1410_v42 }
 0x2de   : > { %v1878_v51 = vpop.permute.xlu0 %1877  ;;  %v8181_v52 = vpop.f32.mrf.mxu1 }
 0x2df   : > { %v3219_v3 = vpack.c.bf16 %v1411_v46, %v1408_v57  ;;  %8798 = vmatprep.subr.msk.bf16.mxu0 %vm1469_vm5, %v1878_v51  ;;  %v1911_v49 = vsel %vm1469_vm5, %v1878_v51, 0 }
 0x2e0   : > { %8203 = vmatpush3.bf16.xpose.msra.mxu1 %v1498_v56  ;;  %8251 = vmatpush3.bf16.xpose.msra.mxu0 %v1911_v49  ;;  %v1415_v59 = vpop.f32.mrf.mxu1 }
 0x2e1   : > { %v3233_v63 = vshll.u32 %v3219_v3, 16  ;;  %v1416_v8 = vadd.f32 %v10226_v54, %v1415_v59  ;;  %v3237_v10 = vshrl.u32 %v3219_v3, 16 }
 0x2e2   : > { %v1462_v1 = vpop.permute.xlu0 %1461  ;;  %v8184_v5 = vpop.f32.mrf.mxu1 }
 0x2e3   : > { %v3235_v7 = vrot.slane %v3233_v63, 1  ;;  %8793 = vmatprep.subr.msk.bf16.mxu1 %vm1469_vm5, %v1462_v1  ;;  %v1495_v15 = vsel %vm1469_vm5, %v1462_v1, 0 }
 0x2e4   : > { %v1418_v53 = vpop.f32.mrf.mxu1 }
 0x2e5   : > { %v10376_v9 = vsel %vm3224_vm6, %v3231_v6, %v3235_v7  ;;  %v1419_v11 = vadd.f32 %v10226_v54, %v1418_v53  ;;  %v3239_v13 = vor.u32 %v3237_v10, %v3235_v7 }
 0x2e6   : > { %13868 = vst [vmem:[#allocation14_spill] sm:$0xff] %v10376_v9  ;;  %v1876_v12 = vpop.permute.xlu0 %1875  ;;  %v8185_v14 = vpop.f32.mrf.mxu1 }
 0x2e7   : > { %8799 = vmatprep.subr.msk.bf16.mxu0 %vm1469_vm5, %v1876_v12  ;;  %v1908_v16 = vsel %vm1469_vm5, %v1876_v12, 0  ;;  %v3220_v17 = vpack.c.bf16 %v1419_v11, %v1416_v8 }
 0x2e8   : > { %8205 = vmatpush3.bf16.xpose.msra.mxu1 %v1495_v15  ;;  %8253 = vmatpush3.bf16.xpose.msra.mxu0 %v1908_v16  ;;  %v1423_v39 = vpop.f32.mrf.mxu1 }
 0x2e9   : > { %v3241_v61 = vshll.u32 %v3220_v17, 16  ;;  %v1424_v21 = vadd.f32 %v10226_v54, %v1423_v39  ;;  %v3245_v27 = vshrl.u32 %v3220_v17, 16 }
 0x2ea   : > { %v1460_v58 = vpop.permute.xlu0 %1459  ;;  %v8188_v19 = vpop.f32.mrf.mxu1 }
 0x2eb   : > { %8794 = vmatprep.subr.msk.bf16.mxu1 %vm1469_vm5, %v1460_v58  ;;  %v3243_v2 = vrot.slane %v3241_v61, 1  ;;  %v1492_v30 = vsel %vm1469_vm5, %v1460_v58, 0 }
 0x2ec   : > { %v1426_v25 = vpop.f32.mrf.mxu1 }
 0x2ed   : > { %v10385_v26 = vsel %vm3224_vm6, %v3239_v13, %v3243_v2  ;;  %v1427_v22 = vadd.f32 %v10226_v54, %v1426_v25  ;;  %v3247_v23 = vor.u32 %v3245_v27, %v3243_v2 }
 0x2ee   : > { %13869 = vst [vmem:[#allocation15_spill] sm:$0xff] %v10385_v26  ;;  %v1458_v28 = vpop.permute.xlu0 %1457  ;;  %v8189_v29 = vpop.f32.mrf.mxu1 }
 0x2ef   : > { %v3221_v33 = vpack.c.bf16 %v1427_v22, %v1424_v21  ;;  %v1489_v42 = vsel %vm1469_vm5, %v1458_v28, 0 }
 0x2f0   : > { %8207 = vmatpush3.bf16.xpose.msra.mxu1 %v1492_v30  ;;  %v1431_v0 = vpop.f32.mrf.mxu1 }
 0x2f1   : > { %8795 = vmatprep.subr.msk.bf16.mxu1 %vm1469_vm5, %v1458_v28  ;;  %v3249_v31 = vshll.u32 %v3221_v33, 16  ;;  %v1432_v62 = vadd.f32 %v10226_v54, %v1431_v0  ;;  %v3253_v41 = vshrl.u32 %v3221_v33, 16 }
 0x2f2   : > { %v1872_v35 = vpop.permute.xlu0 %1871  ;;  %v8192_v44 = vpop.f32.mrf.mxu1 }
 0x2f3   : > { %v3251_v37 = vrot.slane %v3249_v31, 1  ;;  %v1902_v15 = vsel %vm1469_vm5, %v1872_v35, 0 }
 0x2f4   : > { %v1434_v36 = vpop.f32.mrf.mxu1 }
 0x2f5   : > { %v10392_v40 = vsel %vm3224_vm6, %v3247_v23, %v3251_v37  ;;  %v1435_v34 = vadd.f32 %v10226_v54, %v1434_v36  ;;  %v3255_v51 = vor.u32 %v3253_v41, %v3251_v37 }
 0x2f6   : > { %13870 = vst [vmem:[#allocation16_spill] sm:$0xff] %v10392_v40  ;;  %v1860_v4 = vpop.permute.xlu0 %1859  ;;  %v8193_v57 = vpop.f32.mrf.mxu1 }
 0x2f7   : > { %8258 = vmatprep.mubr.msk.bf16.mxu0 %vm1469_vm5, %v1860_v4  ;;  %v10397_v46 = vpack.c.bf16 %v1435_v34, %v1432_v62 }
 0x2f8   : > { %8209 = vmatpush3.bf16.xpose.msra.mxu1 %v1489_v42 }
 0x2f9   : > { %v3257_v52 = vshll.u32 %v10397_v46, 16 }
 0x2fa   : > { %v2335_v55 = vpop.permute.xlu0 %2334 }
 0x2fb   : > { %v10400_v3 = vrot.slane %v3257_v52, 1  ;;  %v2370_v19 = vsel %vm1469_vm5, %v2335_v55, 0 }
 0x2fd   : > { %v10404_v56 = vsel %vm3224_vm6, %v3255_v51, %v10400_v3 }
 0x2fe   : > { %13871 = vst [vmem:[#allocation17_spill] sm:$0xff] %v10404_v56  ;;  %v1862_v49 = vpop.permute.xlu0 %1861 }
 0x302   : > { %v2331_v59 = vpop.permute.xlu0 %2330 }
 0x303   : > { %v2364_v0 = vsel %vm1469_vm5, %v2331_v59, 0 }
 0x306   : > { %v1864_v48 = vpop.permute.xlu0 %1863 }
 0x309   : > { %v1119_v63 = vpop.xlane.xlu1 %1118 }
 0x30a   : > { %v1140_v1 = vmul.f32 0.03125, %v1119_v63  ;;  %v10406_v5 = vpop.permute.xlu0 %2326 }
 0x30b   : > { %v2358_v57 = vsel %vm1469_vm5, %v10406_v5, 0 }
 0x30c   : > { %v1161_v6 = vadd.f32 1e-05, %v1140_v1 }
 0x30d   : > { %v1874_v7 = vpop.permute.xlu1 %1873 }
 0x30e   : > { %8962 = vrsqrt.f32 %v1161_v6  ;;  %8800 = vmatprep.subr.msk.bf16.mxu0 %vm1469_vm5, %v1874_v7  ;;  %v1870_v8 = vpop.permute.xlu0 %1869  ;;  %v1905_v53 = vsel %vm1469_vm5, %v1874_v7, 0 }
 0x30f   : > { %8255 = vmatpush3.bf16.xpose.msra.mxu0 %v1905_v53 }
 0x310   : > { %8801 = vmatprep.subr.msk.bf16.mxu0 %vm1469_vm5, %v1872_v35  ;;  %v9665_v35 = vmov 0  }
 0x311   : > { %v2333_v10 = vpop.permute.xlu1 %2332  ;;  %v10447_v44 = vsel %vm1761_vm7, 65535, %v9665_v35 }
 0x312   : > { %v2313_v11 = vpop.permute.xlu0 %2312 }
 0x315   : > { %v2329_v12 = vpop.permute.xlu1 %2328 }
 0x316   : > { %v10411_v14 = vpop.permute.xlu0 %2316  ;;  %v2361_v36 = vsel %vm1469_vm5, %v2329_v12, 0 }
 0x317   : > { %8257 = vmatpush3.bf16.xpose.msra.mxu0 %v1902_v15 }
 0x318   : > { %8802 = vmatprep.subr.msk.bf16.mxu0 %vm1469_vm5, %v2335_v55 }
 0x319   : > { %v1866_v16 = vpop.permute.xlu1 %1865 }
 0x31a   : > { %v10415_v17 = vpop.permute.xlu0 %2320 }
 0x31b   : > { %v8963_v39 = vpop.eup %8962 }
 0x31c   : > { %v1203_v13 = vmul.f32 %v8963_v39, %v10272_v38 }
 0x31d   : > { %v1868_v61 = vpop.permute.xlu1 %1867 }
 0x31e   : > { %8259 = vmatmul.mubr.msk.bf16.vlgmr.msra.gmra.mxu0 %vm1469_vm5, %v1862_v49  ;;  %v1733_v58 = vpop.permute.xlu0 %1732  ;;  %v1230_v2 = vmul.f32 %v10074_v32, %v1203_v13  ;;  %v2367_v32 = vsel %vm1469_vm5, %v2333_v10, 0 }
 0x31f   : > { %8262 = vmatprep.mubr.msk.bf16.mxu0 %vm1469_vm5, %v1864_v48  ;;  %8295 = vmatpush3.bf16.xpose.msra.mxu0 %v2370_v19 }
 0x320   : > { %8803 = vmatprep.subr.msk.bf16.mxu0 %vm1469_vm5, %v2333_v10  ;;  %v1257_v21 = vadd.f32 %v10083_v45, %v1230_v2 }
 0x321   : > { %v2325_v25 = vpop.permute.xlu1 %2324 }
 0x322   : > { %v1731_v27 = vpop.permute.xlu0 %1730  ;;  %v1268_v22 = vpack.c.bf16 %v1257_v21, %v1257_v21  ;;  %v2355_v52 = vsel %vm1469_vm5, %v2325_v25, 0 }
 0x324   : > { %8195 = vmatmul.mubr.msk.bf16.gmra.mxu1 %vm928_vm2, %v1268_v22 }
 0x325   : > { %v2315_v38 = vpop.permute.xlu1 %2314  ;;  %8210 = vmatprep.mubr.msk.bf16.mxu1 %vm1469_vm5, %v10232_v47 }
 0x326   : > { %8263 = vmatmul.mubr.msk.bf16.gmra.mxu0 %vm1469_vm5, %v1866_v16  ;;  %v1727_v28 = vpop.permute.xlu0 %1726 }
 0x327   : > { %8266 = vmatprep.mubr.msk.bf16.mxu0 %vm1469_vm5, %v1868_v61  ;;  %8297 = vmatpush3.bf16.xpose.msra.mxu0 %v2367_v32 }
 0x328   : > { %8804 = vmatprep.subr.msk.bf16.mxu0 %vm1469_vm5, %v2331_v59 }
 0x329   : > { %v2319_v45 = vpop.permute.xlu1 %2318 }
 0x32a   : > { %v10431_v29 = vpop.permute.xlu0 %2145 }
 0x32c   : > { %8211 = vmatmul.mubr.msk.bf16.vlgmr.msra.gmra.mxu1 %vm1469_vm5, %v10274_v24 }
 0x32d   : > { %v2323_v30 = vpop.permute.xlu1 %2322  ;;  %8214 = vmatprep.mubr.msk.bf16.mxu1 %vm1469_vm5, %v10262_v18 }
 0x32e   : > { %8267 = vmatmul.mubr.msk.bf16.gmra.mxu0 %vm1469_vm5, %v1870_v8  ;;  %v10438_v33 = vpop.permute.xlu0 %2139 }
 0x32f   : > { %8299 = vmatpush3.bf16.xpose.msra.mxu0 %v2364_v0  ;;  %8306 = vmatprep.mubr.msk.bf16.mxu0 %vm1469_vm5, %v2313_v11 }
 0x330   : > { %8805 = vmatprep.subr.msk.bf16.mxu0 %vm1469_vm5, %v2329_v12 }
 0x331   : > { %v1735_v23 = vpop.permute.xlu1 %1734 }
 0x332   : > { %v10443_v31 = vpop.permute.xlu0 %2594 }
 0x333   : > { %13872 = vst [vmem:[#allocation18_spill] sm:$0xff] %v10443_v31 }
 0x334   : > { %8215 = vmatmul.mubr.msk.bf16.gmra.mxu1 %vm1469_vm5, %v10254_v43 }
 0x335   : > { %v1729_v37 = vpop.permute.xlu1 %1728  ;;  %8218 = vmatprep.mubr.msk.bf16.mxu1 %vm1469_vm5, %v10244_v20 }
 0x336   : > { %v1737_v62 = vpop.permute.xlu0 %1736 }
 0x337   : > { %v1765_v41 = vand.u32 %v10447_v44, %v1737_v62  ;;  %8301 = vmatpush3.bf16.xpose.msra.mxu0 %v2361_v36 }
 0x338   : > { %8806 = vmatprep.subr.msk.bf16.mxu0 %vm1469_vm5, %v10406_v5 }
 0x339   : > { %v10455_v34 = vpop.permute.xlu1 %2143  ;;  %8222 = vmatprep.subr.bf16.mxu1 %v1765_v41 }
 0x33a   : > { %8223 = vmatpush3.bf16.msra.mxu1 %v1765_v41 }
 0x33b   : > { %8224 = vmatprep.subr.bf16.mxu1 %v1735_v23 }
 0x33c   : > { %8219 = vmatmul.mubr.msk.bf16.gmra.mxu1 %vm1469_vm5, %v10236_v50 }
 0x33d   : > { %v10459_v4 = vpop.permute.xlu1 %2141 }
 0x33e   : > { %8225 = vmatpush3.bf16.msra.mxu1 %v1735_v23 }
 0x33f   : > { %8226 = vmatprep.subr.bf16.mxu1 %v1733_v58  ;;  %8303 = vmatpush3.bf16.xpose.msra.mxu0 %v2358_v57 }
 0x340   : > { %8807 = vmatprep.subr.msk.bf16.mxu0 %vm1469_vm5, %v2325_v25 }
 0x341   : > { %v10464_v42 = vpop.permute.xlu1 %2137 }
 0x342   : > { %8227 = vmatpush3.bf16.msra.mxu1 %v1733_v58 }
 0x343   : > { %8228 = vmatprep.subr.bf16.mxu1 %v1731_v27 }
 0x345   : > { %v10466_v51 = vpop.permute.xlu1 %2598 }
 0x346   : > { %8229 = vmatpush3.bf16.msra.mxu1 %v1731_v27 }
 0x347   : > { %8230 = vmatprep.subr.bf16.mxu1 %v1729_v37  ;;  %8305 = vmatpush3.bf16.xpose.msra.mxu0 %v2355_v52 }
 0x349   : > { %v10469_v55 = vpop.permute.xlu1 %2596 }
 0x34a   : > { %13873 = vst [vmem:[#allocation19_spill] sm:$0xff] %v10469_v55  ;;  %8231 = vmatpush3.bf16.msra.mxu1 %v1729_v37 }
 0x34b   : > { %8232 = vmatprep.subr.bf16.mxu1 %v1727_v28 }
 0x34d   : > { %v10471_v49 = vpop.permute.xlu1 %2592 }
 0x34e   : > { %13874 = vst [vmem:[#allocation20_spill] sm:$0xff] %v10471_v49  ;;  %8233 = vmatpush3.bf16.msra.mxu1 %v1727_v28  ;;  %8307 = vmatmul.mubr.msk.bf16.vlgmr.msra.gmra.mxu0 %vm1469_vm5, %v2315_v38 }
 0x34f   : > { %8310 = vmatprep.mubr.msk.bf16.mxu0 %vm1469_vm5, %v10411_v14  ;;  %v3261_v14 = vshrl.u32 %v10397_v46, 16 }
 0x351   : > { %v2148_v59 = vpop.permute.xlu1 %2147  ;;  %v3263_v58 = vor.u32 %v3261_v14, %v10400_v3 }
 0x352   : > { %v10477_v48 = vand.u32 %v2148_v59, %v10447_v44 }
 0x354   : > { %8270 = vmatprep.subr.bf16.mxu1 %v10477_v48 }
 0x356   : > { %8311 = vmatmul.mubr.msk.bf16.gmra.mxu0 %vm1469_vm5, %v2319_v45 }
 0x357   : > { %8314 = vmatprep.mubr.msk.bf16.mxu0 %vm1469_vm5, %v10415_v17 }
 0x35e   : > { %8315 = vmatmul.mubr.msk.bf16.gmra.mxu0 %vm1469_vm5, %v2323_v30 }
 0x3de   : > { %v8260_v63 = vpop.f32.mrf.mxu0 }
 0x3df   : > { %v10499_v22 = vmul.f32 0.35355338, %v8260_v63 }
 0x3e0   : > { %v1953_v1 = vpop.f32.mrf.mxu0 }
 0x3e1   : > { %v2016_v23 = vsel %vm1597_vm8, %v10499_v22, -inf  ;;  %v10515_v41 = vmul.f32 0.35355338, %v1953_v1 }
 0x3e2   : > { %v8261_v5 = vpop.f32.mrf.mxu0 }
 0x3e3   : > { %v10484_v6 = vmul.f32 0.35355338, %v8261_v5 }
 0x3e4   : > { %v1439_v7 = vpop.f32.mrf.mxu1  ;;  %v1956_v8 = vpop.f32.mrf.mxu0 }
 0x3e5   : > { %v1440_v53 = vadd.f32 %v10226_v54, %v1439_v7  ;;  %v2019_v10 = vsel %vm1597_vm8, %v10484_v6, -inf  ;;  %v10511_v37 = vmul.f32 0.35355338, %v1956_v8  ;;  %v2010_v8 = vsel %vm1597_vm8, %v10515_v41, -inf }
 0x3e6   : > { %v8196_v11 = vpop.f32.mrf.mxu1  ;;  %2020 = vmax.xlane.f32.xlu1 %v2019_v10  ;;  %v8264_v12 = vpop.f32.mrf.mxu0 }
 0x3e7   : > { %v10490_v15 = vpack.c.bf16 %v1440_v53, %v1440_v53  ;;  %v2013_v63 = vsel %vm1597_vm8, %v10511_v37, -inf  ;;  %v10531_v14 = vmul.f32 0.35355338, %v8264_v12 }
 0x3e8   : > { %v1442_v16 = vpop.f32.mrf.mxu1  ;;  %v1969_v17 = vpop.f32.mrf.mxu0 }
 0x3e9   : > { %13875 = vst [vmem:[#allocation21_spill] sm:$0xff] %v10490_v15  ;;  %v3265_v39 = vshll.u32 %v10490_v15, 16 }
 0x3ea   : > { %v8197_v13 = vpop.f32.mrf.mxu1  ;;  %v8265_v61 = vpop.f32.mrf.mxu0 }
 0x3eb   : > { %v3267_v19 = vrot.slane %v3265_v39, 1  ;;  %v10535_v13 = vmul.f32 0.35355338, %v8265_v61 }
 0x3ec   : > { %v8212_v54 = vpop.f32.mrf.mxu1  ;;  %v1972_v2 = vpop.f32.mrf.mxu0 }
 0x3ed   : > { %v10495_v21 = vsel %vm3224_vm6, %v3263_v58, %v3267_v19  ;;  %v10497_v25 = vmul.f32 0.35355338, %v8212_v54  ;;  %v10539_v19 = vmul.f32 0.35355338, %v1969_v17  ;;  %v2028_v54 = vsel %vm1597_vm8, %v10531_v14, -inf }
 0x3ee   : > { %13876 = vst [vmem:[#allocation22_spill] sm:$0xff] %v10495_v21  ;;  %v1540_v27 = vpop.f32.mrf.mxu1  ;;  %v8268_v46 = vpop.f32.mrf.mxu0  ;;  %v2031_v12 = vsel %vm1597_vm8, %v10535_v13, -inf }
 0x3ef   : > { %v1604_v38 = vsel %vm1597_vm8, %v10497_v25, -inf  ;;  %v10505_v30 = vmul.f32 0.35355338, %v1540_v27  ;;  %v10543_v27 = vmul.f32 0.35355338, %v1972_v2  ;;  %v2022_v61 = vsel %vm1597_vm8, %v10539_v19, -inf }
 0x3f0   : > { %1605 = vmax.xlane.f32.xlu0 %v1604_v38  ;;  %v8213_v28 = vpop.f32.mrf.mxu1  ;;  %v10503_v32 = vpop.f32.mrf.mxu0 }
 0x3f1   : > { %v1598_v57 = vsel %vm1597_vm8, %v10505_v30, -inf  ;;  %v10523_v7 = vmul.f32 0.35355338, %v8213_v28  ;;  %v2025_v17 = vsel %vm1597_vm8, %v10543_v27, -inf }
 0x3f2   : > { %v1543_v3 = vpop.f32.mrf.mxu1  ;;  %v8269_v45 = vpop.f32.mrf.mxu0 }
 0x3f3   : > { %v10507_v0 = vmul.f32 0.35355338, %v1543_v3  ;;  %v1607_v16 = vsel %vm1597_vm8, %v10523_v7, -inf }
 0x3f4   : > { %v8216_v35 = vpop.f32.mrf.mxu1  ;;  %2017 = vmax.xlane.f32.xlu0 %v2016_v23  ;;  %v1988_v45 = vpop.f32.mrf.mxu0 }
 0x3f5   : > { %v1601_v62 = vsel %vm1597_vm8, %v10507_v0, -inf  ;;  %v10519_v59 = vmul.f32 0.35355338, %v8216_v35 }
 0x3f6   : > { %v1556_v36 = vpop.f32.mrf.mxu1  ;;  %1602 = vmax.xlane.f32.xlu1 %v1601_v62 }
 0x3f7   : > { %v10527_v1 = vmul.f32 0.35355338, %v1556_v36  ;;  %v1616_v10 = vsel %vm1597_vm8, %v10519_v59, -inf  ;;  %v10563_v36 = vmul.f32 0.35355338, %v8268_v46 }
 0x3f8   : > { %v8217_v52 = vpop.f32.mrf.mxu1  ;;  %1599 = vmax.xlane.f32.xlu0 %v1598_v57 }
 0x3f9   : > { %v1610_v58 = vsel %vm1597_vm8, %v10527_v1, -inf  ;;  %v10547_v38 = vmul.f32 0.35355338, %v8217_v52 }
 0x3fa   : > { %v1559_v5 = vpop.f32.mrf.mxu1  ;;  %2014 = vmax.xlane.f32.xlu1 %v2013_v63  ;;  %v10567_v63 = vmul.f32 0.35355338, %v1988_v45 }
 0x3fb   : > { %v10555_v3 = vmul.f32 0.35355338, %v1559_v5  ;;  %v1619_v2 = vsel %vm1597_vm8, %v10547_v38, -inf }
 0x3fc   : > { %v8220_v53 = vpop.f32.mrf.mxu1  ;;  %2011 = vmax.xlane.f32.xlu0 %v2010_v8 }
 0x3fd   : > { %v10551_v28 = vmul.f32 0.35355338, %v8220_v53  ;;  %v1613_v57 = vsel %vm1597_vm8, %v10555_v3, -inf  ;;  %v10572_v53 = vmul.f32 0.35355338, %v10503_v32 }
 0x3fe   : > { %v1572_v11 = vpop.f32.mrf.mxu1  ;;  %1617 = vmax.xlane.f32.xlu1 %v1616_v10  ;;  %v2040_v10 = vsel %vm1628_vm9, %v10563_v36, -inf }
 0x3ff   : > { %v10559_v23 = vmul.f32 0.35355338, %v1572_v11  ;;  %v1629_v35 = vsel %vm1628_vm9, %v10551_v28, -inf }
 0x400   : > { %v8221_v39 = vpop.f32.mrf.mxu1  ;;  %1608 = vmax.xlane.f32.xlu0 %v1607_v16 }
 0x401   : > { %v1622_v5 = vsel %vm1597_vm8, %v10559_v23, -inf  ;;  %v2037_v39 = vsel %vm1597_vm8, %v10567_v63, -inf }
 0x402   : > { %1611 = vmax.xlane.f32.xlu1 %v1610_v58  ;;  %v1575_v46 = vpop.f32.mrf.mxu1 }
 0x404   : > { %2029 = vmax.xlane.f32.xlu0 %v2028_v54  ;;  %v10580_v54 = vmul.f32 0.35355338, %v1575_v46 }
 0x406   : > { %2032 = vmax.xlane.f32.xlu1 %v2031_v12  ;;  %v2034_v12 = vsel %vm1597_vm8, %v10572_v53, -inf }
 0x408   : > { %2023 = vmax.xlane.f32.xlu0 %v2022_v61 }
 0x40a   : > { %2026 = vmax.xlane.f32.xlu1 %v2025_v17 }
 0x40c   : > { %1620 = vmax.xlane.f32.xlu0 %v1619_v2 }
 0x40e   : > { %1630 = vmax.xlane.f32.xlu1 %v1629_v35  ;;  %v8308_v62 = vpop.f32.mrf.mxu0  ;;  %v1625_v35 = vsel %vm1597_vm8, %v10580_v54, -inf }
 0x40f   : > { %v10576_v16 = vmul.f32 0.35355338, %v8308_v62 }
 0x410   : > { %1614 = vmax.xlane.f32.xlu0 %v1613_v57  ;;  %v2406_v52 = vpop.f32.mrf.mxu0 }
 0x411   : > { %v10584_v61 = vmul.f32 0.35355338, %v2406_v52  ;;  %v2469_v17 = vsel %vm1597_vm8, %v10576_v16, -inf }
 0x412   : > { %1623 = vmax.xlane.f32.xlu1 %v1622_v5  ;;  %v8309_v8 = vpop.f32.mrf.mxu0 }
 0x413   : > { %v10588_v45 = vmul.f32 0.35355338, %v8309_v8  ;;  %v2463_v5 = vsel %vm1597_vm8, %v10584_v61, -inf }
 0x414   : > { %2041 = vmax.xlane.f32.xlu0 %v2040_v10  ;;  %v2409_v11 = vpop.f32.mrf.mxu0 }
 0x415   : > { %v10596_v10 = vmul.f32 0.35355338, %v2409_v11  ;;  %v2472_v46 = vsel %vm1597_vm8, %v10588_v45, -inf }
 0x416   : > { %2038 = vmax.xlane.f32.xlu1 %v2037_v39  ;;  %v8312_v58 = vpop.f32.mrf.mxu0 }
 0x417   : > { %v10592_v57 = vmul.f32 0.35355338, %v8312_v58 }
 0x418   : > { %2035 = vmax.xlane.f32.xlu0 %v2034_v12  ;;  %v2422_v32 = vpop.f32.mrf.mxu0 }
 0x419   : > { %v10600_v39 = vmul.f32 0.35355338, %v2422_v32  ;;  %v2481_v12 = vsel %vm1597_vm8, %v10592_v57, -inf }
 0x41a   : > { %2470 = vmax.xlane.f32.xlu1 %v2469_v17  ;;  %v8313_v2 = vpop.f32.mrf.mxu0 }
 0x41b   : > { %v10604_v17 = vmul.f32 0.35355338, %v8313_v2 }
 0x41c   : > { %1626 = vmax.xlane.f32.xlu0 %v1625_v35  ;;  %v2425_v62 = vpop.f32.mrf.mxu0  ;;  %v2466_v35 = vsel %vm1597_vm8, %v10596_v10, -inf }
 0x41d   : > { %v2484_v32 = vsel %vm1597_vm8, %v10604_v17, -inf }
 0x41e   : > { %2464 = vmax.xlane.f32.xlu1 %v2463_v5  ;;  %v8316_v52 = vpop.f32.mrf.mxu0  ;;  %v2475_v5 = vsel %vm1597_vm8, %v10600_v39, -inf }
 0x41f   : > { %v10608_v11 = vmul.f32 0.35355338, %v8316_v52 }
 0x420   : > { %2473 = vmax.xlane.f32.xlu0 %v2472_v46  ;;  %v2438_v8 = vpop.f32.mrf.mxu0  ;;  %v10612_v46 = vmul.f32 0.35355338, %v2425_v62 }
 0x421   : > { %v2493_v2 = vsel %vm1628_vm9, %v10608_v11, -inf }
 0x422   : > { %2482 = vmax.xlane.f32.xlu1 %v2481_v12  ;;  %v8317_v58 = vpop.f32.mrf.mxu0  ;;  %v10616_v12 = vmul.f32 0.35355338, %v2438_v8  ;;  %v2478_v52 = vsel %vm1597_vm8, %v10612_v46, -inf  ;;  %v10628_v8 = vpop.permute.xlu0 %2600 }
 0x424   : > { %2467 = vmax.xlane.f32.xlu0 %v2466_v35  ;;  %v2441_v60 = vpop.f32.mrf.mxu0  ;;  %v2487_v62 = vsel %vm1597_vm8, %v10616_v12, -inf }
 0x425   : > { %v10620_v58 = vmul.f32 0.35355338, %v2441_v60 }
 0x426   : > { %2476 = vmax.xlane.f32.xlu1 %v2475_v5 }
 0x427   : > { %v2490_v35 = vsel %vm1597_vm8, %v10620_v58, -inf }
 0x428   : > { %2485 = vmax.xlane.f32.xlu0 %v2484_v32 }
 0x42a   : > { %2494 = vmax.xlane.f32.xlu1 %v2493_v2 }
 0x42c   : > { %2479 = vmax.xlane.f32.xlu0 %v2478_v52 }
 0x42e   : > { %2488 = vmax.xlane.f32.xlu1 %v2487_v62 }
 0x430   : > { %2491 = vmax.xlane.f32.xlu0 %v2490_v35 }
 0x46f   : > { %v2021_v2 = vpop.xlane.xlu1 %2020 }
 0x470   : > { %v2046_v21 = vsub.f32 %v10484_v6, %v2021_v2 }
 0x479   : > { %v1606_v5 = vpop.xlane.xlu0 %1605 }
 0x47a   : > { %v1634_v32 = vsub.f32 %v10497_v25, %v1606_v5  ;;  %v2060_v5 = vmul.f32 1.442695, %v2046_v21 }
 0x47c   : > { %v1647_v60 = vmul.f32 1.442695, %v1634_v32 }
 0x47d   : > { %v2018_v56 = vpop.xlane.xlu0 %2017 }
 0x47e   : > { %8964 = vpow2.f32 %v1647_v60  ;;  %v2045_v9 = vsub.f32 %v10499_v22, %v2018_v56 }
 0x47f   : > { %v1603_v52 = vpop.xlane.xlu1 %1602 }
 0x480   : > { %v2058_v26 = vmul.f32 1.442695, %v2045_v9  ;;  %v1633_v32 = vsub.f32 %v10507_v0, %v1603_v52 }
 0x481   : > { %v1600_v40 = vpop.xlane.xlu0 %1599 }
 0x482   : > { %8966 = vpow2.f32 %v2058_v26  ;;  %v1632_v62 = vsub.f32 %v10505_v30, %v1600_v40  ;;  %v1645_v40 = vmul.f32 1.442695, %v1633_v32 }
 0x483   : > { %v2015_v35 = vpop.xlane.xlu1 %2014 }
 0x484   : > { %v1643_v15 = vmul.f32 1.442695, %v1632_v62  ;;  %v2044_v22 = vsub.f32 %v10511_v37, %v2015_v35 }
 0x485   : > { %v2012_v49 = vpop.xlane.xlu0 %2011 }
 0x486   : > { %8968 = vpow2.f32 %v1643_v15  ;;  %v2043_v25 = vsub.f32 %v10515_v41, %v2012_v49 }
 0x487   : > { %v1618_v60 = vpop.xlane.xlu1 %1617 }
 0x488   : > { %v2054_v31 = vmul.f32 1.442695, %v2043_v25 }
 0x489   : > { %v1609_v56 = vpop.xlane.xlu0 %1608 }
 0x48a   : > { %8970 = vpow2.f32 %v2054_v31  ;;  %v1635_v9 = vsub.f32 %v10523_v7, %v1609_v56  ;;  %v1638_v31 = vsub.f32 %v10519_v59, %v1618_v60  ;;  %v2056_v7 = vmul.f32 1.442695, %v2044_v22 }
 0x48b   : > { %v10637_v26 = vpop.eup %8964  ;;  %8972 = vpow2.f32 %v2060_v5  ;;  %v1612_v6 = vpop.xlane.xlu1 %1611 }
 0x48c   : > { %v1649_v30 = vmul.f32 1.442695, %v1635_v9  ;;  %v1671_v49 = vsel %vm1597_vm8, %v10637_v26, 0.0  ;;  %v1655_v35 = vmul.f32 1.442695, %v1638_v31  ;;  %v1636_v25 = vsub.f32 %v10527_v1, %v1612_v6 }
 0x48d   : > { %1672 = vadd.xlane.f32.xlu0 %v1671_v49  ;;  %v2030_v15 = vpop.xlane.xlu0 %2029 }
 0x48e   : > { %8974 = vpow2.f32 %v1649_v30  ;;  %v2049_v21 = vsub.f32 %v10531_v14, %v2030_v15  ;;  %v1651_v9 = vmul.f32 1.442695, %v1636_v25 }
 0x48f   : > { %v10643_v0 = vpop.eup %8966  ;;  %8976 = vpow2.f32 %v1645_v40  ;;  %v2033_v41 = vpop.xlane.xlu1 %2032 }
 0x490   : > { %v2066_v2 = vmul.f32 1.442695, %v2049_v21  ;;  %v2082_v37 = vsel %vm1597_vm8, %v10643_v0, 0.0 }
 0x491   : > { %2083 = vadd.xlane.f32.xlu0 %v2082_v37  ;;  %v2024_v52 = vpop.xlane.xlu0 %2023 }
 0x492   : > { %8978 = vpow2.f32 %v2066_v2  ;;  %v2047_v30 = vsub.f32 %v10539_v19, %v2024_v52 }
 0x493   : > { %v10648_v62 = vpop.eup %8968  ;;  %v2027_v14 = vpop.xlane.xlu1 %2026  ;;  %8980 = vpow2.f32 %v2056_v7 }
 0x494   : > { %v2048_v5 = vsub.f32 %v10543_v27, %v2027_v14  ;;  %v1665_v59 = vsel %vm1597_vm8, %v10648_v62, 0.0  ;;  %8982 = vpow2.f32 %v1655_v35  ;;  %v2062_v19 = vmul.f32 1.442695, %v2047_v30 }
 0x495   : > { %1666 = vadd.xlane.f32.xlu0 %v1665_v59  ;;  %v1621_v32 = vpop.xlane.xlu0 %1620 }
 0x496   : > { %v2064_v60 = vmul.f32 1.442695, %v2048_v5  ;;  %v1639_v21 = vsub.f32 %v10547_v38, %v1621_v32  ;;  %v2050_v38 = vsub.f32 %v10535_v13, %v2033_v41 }
 0x497   : > { %v10654_v56 = vpop.eup %8970  ;;  %v1631_v40 = vpop.xlane.xlu1 %1630 }
 0x498   : > { %v10656_v22 = vpop.eup %8972  ;;  %8984 = vpow2.f32 %v2064_v60  ;;  %v1642_v1 = vsub.f32 %v10551_v28, %v1631_v40  ;;  %v2076_v27 = vsel %vm1597_vm8, %v10654_v56, 0.0  ;;  %v1657_v14 = vmul.f32 1.442695, %v1639_v21 }
 0x499   : > { %2077 = vadd.xlane.f32.xlu0 %v2076_v27  ;;  %v1615_v6 = vpop.xlane.xlu0 %1614  ;;  %8986 = vpow2.f32 %v1651_v9  ;;  %v2085_v7 = vsel %vm1597_vm8, %v10656_v22, 0.0  ;;  %v2068_v9 = vmul.f32 1.442695, %v2050_v38 }
 0x49a   : > { %v1663_v49 = vmul.f32 1.442695, %v1642_v1  ;;  %v1637_v13 = vsub.f32 %v10555_v3, %v1615_v6 }
 0x49b   : > { %v10662_v15 = vpop.eup %8974  ;;  %v1624_v31 = vpop.xlane.xlu1 %1623 }
 0x49c   : > { %v10667_v2 = vpop.eup %8976  ;;  %8988 = vpow2.f32 %v1663_v49  ;;  %v1640_v28 = vsub.f32 %v10559_v23, %v1624_v31  ;;  %v1674_v37 = vsel %vm1597_vm8, %v10662_v15, 0.0  ;;  %v1653_v27 = vmul.f32 1.442695, %v1637_v13 }
 0x49d   : > { %2086 = vadd.xlane.f32.xlu0 %v2085_v7  ;;  %1675 = vadd.xlane.f32.xlu1 %v1674_v37  ;;  %v2042_v52 = vpop.xlane.xlu0 %2041  ;;  %v1668_v5 = vsel %vm1597_vm8, %v10667_v2, 0.0  ;;  %8990 = vpow2.f32 %v2062_v19 }
 0x49e   : > { %v2053_v35 = vsub.f32 %v10563_v36, %v2042_v52  ;;  %v1659_v59 = vmul.f32 1.442695, %v1640_v28 }
 0x49f   : > { %v10673_v25 = vpop.eup %8978 }
 0x4a0   : > { %13877 = vst [vmem:[#allocation23_spill] sm:$0xff] %v10673_v25  ;;  %v2074_v32 = vmul.f32 1.442695, %v2053_v35  ;;  %v2094_v23 = vsel %vm1597_vm8, %v10673_v25, 0.0  ;;  %v10680_v60 = vpop.eup %8980 }
 0x4a1   : > { %1669 = vadd.xlane.f32.xlu1 %v1668_v5  ;;  %2095 = vadd.xlane.f32.xlu0 %v2094_v23  ;;  %v10682_v36 = vpop.eup %8982  ;;  %v2079_v41 = vsel %vm1597_vm8, %v10680_v60, 0.0  ;;  %v2036_v23 = vpop.xlane.xlu0 %2035 }
 0x4a2   : > { %8992 = vpow2.f32 %v2074_v32  ;;  %v1683_v49 = vsel %vm1597_vm8, %v10682_v36, 0.0 }
 0x4a3   : > { %8994 = vpow2.f32 %v1657_v14 }
 0x4a4   : > { %8996 = vpow2.f32 %v1659_v59 }
 0x4a5   : > { %v10687_v40 = vpop.eup %8984  ;;  %2080 = vadd.xlane.f32.xlu1 %v2079_v41  ;;  %8998 = vpow2.f32 %v2068_v9  ;;  %v2039_v9 = vpop.xlane.xlu1 %2038 }
 0x4a6   : > { %v2091_v30 = vsel %vm1597_vm8, %v10687_v40, 0.0  ;;  %v10691_v1 = vpop.eup %8986  ;;  %9000 = vpow2.f32 %v1653_v27  ;;  %v1627_v13 = vpop.xlane.xlu0 %1626  ;;  %v2052_v27 = vsub.f32 %v10567_v63, %v2039_v9 }
 0x4a7   : > { %2092 = vadd.xlane.f32.xlu0 %v2091_v30  ;;  %v1677_v6 = vsel %vm1597_vm8, %v10691_v1, 0.0 }
 0x4a9   : > { %v10695_v21 = vpop.eup %8988  ;;  %1684 = vadd.xlane.f32.xlu1 %v1683_v49  ;;  %v2471_v41 = vpop.xlane.xlu1 %2470 }
 0x4aa   : > { %v1695_v3 = vsel %vm1628_vm9, %v10695_v21, 0.0  ;;  %v10701_v31 = vpop.eup %8990  ;;  %v2474_v30 = vpop.xlane.xlu0 %2473  ;;  %v2498_v9 = vsub.f32 %v10576_v16, %v2471_v41 }
 0x4ab   : > { %1696 = vadd.xlane.f32.xlu0 %v1695_v3  ;;  %v2088_v28 = vsel %vm1597_vm8, %v10701_v31, 0.0  ;;  %v2072_v3 = vmul.f32 1.442695, %v2052_v27 }
 0x4ac   : > { %v2511_v27 = vmul.f32 1.442695, %v2498_v9 }
 0x4ad   : > { %1678 = vadd.xlane.f32.xlu1 %v1677_v6  ;;  %v2465_v49 = vpop.xlane.xlu1 %2464  ;;  %v2499_v6 = vsub.f32 %v10588_v45, %v2474_v30  ;;  %9002 = vpow2.f32 %v2072_v3 }
 0x4af   : > { %v10703_v7 = vpop.eup %8992 }
 0x4b0   : > { %13878 = vst [vmem:[#allocation24_spill] sm:$0xff] %v10703_v7  ;;  %v10705_v19 = vpop.eup %8994  ;;  %v2106_v37 = vsel %vm1628_vm9, %v10703_v7, 0.0  ;;  %v1641_v7 = vsub.f32 %v10580_v54, %v1627_v13 }
 0x4b1   : > { %v10711_v52 = vpop.eup %8996  ;;  %2089 = vadd.xlane.f32.xlu1 %v2088_v28  ;;  %2107 = vadd.xlane.f32.xlu0 %v2106_v37  ;;  %v1686_v35 = vsel %vm1597_vm8, %v10705_v19, 0.0  ;;  %v2468_v28 = vpop.xlane.xlu0 %2467  ;;  %v2051_v37 = vsub.f32 %v10572_v53, %v2036_v23 }
 0x4b2   : > { %v1689_v38 = vsel %vm1597_vm8, %v10711_v52, 0.0  ;;  %v10717_v14 = vpop.eup %8998  ;;  %v1661_v45 = vmul.f32 1.442695, %v1641_v7 }
 0x4b3   : > { %v2097_v5 = vsel %vm1597_vm8, %v10717_v14, 0.0  ;;  %v10721_v59 = vpop.eup %9000 }
 0x4b4   : > { %v1680_v32 = vsel %vm1597_vm8, %v10721_v59, 0.0 }
 0x4b5   : > { %1687 = vadd.xlane.f32.xlu1 %v1686_v35  ;;  %1690 = vadd.xlane.f32.xlu0 %v1689_v38  ;;  %v2483_v35 = vpop.xlane.xlu1 %2482  ;;  %v2513_v38 = vmul.f32 1.442695, %v2499_v6  ;;  %v2486_v23 = vpop.xlane.xlu0 %2485 }
 0x4b6   : > { %v2502_v55 = vsub.f32 %v10592_v57, %v2483_v35  ;;  %v2503_v57 = vsub.f32 %v10604_v17, %v2486_v23 }
 0x4b7   : > { %9004 = vpow2.f32 %v2513_v38 }
 0x4b8   : > { %v2519_v30 = vmul.f32 1.442695, %v2502_v55  ;;  %v2521_v55 = vmul.f32 1.442695, %v2503_v57 }
 0x4b9   : > { %2098 = vadd.xlane.f32.xlu1 %v2097_v5  ;;  %v2497_v5 = vsub.f32 %v10596_v10, %v2468_v28  ;;  %v2477_v63 = vpop.xlane.xlu1 %2476  ;;  %v2496_v10 = vsub.f32 %v10584_v61, %v2465_v49  ;;  %v2480_v16 = vpop.xlane.xlu0 %2479 }
 0x4ba   : > { %v2500_v53 = vsub.f32 %v10600_v39, %v2477_v63  ;;  %v10739_v13 = vpop.eup %9002 }
 0x4bb   : > { %v2509_v25 = vmul.f32 1.442695, %v2497_v5  ;;  %v2507_v6 = vmul.f32 1.442695, %v2496_v10  ;;  %v2103_v39 = vsel %vm1597_vm8, %v10739_v13, 0.0 }
 0x4bc   : > { %v2515_v54 = vmul.f32 1.442695, %v2500_v53 }
 0x4bd   : > { %1681 = vadd.xlane.f32.xlu1 %v1680_v32  ;;  %v2070_v32 = vmul.f32 1.442695, %v2051_v37  ;;  %v2495_v3 = vpop.xlane.xlu1 %2494 }
 0x4bf   : > { %9006 = vpow2.f32 %v2070_v32 }
 0x4c0   : > { %9008 = vpow2.f32 %v2509_v25  ;;  %v2506_v25 = vsub.f32 %v10608_v11, %v2495_v3  ;;  %v2492_v11 = vpop.xlane.xlu0 %2491 }
 0x4c1   : > { %9010 = vpow2.f32 %v1661_v45  ;;  %v2489_v61 = vpop.xlane.xlu1 %2488  ;;  %v2505_v32 = vsub.f32 %v10620_v58, %v2492_v11 }
 0x4c2   : > { %9012 = vpow2.f32 %v2519_v30  ;;  %v2527_v17 = vmul.f32 1.442695, %v2506_v25  ;;  %v2504_v49 = vsub.f32 %v10616_v12, %v2489_v61 }
 0x4c3   : > { %9014 = vpow2.f32 %v2511_v27  ;;  %v2525_v45 = vmul.f32 1.442695, %v2505_v32 }
 0x4c4   : > { %9016 = vpow2.f32 %v2515_v54  ;;  %v10744_v7 = vpop.eup %9004  ;;  %v2523_v5 = vmul.f32 1.442695, %v2504_v49  ;;  %v2501_v49 = vsub.f32 %v10612_v46, %v2480_v16 }
 0x4c5   : > { %9018 = vpow2.f32 %v2507_v6  ;;  %v2538_v28 = vsel %vm1597_vm8, %v10744_v7, 0.0 }
 0x4c6   : > { %9020 = vpow2.f32 %v2521_v55  ;;  %v2517_v11 = vmul.f32 1.442695, %v2501_v49 }
 0x4c7   : > { %9022 = vpow2.f32 %v2527_v17 }
 0x4c8   : > { %9024 = vpow2.f32 %v2523_v5 }
 0x4c9   : > { %9026 = vpow2.f32 %v2525_v45 }
 0x4ca   : > { %9028 = vpow2.f32 %v2517_v11 }
 0x4cb   : > { %2590 = vrot.lane.b32.xlu0 %v10232_v47, %s9664_s29 }
 0x4cc   : > { %v10746_v41 = vpop.eup %9006 }
 0x4cd   : > { %v10751_v37 = vpop.eup %9008  ;;  %v2100_v35 = vsel %vm1597_vm8, %v10746_v41, 0.0 }
 0x4ce   : > { %2787 = vrot.lane.b32.xlu1 %v10236_v50, %s9666_s30  ;;  %v10755_v38 = vpop.eup %9010  ;;  %v2532_v63 = vsel %vm1597_vm8, %v10751_v37, 0.0 }
 0x4cf   : > { %v10760_v12 = vpop.eup %9012  ;;  %v1692_v30 = vsel %vm1597_vm8, %v10755_v38, 0.0 }
 0x4d0   : > { %v10762_v9 = vpop.eup %9014  ;;  %v2547_v53 = vsel %vm1597_vm8, %v10760_v12, 0.0 }
 0x4d1   : > { %v10768_v23 = vpop.eup %9016  ;;  %v2535_v27 = vsel %vm1597_vm8, %v10762_v9, 0.0 }
 0x4d2   : > { %v10770_v58 = vpop.eup %9018  ;;  %v2541_v10 = vsel %vm1597_vm8, %v10768_v23, 0.0 }
 0x4d3   : > { %v10776_v3 = vpop.eup %9020  ;;  %v2529_v54 = vsel %vm1597_vm8, %v10770_v58, 0.0 }
 0x4d4   : > { %v2550_v57 = vsel %vm1597_vm8, %v10776_v3, 0.0  ;;  %v10782_v6 = vpop.eup %9022 }
 0x4d5   : > { %v2559_v55 = vsel %vm1628_vm9, %v10782_v6, 0.0  ;;  %v10786_v25 = vpop.eup %9024 }
 0x4d6   : > { %v10790_v61 = vpop.eup %9026 }
 0x4d7   : > { %v2556_v17 = vsel %vm1597_vm8, %v10790_v61, 0.0 }
 0x4ea   : > { %2104 = vadd.xlane.f32.xlu0 %v2103_v39  ;;  %v2553_v39 = vsel %vm1597_vm8, %v10786_v25, 0.0 }
 0x4ee   : > { %2539 = vadd.xlane.f32.xlu0 %v2538_v28 }
 0x4f2   : > { %2101 = vadd.xlane.f32.xlu1 %v2100_v35  ;;  %2533 = vadd.xlane.f32.xlu0 %v2532_v63  ;;  %v10809_v63 = vpop.eup %9028 }
 0x4f6   : > { %1693 = vadd.xlane.f32.xlu1 %v1692_v30  ;;  %2548 = vadd.xlane.f32.xlu0 %v2547_v53  ;;  %v2544_v30 = vsel %vm1597_vm8, %v10809_v63, 0.0 }
 0x4fa   : > { %2536 = vadd.xlane.f32.xlu1 %v2535_v27  ;;  %2542 = vadd.xlane.f32.xlu0 %v2541_v10 }
 0x4fe   : > { %2530 = vadd.xlane.f32.xlu1 %v2529_v54  ;;  %2551 = vadd.xlane.f32.xlu0 %v2550_v57 }
 0x502   : > { %2560 = vadd.xlane.f32.xlu0 %v2559_v55 }
 0x506   : > { %2554 = vadd.xlane.f32.xlu0 %v2553_v39 }
 0x50a   : > { %2557 = vadd.xlane.f32.xlu0 %v2556_v17 }
 0x50f   : > { %2785 = vrot.lane.b32.xlu1 %v10244_v20, %s9666_s30 }
 0x516   : > { %v1673_v28 = vpop.xlane.xlu0 %1672 }
 0x51a   : > { %v10797_v35 = vpop.xlane.xlu0 %2083 }
 0x51e   : > { %v1667_v5 = vpop.xlane.xlu0 %1666 }
 0x520   : > { %2783 = vrot.lane.b32.xlu0 %v10254_v43, %s9666_s30 }
 0x524   : > { %2769 = vrot.lane.b32.xlu0 %v10262_v18, %s9667_s2 }
 0x526   : > { %v1676_v32 = vpop.xlane.xlu1 %1675 }
 0x527   : > { %9030 = vrcp.f32 %v1676_v32 }
 0x528   : > { %2773 = vrot.lane.b32.xlu0 %v10244_v20, %s9667_s2  ;;  %9032 = vrcp.f32 %v1667_v5 }
 0x529   : > { %9034 = vrcp.f32 %v1673_v28 }
 0x52a   : > { %v1670_v46 = vpop.xlane.xlu1 %1669 }
 0x52b   : > { %9036 = vrcp.f32 %v1670_v46 }
 0x52c   : > { %3053 = vrot.lane.b32.xlu0 %v10236_v50, %s9668_s21 }
 0x52e   : > { %v10807_v16 = vpop.xlane.xlu1 %2080 }
 0x532   : > { %v1685_v45 = vpop.xlane.xlu1 %1684 }
 0x533   : > { %2545 = vadd.xlane.f32.xlu1 %v2544_v30 }
 0x534   : > { %v9031_v53 = vpop.eup %9030 }
 0x535   : > { %v9033_v27 = vpop.eup %9032  ;;  %v1712_v55 = vmul.f32 %v9031_v53, %v10662_v15 }
 0x536   : > { %v1679_v10 = vpop.xlane.xlu1 %1678  ;;  %v9035_v54 = vpop.eup %9034  ;;  %v1709_v39 = vmul.f32 %v9033_v27, %v10648_v62 }
 0x537   : > { %v1711_v49 = vmul.f32 %v9035_v54, %v10637_v26 }
 0x538   : > { %v9037_v57 = vpop.eup %9036 }
 0x539   : > { %v1710_v17 = vmul.f32 %v9037_v57, %v10667_v2  ;;  %v1721_v5 = vpack.c.bf16 %v1712_v55, %v1711_v49  ;;  %v10843_v2 = vand.u32 %v10628_v8, %v10447_v44 }
 0x53a   : > { %v10817_v28 = vpop.xlane.xlu1 %2089 }
 0x53b   : > { %v1720_v11 = vpack.c.bf16 %v1710_v17, %v1709_v39 }
 0x53d   : > { %8234 = vmatprep.mubr.msk.bf16.mxu1 %vm1597_vm8, %v1720_v11 }
 0x53e   : > { %v1688_v32 = vpop.xlane.xlu1 %1687  ;;  %8235 = vmatmul.mubr.msk.bf16.vlgmr.msra.gmra.mxu1 %vm1597_vm8, %v1721_v5 }
 0x53f   : > { %8271 = vmatpush3.bf16.msra.mxu1 %v10477_v48  ;;  %9038 = vrcp.f32 %v1688_v32  ;;  %v2078_v48 = vpop.xlane.xlu0 %2077 }
 0x540   : > { %8272 = vmatprep.subr.bf16.mxu1 %v10431_v29  ;;  %9040 = vrcp.f32 %v1679_v10 }
 0x541   : > { %9042 = vrcp.f32 %v1685_v45 }
 0x542   : > { %v10823_v15 = vpop.xlane.xlu1 %2098 }
 0x543   : > { %8273 = vmatpush3.bf16.msra.mxu1 %v10431_v29  ;;  %v2087_v29 = vpop.xlane.xlu0 %2086 }
 0x544   : > { %8274 = vmatprep.subr.bf16.mxu1 %v10455_v34  ;;  %2781 = vrot.lane.b32.xlu1 %v10262_v18, %s9666_s30 }
 0x546   : > { %v1682_v26 = vpop.xlane.xlu1 %1681 }
 0x547   : > { %9044 = vrcp.f32 %v1682_v26  ;;  %8275 = vmatpush3.bf16.msra.mxu1 %v10455_v34  ;;  %v2096_v45 = vpop.xlane.xlu0 %2095 }
 0x548   : > { %8276 = vmatprep.subr.bf16.mxu1 %v10459_v4  ;;  %2779 = vrot.lane.b32.xlu1 %v10274_v24, %s9666_s30  ;;  %9046 = vrcp.f32 %v10807_v16 }
 0x54a   : > { %v10867_v57 = vpop.permute.xlu1 %2787 }
 0x54b   : > { %8277 = vmatpush3.bf16.msra.mxu1 %v10459_v4  ;;  %v2093_v10 = vpop.xlane.xlu0 %2092 }
 0x54c   : > { %8278 = vmatprep.subr.bf16.mxu1 %v10438_v33  ;;  %2777 = vrot.lane.b32.xlu1 %v10232_v47, %s9666_s30  ;;  %v9039_v34 = vpop.eup %9038 }
 0x54d   : > { %v9041_v62 = vpop.eup %9040 }
 0x54e   : > { %v9043_v4 = vpop.eup %9042  ;;  %v1713_v30 = vmul.f32 %v9041_v62, %v10691_v1 }
 0x54f   : > { %8279 = vmatpush3.bf16.msra.mxu1 %v10438_v33  ;;  %v1716_v33 = vmul.f32 %v9039_v34, %v10705_v19  ;;  %v1715_v27 = vmul.f32 %v9043_v4, %v10682_v36  ;;  %v1697_v19 = vpop.xlane.xlu0 %1696 }
 0x550   : > { %8280 = vmatprep.subr.bf16.mxu1 %v10464_v42  ;;  %2765 = vrot.lane.b32.xlu1 %v10232_v47, %s9667_s2  ;;  %9048 = vrcp.f32 %v1697_v19 }
 0x553   : > { %8281 = vmatpush3.bf16.msra.mxu1 %v10464_v42  ;;  %v1723_v42 = vpack.c.bf16 %v1716_v33, %v1715_v27  ;;  %v2108_v1 = vpop.xlane.xlu0 %2107 }
 0x554   : > { %v9045_v46 = vpop.eup %9044  ;;  %8318 = vmatprep.subr.bf16.mxu1 %v10843_v2  ;;  %2767 = vrot.lane.b32.xlu1 %v10274_v24, %s9667_s2 }
 0x555   : > { %v1714_v53 = vmul.f32 %v9045_v46, %v10721_v59  ;;  %v9047_v49 = vpop.eup %9046 }
 0x557   : > { %v1722_v8 = vpack.c.bf16 %v1714_v53, %v1713_v30  ;;  %v1691_v36 = vpop.xlane.xlu0 %1690 }
 0x558   : > { %2771 = vrot.lane.b32.xlu1 %v10254_v43, %s9667_s2  ;;  %9050 = vrcp.f32 %v1691_v36 }
 0x559   : > { %8238 = vmatprep.mubr.msk.bf16.mxu1 %vm1597_vm8, %v1722_v8  ;;  %9052 = vrcp.f32 %v2078_v48 }
 0x55a   : > { %8239 = vmatmul.mubr.msk.bf16.gmra.mxu1 %vm1597_vm8, %v1723_v42 }
 0x55b   : > { %v10865_v59 = vpop.permute.xlu0 %2590 }
 0x55c   : > { %2775 = vrot.lane.b32.xlu1 %v10236_v50, %s9667_s2 }
 0x55d   : > { %v9049_v11 = vpop.eup %9048 }
 0x55e   : > { %v1719_v34 = vmul.f32 %v9049_v11, %v10695_v21 }
 0x560   : > { %3051 = vrot.lane.b32.xlu1 %v10244_v20, %s9668_s21  ;;  %v1725_v33 = vpack.c.bf16 %v1719_v34, %v1719_v34 }
 0x564   : > { %3049 = vrot.lane.b32.xlu1 %v10254_v43, %s9668_s21 }
 0x565   : > { %v9051_v16 = vpop.eup %9050 }
 0x566   : > { %v9053_v32 = vpop.eup %9052 }
 0x567   : > { %v2120_v46 = vmul.f32 %v9053_v32, %v10654_v56 }
 0x568   : > { %3045 = vrot.lane.b32.xlu1 %v10274_v24, %s9668_s21 }
 0x573   : > { %v2105_v54 = vpop.xlane.xlu0 %2104 }
 0x577   : > { %v10869_v55 = vpop.xlane.xlu0 %2539 }
 0x57b   : > { %v2102_v50 = vpop.xlane.xlu1 %2101  ;;  %v2534_v39 = vpop.xlane.xlu0 %2533 }
 0x57f   : > { %v1694_v20 = vpop.xlane.xlu1 %1693  ;;  %v10872_v43 = vpop.xlane.xlu0 %2548 }
 0x580   : > { %9054 = vrcp.f32 %v1694_v20 }
 0x581   : > { %9056 = vrcp.f32 %v2087_v29  ;;  %v2121_v29 = vmul.f32 %v9047_v49, %v10680_v60  ;;  %v13880_v49 = vld [vmem:[#allocation19_spill] sm:$0xff] }
 0x582   : > { %9058 = vrcp.f32 %v10817_v28  ;;  %v1717_v28 = vmul.f32 %v9051_v16, %v10711_v52 }
 0x583   : > { %v10874_v24 = vpop.xlane.xlu0 %2542  ;;  %9060 = vrcp.f32 %v10797_v35  ;;  %v2537_v48 = vpop.xlane.xlu1 %2536 }
 0x584   : > { %9062 = vrcp.f32 %v2093_v10 }
 0x585   : > { %9064 = vrcp.f32 %v10823_v15  ;;  %v2131_v15 = vpack.c.bf16 %v2121_v29, %v2120_v46 }
 0x586   : > { %9066 = vrcp.f32 %v2102_v50 }
 0x587   : > { %v10878_v17 = vpop.xlane.xlu0 %2551  ;;  %9068 = vrcp.f32 %v2096_v45  ;;  %v2531_v53 = vpop.xlane.xlu1 %2530 }
 0x588   : > { %9070 = vrcp.f32 %v2105_v54 }
 0x589   : > { %9072 = vrcp.f32 %v2108_v1 }
 0x58a   : > { %9074 = vrcp.f32 %v2531_v53 }
 0x58b   : > { %v10880_v5 = vpop.xlane.xlu0 %2560  ;;  %9076 = vrcp.f32 %v2534_v39  ;;  %v13879_v39 = vld [vmem:[#allocation23_spill] sm:$0xff] }
 0x58c   : > { %9078 = vrcp.f32 %v2537_v48  ;;  %v13881_v48 = vld [vmem:[#allocation18_spill] sm:$0xff] }
 0x58d   : > { %v9055_v26 = vpop.eup %9054  ;;  %9080 = vrcp.f32 %v10869_v55 }
 0x58e   : > { %v1718_v35 = vmul.f32 %v9055_v26, %v10755_v38  ;;  %v9057_v30 = vpop.eup %9056  ;;  %9082 = vrcp.f32 %v10872_v43 }
 0x58f   : > { %v10887_v62 = vpop.xlane.xlu0 %2554  ;;  %v9059_v21 = vpop.eup %9058  ;;  %v2123_v45 = vmul.f32 %v9057_v30, %v10656_v22  ;;  %9084 = vrcp.f32 %v10874_v24 }
 0x590   : > { %v1724_v4 = vpack.c.bf16 %v1718_v35, %v1717_v28  ;;  %v9061_v38 = vpop.eup %9060  ;;  %v2124_v56 = vmul.f32 %v9059_v21, %v10701_v31  ;;  %v13883_v35 = vld [vmem:[#allocation20_spill] sm:$0xff]  ;;  %v2786_v21 = vpop.permute.xlu1 %2785  ;;  %9086 = vrcp.f32 %v10878_v17 }
 0x591   : > { %v9063_v60 = vpop.eup %9062  ;;  %v2122_v27 = vmul.f32 %v9061_v38, %v10643_v0 }
 0x592   : > { %8242 = vmatprep.mubr.msk.bf16.mxu1 %vm1597_vm8, %v1724_v4  ;;  %v2125_v42 = vmul.f32 %v9063_v60, %v10687_v40  ;;  %v9065_v19 = vpop.eup %9064 }
 0x593   : > { %8243 = vmatmul.mubr.msk.bf16.gmra.mxu1 %vm1597_vm8, %v1725_v33  ;;  %v10892_v52 = vpop.xlane.xlu0 %2557  ;;  %v2132_v10 = vpack.c.bf16 %v2123_v45, %v2122_v27  ;;  %v9067_v54 = vpop.eup %9066  ;;  %v2127_v0 = vmul.f32 %v9065_v19, %v10717_v14 }
 0x594   : > { %8282 = vmatprep.mubr.msk.bf16.mxu1 %vm1597_vm8, %v2131_v15  ;;  %v2133_v36 = vpack.c.bf16 %v2125_v42, %v2124_v56  ;;  %v9069_v22 = vpop.eup %9068  ;;  %v2128_v40 = vmul.f32 %v9067_v54, %v10746_v41  ;;  %v2823_v15 = vsel %vm1469_vm5, %v10867_v57, 0  ;;  %9088 = vrcp.f32 %v10892_v52 }
 0x595   : > { %v9071_v31 = vpop.eup %9070  ;;  %v2126_v20 = vmul.f32 %v9069_v22, %v13879_v39  ;;  %9090 = vrcp.f32 %v10887_v62 }
 0x596   : > { %v9073_v16 = vpop.eup %9072 }
 0x597   : > { %v10898_v8 = vpop.permute.xlu0 %2783  ;;  %v2134_v11 = vpack.c.bf16 %v2127_v0, %v2126_v20  ;;  %v9075_v26 = vpop.eup %9074 }
 0x598   : > { %v9077_v55 = vpop.eup %9076  ;;  %v2573_v34 = vmul.f32 %v9075_v26, %v10770_v58 }
 0x599   : > { %v2574_v28 = vmul.f32 %v9077_v55, %v10751_v37  ;;  %v9079_v4 = vpop.eup %9078 }
 0x59a   : > { %v9081_v33 = vpop.eup %9080  ;;  %v2575_v30 = vmul.f32 %v9079_v4, %v10762_v9 }
 0x59b   : > { %8283 = vmatmul.mubr.msk.bf16.vlgmr.msra.gmra.mxu1 %vm1597_vm8, %v2132_v10  ;;  %v10902_v50 = vpop.permute.xlu0 %2769  ;;  %v2584_v46 = vpack.c.bf16 %v2574_v28, %v2573_v34  ;;  %v2576_v58 = vmul.f32 %v9081_v33, %v10744_v7  ;;  %v2820_v7 = vsel %vm1469_vm5, %v2786_v21, 0  ;;  %v9083_v24 = vpop.eup %9082 }
 0x59c   : > { %8319 = vmatpush3.bf16.msra.mxu1 %v10843_v2  ;;  %8286 = vmatprep.mubr.msk.bf16.mxu1 %vm1597_vm8, %v2133_v36  ;;  %v2129_v2 = vmul.f32 %v9071_v31, %v10739_v13  ;;  %v9085_v17 = vpop.eup %9084  ;;  %v2579_v10 = vmul.f32 %v9083_v24, %v10760_v12 }
 0x59d   : > { %8320 = vmatprep.subr.bf16.mxu1 %v10466_v51  ;;  %v2585_v37 = vpack.c.bf16 %v2576_v58, %v2575_v30  ;;  %v9087_v53 = vpop.eup %9086 }
 0x59e   : > { %v2135_v32 = vpack.c.bf16 %v2129_v2, %v2128_v40  ;;  %v2580_v45 = vmul.f32 %v9087_v53, %v10776_v3 }
 0x59f   : > { %v10910_v1 = vpop.permute.xlu0 %2773 }
 0x5a0   : > { %8321 = vmatpush3.bf16.msra.mxu1 %v10466_v51  ;;  %v13882_v51 = vld [vmem:[#allocation24_spill] sm:$0xff]  ;;  %v2587_v54 = vpack.c.bf16 %v2580_v45, %v2579_v10 }
 0x5a1   : > { %8322 = vmatprep.subr.bf16.mxu1 %v13880_v49  ;;  %v2130_v13 = vmul.f32 %v9073_v16, %v13882_v51  ;;  %v9089_v62 = vpop.eup %9088 }
 0x5a2   : > { %v9091_v38 = vpop.eup %9090 }
 0x5a3   : > { %8287 = vmatmul.mubr.msk.bf16.gmra.mxu1 %vm1597_vm8, %v2134_v11  ;;  %v3054_v14 = vpop.permute.xlu0 %3053  ;;  %v2136_v29 = vpack.c.bf16 %v2130_v13, %v2130_v13  ;;  %v2581_v36 = vmul.f32 %v9091_v38, %v10786_v25 }
 0x5a4   : > { %8323 = vmatpush3.bf16.msra.mxu1 %v13880_v49  ;;  %v3079_v41 = vand.u32 %v3054_v14, %v10447_v44  ;;  %8290 = vmatprep.mubr.msk.bf16.mxu1 %vm1597_vm8, %v2135_v32 }
 0x5a5   : > { %8324 = vmatprep.subr.bf16.mxu1 %v13881_v48 }
 0x5a6   : > { %8366 = vmatprep.subr.bf16.mxu0 %v3079_v41 }
 0x5a7   : > { %8367 = vmatpush3.bf16.msra.mxu0 %v3079_v41 }
 0x5a8   : > { %8325 = vmatpush3.bf16.msra.mxu1 %v13881_v48 }
 0x5a9   : > { %8326 = vmatprep.subr.bf16.mxu1 %v13883_v35 }
 0x5ab   : > { %8291 = vmatmul.mubr.msk.bf16.gmra.mxu1 %vm1597_vm8, %v2136_v29 }
 0x5ac   : > { %8327 = vmatpush3.bf16.msra.mxu1 %v13883_v35  ;;  %8330 = vmatprep.mubr.msk.bf16.mxu1 %vm1597_vm8, %v2584_v46 }
 0x5ad   : > { %8328 = vmatprep.subr.bf16.mxu1 %v10865_v59 }
 0x5b0   : > { %8329 = vmatpush3.bf16.msra.mxu1 %v10865_v59 }
 0x5b1   : > { %8808 = vmatprep.subr.msk.bf16.mxu1 %vm1469_vm5, %v10867_v57  ;;  %v2817_v57 = vsel %vm1469_vm5, %v10898_v8, 0 }
 0x5b3   : > { %8331 = vmatmul.mubr.msk.bf16.vlgmr.msra.gmra.mxu1 %vm1597_vm8, %v2585_v37 }
 0x5b4   : > { %8343 = vmatpush3.bf16.xpose.msra.mxu1 %v2823_v15 }
 0x5b5   : > { %8809 = vmatprep.subr.msk.bf16.mxu1 %vm1469_vm5, %v2786_v21 }
 0x5bc   : > { %8345 = vmatpush3.bf16.xpose.msra.mxu1 %v2820_v7  ;;  %v2546_v9 = vpop.xlane.xlu1 %2545 }
 0x5bd   : > { %9092 = vrcp.f32 %v2546_v9  ;;  %8810 = vmatprep.subr.msk.bf16.mxu1 %vm1469_vm5, %v10898_v8  ;;  %v2582_v8 = vmul.f32 %v9089_v62, %v10790_v61 }
 0x5be   : > { %9094 = vrcp.f32 %v10880_v5  ;;  %v2577_v5 = vmul.f32 %v9085_v17, %v10768_v23 }
 0x5bf   : > { %v2588_v3 = vpack.c.bf16 %v2582_v8, %v2581_v36 }
 0x5c0   : > { %v2782_v59 = vpop.permute.xlu1 %2781 }
 0x5c1   : > { %v2814_v56 = vsel %vm1469_vm5, %v2782_v59, 0 }
 0x5c4   : > { %8347 = vmatpush3.bf16.xpose.msra.mxu1 %v2817_v57  ;;  %v2780_v43 = vpop.permute.xlu1 %2779 }
 0x5c5   : > { %8811 = vmatprep.subr.msk.bf16.mxu1 %vm1469_vm5, %v2782_v59  ;;  %v2811_v61 = vsel %vm1469_vm5, %v2780_v43, 0 }
 0x5c8   : > { %v2778_v52 = vpop.permute.xlu1 %2777 }
 0x5c9   : > { %v2808_v0 = vsel %vm1469_vm5, %v2778_v52, 0 }
 0x5ca   : > { %v9093_v60 = vpop.eup %9092 }
 0x5cb   : > { %v2578_v27 = vmul.f32 %v9093_v60, %v10809_v63  ;;  %v9095_v22 = vpop.eup %9094 }
 0x5cc   : > { %8349 = vmatpush3.bf16.xpose.msra.mxu1 %v2814_v56  ;;  %v2766_v42 = vpop.permute.xlu1 %2765  ;;  %v2583_v23 = vmul.f32 %v9095_v22, %v10782_v6 }
 0x5cd   : > { %8812 = vmatprep.subr.msk.bf16.mxu1 %vm1469_vm5, %v2780_v43  ;;  %v2586_v19 = vpack.c.bf16 %v2578_v27, %v2577_v5 }
 0x5ce   : > { %v2589_v63 = vpack.c.bf16 %v2583_v23, %v2583_v23 }
 0x5cf   : > { %8334 = vmatprep.mubr.msk.bf16.mxu1 %vm1597_vm8, %v2586_v19 }
 0x5d0   : > { %v2768_v31 = vpop.permute.xlu1 %2767  ;;  %8335 = vmatmul.mubr.msk.bf16.gmra.mxu1 %vm1597_vm8, %v2587_v54 }
 0x5d1   : > { %8338 = vmatprep.mubr.msk.bf16.mxu1 %vm1597_vm8, %v2588_v3 }
 0x5d4   : > { %8351 = vmatpush3.bf16.xpose.msra.mxu1 %v2811_v61  ;;  %v2772_v12 = vpop.permute.xlu1 %2771 }
 0x5d5   : > { %8813 = vmatprep.subr.msk.bf16.mxu1 %vm1469_vm5, %v2778_v52 }
 0x5d8   : > { %v2776_v25 = vpop.permute.xlu1 %2775  ;;  %8339 = vmatmul.mubr.msk.bf16.gmra.mxu1 %vm1597_vm8, %v2589_v63 }
 0x5d9   : > { %8354 = vmatprep.mubr.msk.bf16.mxu1 %vm1469_vm5, %v2766_v42 }
 0x5dc   : > { %8353 = vmatpush3.bf16.xpose.msra.mxu1 %v2808_v0  ;;  %v3052_v40 = vpop.permute.xlu1 %3051 }
 0x5dd   : > { %8368 = vmatprep.subr.bf16.mxu0 %v3052_v40 }
 0x5de   : > { %8369 = vmatpush3.bf16.msra.mxu0 %v3052_v40 }
 0x5e0   : > { %v3050_v39 = vpop.permute.xlu1 %3049 }
 0x5e1   : > { %8370 = vmatprep.subr.bf16.mxu0 %v3050_v39 }
 0x5e2   : > { %8371 = vmatpush3.bf16.msra.mxu0 %v3050_v39 }
 0x5e3   : > { %8355 = vmatmul.mubr.msk.bf16.vlgmr.msra.gmra.mxu1 %vm1469_vm5, %v2768_v31 }
 0x5e4   : > { %8358 = vmatprep.mubr.msk.bf16.mxu1 %vm1469_vm5, %v10902_v50 }
 0x5eb   : > { %8359 = vmatmul.mubr.msk.bf16.gmra.mxu1 %vm1469_vm5, %v2772_v12 }
 0x5ec   : > { %8362 = vmatprep.mubr.msk.bf16.mxu1 %vm1469_vm5, %v10910_v1 }
 0x5f3   : > { %8363 = vmatmul.mubr.msk.bf16.gmra.mxu1 %vm1469_vm5, %v2776_v25 }
 0x5fe   : > { %v8236_v6 = vpop.f32.mrf.mxu1 }
 0x5ff   : > { %1849 = vst.msk [vmem:[#allocation3 + $0x10] sm:$0xff] %vm1469_vm5, %v8236_v6 }
 0x600   : > { %v1801_v20 = vpop.f32.mrf.mxu1 }
 0x601   : > { %1847 = vst.msk [vmem:[#allocation3] sm:$0xff] %vm1469_vm5, %v1801_v20 }
 0x602   : > { %v8237_v2 = vpop.f32.mrf.mxu1 }
 0x603   : > { %1850 = vst.msk [vmem:[#allocation3 + $0x18] sm:$0xff] %vm1469_vm5, %v8237_v2  ;;  %v13886_v2 = vld [vmem:[#allocation21_spill] sm:$0xff] }
 0x604   : > { %v1804_v49 = vpop.f32.mrf.mxu1 }
 0x605   : > { %1848 = vst.msk [vmem:[#allocation3 + $0x8] sm:$0xff] %vm1469_vm5, %v1804_v49  ;;  %v11047_v49 = vshrl.u32 %v13886_v2, 16 }
 0x61a   : > { %v8240_v50 = vpop.f32.mrf.mxu1 }
 0x61b   : > { %1853 = vst.msk [vmem:[#allocation3 + $0x30] sm:$0xff] %vm1469_vm5, %v8240_v50 }
 0x61c   : > { %v1817_v11 = vpop.f32.mrf.mxu1 }
 0x61d   : > { %1851 = vst.msk [vmem:[#allocation3 + $0x20] sm:$0xff] %vm1469_vm5, %v1817_v11 }
 0x61e   : > { %v8241_v1 = vpop.f32.mrf.mxu1 }
 0x61f   : > { %1854 = vst.msk [vmem:[#allocation3 + $0x38] sm:$0xff] %vm1469_vm5, %v8241_v1 }
 0x620   : > { %v1820_v16 = vpop.f32.mrf.mxu1 }
 0x621   : > { %1852 = vst.msk [vmem:[#allocation3 + $0x28] sm:$0xff] %vm1469_vm5, %v1820_v16 }
 0x653   : > { %v8244_v32 = vpop.f32.mrf.mxu1 }
 0x654   : > { %1858 = vst.msk [vmem:[#allocation3 + $0x50] sm:$0x1] %vm1857_vm10, %v8244_v32 }
 0x655   : > { %v1833_v26 = vpop.f32.mrf.mxu1 }
 0x656   : > { %1855 = vst.msk [vmem:[#allocation3 + $0x40] sm:$0xff] %vm1469_vm5, %v1833_v26 }
 0x657   : > { %v8245_v14 = vpop.f32.mrf.mxu1 }
 0x659   : > { %v1836_v41 = vpop.f32.mrf.mxu1 }
 0x65a   : > { %1856 = vst.msk [vmem:[#allocation3 + $0x48] sm:$0xff] %vm1469_vm5, %v1836_v41 }
 0x65b   : > { %v10986_v55 = vpop.f32.mrf.mxu1 }
 0x65d   : > { %v10988_v48 = vpop.f32.mrf.mxu1 }
 0x65f   : > { %v10990_v51 = vpop.f32.mrf.mxu1 }
 0x661   : > { %v10992_v13 = vpop.f32.mrf.mxu1 }
 0x663   : > { %v10994_v34 = vpop.f32.mrf.mxu1 }
 0x665   : > { %v10996_v28 = vpop.f32.mrf.mxu1 }
 0x667   : > { %v10998_v35 = vpop.f32.mrf.mxu1 }
 0x669   : > { %v11000_v29 = vpop.f32.mrf.mxu1 }
 0x66b   : > { %v11002_v4 = vpop.f32.mrf.mxu1 }
 0x66c   : > { %13884 = vst [vmem:[#allocation23_spill] sm:$0xff] %v11002_v4 }
 0x66d   : > { %v11004_v46 = vpop.f32.mrf.mxu1 }
 0x66f   : > { %v8293_v33 = vpop.f32.mrf.mxu1 }
 0x670   : > { %v3046_v33 = vpop.permute.xlu1 %3045 }
 0x671   : > { %v11006_v30 = vpop.f32.mrf.mxu1 }
 0x673   : > { %v11008_v58 = vpop.f32.mrf.mxu1 }
 0x675   : > { %v11010_v37 = vpop.f32.mrf.mxu1 }
 0x677   : > { %v11012_v15 = vpop.f32.mrf.mxu1 }
 0x679   : > { %v11014_v21 = vpop.f32.mrf.mxu1 }
 0x690   : > { %v11016_v7 = vpop.f32.mrf.mxu1 }
 0x692   : > { %v11018_v9 = vpop.f32.mrf.mxu1 }
 0x694   : > { %v11020_v59 = vpop.f32.mrf.mxu1 }
 0x696   : > { %v11022_v57 = vpop.f32.mrf.mxu1 }
 0x698   : > { %v11024_v43 = vpop.f32.mrf.mxu1 }
 0x699   : > { %13885 = vst [vmem:[#allocation19_spill] sm:$0xff] %v11024_v43 }
 0x69a   : > { %v11026_v24 = vpop.f32.mrf.mxu1 }
 0x69c   : > { %v8341_v17 = vpop.f32.mrf.mxu1 }
 0x69e   : > { %v11028_v53 = vpop.f32.mrf.mxu1 }
 0x6a3   : > { %v8356_v62 = vpop.f32.mrf.mxu1 }
 0x6a4   : > { %v2907_v52 = vmul.f32 0.35355338, %v8356_v62 }
 0x6a5   : > { %v2859_v38 = vpop.f32.mrf.mxu1 }
 0x6a6   : > { %v2905_v60 = vmul.f32 0.35355338, %v2859_v38  ;;  %v2922_v45 = vsel %vm1597_vm8, %v2907_v52, -inf }
 0x6a7   : > { %2923 = vmax.xlane.f32.xlu0 %v2922_v45  ;;  %v8357_v56 = vpop.f32.mrf.mxu1 }
 0x6a8   : > { %v2908_v27 = vmul.f32 0.35355338, %v8357_v56  ;;  %v2916_v42 = vsel %vm1597_vm8, %v2905_v60, -inf }
 0x6a9   : > { %v2862_v5 = vpop.f32.mrf.mxu1 }
 0x6aa   : > { %v2906_v8 = vmul.f32 0.35355338, %v2862_v5  ;;  %v2925_v22 = vsel %vm1597_vm8, %v2908_v27, -inf }
 0x6ab   : > { %2917 = vmax.xlane.f32.xlu0 %v2916_v42  ;;  %v8360_v10 = vpop.f32.mrf.mxu1 }
 0x6ac   : > { %v2911_v19 = vmul.f32 0.35355338, %v8360_v10  ;;  %v2919_v36 = vsel %vm1597_vm8, %v2906_v8, -inf }
 0x6ad   : > { %2920 = vmax.xlane.f32.xlu1 %v2919_v36  ;;  %v2875_v54 = vpop.f32.mrf.mxu1 }
 0x6ae   : > { %v2909_v31 = vmul.f32 0.35355338, %v2875_v54  ;;  %v2934_v23 = vsel %vm1597_vm8, %v2911_v19, -inf }
 0x6af   : > { %2926 = vmax.xlane.f32.xlu0 %v2925_v22  ;;  %v8361_v3 = vpop.f32.mrf.mxu1 }
 0x6b0   : > { %v2928_v25 = vsel %vm1597_vm8, %v2909_v31, -inf  ;;  %v11051_v50 = vmul.f32 0.35355338, %v8361_v3 }
 0x6b1   : > { %2935 = vmax.xlane.f32.xlu1 %v2934_v23  ;;  %v2878_v61 = vpop.f32.mrf.mxu1 }
 0x6b2   : > { %v11053_v11 = vmul.f32 0.35355338, %v2878_v61  ;;  %v2937_v1 = vsel %vm1597_vm8, %v11051_v50, -inf }
 0x6b3   : > { %v8364_v12 = vpop.f32.mrf.mxu1 }
 0x6b4   : > { %v11035_v63 = vmul.f32 0.35355338, %v8364_v12 }
 0x6b5   : > { %2929 = vmax.xlane.f32.xlu1 %v2928_v25  ;;  %v2891_v0 = vpop.f32.mrf.mxu1 }
 0x6b6   : > { %v11038_v39 = vmul.f32 0.35355338, %v2891_v0  ;;  %v2946_v6 = vsel %vm1628_vm9, %v11035_v63, -inf }
 0x6b7   : > { %v8365_v40 = vpop.f32.mrf.mxu1 }
 0x6b8   : > { %v2940_v20 = vsel %vm1597_vm8, %v11038_v39, -inf }
 0x6b9   : > { %2947 = vmax.xlane.f32.xlu1 %v2946_v6  ;;  %v2894_v16 = vpop.f32.mrf.mxu1 }
 0x6ba   : > { %v11057_v32 = vmul.f32 0.35355338, %v2894_v16  ;;  %v13887_v16 = vld [vmem:[#allocation22_spill] sm:$0xff] }
 0x6bc   : > { %v2943_v26 = vsel %vm1597_vm8, %v11057_v32, -inf }
 0x6bd   : > { %2941 = vmax.xlane.f32.xlu1 %v2940_v20 }
 0x6c5   : > { %3047 = vrot.lane.b32.xlu0 %v10262_v18, %s9668_s21  ;;  %v2931_v18 = vsel %vm1597_vm8, %v11053_v11, -inf }
 0x6ce   : > { %3281 = vrot.lane.b32.xlu1 %v11047_v49, %s9658_s20 }
 0x6e4   : > { %2938 = vmax.xlane.f32.xlu0 %v2937_v1 }
 0x6e8   : > { %2932 = vmax.xlane.f32.xlu0 %v2931_v18 }
 0x6ec   : > { %2944 = vmax.xlane.f32.xlu0 %v2943_v26 }
 0x702   : > { %3043 = vrot.lane.b32.xlu0 %v10232_v47, %s9668_s21 }
 0x730   : > { %v2924_v14 = vpop.xlane.xlu0 %2923 }
 0x731   : > { %v2951_v41 = vsub.f32 %v2907_v52, %v2924_v14 }
 0x733   : > { %v2964_v17 = vmul.f32 1.442695, %v2951_v41 }
 0x734   : > { %v2918_v62 = vpop.xlane.xlu0 %2917 }
 0x735   : > { %9096 = vpow2.f32 %v2964_v17  ;;  %v2949_v38 = vsub.f32 %v2905_v60, %v2918_v62 }
 0x736   : > { %v2921_v45 = vpop.xlane.xlu1 %2920 }
 0x737   : > { %v2960_v56 = vmul.f32 1.442695, %v2949_v38  ;;  %v2950_v5 = vsub.f32 %v2906_v8, %v2921_v45 }
 0x738   : > { %v2927_v42 = vpop.xlane.xlu0 %2926 }
 0x739   : > { %9098 = vpow2.f32 %v2960_v56  ;;  %v2952_v10 = vsub.f32 %v2908_v27, %v2927_v42  ;;  %v2962_v36 = vmul.f32 1.442695, %v2950_v5 }
 0x73a   : > { %v2936_v54 = vpop.xlane.xlu1 %2935 }
 0x73b   : > { %v2966_v22 = vmul.f32 1.442695, %v2952_v10  ;;  %v2955_v3 = vsub.f32 %v2911_v19, %v2936_v54 }
 0x73c   : > { %v3048_v23 = vpop.permute.xlu0 %3047 }
 0x73d   : > { %9100 = vpow2.f32 %v2966_v22  ;;  %v2972_v47 = vmul.f32 1.442695, %v2955_v3  ;;  %8372 = vmatprep.subr.bf16.mxu0 %v3048_v23 }
 0x73e   : > { %9102 = vpow2.f32 %v2962_v36  ;;  %v2930_v52 = vpop.xlane.xlu1 %2929  ;;  %8373 = vmatpush3.bf16.msra.mxu0 %v3048_v23 }
 0x73f   : > { %9104 = vpow2.f32 %v2972_v47  ;;  %v2953_v61 = vsub.f32 %v2909_v31, %v2930_v52  ;;  %8374 = vmatprep.subr.bf16.mxu0 %v3046_v33 }
 0x741   : > { %v2968_v60 = vmul.f32 1.442695, %v2953_v61 }
 0x742   : > { %v11065_v12 = vpop.eup %9096  ;;  %8375 = vmatpush3.bf16.msra.mxu0 %v3046_v33  ;;  %v2948_v18 = vpop.xlane.xlu1 %2947 }
 0x743   : > { %9106 = vpow2.f32 %v2968_v60  ;;  %v2988_v27 = vsel %vm1597_vm8, %v11065_v12, 0.0  ;;  %v2959_v26 = vsub.f32 %v11035_v63, %v2948_v18 }
 0x744   : > { %2989 = vadd.xlane.f32.xlu0 %v2988_v27  ;;  %v13888_v27 = vld [vmem:[#allocation16_spill] sm:$0xff] }
 0x745   : > { %v2980_v17 = vmul.f32 1.442695, %v2959_v26 }
 0x746   : > { %v11069_v8 = vpop.eup %9098  ;;  %v2942_v14 = vpop.xlane.xlu1 %2941 }
 0x747   : > { %v2982_v19 = vsel %vm1597_vm8, %v11069_v8, 0.0  ;;  %v2957_v62 = vsub.f32 %v11038_v39, %v2942_v14 }
 0x748   : > { %2983 = vadd.xlane.f32.xlu0 %v2982_v19  ;;  %v13889_v19 = vld [vmem:[#allocation15_spill] sm:$0xff] }
 0x749   : > { %v2976_v5 = vmul.f32 1.442695, %v2957_v62 }
 0x74a   : > { %v11073_v25 = vpop.eup %9100 }
 0x74b   : > { %v11075_v0 = vpop.eup %9102  ;;  %v2991_v31 = vsel %vm1597_vm8, %v11073_v25, 0.0 }
 0x74c   : > { %v11079_v40 = vpop.eup %9104  ;;  %2992 = vadd.xlane.f32.xlu1 %v2991_v31  ;;  %v2985_v20 = vsel %vm1597_vm8, %v11075_v0, 0.0  ;;  %v13890_v31 = vld [vmem:[#allocation14_spill] sm:$0xff] }
 0x74d   : > { %v3000_v6 = vsel %vm1597_vm8, %v11079_v40, 0.0 }
 0x74e   : > { %3001 = vadd.xlane.f32.xlu0 %v3000_v6  ;;  %v13891_v6 = vld [vmem:[#allocation17_spill] sm:$0xff] }
 0x750   : > { %v11085_v2 = vpop.eup %9106  ;;  %2986 = vadd.xlane.f32.xlu1 %v2985_v20 }
 0x751   : > { %v2994_v1 = vsel %vm1597_vm8, %v11085_v2, 0.0 }
 0x752   : > { %2995 = vadd.xlane.f32.xlu0 %v2994_v1 }
 0x761   : > { %3279 = vrot.lane.b32.xlu1 %v13887_v16, %s9658_s20 }
 0x76d   : > { %v2939_v41 = vpop.xlane.xlu0 %2938 }
 0x76e   : > { %v2956_v33 = vsub.f32 %v11051_v50, %v2939_v41  ;;  %v3282_v50 = vpop.permute.xlu1 %3281 }
 0x770   : > { %v2974_v38 = vmul.f32 1.442695, %v2956_v33 }
 0x771   : > { %v2933_v45 = vpop.xlane.xlu0 %2932 }
 0x772   : > { %9108 = vpow2.f32 %v2974_v38  ;;  %v2954_v56 = vsub.f32 %v11053_v11, %v2933_v45 }
 0x773   : > { %9110 = vpow2.f32 %v2980_v17 }
 0x774   : > { %v2970_v42 = vmul.f32 1.442695, %v2954_v56 }
 0x775   : > { %v2945_v10 = vpop.xlane.xlu0 %2944 }
 0x776   : > { %9112 = vpow2.f32 %v2970_v42  ;;  %v2958_v36 = vsub.f32 %v11057_v32, %v2945_v10  ;;  %v3317_v10 = vsel %vm1469_vm5, %v3282_v50, 0 }
 0x777   : > { %9114 = vpow2.f32 %v2976_v5 }
 0x778   : > { %v2978_v63 = vmul.f32 1.442695, %v2958_v36 }
 0x779   : > { %v3044_v54 = vpop.permute.xlu0 %3043 }
 0x77a   : > { %8376 = vmatprep.subr.bf16.mxu0 %v3044_v54  ;;  %9116 = vpow2.f32 %v2978_v63 }
 0x77b   : > { %8377 = vmatpush3.bf16.msra.mxu0 %v3044_v54 }
 0x77c   : > { %8814 = vmatprep.subr.msk.bf16.mxu0 %vm1469_vm5, %v3282_v50 }
 0x77f   : > { %v11097_v39 = vpop.eup %9108 }
 0x780   : > { %v3003_v11 = vsel %vm1597_vm8, %v11097_v39, 0.0  ;;  %v11101_v22 = vpop.eup %9110 }
 0x781   : > { %3004 = vadd.xlane.f32.xlu0 %v3003_v11  ;;  %v3012_v32 = vsel %vm1628_vm9, %v11101_v22, 0.0 }
 0x783   : > { %v11103_v3 = vpop.eup %9112 }
 0x784   : > { %v2997_v23 = vsel %vm1597_vm8, %v11103_v3, 0.0  ;;  %v11109_v47 = vpop.eup %9114 }
 0x785   : > { %3013 = vadd.xlane.f32.xlu0 %v3012_v32  ;;  %2998 = vadd.xlane.f32.xlu1 %v2997_v23  ;;  %v3006_v52 = vsel %vm1597_vm8, %v11109_v47, 0.0 }
 0x787   : > { %v11113_v61 = vpop.eup %9116 }
 0x788   : > { %v3009_v60 = vsel %vm1597_vm8, %v11113_v61, 0.0 }
 0x789   : > { %3007 = vadd.xlane.f32.xlu0 %v3006_v52 }
 0x78d   : > { %3010 = vadd.xlane.f32.xlu0 %v3009_v60 }
 0x796   : > { %3275 = vrot.lane.b32.xlu1 %v13888_v27, %s9658_s20 }
 0x79a   : > { %3273 = vrot.lane.b32.xlu1 %v13889_v19, %s9658_s20 }
 0x79e   : > { %3271 = vrot.lane.b32.xlu1 %v13890_v31, %s9658_s20 }
 0x7a2   : > { %3545 = vrot.lane.b32.xlu1 %v13887_v16, %s9662_s15 }
 0x7a3   : > { %3277 = vrot.lane.b32.xlu0 %v13891_v6, %s9658_s20  ;;  %s9670_s20 = smov 16  }
 0x7a6   : > { %3543 = vrot.lane.b32.xlu1 %v13891_v6, %s9662_s15 }
 0x7a7   : > { %3547 = vrot.lane.b32.xlu0 %v11047_v49, %s9662_s15 }
 0x7cd   : > { %v2990_v20 = vpop.xlane.xlu0 %2989 }
 0x7d1   : > { %v2984_v1 = vpop.xlane.xlu0 %2983 }
 0x7d5   : > { %v2993_v18 = vpop.xlane.xlu1 %2992 }
 0x7d6   : > { %9118 = vrcp.f32 %v2993_v18 }
 0x7d7   : > { %9120 = vrcp.f32 %v2984_v1 }
 0x7d8   : > { %9122 = vrcp.f32 %v2990_v20 }
 0x7d9   : > { %v2987_v26 = vpop.xlane.xlu1 %2986 }
 0x7da   : > { %9124 = vrcp.f32 %v2987_v26 }
 0x7dd   : > { %v3280_v36 = vpop.permute.xlu1 %3279 }
 0x7e3   : > { %v9119_v14 = vpop.eup %9118 }
 0x7e4   : > { %v9121_v41 = vpop.eup %9120  ;;  %v3029_v62 = vmul.f32 %v9119_v14, %v11073_v25  ;;  %v3314_v25 = vsel %vm1469_vm5, %v3280_v36, 0 }
 0x7e5   : > { %v9123_v33 = vpop.eup %9122  ;;  %v3026_v38 = vmul.f32 %v9121_v41, %v11069_v8  ;;  %v3002_v8 = vpop.xlane.xlu0 %3001 }
 0x7e6   : > { %v3028_v56 = vmul.f32 %v9123_v33, %v11065_v12 }
 0x7e7   : > { %v9125_v17 = vpop.eup %9124 }
 0x7e8   : > { %v3027_v45 = vmul.f32 %v9125_v17, %v11075_v0  ;;  %v3038_v42 = vpack.c.bf16 %v3029_v62, %v3028_v56 }
 0x7e9   : > { %v2996_v63 = vpop.xlane.xlu0 %2995 }
 0x7ea   : > { %v3037_v5 = vpack.c.bf16 %v3027_v45, %v3026_v38 }
 0x7ec   : > { %8378 = vmatprep.mubr.msk.bf16.mxu0 %vm1597_vm8, %v3037_v5 }
 0x7ed   : > { %8379 = vmatmul.mubr.msk.bf16.vlgmr.msra.gmra.mxu0 %vm1597_vm8, %v3038_v42 }
 0x7ee   : > { %8391 = vmatpush3.bf16.xpose.msra.mxu0 %v3317_v10 }
 0x7ef   : > { %8815 = vmatprep.subr.msk.bf16.mxu0 %vm1469_vm5, %v3280_v36 }
 0x7f6   : > { %8393 = vmatpush3.bf16.xpose.msra.mxu0 %v3314_v25 }
 0x80a   : > { %v3005_v0 = vpop.xlane.xlu0 %3004 }
 0x80b   : > { %9126 = vrcp.f32 %v3005_v0 }
 0x80c   : > { %9128 = vrcp.f32 %v2996_v63 }
 0x80d   : > { %9130 = vrcp.f32 %v3002_v8 }
 0x80e   : > { %v2999_v12 = vpop.xlane.xlu1 %2998  ;;  %v3014_v54 = vpop.xlane.xlu0 %3013 }
 0x80f   : > { %9132 = vrcp.f32 %v2999_v12 }
 0x810   : > { %9134 = vrcp.f32 %v3014_v54 }
 0x812   : > { %v3276_v11 = vpop.permute.xlu1 %3275  ;;  %v3008_v32 = vpop.xlane.xlu0 %3007 }
 0x813   : > { %9136 = vrcp.f32 %v3008_v32 }
 0x816   : > { %v3274_v50 = vpop.permute.xlu1 %3273  ;;  %v3011_v23 = vpop.xlane.xlu0 %3010 }
 0x817   : > { %9138 = vrcp.f32 %v3011_v23 }
 0x818   : > { %v9127_v52 = vpop.eup %9126 }
 0x819   : > { %v9129_v60 = vpop.eup %9128  ;;  %v3033_v41 = vmul.f32 %v9127_v52, %v11097_v39 }
 0x81a   : > { %v3272_v20 = vpop.permute.xlu1 %3271  ;;  %v3278_v1 = vpop.permute.xlu0 %3277  ;;  %v3030_v33 = vmul.f32 %v9129_v60, %v11085_v2  ;;  %v3308_v2 = vsel %vm1469_vm5, %v3276_v11, 0 }
 0x81b   : > { %v9131_v18 = vpop.eup %9130  ;;  %8816 = vmatprep.subr.msk.bf16.mxu0 %vm1469_vm5, %v3278_v1  ;;  %v3311_v26 = vsel %vm1469_vm5, %v3278_v1, 0 }
 0x81c   : > { %v9133_v14 = vpop.eup %9132  ;;  %8395 = vmatpush3.bf16.xpose.msra.mxu0 %v3311_v26  ;;  %v3032_v38 = vmul.f32 %v9131_v18, %v11079_v40 }
 0x81d   : > { %8817 = vmatprep.subr.msk.bf16.mxu0 %vm1469_vm5, %v3276_v11  ;;  %v3031_v17 = vmul.f32 %v9133_v14, %v11103_v3  ;;  %v9135_v10 = vpop.eup %9134 }
 0x81e   : > { %v3548_v62 = vpop.permute.xlu0 %3547  ;;  %v3546_v5 = vpop.permute.xlu1 %3545  ;;  %v3040_v42 = vpack.c.bf16 %v3033_v41, %v3032_v38  ;;  %v3036_v40 = vmul.f32 %v9135_v10, %v11101_v22  ;;  %v3305_v22 = vsel %vm1469_vm5, %v3274_v50, 0 }
 0x81f   : > { %v3573_v45 = vand.u32 %v3548_v62, %v10447_v44  ;;  %v3039_v56 = vpack.c.bf16 %v3031_v17, %v3030_v33 }
 0x820   : > { %v9137_v36 = vpop.eup %9136  ;;  %v3042_v0 = vpack.c.bf16 %v3036_v40, %v3036_v40 }
 0x821   : > { %8382 = vmatprep.mubr.msk.bf16.mxu0 %vm1597_vm8, %v3039_v56  ;;  %8414 = vmatprep.subr.bf16.mxu1 %v3573_v45  ;;  %v3034_v3 = vmul.f32 %v9137_v36, %v11109_v47  ;;  %v3302_v47 = vsel %vm1469_vm5, %v3272_v20, 0 }
 0x822   : > { %8383 = vmatmul.mubr.msk.bf16.gmra.mxu0 %vm1597_vm8, %v3040_v42  ;;  %8415 = vmatpush3.bf16.msra.mxu1 %v3573_v45  ;;  %v3544_v8 = vpop.permute.xlu1 %3543 }
 0x823   : > { %8416 = vmatprep.subr.bf16.mxu1 %v3546_v5 }
 0x824   : > { %v9139_v39 = vpop.eup %9138  ;;  %8397 = vmatpush3.bf16.xpose.msra.mxu0 %v3308_v2 }
 0x825   : > { %8818 = vmatprep.subr.msk.bf16.mxu0 %vm1469_vm5, %v3274_v50  ;;  %v3035_v25 = vmul.f32 %v9139_v39, %v11113_v61 }
 0x826   : > { %8417 = vmatpush3.bf16.msra.mxu1 %v3546_v5 }
 0x827   : > { %8418 = vmatprep.subr.bf16.mxu1 %v3544_v8  ;;  %v3041_v63 = vpack.c.bf16 %v3035_v25, %v3034_v3 }
 0x829   : > { %8386 = vmatprep.mubr.msk.bf16.mxu0 %vm1597_vm8, %v3041_v63 }
 0x82a   : > { %8387 = vmatmul.mubr.msk.bf16.gmra.mxu0 %vm1597_vm8, %v3042_v0  ;;  %8419 = vmatpush3.bf16.msra.mxu1 %v3544_v8 }
 0x82b   : > { %8402 = vmatprep.mubr.msk.bf16.mxu0 %vm1469_vm5, %v13890_v31 }
 0x82c   : > { %8399 = vmatpush3.bf16.xpose.msra.mxu0 %v3305_v22 }
 0x82d   : > { %8819 = vmatprep.subr.msk.bf16.mxu0 %vm1469_vm5, %v3272_v20 }
 0x834   : > { %8401 = vmatpush3.bf16.xpose.msra.mxu0 %v3302_v47 }
 0x83b   : > { %8403 = vmatmul.mubr.msk.bf16.vlgmr.msra.gmra.mxu0 %vm1469_vm5, %v13889_v19 }
 0x83c   : > { %8406 = vmatprep.mubr.msk.bf16.mxu0 %vm1469_vm5, %v13888_v27 }
 0x843   : > { %8407 = vmatmul.mubr.msk.bf16.gmra.mxu0 %vm1469_vm5, %v13891_v6 }
 0x844   : > { %8410 = vmatprep.mubr.msk.bf16.mxu0 %vm1469_vm5, %v13887_v16 }
 0x84b   : > { %8411 = vmatmul.mubr.msk.bf16.gmra.mxu0 %vm1469_vm5, %v11047_v49 }
 0x8ad   : > { %v11172_v61 = vpop.f32.mrf.mxu0 }
 0x8af   : > { %v11174_v12 = vpop.f32.mrf.mxu0 }
 0x8b1   : > { %v11176_v54 = vpop.f32.mrf.mxu0 }
 0x8b3   : > { %v11178_v11 = vpop.f32.mrf.mxu0 }
 0x8e2   : > { %v11180_v32 = vpop.f32.mrf.mxu0 }
 0x8e4   : > { %v11182_v50 = vpop.f32.mrf.mxu0 }
 0x8e6   : > { %v11184_v23 = vpop.f32.mrf.mxu0 }
 0x8e8   : > { %v11186_v52 = vpop.f32.mrf.mxu0 }
 0x8ea   : > { %v11188_v60 = vpop.f32.mrf.mxu0 }
 0x8eb   : > { %13892 = vst [vmem:[#allocation18_spill] sm:$0xff] %v11188_v60 }
 0x8ec   : > { %v11190_v20 = vpop.f32.mrf.mxu0 }
 0x8ed   : > { %13893 = vst [vmem:[#allocation24_spill] sm:$0xff] %v11190_v20 }
 0x8ee   : > { %v8389_v1 = vpop.f32.mrf.mxu0 }
 0x8f0   : > { %v11192_v18 = vpop.f32.mrf.mxu0 }
 0x8fb   : > { %v8404_v26 = vpop.f32.mrf.mxu0 }
 0x8fc   : > { %v3401_v14 = vmul.f32 0.35355338, %v8404_v26 }
 0x8fd   : > { %v3353_v41 = vpop.f32.mrf.mxu0 }
 0x8fe   : > { %v3399_v33 = vmul.f32 0.35355338, %v3353_v41  ;;  %v3416_v17 = vsel %vm1597_vm8, %v3401_v14, -inf }
 0x8ff   : > { %3417 = vmax.xlane.f32.xlu1 %v3416_v17  ;;  %v8405_v62 = vpop.f32.mrf.mxu0 }
 0x900   : > { %v3402_v38 = vmul.f32 0.35355338, %v8405_v62  ;;  %v3410_v5 = vsel %vm1597_vm8, %v3399_v33, -inf }
 0x901   : > { %v3356_v45 = vpop.f32.mrf.mxu0 }
 0x902   : > { %v3400_v56 = vmul.f32 0.35355338, %v3356_v45  ;;  %v3419_v42 = vsel %vm1597_vm8, %v3402_v38, -inf }
 0x903   : > { %3411 = vmax.xlane.f32.xlu1 %v3410_v5  ;;  %3420 = vmax.xlane.f32.xlu0 %v3419_v42  ;;  %v8408_v10 = vpop.f32.mrf.mxu0 }
 0x904   : > { %v3413_v2 = vsel %vm1597_vm8, %v3400_v56, -inf  ;;  %v3405_v63 = vmul.f32 0.35355338, %v8408_v10 }
 0x905   : > { %v3369_v36 = vpop.f32.mrf.mxu0 }
 0x906   : > { %v11202_v0 = vmul.f32 0.35355338, %v3369_v36  ;;  %v3428_v47 = vsel %vm1597_vm8, %v3405_v63, -inf }
 0x907   : > { %3414 = vmax.xlane.f32.xlu0 %v3413_v2  ;;  %v8409_v39 = vpop.f32.mrf.mxu0 }
 0x908   : > { %v11204_v22 = vmul.f32 0.35355338, %v8409_v39  ;;  %v3422_v41 = vsel %vm1597_vm8, %v11202_v0, -inf }
 0x909   : > { %v3372_v40 = vpop.f32.mrf.mxu0 }
 0x90a   : > { %v11207_v1 = vmul.f32 0.35355338, %v3372_v40  ;;  %v3431_v17 = vsel %vm1597_vm8, %v11204_v22, -inf }
 0x90b   : > { %v8412_v3 = vpop.f32.mrf.mxu0 }
 0x90c   : > { %v11209_v26 = vmul.f32 0.35355338, %v8412_v3  ;;  %v3425_v42 = vsel %vm1597_vm8, %v11207_v1, -inf }
 0x90d   : > { %v3385_v25 = vpop.f32.mrf.mxu0 }
 0x90e   : > { %v11215_v45 = vmul.f32 0.35355338, %v3385_v25  ;;  %v3440_v10 = vsel %vm1628_vm9, %v11209_v26, -inf }
 0x90f   : > { %v8413_v8 = vpop.f32.mrf.mxu0 }
 0x910   : > { %v3434_v36 = vsel %vm1597_vm8, %v11215_v45, -inf }
 0x911   : > { %v3388_v62 = vpop.f32.mrf.mxu0 }
 0x912   : > { %v11217_v5 = vmul.f32 0.35355338, %v3388_v62 }
 0x914   : > { %3539 = vrot.lane.b32.xlu1 %v13889_v19, %s9662_s15  ;;  %v3437_v2 = vsel %vm1597_vm8, %v11217_v5, -inf }
 0x91d   : > { %3541 = vrot.lane.b32.xlu0 %v13888_v27, %s9662_s15 }
 0x938   : > { %3429 = vmax.xlane.f32.xlu1 %v3428_v47 }
 0x93c   : > { %3423 = vmax.xlane.f32.xlu1 %v3422_v41  ;;  %3432 = vmax.xlane.f32.xlu0 %v3431_v17 }
 0x940   : > { %3426 = vmax.xlane.f32.xlu0 %v3425_v42  ;;  %3441 = vmax.xlane.f32.xlu1 %v3440_v10 }
 0x944   : > { %3435 = vmax.xlane.f32.xlu1 %v3434_v36  ;;  %3438 = vmax.xlane.f32.xlu0 %v3437_v2 }
 0x955   : > { %3688 = vrot.lane.b32.xlu1 %v11047_v49, %s9657_s18 }
 0x95a   : > { %3537 = vrot.lane.b32.xlu0 %v13890_v31, %s9662_s15 }
 0x988   : > { %v3418_v39 = vpop.xlane.xlu1 %3417 }
 0x989   : > { %v3445_v40 = vsub.f32 %v3401_v14, %v3418_v39 }
 0x98b   : > { %v3458_v3 = vmul.f32 1.442695, %v3445_v40 }
 0x98c   : > { %v3412_v25 = vpop.xlane.xlu1 %3411  ;;  %v3421_v8 = vpop.xlane.xlu0 %3420 }
 0x98d   : > { %9140 = vpow2.f32 %v3458_v3  ;;  %v3443_v47 = vsub.f32 %v3399_v33, %v3412_v25  ;;  %v3446_v41 = vsub.f32 %v3402_v38, %v3421_v8 }
 0x98f   : > { %v3454_v17 = vmul.f32 1.442695, %v3443_v47  ;;  %v3460_v62 = vmul.f32 1.442695, %v3446_v41 }
 0x990   : > { %v3415_v42 = vpop.xlane.xlu0 %3414  ;;  %v3540_v60 = vpop.permute.xlu1 %3539 }
 0x991   : > { %9142 = vpow2.f32 %v3454_v17  ;;  %v3444_v10 = vsub.f32 %v3400_v56, %v3415_v42 }
 0x992   : > { %9144 = vpow2.f32 %v3460_v62 }
 0x993   : > { %v3456_v36 = vmul.f32 1.442695, %v3444_v10 }
 0x994   : > { %v3542_v2 = vpop.permute.xlu0 %3541 }
 0x995   : > { %9146 = vpow2.f32 %v3456_v36  ;;  %8420 = vmatprep.subr.bf16.mxu1 %v3542_v2 }
 0x996   : > { %8421 = vmatpush3.bf16.msra.mxu1 %v3542_v2 }
 0x997   : > { %8422 = vmatprep.subr.bf16.mxu1 %v3540_v60 }
 0x99a   : > { %v11231_v14 = vpop.eup %9140  ;;  %8423 = vmatpush3.bf16.msra.mxu1 %v3540_v60 }
 0x99b   : > { %v3482_v33 = vsel %vm1597_vm8, %v11231_v14, 0.0 }
 0x99c   : > { %3483 = vadd.xlane.f32.xlu0 %v3482_v33 }
 0x99e   : > { %v11235_v38 = vpop.eup %9142 }
 0x99f   : > { %v11237_v39 = vpop.eup %9144  ;;  %v3476_v56 = vsel %vm1597_vm8, %v11235_v38, 0.0 }
 0x9a0   : > { %3477 = vadd.xlane.f32.xlu0 %v3476_v56  ;;  %v3485_v40 = vsel %vm1597_vm8, %v11237_v39, 0.0 }
 0x9a1   : > { %3486 = vadd.xlane.f32.xlu1 %v3485_v40 }
 0x9a2   : > { %v11243_v3 = vpop.eup %9146 }
 0x9a3   : > { %v3479_v60 = vsel %vm1597_vm8, %v11243_v3, 0.0 }
 0x9a5   : > { %3480 = vadd.xlane.f32.xlu1 %v3479_v60 }
 0x9b6   : > { %3686 = vrot.lane.b32.xlu1 %v13887_v16, %s9657_s18 }
 0x9c1   : > { %v3430_v25 = vpop.xlane.xlu1 %3429 }
 0x9c2   : > { %v3449_v8 = vsub.f32 %v3405_v63, %v3430_v25 }
 0x9c4   : > { %v3466_v47 = vmul.f32 1.442695, %v3449_v8 }
 0x9c5   : > { %v3424_v41 = vpop.xlane.xlu1 %3423  ;;  %v3433_v17 = vpop.xlane.xlu0 %3432 }
 0x9c6   : > { %9148 = vpow2.f32 %v3466_v47  ;;  %v3447_v62 = vsub.f32 %v11202_v0, %v3424_v41  ;;  %v3450_v42 = vsub.f32 %v11204_v22, %v3433_v17 }
 0x9c8   : > { %v3462_v10 = vmul.f32 1.442695, %v3447_v62  ;;  %v3468_v36 = vmul.f32 1.442695, %v3450_v42 }
 0x9c9   : > { %v3442_v2 = vpop.xlane.xlu1 %3441  ;;  %v3427_v33 = vpop.xlane.xlu0 %3426 }
 0x9ca   : > { %9150 = vpow2.f32 %v3462_v10  ;;  %v3453_v56 = vsub.f32 %v11209_v26, %v3442_v2  ;;  %v3448_v40 = vsub.f32 %v11207_v1, %v3427_v33 }
 0x9cb   : > { %9152 = vpow2.f32 %v3468_v36 }
 0x9cc   : > { %v3474_v60 = vmul.f32 1.442695, %v3453_v56  ;;  %v3464_v63 = vmul.f32 1.442695, %v3448_v40 }
 0x9cd   : > { %v3436_v25 = vpop.xlane.xlu1 %3435  ;;  %v3439_v8 = vpop.xlane.xlu0 %3438 }
 0x9ce   : > { %v3451_v47 = vsub.f32 %v11215_v45, %v3436_v25  ;;  %9154 = vpow2.f32 %v3464_v63  ;;  %v3452_v22 = vsub.f32 %v11217_v5, %v3439_v8 }
 0x9cf   : > { %9156 = vpow2.f32 %v3474_v60 }
 0x9d0   : > { %v3470_v0 = vmul.f32 1.442695, %v3451_v47  ;;  %v3472_v1 = vmul.f32 1.442695, %v3452_v22 }
 0x9d1   : > { %v3538_v41 = vpop.permute.xlu0 %3537  ;;  %v3689_v62 = vpop.permute.xlu1 %3688 }
 0x9d2   : > { %8424 = vmatprep.subr.bf16.mxu1 %v3538_v41  ;;  %9158 = vpow2.f32 %v3470_v0 }
 0x9d3   : > { %v11255_v17 = vpop.eup %9148  ;;  %8425 = vmatpush3.bf16.msra.mxu1 %v3538_v41  ;;  %9160 = vpow2.f32 %v3472_v1 }
 0x9d4   : > { %8820 = vmatprep.subr.msk.bf16.mxu1 %vm1469_vm5, %v3689_v62  ;;  %v3494_v26 = vsel %vm1597_vm8, %v11255_v17, 0.0 }
 0x9d5   : > { %3495 = vadd.xlane.f32.xlu0 %v3494_v26 }
 0x9d7   : > { %v11260_v45 = vpop.eup %9150 }
 0x9d8   : > { %v3488_v5 = vsel %vm1597_vm8, %v11260_v45, 0.0  ;;  %v11264_v42 = vpop.eup %9152 }
 0x9d9   : > { %3489 = vadd.xlane.f32.xlu0 %v3488_v5  ;;  %v3497_v36 = vsel %vm1597_vm8, %v11264_v42, 0.0 }
 0x9db   : > { %v11266_v10 = vpop.eup %9154 }
 0x9dc   : > { %v11270_v2 = vpop.eup %9156  ;;  %v3491_v33 = vsel %vm1597_vm8, %v11266_v10, 0.0 }
 0x9dd   : > { %3498 = vadd.xlane.f32.xlu0 %v3497_v36  ;;  %3492 = vadd.xlane.f32.xlu1 %v3491_v33  ;;  %v3506_v56 = vsel %vm1628_vm9, %v11270_v2, 0.0 }
 0x9df   : > { %v11276_v40 = vpop.eup %9158 }
 0x9e0   : > { %v3500_v60 = vsel %vm1597_vm8, %v11276_v40, 0.0  ;;  %v11280_v63 = vpop.eup %9160 }
 0x9e1   : > { %3507 = vadd.xlane.f32.xlu0 %v3506_v56  ;;  %v3503_v25 = vsel %vm1597_vm8, %v11280_v63, 0.0 }
 0x9e5   : > { %3501 = vadd.xlane.f32.xlu0 %v3500_v60 }
 0x9e9   : > { %3504 = vadd.xlane.f32.xlu0 %v3503_v25 }
 0x9ee   : > { %3682 = vrot.lane.b32.xlu1 %v13888_v27, %s9657_s18 }
 0x9f2   : > { %3680 = vrot.lane.b32.xlu1 %v13889_v19, %s9657_s18 }
 0x9f6   : > { %3678 = vrot.lane.b32.xlu1 %v13890_v31, %s9657_s18 }
 0x9fa   : > { %3666 = vrot.lane.b32.xlu1 %v13890_v31, %s9659_s19 }
 0x9fe   : > { %3668 = vrot.lane.b32.xlu1 %v13889_v19, %s9659_s19 }
 0x9ff   : > { %3684 = vrot.lane.b32.xlu0 %v13891_v6, %s9657_s18  ;;  %s9669_s18 = smov 8  }
 0xa02   : > { %3672 = vrot.lane.b32.xlu1 %v13891_v6, %s9659_s19 }
 0xa03   : > { %3670 = vrot.lane.b32.xlu0 %v13888_v27, %s9659_s19 }
 0xa06   : > { %3676 = vrot.lane.b32.xlu1 %v11047_v49, %s9659_s19 }
 0xa07   : > { %3674 = vrot.lane.b32.xlu0 %v13887_v16, %s9659_s19  ;;  %s9671_s19 = smov 24  }
 0xa0a   : > { %3952 = vrot.lane.b32.xlu1 %v13887_v16, %s9663_s27 }
 0xa0b   : > { %3954 = vrot.lane.b32.xlu0 %v11047_v49, %s9663_s27 }
 0xa0e   : > { %3950 = vrot.lane.b32.xlu1 %v13891_v6, %s9663_s27 }
 0xa12   : > { %3946 = vrot.lane.b32.xlu1 %v13889_v19, %s9663_s27 }
 0xa25   : > { %v3484_v8 = vpop.xlane.xlu0 %3483 }
 0xa29   : > { %v3478_v0 = vpop.xlane.xlu0 %3477 }
 0xa2a   : > { %v3487_v47 = vpop.xlane.xlu1 %3486 }
 0xa2b   : > { %9162 = vrcp.f32 %v3487_v47 }
 0xa2c   : > { %9164 = vrcp.f32 %v3478_v0 }
 0xa2d   : > { %9166 = vrcp.f32 %v3484_v8  ;;  %v3724_v8 = vsel %vm1469_vm5, %v3689_v62, 0 }
 0xa2e   : > { %v3481_v22 = vpop.xlane.xlu1 %3480 }
 0xa2f   : > { %9168 = vrcp.f32 %v3481_v22 }
 0xa32   : > { %v3687_v47 = vpop.permute.xlu1 %3686 }
 0xa38   : > { %v9163_v41 = vpop.eup %9162 }
 0xa39   : > { %v9165_v1 = vpop.eup %9164  ;;  %v3523_v36 = vmul.f32 %v9163_v41, %v11237_v39  ;;  %v3721_v39 = vsel %vm1469_vm5, %v3687_v47, 0 }
 0xa3a   : > { %v9167_v26 = vpop.eup %9166  ;;  %v3520_v33 = vmul.f32 %v9165_v1, %v11235_v38 }
 0xa3b   : > { %v3522_v60 = vmul.f32 %v9167_v26, %v11231_v14 }
 0xa3c   : > { %v9169_v5 = vpop.eup %9168 }
 0xa3d   : > { %v3521_v56 = vmul.f32 %v9169_v5, %v11243_v3  ;;  %v3532_v43 = vpack.c.bf16 %v3523_v36, %v3522_v60 }
 0xa3f   : > { %v3531_v25 = vpack.c.bf16 %v3521_v56, %v3520_v33 }
 0xa41   : > { %8426 = vmatprep.mubr.msk.bf16.mxu1 %vm1597_vm8, %v3531_v25 }
 0xa42   : > { %8427 = vmatmul.mubr.msk.bf16.vlgmr.msra.gmra.mxu1 %vm1597_vm8, %v3532_v43 }
 0xa43   : > { %8439 = vmatpush3.bf16.xpose.msra.mxu1 %v3724_v8 }
 0xa44   : > { %8821 = vmatprep.subr.msk.bf16.mxu1 %vm1469_vm5, %v3687_v47 }
 0xa4b   : > { %8441 = vmatpush3.bf16.xpose.msra.mxu1 %v3721_v39 }
 0xa5e   : > { %v3496_v38 = vpop.xlane.xlu0 %3495 }
 0xa5f   : > { %9170 = vrcp.f32 %v3496_v38 }
 0xa62   : > { %v3490_v0 = vpop.xlane.xlu0 %3489 }
 0xa63   : > { %9172 = vrcp.f32 %v3490_v0 }
 0xa66   : > { %v3499_v14 = vpop.xlane.xlu0 %3498  ;;  %v3493_v3 = vpop.xlane.xlu1 %3492 }
 0xa67   : > { %9174 = vrcp.f32 %v3499_v14 }
 0xa68   : > { %9176 = vrcp.f32 %v3493_v3 }
 0xa6a   : > { %v3508_v22 = vpop.xlane.xlu0 %3507  ;;  %v3683_v41 = vpop.permute.xlu1 %3682 }
 0xa6b   : > { %9178 = vrcp.f32 %v3508_v22 }
 0xa6c   : > { %v9171_v62 = vpop.eup %9170 }
 0xa6d   : > { %v3526_v60 = vmul.f32 %v9171_v62, %v11255_v17  ;;  %v3715_v62 = vsel %vm1469_vm5, %v3683_v41, 0 }
 0xa6e   : > { %v3502_v43 = vpop.xlane.xlu0 %3501  ;;  %v3681_v1 = vpop.permute.xlu1 %3680 }
 0xa6f   : > { %9180 = vrcp.f32 %v3502_v43 }
 0xa70   : > { %v9173_v5 = vpop.eup %9172 }
 0xa71   : > { %v3524_v47 = vmul.f32 %v9173_v5, %v11260_v45 }
 0xa72   : > { %v3505_v26 = vpop.xlane.xlu0 %3504  ;;  %v3679_v36 = vpop.permute.xlu1 %3678 }
 0xa73   : > { %9182 = vrcp.f32 %v3505_v26 }
 0xa74   : > { %v9175_v33 = vpop.eup %9174 }
 0xa75   : > { %v9177_v56 = vpop.eup %9176  ;;  %v3527_v25 = vmul.f32 %v9175_v33, %v11264_v42 }
 0xa76   : > { %v3685_v8 = vpop.permute.xlu0 %3684  ;;  %v3525_v39 = vmul.f32 %v9177_v56, %v11266_v10  ;;  %v3667_v38 = vpop.permute.xlu1 %3666 }
 0xa77   : > { %8822 = vmatprep.subr.msk.bf16.mxu1 %vm1469_vm5, %v3685_v8  ;;  %v3718_v0 = vsel %vm1469_vm5, %v3685_v8, 0  ;;  %v3534_v14 = vpack.c.bf16 %v3527_v25, %v3526_v60 }
 0xa78   : > { %8443 = vmatpush3.bf16.xpose.msra.mxu1 %v3718_v0  ;;  %v3533_v3 = vpack.c.bf16 %v3525_v39, %v3524_v47  ;;  %v9179_v42 = vpop.eup %9178 }
 0xa79   : > { %8823 = vmatprep.subr.msk.bf16.mxu1 %vm1469_vm5, %v3683_v41  ;;  %v3530_v5 = vmul.f32 %v9179_v42, %v11270_v2  ;;  %v3712_v2 = vsel %vm1469_vm5, %v3681_v1, 0 }
 0xa7a   : > { %8430 = vmatprep.mubr.msk.bf16.mxu1 %vm1597_vm8, %v3533_v3  ;;  %v3671_v17 = vpop.permute.xlu0 %3670  ;;  %v3669_v22 = vpop.permute.xlu1 %3668 }
 0xa7b   : > { %8431 = vmatmul.mubr.msk.bf16.gmra.mxu1 %vm1597_vm8, %v3534_v14  ;;  %v3536_v39 = vpack.c.bf16 %v3530_v5, %v3530_v5 }
 0xa7c   : > { %v9181_v45 = vpop.eup %9180 }
 0xa7d   : > { %v3528_v33 = vmul.f32 %v9181_v45, %v11276_v40 }
 0xa7e   : > { %v3675_v43 = vpop.permute.xlu0 %3674  ;;  %v3673_v10 = vpop.permute.xlu1 %3672 }
 0xa80   : > { %v9183_v26 = vpop.eup %9182  ;;  %8445 = vmatpush3.bf16.xpose.msra.mxu1 %v3715_v62 }
 0xa81   : > { %8824 = vmatprep.subr.msk.bf16.mxu1 %vm1469_vm5, %v3681_v1  ;;  %v3529_v56 = vmul.f32 %v9183_v26, %v11280_v63  ;;  %v3709_v63 = vsel %vm1469_vm5, %v3679_v36, 0 }
 0xa82   : > { %v3955_v60 = vpop.permute.xlu0 %3954  ;;  %v3677_v25 = vpop.permute.xlu1 %3676 }
 0xa83   : > { %v3980_v8 = vand.u32 %v3955_v60, %v10447_v44  ;;  %v3535_v47 = vpack.c.bf16 %v3529_v56, %v3528_v33 }
 0xa85   : > { %8434 = vmatprep.mubr.msk.bf16.mxu1 %vm1597_vm8, %v3535_v47  ;;  %8462 = vmatprep.subr.bf16.mxu0 %v3980_v8 }
 0xa86   : > { %8435 = vmatmul.mubr.msk.bf16.gmra.mxu1 %vm1597_vm8, %v3536_v39  ;;  %8463 = vmatpush3.bf16.msra.mxu0 %v3980_v8  ;;  %v3953_v41 = vpop.permute.xlu1 %3952 }
 0xa87   : > { %8450 = vmatprep.mubr.msk.bf16.mxu1 %vm1469_vm5, %v3667_v38  ;;  %8464 = vmatprep.subr.bf16.mxu0 %v3953_v41 }
 0xa88   : > { %8447 = vmatpush3.bf16.xpose.msra.mxu1 %v3712_v2 }
 0xa89   : > { %8825 = vmatprep.subr.msk.bf16.mxu1 %vm1469_vm5, %v3679_v36 }
 0xa8a   : > { %8465 = vmatpush3.bf16.msra.mxu0 %v3953_v41  ;;  %v3951_v40 = vpop.permute.xlu1 %3950 }
 0xa8b   : > { %8466 = vmatprep.subr.bf16.mxu0 %v3951_v40 }
 0xa8e   : > { %8467 = vmatpush3.bf16.msra.mxu0 %v3951_v40 }
 0xa90   : > { %8449 = vmatpush3.bf16.xpose.msra.mxu1 %v3709_v63 }
 0xa97   : > { %8451 = vmatmul.mubr.msk.bf16.vlgmr.msra.gmra.mxu1 %vm1469_vm5, %v3669_v22 }
 0xa98   : > { %8454 = vmatprep.mubr.msk.bf16.mxu1 %vm1469_vm5, %v3671_v17 }
 0xa9f   : > { %8455 = vmatmul.mubr.msk.bf16.gmra.mxu1 %vm1469_vm5, %v3673_v10 }
 0xaa0   : > { %8458 = vmatprep.mubr.msk.bf16.mxu1 %vm1469_vm5, %v3675_v43 }
 0xaa7   : > { %8459 = vmatmul.mubr.msk.bf16.gmra.mxu1 %vm1469_vm5, %v3677_v25 }
 0xb02   : > { %v8428_v1 = vpop.f32.mrf.mxu1 }
 0xb03   : > { %3657 = vst.msk [vmem:[#allocation3 + $0x61] sm:$0xff] %vm1469_vm5, %v8428_v1 }
 0xb04   : > { %v3609_v38 = vpop.f32.mrf.mxu1 }
 0xb05   : > { %3655 = vst.msk [vmem:[#allocation3 + $0x51] sm:$0xff] %vm1469_vm5, %v3609_v38 }
 0xb06   : > { %v8429_v0 = vpop.f32.mrf.mxu1 }
 0xb07   : > { %3658 = vst.msk [vmem:[#allocation3 + $0x69] sm:$0xff] %vm1469_vm5, %v8429_v0 }
 0xb08   : > { %v3612_v36 = vpop.f32.mrf.mxu1 }
 0xb09   : > { %3656 = vst.msk [vmem:[#allocation3 + $0x59] sm:$0xff] %vm1469_vm5, %v3612_v36 }
 0xb3b   : > { %v8432_v14 = vpop.f32.mrf.mxu1 }
 0xb3c   : > { %3661 = vst.msk [vmem:[#allocation3 + $0x81] sm:$0xff] %vm1469_vm5, %v8432_v14 }
 0xb3d   : > { %v3625_v3 = vpop.f32.mrf.mxu1 }
 0xb3e   : > { %3659 = vst.msk [vmem:[#allocation3 + $0x71] sm:$0xff] %vm1469_vm5, %v3625_v3 }
 0xb3f   : > { %v8433_v17 = vpop.f32.mrf.mxu1 }
 0xb40   : > { %3662 = vst.msk [vmem:[#allocation3 + $0x89] sm:$0xff] %vm1469_vm5, %v8433_v17 }
 0xb41   : > { %v3628_v22 = vpop.f32.mrf.mxu1 }
 0xb42   : > { %3660 = vst.msk [vmem:[#allocation3 + $0x79] sm:$0xff] %vm1469_vm5, %v3628_v22 }
 0xb46   : > { %v8436_v42 = vpop.f32.mrf.mxu1 }
 0xb47   : > { %3665 = vst.msk [vmem:[#allocation3 + $0xa1] sm:$0x1] %vm1857_vm10, %v8436_v42 }
 0xb48   : > { %v3641_v45 = vpop.f32.mrf.mxu1 }
 0xb49   : > { %3663 = vst.msk [vmem:[#allocation3 + $0x91] sm:$0xff] %vm1469_vm5, %v3641_v45 }
 0xb4a   : > { %v8437_v43 = vpop.f32.mrf.mxu1 }
 0xb4c   : > { %v3644_v10 = vpop.f32.mrf.mxu1 }
 0xb4d   : > { %3664 = vst.msk [vmem:[#allocation3 + $0x99] sm:$0xff] %vm1469_vm5, %v3644_v10 }
 0xb57   : > { %v8452_v62 = vpop.f32.mrf.mxu1 }
 0xb58   : > { %v3808_v26 = vmul.f32 0.35355338, %v8452_v62 }
 0xb59   : > { %v3760_v5 = vpop.f32.mrf.mxu1 }
 0xb5a   : > { %v3806_v33 = vmul.f32 0.35355338, %v3760_v5  ;;  %v3823_v56 = vsel %vm1597_vm8, %v3808_v26, -inf }
 0xb5b   : > { %3824 = vmax.xlane.f32.xlu0 %v3823_v56  ;;  %v8453_v60 = vpop.f32.mrf.mxu1 }
 0xb5c   : > { %v3809_v8 = vmul.f32 0.35355338, %v8453_v60  ;;  %v3817_v39 = vsel %vm1597_vm8, %v3806_v33, -inf }
 0xb5d   : > { %v3763_v25 = vpop.f32.mrf.mxu1 }
 0xb5e   : > { %v3807_v47 = vmul.f32 0.35355338, %v3763_v25  ;;  %v3826_v1 = vsel %vm1597_vm8, %v3809_v8, -inf }
 0xb5f   : > { %3818 = vmax.xlane.f32.xlu0 %v3817_v39  ;;  %v8456_v41 = vpop.f32.mrf.mxu1 }
 0xb60   : > { %v3812_v2 = vmul.f32 0.35355338, %v8456_v41  ;;  %v3820_v40 = vsel %vm1597_vm8, %v3807_v47, -inf }
 0xb61   : > { %3821 = vmax.xlane.f32.xlu1 %v3820_v40  ;;  %v3776_v63 = vpop.f32.mrf.mxu1 }
 0xb62   : > { %v3810_v0 = vmul.f32 0.35355338, %v3776_v63  ;;  %v3835_v36 = vsel %vm1597_vm8, %v3812_v2, -inf }
 0xb63   : > { %3827 = vmax.xlane.f32.xlu0 %v3826_v1  ;;  %v8457_v38 = vpop.f32.mrf.mxu1 }
 0xb64   : > { %v3829_v22 = vsel %vm1597_vm8, %v3810_v0, -inf  ;;  %v11376_v5 = vmul.f32 0.35355338, %v8457_v38  ;;  %v3947_v38 = vpop.permute.xlu1 %3946 }
 0xb65   : > { %3836 = vmax.xlane.f32.xlu1 %v3835_v36  ;;  %v3779_v14 = vpop.f32.mrf.mxu1 }
 0xb66   : > { %v11378_v56 = vmul.f32 0.35355338, %v3779_v14  ;;  %v3838_v60 = vsel %vm1597_vm8, %v11376_v5, -inf }
 0xb67   : > { %v8460_v3 = vpop.f32.mrf.mxu1 }
 0xb68   : > { %v11363_v17 = vmul.f32 0.35355338, %v8460_v3  ;;  %v3832_v41 = vsel %vm1597_vm8, %v11378_v56, -inf }
 0xb69   : > { %3830 = vmax.xlane.f32.xlu1 %v3829_v22  ;;  %v3792_v42 = vpop.f32.mrf.mxu1 }
 0xb6a   : > { %v11366_v43 = vmul.f32 0.35355338, %v3792_v42  ;;  %v3847_v10 = vsel %vm1628_vm9, %v11363_v17, -inf }
 0xb6b   : > { %v8461_v45 = vpop.f32.mrf.mxu1 }
 0xb6c   : > { %v3841_v62 = vsel %vm1597_vm8, %v11366_v43, -inf }
 0xb6d   : > { %3848 = vmax.xlane.f32.xlu1 %v3847_v10  ;;  %v3795_v25 = vpop.f32.mrf.mxu1 }
 0xb6e   : > { %v11382_v39 = vmul.f32 0.35355338, %v3795_v25 }
 0xb70   : > { %v3844_v40 = vsel %vm1597_vm8, %v11382_v39, -inf }
 0xb71   : > { %3842 = vmax.xlane.f32.xlu1 %v3841_v62 }
 0xb79   : > { %3948 = vrot.lane.b32.xlu0 %v13888_v27, %s9663_s27 }
 0xb82   : > { %4139 = vrot.lane.b32.xlu1 %v11047_v49, %s9660_s23 }
 0xb98   : > { %3839 = vmax.xlane.f32.xlu0 %v3838_v60 }
 0xb9c   : > { %3833 = vmax.xlane.f32.xlu0 %v3832_v41 }
 0xba0   : > { %3845 = vmax.xlane.f32.xlu0 %v3844_v40 }
 0xbb6   : > { %3944 = vrot.lane.b32.xlu0 %v13890_v31, %s9663_s27 }
 0xbe4   : > { %v3825_v63 = vpop.xlane.xlu0 %3824 }
 0xbe5   : > { %v3852_v1 = vsub.f32 %v3808_v26, %v3825_v63 }
 0xbe7   : > { %v3865_v36 = vmul.f32 1.442695, %v3852_v1 }
 0xbe8   : > { %v3819_v14 = vpop.xlane.xlu0 %3818 }
 0xbe9   : > { %9184 = vpow2.f32 %v3865_v36  ;;  %v3850_v3 = vsub.f32 %v3806_v33, %v3819_v14 }
 0xbea   : > { %v3822_v22 = vpop.xlane.xlu1 %3821 }
 0xbeb   : > { %v3861_v42 = vmul.f32 1.442695, %v3850_v3  ;;  %v3851_v45 = vsub.f32 %v3807_v47, %v3822_v22 }
 0xbec   : > { %v3828_v10 = vpop.xlane.xlu0 %3827 }
 0xbed   : > { %9186 = vpow2.f32 %v3861_v42  ;;  %v3853_v62 = vsub.f32 %v3809_v8, %v3828_v10  ;;  %v3863_v60 = vmul.f32 1.442695, %v3851_v45 }
 0xbee   : > { %v3837_v25 = vpop.xlane.xlu1 %3836 }
 0xbef   : > { %v3867_v41 = vmul.f32 1.442695, %v3853_v62  ;;  %v3856_v40 = vsub.f32 %v3812_v2, %v3837_v25 }
 0xbf0   : > { %v3949_v4 = vpop.permute.xlu0 %3948 }
 0xbf1   : > { %9188 = vpow2.f32 %v3867_v41  ;;  %v3873_v20 = vmul.f32 1.442695, %v3856_v40  ;;  %8468 = vmatprep.subr.bf16.mxu0 %v3949_v4 }
 0xbf2   : > { %9190 = vpow2.f32 %v3863_v60  ;;  %v3831_v26 = vpop.xlane.xlu1 %3830  ;;  %8469 = vmatpush3.bf16.msra.mxu0 %v3949_v4 }
 0xbf3   : > { %9192 = vpow2.f32 %v3873_v20  ;;  %v3854_v63 = vsub.f32 %v3810_v0, %v3831_v26  ;;  %8470 = vmatprep.subr.bf16.mxu0 %v3947_v38 }
 0xbf5   : > { %v3869_v33 = vmul.f32 1.442695, %v3854_v63 }
 0xbf6   : > { %v11390_v1 = vpop.eup %9184  ;;  %8471 = vmatpush3.bf16.msra.mxu0 %v3947_v38  ;;  %v3849_v42 = vpop.xlane.xlu1 %3848 }
 0xbf7   : > { %9194 = vpow2.f32 %v3869_v33  ;;  %v3889_v8 = vsel %vm1597_vm8, %v11390_v1, 0.0  ;;  %v3860_v45 = vsub.f32 %v11363_v17, %v3849_v42 }
 0xbf8   : > { %3890 = vadd.xlane.f32.xlu0 %v3889_v8 }
 0xbf9   : > { %v3881_v25 = vmul.f32 1.442695, %v3860_v45 }
 0xbfa   : > { %v11394_v47 = vpop.eup %9186  ;;  %v3843_v10 = vpop.xlane.xlu1 %3842 }
 0xbfb   : > { %v3883_v2 = vsel %vm1597_vm8, %v11394_v47, 0.0  ;;  %v3858_v41 = vsub.f32 %v11366_v43, %v3843_v10 }
 0xbfc   : > { %3884 = vadd.xlane.f32.xlu0 %v3883_v2 }
 0xbfd   : > { %v3877_v33 = vmul.f32 1.442695, %v3858_v41 }
 0xbfe   : > { %v11398_v36 = vpop.eup %9188 }
 0xbff   : > { %v11400_v4 = vpop.eup %9190  ;;  %v3892_v20 = vsel %vm1597_vm8, %v11398_v36, 0.0 }
 0xc00   : > { %v11404_v0 = vpop.eup %9192  ;;  %3893 = vadd.xlane.f32.xlu1 %v3892_v20  ;;  %v3886_v14 = vsel %vm1597_vm8, %v11400_v4, 0.0 }
 0xc01   : > { %v3901_v38 = vsel %vm1597_vm8, %v11404_v0, 0.0 }
 0xc02   : > { %3902 = vadd.xlane.f32.xlu0 %v3901_v38 }
 0xc04   : > { %v11410_v3 = vpop.eup %9194  ;;  %3887 = vadd.xlane.f32.xlu1 %v3886_v14 }
 0xc05   : > { %v3895_v22 = vsel %vm1597_vm8, %v11410_v3, 0.0 }
 0xc06   : > { %3896 = vadd.xlane.f32.xlu0 %v3895_v22 }
 0xc15   : > { %4137 = vrot.lane.b32.xlu1 %v13887_v16, %s9660_s23 }
 0xc21   : > { %v3840_v62 = vpop.xlane.xlu0 %3839 }
 0xc22   : > { %v3857_v60 = vsub.f32 %v11376_v5, %v3840_v62  ;;  %v4140_v5 = vpop.permute.xlu1 %4139 }
 0xc24   : > { %v3875_v40 = vmul.f32 1.442695, %v3857_v60 }
 0xc25   : > { %v3834_v26 = vpop.xlane.xlu0 %3833 }
 0xc26   : > { %9196 = vpow2.f32 %v3875_v40  ;;  %v3855_v63 = vsub.f32 %v11378_v56, %v3834_v26 }
 0xc27   : > { %9198 = vpow2.f32 %v3881_v25 }
 0xc28   : > { %v3871_v8 = vmul.f32 1.442695, %v3855_v63 }
 0xc29   : > { %v3846_v2 = vpop.xlane.xlu0 %3845 }
 0xc2a   : > { %9200 = vpow2.f32 %v3871_v8  ;;  %v3859_v20 = vsub.f32 %v11382_v39, %v3846_v2 }
 0xc2b   : > { %9202 = vpow2.f32 %v3877_v33 }
 0xc2c   : > { %v3879_v17 = vmul.f32 1.442695, %v3859_v20 }
 0xc2d   : > { %v3945_v38 = vpop.permute.xlu0 %3944 }
 0xc2e   : > { %8472 = vmatprep.subr.bf16.mxu0 %v3945_v38  ;;  %9204 = vpow2.f32 %v3879_v17 }
 0xc2f   : > { %8473 = vmatpush3.bf16.msra.mxu0 %v3945_v38 }
 0xc30   : > { %8826 = vmatprep.subr.msk.bf16.mxu0 %vm1469_vm5, %v4140_v5 }
 0xc33   : > { %v11422_v43 = vpop.eup %9196 }
 0xc34   : > { %v3904_v56 = vsel %vm1597_vm8, %v11422_v43, 0.0  ;;  %v11426_v14 = vpop.eup %9198 }
 0xc35   : > { %3905 = vadd.xlane.f32.xlu0 %v3904_v56  ;;  %v3913_v39 = vsel %vm1628_vm9, %v11426_v14, 0.0 }
 0xc37   : > { %v11428_v22 = vpop.eup %9200 }
 0xc38   : > { %v3898_v42 = vsel %vm1597_vm8, %v11428_v22, 0.0  ;;  %v11434_v45 = vpop.eup %9202 }
 0xc39   : > { %3914 = vadd.xlane.f32.xlu0 %v3913_v39  ;;  %3899 = vadd.xlane.f32.xlu1 %v3898_v42  ;;  %v3907_v10 = vsel %vm1597_vm8, %v11434_v45, 0.0 }
 0xc3b   : > { %v11438_v62 = vpop.eup %9204 }
 0xc3c   : > { %v3910_v60 = vsel %vm1597_vm8, %v11438_v62, 0.0 }
 0xc3d   : > { %3908 = vadd.xlane.f32.xlu0 %v3907_v10  ;;  %v4175_v10 = vsel %vm1469_vm5, %v4140_v5, 0 }
 0xc41   : > { %3911 = vadd.xlane.f32.xlu0 %v3910_v60 }
 0xc4a   : > { %4133 = vrot.lane.b32.xlu1 %v13888_v27, %s9660_s23 }
 0xc4e   : > { %4131 = vrot.lane.b32.xlu1 %v13889_v19, %s9660_s23 }
 0xc52   : > { %4129 = vrot.lane.b32.xlu1 %v13890_v31, %s9660_s23 }
 0xc56   : > { %4117 = vrot.lane.b32.xlu1 %v13890_v31, %s9661_s28 }
 0xc57   : > { %4135 = vrot.lane.b32.xlu0 %v13891_v6, %s9660_s23 }
 0xc5a   : > { %4119 = vrot.lane.b32.xlu1 %v13889_v19, %s9661_s28 }
 0xc5b   : > { %4121 = vrot.lane.b32.xlu0 %v13888_v27, %s9661_s28 }
 0xc5e   : > { %4123 = vrot.lane.b32.xlu1 %v13891_v6, %s9661_s28 }
 0xc5f   : > { %4125 = vrot.lane.b32.xlu0 %v13887_v16, %s9661_s28 }
 0xc62   : > { %4127 = vrot.lane.b32.xlu1 %v11047_v49, %s9661_s28  ;;  %s13937_s28 = scalar_lea.vmem %s13777_s7, %s9807_s25 }
 0xc63   : > { %4405 = vrot.lane.b32.xlu0 %v11047_v49, %s9664_s29 }
 0xc66   : > { %4403 = vrot.lane.b32.xlu1 %v13887_v16, %s9664_s29 }
 0xc6a   : > { %4401 = vrot.lane.b32.xlu1 %v13891_v6, %s9664_s29 }
 0xc6e   : > { %4397 = vrot.lane.b32.xlu1 %v13889_v19, %s9664_s29 }
 0xc81   : > { %v3891_v25 = vpop.xlane.xlu0 %3890 }
 0xc85   : > { %v3885_v41 = vpop.xlane.xlu0 %3884 }
 0xc89   : > { %v3894_v40 = vpop.xlane.xlu1 %3893 }
 0xc8a   : > { %9206 = vrcp.f32 %v3894_v40 }
 0xc8b   : > { %9208 = vrcp.f32 %v3885_v41 }
 0xc8c   : > { %9210 = vrcp.f32 %v3891_v25 }
 0xc8d   : > { %v3888_v26 = vpop.xlane.xlu1 %3887 }
 0xc8e   : > { %9212 = vrcp.f32 %v3888_v26 }
 0xc91   : > { %v4138_v60 = vpop.permute.xlu1 %4137 }
 0xc97   : > { %v9207_v63 = vpop.eup %9206 }
 0xc98   : > { %v9209_v33 = vpop.eup %9208  ;;  %v3930_v20 = vmul.f32 %v9207_v63, %v11398_v36  ;;  %v4172_v36 = vsel %vm1469_vm5, %v4138_v60, 0 }
 0xc99   : > { %v9211_v8 = vpop.eup %9210  ;;  %v3927_v17 = vmul.f32 %v9209_v33, %v11394_v47  ;;  %v3903_v47 = vpop.xlane.xlu0 %3902 }
 0xc9a   : > { %v3929_v56 = vmul.f32 %v9211_v8, %v11390_v1 }
 0xc9b   : > { %v9213_v2 = vpop.eup %9212 }
 0xc9c   : > { %v3928_v38 = vmul.f32 %v9213_v2, %v11400_v4  ;;  %v3939_v42 = vpack.c.bf16 %v3930_v20, %v3929_v56 }
 0xc9d   : > { %v3897_v25 = vpop.xlane.xlu0 %3896 }
 0xc9e   : > { %v3938_v39 = vpack.c.bf16 %v3928_v38, %v3927_v17 }
 0xca0   : > { %8474 = vmatprep.mubr.msk.bf16.mxu0 %vm1597_vm8, %v3938_v39 }
 0xca1   : > { %8475 = vmatmul.mubr.msk.bf16.vlgmr.msra.gmra.mxu0 %vm1597_vm8, %v3939_v42 }
 0xca2   : > { %8487 = vmatpush3.bf16.xpose.msra.mxu0 %v4175_v10 }
 0xca3   : > { %8827 = vmatprep.subr.msk.bf16.mxu0 %vm1469_vm5, %v4138_v60 }
 0xcaa   : > { %8489 = vmatpush3.bf16.xpose.msra.mxu0 %v4172_v36 }
 0xcbe   : > { %v3906_v4 = vpop.xlane.xlu0 %3905 }
 0xcbf   : > { %9214 = vrcp.f32 %v3906_v4 }
 0xcc0   : > { %9216 = vrcp.f32 %v3897_v25 }
 0xcc1   : > { %9218 = vrcp.f32 %v3903_v47 }
 0xcc2   : > { %v3900_v1 = vpop.xlane.xlu1 %3899  ;;  %v3915_v41 = vpop.xlane.xlu0 %3914 }
 0xcc3   : > { %9220 = vrcp.f32 %v3900_v1 }
 0xcc4   : > { %9222 = vrcp.f32 %v3915_v41 }
 0xcc6   : > { %v4134_v40 = vpop.permute.xlu1 %4133  ;;  %v3909_v26 = vpop.xlane.xlu0 %3908 }
 0xcc7   : > { %9224 = vrcp.f32 %v3909_v26 }
 0xcca   : > { %v4132_v5 = vpop.permute.xlu1 %4131  ;;  %v3912_v63 = vpop.xlane.xlu0 %3911 }
 0xccb   : > { %9226 = vrcp.f32 %v3912_v63  ;;  %v4166_v63 = vsel %vm1469_vm5, %v4134_v40, 0 }
 0xccc   : > { %v9215_v33 = vpop.eup %9214 }
 0xccd   : > { %v9217_v8 = vpop.eup %9216  ;;  %v3934_v39 = vmul.f32 %v9215_v33, %v11422_v43 }
 0xcce   : > { %v4130_v2 = vpop.permute.xlu1 %4129  ;;  %v4136_v20 = vpop.permute.xlu0 %4135  ;;  %v3931_v42 = vmul.f32 %v9217_v8, %v11410_v3 }
 0xccf   : > { %v9219_v17 = vpop.eup %9218  ;;  %8828 = vmatprep.subr.msk.bf16.mxu0 %vm1469_vm5, %v4136_v20  ;;  %v4169_v38 = vsel %vm1469_vm5, %v4136_v20, 0 }
 0xcd0   : > { %v9221_v56 = vpop.eup %9220  ;;  %8491 = vmatpush3.bf16.xpose.msra.mxu0 %v4169_v38  ;;  %v3933_v47 = vmul.f32 %v9219_v17, %v11404_v0 }
 0xcd1   : > { %8829 = vmatprep.subr.msk.bf16.mxu0 %vm1469_vm5, %v4134_v40  ;;  %v3932_v10 = vmul.f32 %v9221_v56, %v11428_v22  ;;  %v9223_v1 = vpop.eup %9222 }
 0xcd2   : > { %v4118_v60 = vpop.permute.xlu1 %4117  ;;  %v4122_v36 = vpop.permute.xlu0 %4121  ;;  %v3941_v4 = vpack.c.bf16 %v3934_v39, %v3933_v47  ;;  %v3937_v3 = vmul.f32 %v9223_v1, %v11426_v14  ;;  %v4163_v14 = vsel %vm1469_vm5, %v4132_v5, 0  ;;  %v4160_v39 = vsel %vm1469_vm5, %v4130_v2, 0 }
 0xcd3   : > { %v3940_v25 = vpack.c.bf16 %v3932_v10, %v3931_v42 }
 0xcd4   : > { %v9225_v41 = vpop.eup %9224  ;;  %v3943_v56 = vpack.c.bf16 %v3937_v3, %v3937_v3 }
 0xcd5   : > { %8478 = vmatprep.mubr.msk.bf16.mxu0 %vm1597_vm8, %v3940_v25  ;;  %v3935_v0 = vmul.f32 %v9225_v41, %v11434_v45 }
 0xcd6   : > { %v4120_v26 = vpop.permute.xlu1 %4119  ;;  %8479 = vmatmul.mubr.msk.bf16.gmra.mxu0 %vm1597_vm8, %v3941_v4  ;;  %v4126_v43 = vpop.permute.xlu0 %4125 }
 0xcd8   : > { %v9227_v33 = vpop.eup %9226  ;;  %8493 = vmatpush3.bf16.xpose.msra.mxu0 %v4166_v63 }
 0xcd9   : > { %8830 = vmatprep.subr.msk.bf16.mxu0 %vm1469_vm5, %v4132_v5  ;;  %v3936_v22 = vmul.f32 %v9227_v33, %v11438_v62 }
 0xcda   : > { %v4124_v8 = vpop.permute.xlu1 %4123  ;;  %v4406_v20 = vpop.permute.xlu0 %4405 }
 0xcdb   : > { %v4431_v17 = vand.u32 %v4406_v20, %v10447_v44  ;;  %v3942_v38 = vpack.c.bf16 %v3936_v22, %v3935_v0 }
 0xcdd   : > { %8482 = vmatprep.mubr.msk.bf16.mxu0 %vm1597_vm8, %v3942_v38  ;;  %8510 = vmatprep.subr.bf16.mxu1 %v4431_v17 }
 0xcde   : > { %v4128_v40 = vpop.permute.xlu1 %4127  ;;  %8483 = vmatmul.mubr.msk.bf16.gmra.mxu0 %vm1597_vm8, %v3943_v56  ;;  %8511 = vmatpush3.bf16.msra.mxu1 %v4431_v17 }
 0xcdf   : > { %8498 = vmatprep.mubr.msk.bf16.mxu0 %vm1469_vm5, %v4118_v60 }
 0xce0   : > { %8495 = vmatpush3.bf16.xpose.msra.mxu0 %v4163_v14 }
 0xce1   : > { %8831 = vmatprep.subr.msk.bf16.mxu0 %vm1469_vm5, %v4130_v2 }
 0xce2   : > { %v4404_v45 = vpop.permute.xlu1 %4403 }
 0xce3   : > { %8512 = vmatprep.subr.bf16.mxu1 %v4404_v45 }
 0xce4   : > { %8513 = vmatpush3.bf16.msra.mxu1 %v4404_v45 }
 0xce6   : > { %v4402_v62 = vpop.permute.xlu1 %4401 }
 0xce7   : > { %8514 = vmatprep.subr.bf16.mxu1 %v4402_v62 }
 0xce8   : > { %8497 = vmatpush3.bf16.xpose.msra.mxu0 %v4160_v39  ;;  %8515 = vmatpush3.bf16.msra.mxu1 %v4402_v62 }
 0xcef   : > { %8499 = vmatmul.mubr.msk.bf16.vlgmr.msra.gmra.mxu0 %vm1469_vm5, %v4120_v26 }
 0xcf0   : > { %8502 = vmatprep.mubr.msk.bf16.mxu0 %vm1469_vm5, %v4122_v36 }
 0xcf7   : > { %8503 = vmatmul.mubr.msk.bf16.gmra.mxu0 %vm1469_vm5, %v4124_v8 }
 0xcf8   : > { %8506 = vmatprep.mubr.msk.bf16.mxu0 %vm1469_vm5, %v4126_v43 }
 0xcff   : > { %8507 = vmatmul.mubr.msk.bf16.gmra.mxu0 %vm1469_vm5, %v4128_v40 }
 0xd61   : > { %v11505_v5 = vpop.f32.mrf.mxu0 }
 0xd62   : > { %13894 = vst [vmem:[#allocation20_spill] sm:$0xff] %v11505_v5 }
 0xd63   : > { %v11507_v42 = vpop.f32.mrf.mxu0 }
 0xd64   : > { %13895 = vst [vmem:[#allocation21_spill] sm:$0xff] %v11507_v42 }
 0xd65   : > { %v11509_v10 = vpop.f32.mrf.mxu0 }
 0xd66   : > { %13896 = vst [vmem:[#allocation22_spill] sm:$0xff] %v11509_v10 }
 0xd67   : > { %v11511_v60 = vpop.f32.mrf.mxu0 }
 0xd68   : > { %13897 = vst [vmem:[#allocation16_spill] sm:$0xff] %v11511_v60 }
 0xd96   : > { %v11513_v2 = vpop.f32.mrf.mxu0 }
 0xd97   : > { %13898 = vst [vmem:[#allocation15_spill] sm:$0xff] %v11513_v2 }
 0xd98   : > { %v11515_v47 = vpop.f32.mrf.mxu0 }
 0xd99   : > { %13899 = vst [vmem:[#allocation14_spill] sm:$0xff] %v11515_v47 }
 0xd9a   : > { %v11517_v25 = vpop.f32.mrf.mxu0 }
 0xd9b   : > { %13900 = vst [vmem:[#allocation17_spill] sm:$0xff] %v11517_v25 }
 0xd9c   : > { %v11519_v36 = vpop.f32.mrf.mxu0 }
 0xd9d   : > { %13901 = vst [vmem:[#allocation25_spill] sm:$0xff] %v11519_v36 }
 0xd9e   : > { %v11521_v4 = vpop.f32.mrf.mxu0 }
 0xd9f   : > { %13902 = vst [vmem:[#allocation26_spill] sm:$0xff] %v11521_v4 }
 0xda0   : > { %v11523_v1 = vpop.f32.mrf.mxu0 }
 0xda1   : > { %13903 = vst [vmem:[#allocation27_spill] sm:$0xff] %v11523_v1 }
 0xda2   : > { %v8485_v41 = vpop.f32.mrf.mxu0 }
 0xda4   : > { %v11525_v26 = vpop.f32.mrf.mxu0 }
 0xda5   : > { %13904 = vst [vmem:[#allocation28_spill] sm:$0xff] %v11525_v26 }
 0xdaf   : > { %v8500_v43 = vpop.f32.mrf.mxu0 }
 0xdb0   : > { %v4259_v63 = vmul.f32 0.35355338, %v8500_v43 }
 0xdb1   : > { %v4211_v33 = vpop.f32.mrf.mxu0 }
 0xdb2   : > { %v4257_v3 = vmul.f32 0.35355338, %v4211_v33  ;;  %v4274_v0 = vsel %vm1597_vm8, %v4259_v63, -inf }
 0xdb3   : > { %4275 = vmax.xlane.f32.xlu0 %v4274_v0  ;;  %v8501_v22 = vpop.f32.mrf.mxu0 }
 0xdb4   : > { %v4260_v20 = vmul.f32 0.35355338, %v8501_v22  ;;  %v4268_v38 = vsel %vm1597_vm8, %v4257_v3, -inf }
 0xdb5   : > { %v4214_v8 = vpop.f32.mrf.mxu0 }
 0xdb6   : > { %v4258_v17 = vmul.f32 0.35355338, %v4214_v8  ;;  %v4277_v62 = vsel %vm1597_vm8, %v4260_v20, -inf }
 0xdb7   : > { %4269 = vmax.xlane.f32.xlu0 %v4268_v38  ;;  %v8504_v56 = vpop.f32.mrf.mxu0 }
 0xdb8   : > { %v4263_v40 = vmul.f32 0.35355338, %v8504_v56  ;;  %v4271_v14 = vsel %vm1597_vm8, %v4258_v17, -inf }
 0xdb9   : > { %4272 = vmax.xlane.f32.xlu1 %v4271_v14  ;;  %v4227_v45 = vpop.f32.mrf.mxu0 }
 0xdba   : > { %v4261_v41 = vmul.f32 0.35355338, %v4227_v45  ;;  %v4286_v43 = vsel %vm1597_vm8, %v4263_v40, -inf }
 0xdbb   : > { %4278 = vmax.xlane.f32.xlu0 %v4277_v62  ;;  %v8505_v39 = vpop.f32.mrf.mxu0 }
 0xdbc   : > { %v4280_v8 = vsel %vm1597_vm8, %v4261_v41, -inf  ;;  %v11545_v62 = vmul.f32 0.35355338, %v8505_v39 }
 0xdbd   : > { %4287 = vmax.xlane.f32.xlu1 %v4286_v43  ;;  %v4230_v33 = vpop.f32.mrf.mxu0 }
 0xdbe   : > { %v11547_v43 = vmul.f32 0.35355338, %v4230_v33 }
 0xdbf   : > { %v8508_v0 = vpop.f32.mrf.mxu0 }
 0xdc0   : > { %v11532_v22 = vmul.f32 0.35355338, %v8508_v0  ;;  %v4289_v0 = vsel %vm1597_vm8, %v11545_v62, -inf }
 0xdc1   : > { %4281 = vmax.xlane.f32.xlu1 %v4280_v8  ;;  %v4243_v38 = vpop.f32.mrf.mxu0 }
 0xdc2   : > { %v11535_v4 = vmul.f32 0.35355338, %v4243_v38  ;;  %v4298_v14 = vsel %vm1628_vm9, %v11532_v22, -inf }
 0xdc3   : > { %v8509_v56 = vpop.f32.mrf.mxu0 }
 0xdc4   : > { %v4292_v45 = vsel %vm1597_vm8, %v11535_v4, -inf  ;;  %v4283_v56 = vsel %vm1597_vm8, %v11547_v43, -inf }
 0xdc5   : > { %4299 = vmax.xlane.f32.xlu1 %v4298_v14  ;;  %v4246_v8 = vpop.f32.mrf.mxu0 }
 0xdc6   : > { %v11551_v38 = vmul.f32 0.35355338, %v4246_v8 }
 0xdc8   : > { %v4295_v14 = vsel %vm1597_vm8, %v11551_v38, -inf }
 0xdc9   : > { %4293 = vmax.xlane.f32.xlu1 %v4292_v45  ;;  %v4398_v45 = vpop.permute.xlu1 %4397 }
 0xdd1   : > { %4399 = vrot.lane.b32.xlu0 %v13888_v27, %s9664_s29 }
 0xdda   : > { %4590 = vrot.lane.b32.xlu1 %v11047_v49, %s9666_s30 }
 0xdf0   : > { %4290 = vmax.xlane.f32.xlu0 %v4289_v0 }
 0xdf4   : > { %4284 = vmax.xlane.f32.xlu0 %v4283_v56 }
 0xdf8   : > { %4296 = vmax.xlane.f32.xlu0 %v4295_v14 }
 0xe0e   : > { %4395 = vrot.lane.b32.xlu0 %v13890_v31, %s9664_s29 }
 0xe3c   : > { %v4276_v39 = vpop.xlane.xlu0 %4275 }
 0xe3d   : > { %v4303_v33 = vsub.f32 %v4259_v63, %v4276_v39 }
 0xe3f   : > { %v4316_v26 = vmul.f32 1.442695, %v4303_v33 }
 0xe40   : > { %v4270_v1 = vpop.xlane.xlu0 %4269 }
 0xe41   : > { %9228 = vpow2.f32 %v4316_v26  ;;  %v4301_v0 = vsub.f32 %v4257_v3, %v4270_v1 }
 0xe42   : > { %v4273_v8 = vpop.xlane.xlu1 %4272 }
 0xe43   : > { %v4312_v25 = vmul.f32 1.442695, %v4301_v0  ;;  %v4302_v2 = vsub.f32 %v4258_v17, %v4273_v8 }
 0xe44   : > { %v4279_v36 = vpop.xlane.xlu0 %4278 }
 0xe45   : > { %9230 = vpow2.f32 %v4312_v25  ;;  %v4304_v56 = vsub.f32 %v4260_v20, %v4279_v36  ;;  %v4314_v47 = vmul.f32 1.442695, %v4302_v2 }
 0xe46   : > { %v4288_v10 = vpop.xlane.xlu1 %4287 }
 0xe47   : > { %v4318_v5 = vmul.f32 1.442695, %v4304_v56  ;;  %v4307_v14 = vsub.f32 %v4263_v40, %v4288_v10 }
 0xe48   : > { %v4400_v60 = vpop.permute.xlu0 %4399 }
 0xe49   : > { %9232 = vpow2.f32 %v4318_v5  ;;  %v4324_v42 = vmul.f32 1.442695, %v4307_v14  ;;  %8516 = vmatprep.subr.bf16.mxu1 %v4400_v60 }
 0xe4a   : > { %9234 = vpow2.f32 %v4314_v47  ;;  %v4282_v63 = vpop.xlane.xlu1 %4281  ;;  %8517 = vmatpush3.bf16.msra.mxu1 %v4400_v60 }
 0xe4b   : > { %9236 = vpow2.f32 %v4324_v42  ;;  %v4305_v26 = vsub.f32 %v4261_v41, %v4282_v63  ;;  %8518 = vmatprep.subr.bf16.mxu1 %v4398_v45 }
 0xe4d   : > { %v4320_v1 = vmul.f32 1.442695, %v4305_v26 }
 0xe4e   : > { %v11559_v3 = vpop.eup %9228  ;;  %8519 = vmatpush3.bf16.msra.mxu1 %v4398_v45  ;;  %v4300_v41 = vpop.xlane.xlu1 %4299 }
 0xe4f   : > { %9238 = vpow2.f32 %v4320_v1  ;;  %v4340_v2 = vsel %vm1597_vm8, %v11559_v3, 0.0  ;;  %v4311_v39 = vsub.f32 %v11532_v22, %v4300_v41 }
 0xe50   : > { %4341 = vadd.xlane.f32.xlu0 %v4340_v2 }
 0xe51   : > { %v4332_v8 = vmul.f32 1.442695, %v4311_v39 }
 0xe52   : > { %v11563_v10 = vpop.eup %9230  ;;  %v4294_v33 = vpop.xlane.xlu1 %4293 }
 0xe53   : > { %v4334_v5 = vsel %vm1597_vm8, %v11563_v10, 0.0  ;;  %v4309_v56 = vsub.f32 %v11535_v4, %v4294_v33 }
 0xe54   : > { %4335 = vadd.xlane.f32.xlu0 %v4334_v5 }
 0xe55   : > { %v4328_v1 = vmul.f32 1.442695, %v4309_v56 }
 0xe56   : > { %v11567_v47 = vpop.eup %9232 }
 0xe57   : > { %v11569_v42 = vpop.eup %9234  ;;  %v4343_v60 = vsel %vm1597_vm8, %v11567_v47, 0.0 }
 0xe58   : > { %v11573_v25 = vpop.eup %9236  ;;  %4344 = vadd.xlane.f32.xlu1 %v4343_v60  ;;  %v4337_v20 = vsel %vm1597_vm8, %v11569_v42, 0.0 }
 0xe59   : > { %v4352_v36 = vsel %vm1597_vm8, %v11573_v25, 0.0 }
 0xe5a   : > { %4353 = vadd.xlane.f32.xlu0 %v4352_v36 }
 0xe5c   : > { %v11579_v17 = vpop.eup %9238  ;;  %4338 = vadd.xlane.f32.xlu1 %v4337_v20 }
 0xe5d   : > { %v4346_v40 = vsel %vm1597_vm8, %v11579_v17, 0.0 }
 0xe5e   : > { %4347 = vadd.xlane.f32.xlu0 %v4346_v40 }
 0xe6d   : > { %4588 = vrot.lane.b32.xlu1 %v13887_v16, %s9666_s30 }
 0xe79   : > { %v4291_v45 = vpop.xlane.xlu0 %4290 }
 0xe7a   : > { %v4308_v0 = vsub.f32 %v11545_v62, %v4291_v45  ;;  %v4591_v62 = vpop.permute.xlu1 %4590 }
 0xe7c   : > { %v4326_v14 = vmul.f32 1.442695, %v4308_v0 }
 0xe7d   : > { %v4285_v63 = vpop.xlane.xlu0 %4284 }
 0xe7e   : > { %9240 = vpow2.f32 %v4326_v14  ;;  %v4306_v26 = vsub.f32 %v11547_v43, %v4285_v63 }
 0xe7f   : > { %9242 = vpow2.f32 %v4332_v8 }
 0xe80   : > { %v4322_v2 = vmul.f32 1.442695, %v4306_v26 }
 0xe81   : > { %v4297_v5 = vpop.xlane.xlu0 %4296 }
 0xe82   : > { %9244 = vpow2.f32 %v4322_v2  ;;  %v4310_v60 = vsub.f32 %v11551_v38, %v4297_v5 }
 0xe83   : > { %9246 = vpow2.f32 %v4328_v1 }
 0xe84   : > { %v4330_v22 = vmul.f32 1.442695, %v4310_v60 }
 0xe85   : > { %v4396_v36 = vpop.permute.xlu0 %4395 }
 0xe86   : > { %8520 = vmatprep.subr.bf16.mxu1 %v4396_v36  ;;  %9248 = vpow2.f32 %v4330_v22 }
 0xe87   : > { %8521 = vmatpush3.bf16.msra.mxu1 %v4396_v36 }
 0xe88   : > { %8832 = vmatprep.subr.msk.bf16.mxu1 %vm1469_vm5, %v4591_v62 }
 0xe8b   : > { %v11591_v4 = vpop.eup %9240 }
 0xe8c   : > { %v4355_v43 = vsel %vm1597_vm8, %v11591_v4, 0.0  ;;  %v11595_v20 = vpop.eup %9242 }
 0xe8d   : > { %4356 = vadd.xlane.f32.xlu0 %v4355_v43  ;;  %v4364_v38 = vsel %vm1628_vm9, %v11595_v20, 0.0 }
 0xe8f   : > { %v11597_v40 = vpop.eup %9244 }
 0xe90   : > { %v4349_v41 = vsel %vm1597_vm8, %v11597_v40, 0.0  ;;  %v11603_v39 = vpop.eup %9246 }
 0xe91   : > { %4365 = vadd.xlane.f32.xlu0 %v4364_v38  ;;  %4350 = vadd.xlane.f32.xlu1 %v4349_v41  ;;  %v4358_v33 = vsel %vm1597_vm8, %v11603_v39, 0.0 }
 0xe93   : > { %v11607_v45 = vpop.eup %9248 }
 0xe94   : > { %v4361_v0 = vsel %vm1597_vm8, %v11607_v45, 0.0 }
 0xe95   : > { %4359 = vadd.xlane.f32.xlu0 %v4358_v33  ;;  %v4626_v33 = vsel %vm1469_vm5, %v4591_v62, 0 }
 0xe99   : > { %4362 = vadd.xlane.f32.xlu0 %v4361_v0 }
 0xea2   : > { %4584 = vrot.lane.b32.xlu1 %v13888_v27, %s9666_s30 }
 0xea6   : > { %4582 = vrot.lane.b32.xlu1 %v13889_v19, %s9666_s30 }
 0xeaa   : > { %4580 = vrot.lane.b32.xlu1 %v13890_v31, %s9666_s30 }
 0xeae   : > { %4568 = vrot.lane.b32.xlu1 %v13890_v31, %s9667_s2 }
 0xeaf   : > { %4586 = vrot.lane.b32.xlu0 %v13891_v6, %s9666_s30 }
 0xeb2   : > { %4570 = vrot.lane.b32.xlu1 %v13889_v19, %s9667_s2 }
 0xeb3   : > { %4572 = vrot.lane.b32.xlu0 %v13888_v27, %s9667_s2 }
 0xeb6   : > { %4574 = vrot.lane.b32.xlu1 %v13891_v6, %s9667_s2 }
 0xeb7   : > { %4576 = vrot.lane.b32.xlu0 %v13887_v16, %s9667_s2 }
 0xeba   : > { %4578 = vrot.lane.b32.xlu1 %v11047_v49, %s9667_s2 }
 0xed9   : > { %v4342_v8 = vpop.xlane.xlu0 %4341 }
 0xedd   : > { %v4336_v56 = vpop.xlane.xlu0 %4335 }
 0xee1   : > { %v4345_v14 = vpop.xlane.xlu1 %4344 }
 0xee2   : > { %9250 = vrcp.f32 %v4345_v14 }
 0xee3   : > { %9252 = vrcp.f32 %v4336_v56 }
 0xee4   : > { %9254 = vrcp.f32 %v4342_v8 }
 0xee5   : > { %v4339_v63 = vpop.xlane.xlu1 %4338 }
 0xee6   : > { %9256 = vrcp.f32 %v4339_v63 }
 0xee9   : > { %v4589_v0 = vpop.permute.xlu1 %4588 }
 0xeef   : > { %v9251_v26 = vpop.eup %9250 }
 0xef0   : > { %v9253_v1 = vpop.eup %9252  ;;  %v4381_v60 = vmul.f32 %v9251_v26, %v11567_v47  ;;  %v4623_v47 = vsel %vm1469_vm5, %v4589_v0, 0 }
 0xef1   : > { %v9255_v2 = vpop.eup %9254  ;;  %v4378_v22 = vmul.f32 %v9253_v1, %v11563_v10  ;;  %v4354_v10 = vpop.xlane.xlu0 %4353 }
 0xef2   : > { %v4380_v43 = vmul.f32 %v9255_v2, %v11559_v3 }
 0xef3   : > { %v9257_v5 = vpop.eup %9256 }
 0xef4   : > { %v4379_v36 = vmul.f32 %v9257_v5, %v11569_v42  ;;  %v4390_v41 = vpack.c.bf16 %v4381_v60, %v4380_v43 }
 0xef5   : > { %v4348_v8 = vpop.xlane.xlu0 %4347 }
 0xef6   : > { %v4389_v38 = vpack.c.bf16 %v4379_v36, %v4378_v22 }
 0xef8   : > { %8522 = vmatprep.mubr.msk.bf16.mxu1 %vm1597_vm8, %v4389_v38 }
 0xef9   : > { %8523 = vmatmul.mubr.msk.bf16.vlgmr.msra.gmra.mxu1 %vm1597_vm8, %v4390_v41 }
 0xefa   : > { %8535 = vmatpush3.bf16.xpose.msra.mxu1 %v4626_v33 }
 0xefb   : > { %8833 = vmatprep.subr.msk.bf16.mxu1 %vm1469_vm5, %v4589_v0 }
 0xf02   : > { %8537 = vmatpush3.bf16.xpose.msra.mxu1 %v4623_v47 }
 0xf16   : > { %v4357_v42 = vpop.xlane.xlu0 %4356 }
 0xf17   : > { %9258 = vrcp.f32 %v4357_v42 }
 0xf18   : > { %9260 = vrcp.f32 %v4348_v8 }
 0xf19   : > { %9262 = vrcp.f32 %v4354_v10 }
 0xf1a   : > { %v4351_v3 = vpop.xlane.xlu1 %4350  ;;  %v4366_v56 = vpop.xlane.xlu0 %4365 }
 0xf1b   : > { %9264 = vrcp.f32 %v4351_v3 }
 0xf1c   : > { %9266 = vrcp.f32 %v4366_v56 }
 0xf1e   : > { %v4360_v14 = vpop.xlane.xlu0 %4359  ;;  %v4585_v63 = vpop.permute.xlu1 %4584 }
 0xf1f   : > { %9268 = vrcp.f32 %v4360_v14  ;;  %v4617_v42 = vsel %vm1469_vm5, %v4585_v63, 0 }
 0xf22   : > { %v4363_v62 = vpop.xlane.xlu0 %4362  ;;  %v4583_v41 = vpop.permute.xlu1 %4582 }
 0xf23   : > { %9270 = vrcp.f32 %v4363_v62 }
 0xf24   : > { %v9259_v26 = vpop.eup %9258 }
 0xf25   : > { %v9261_v1 = vpop.eup %9260  ;;  %v4385_v36 = vmul.f32 %v9259_v26, %v11591_v4 }
 0xf26   : > { %v4587_v2 = vpop.permute.xlu0 %4586  ;;  %v9263_v5 = vpop.eup %9262  ;;  %v4382_v43 = vmul.f32 %v9261_v1, %v11579_v17 }
 0xf27   : > { %8834 = vmatprep.subr.msk.bf16.mxu1 %vm1469_vm5, %v4587_v2  ;;  %v4620_v60 = vsel %vm1469_vm5, %v4587_v2, 0  ;;  %v4384_v33 = vmul.f32 %v9263_v5, %v11573_v25  ;;  %v4581_v3 = vpop.permute.xlu1 %4580 }
 0xf28   : > { %v9265_v22 = vpop.eup %9264  ;;  %8539 = vmatpush3.bf16.xpose.msra.mxu1 %v4620_v60 }
 0xf29   : > { %8835 = vmatprep.subr.msk.bf16.mxu1 %vm1469_vm5, %v4585_v63  ;;  %v4383_v38 = vmul.f32 %v9265_v22, %v11597_v40  ;;  %v4392_v47 = vpack.c.bf16 %v4385_v36, %v4384_v33  ;;  %v9267_v10 = vpop.eup %9266  ;;  %v4614_v63 = vsel %vm1469_vm5, %v4583_v41, 0 }
 0xf2a   : > { %v4388_v17 = vmul.f32 %v9267_v10, %v11595_v20  ;;  %v4611_v20 = vsel %vm1469_vm5, %v4581_v3, 0  ;;  %v4573_v26 = vpop.permute.xlu0 %4572 }
 0xf2b   : > { %v4391_v0 = vpack.c.bf16 %v4383_v38, %v4382_v43  ;;  %v4569_v62 = vpop.permute.xlu1 %4568 }
 0xf2c   : > { %v9269_v8 = vpop.eup %9268  ;;  %v4394_v14 = vpack.c.bf16 %v4388_v17, %v4388_v17 }
 0xf2d   : > { %8526 = vmatprep.mubr.msk.bf16.mxu1 %vm1597_vm8, %v4391_v0  ;;  %v4386_v40 = vmul.f32 %v9269_v8, %v11603_v39  ;;  %v13905_v39 = vmov 0.0  }
 0xf2e   : > { %8527 = vmatmul.mubr.msk.bf16.gmra.mxu1 %vm1597_vm8, %v4392_v47  ;;  %v4577_v2 = vpop.permute.xlu0 %4576 }
 0xf30   : > { %v9271_v4 = vpop.eup %9270  ;;  %8541 = vmatpush3.bf16.xpose.msra.mxu1 %v4617_v42 }
 0xf31   : > { %8836 = vmatprep.subr.msk.bf16.mxu1 %vm1469_vm5, %v4583_v41  ;;  %v4387_v25 = vmul.f32 %v9271_v4, %v11607_v45  ;;  %v4571_v45 = vpop.permute.xlu1 %4570 }
 0xf33   : > { %v4393_v56 = vpack.c.bf16 %v4387_v25, %v4386_v40 }
 0xf35   : > { %8530 = vmatprep.mubr.msk.bf16.mxu1 %vm1597_vm8, %v4393_v56  ;;  %v4575_v1 = vpop.permute.xlu1 %4574 }
 0xf36   : > { %8531 = vmatmul.mubr.msk.bf16.gmra.mxu1 %vm1597_vm8, %v4394_v14 }
 0xf37   : > { %8546 = vmatprep.mubr.msk.bf16.mxu1 %vm1469_vm5, %v4569_v62 }
 0xf38   : > { %8543 = vmatpush3.bf16.xpose.msra.mxu1 %v4614_v63 }
 0xf39   : > { %8837 = vmatprep.subr.msk.bf16.mxu1 %vm1469_vm5, %v4581_v3  ;;  %v4579_v5 = vpop.permute.xlu1 %4578 }
 0xf40   : > { %8545 = vmatpush3.bf16.xpose.msra.mxu1 %v4611_v20 }
 0xf41   : > { %8630 = vmatprep.subr.bf16.mxu1 %v13905_v39 }
 0xf47   : > { %8547 = vmatmul.mubr.msk.bf16.vlgmr.msra.gmra.mxu1 %vm1469_vm5, %v4571_v45 }
 0xf48   : > { %8550 = vmatprep.mubr.msk.bf16.mxu1 %vm1469_vm5, %v4573_v26 }
 0xf4f   : > { %8551 = vmatmul.mubr.msk.bf16.gmra.mxu1 %vm1469_vm5, %v4575_v1 }
 0xf50   : > { %8554 = vmatprep.mubr.msk.bf16.mxu1 %vm1469_vm5, %v4577_v2 }
 0xf57   : > { %8555 = vmatmul.mubr.msk.bf16.gmra.mxu1 %vm1469_vm5, %v4579_v5 }
 0xf58   : > { %8634 = vmatprep.mubr.msk.bf16.mxu1 %vm9656_vm3, %v13905_v39 }
 0xfb9   : > { %v11668_v60 = vpop.f32.mrf.mxu1 }
 0xfbb   : > { %v11670_v22 = vpop.f32.mrf.mxu1 }
 0xfbd   : > { %v11672_v36 = vpop.f32.mrf.mxu1 }
 0xfbe   : > { %13906 = vst [vmem:[#allocation29_spill] sm:$0xff] %v11672_v36 }
 0xfbf   : > { %v11674_v43 = vpop.f32.mrf.mxu1 }
 0xfee   : > { %v11676_v38 = vpop.f32.mrf.mxu1 }
 0xfef   : > { %13907 = vst [vmem:[#allocation30_spill] sm:$0xff] %v11676_v38 }
 0xff0   : > { %v11678_v41 = vpop.f32.mrf.mxu1 }
 0xff1   : > { %13908 = vst [vmem:[#allocation31_spill] sm:$0xff] %v11678_v41 }
 0xff2   : > { %v11680_v33 = vpop.f32.mrf.mxu1 }
 0xff3   : > { %13909 = vst [vmem:[#allocation32_spill] sm:$0xff] %v11680_v33 }
 0xff4   : > { %v11682_v0 = vpop.f32.mrf.mxu1 }
 0xff5   : > { %13910 = vst [vmem:[#allocation33_spill] sm:$0xff] %v11682_v0 }
 0xff6   : > { %v11684_v47 = vpop.f32.mrf.mxu1 }
 0xff7   : > { %13911 = vst [vmem:[#allocation34_spill] sm:$0xff] %v11684_v47 }
 0xff8   : > { %v11686_v10 = vpop.f32.mrf.mxu1 }
 0xff9   : > { %13912 = vst [vmem:[#allocation35_spill] sm:$0xff] %v11686_v10 }
 0xffa   : > { %v8533_v8 = vpop.f32.mrf.mxu1 }
 0xffc   : > { %v11688_v42 = vpop.f32.mrf.mxu1 }
 0xffd   : > { %13913 = vst [vmem:[#allocation36_spill] sm:$0xff] %v11688_v42 }
0x1007   : > { %v8548_v4 = vpop.f32.mrf.mxu1 }
0x1008   : > { %v4710_v3 = vmul.f32 0.35355338, %v8548_v4 }
0x1009   : > { %v4662_v17 = vpop.f32.mrf.mxu1 }
0x100a   : > { %v4708_v40 = vmul.f32 0.35355338, %v4662_v17  ;;  %v4725_v25 = vsel %vm1597_vm8, %v4710_v3, -inf }
0x100b   : > { %4726 = vmax.xlane.f32.xlu0 %v4725_v25  ;;  %v8549_v56 = vpop.f32.mrf.mxu1 }
0x100c   : > { %v4711_v62 = vmul.f32 0.35355338, %v8549_v56  ;;  %v4719_v20 = vsel %vm1597_vm8, %v4708_v40, -inf }
0x100d   : > { %v4665_v14 = vpop.f32.mrf.mxu1 }
0x100e   : > { %v4709_v63 = vmul.f32 0.35355338, %v4665_v14  ;;  %v4728_v5 = vsel %vm1597_vm8, %v4711_v62, -inf }
0x100f   : > { %4720 = vmax.xlane.f32.xlu0 %v4719_v20  ;;  %v8552_v45 = vpop.f32.mrf.mxu1 }
0x1010   : > { %v4714_v26 = vmul.f32 0.35355338, %v8552_v45  ;;  %v4722_v1 = vsel %vm1597_vm8, %v4709_v63, -inf }
0x1011   : > { %4723 = vmax.xlane.f32.xlu1 %v4722_v1  ;;  %v4678_v2 = vpop.f32.mrf.mxu1 }
0x1012   : > { %v4712_v4 = vmul.f32 0.35355338, %v4678_v2  ;;  %v4737_v25 = vsel %vm1597_vm8, %v4714_v26, -inf }
0x1013   : > { %4729 = vmax.xlane.f32.xlu0 %v4728_v5  ;;  %v8553_v8 = vpop.f32.mrf.mxu1 }
0x1014   : > { %v4715_v17 = vmul.f32 0.35355338, %v8553_v8  ;;  %v4731_v1 = vsel %vm1597_vm8, %v4712_v4, -inf }
0x1015   : > { %4738 = vmax.xlane.f32.xlu1 %v4737_v25  ;;  %v4681_v56 = vpop.f32.mrf.mxu1 }
0x1016   : > { %v4713_v14 = vmul.f32 0.35355338, %v4681_v56  ;;  %v4740_v47 = vsel %vm1597_vm8, %v4715_v17, -inf }
0x1017   : > { %4741 = vmax.xlane.f32.xlu0 %v4740_v47  ;;  %v8556_v20 = vpop.f32.mrf.mxu1 }
0x1018   : > { %v11696_v45 = vmul.f32 0.35355338, %v8556_v20  ;;  %v4734_v5 = vsel %vm1597_vm8, %v4713_v14, -inf }
0x1019   : > { %4732 = vmax.xlane.f32.xlu1 %v4731_v1  ;;  %v4694_v42 = vpop.f32.mrf.mxu1 }
0x101a   : > { %v11700_v8 = vmul.f32 0.35355338, %v4694_v42  ;;  %v4749_v25 = vsel %vm1628_vm9, %v11696_v45, -inf }
0x101b   : > { %4735 = vmax.xlane.f32.xlu0 %v4734_v5  ;;  %v8557_v2 = vpop.f32.mrf.mxu1 }
0x101c   : > { %v4743_v47 = vsel %vm1597_vm8, %v11700_v8, -inf }
0x101d   : > { %4750 = vmax.xlane.f32.xlu1 %v4749_v25  ;;  %v4697_v56 = vpop.f32.mrf.mxu1 }
0x101e   : > { %v11704_v10 = vmul.f32 0.35355338, %v4697_v56 }
0x1020   : > { %v4746_v20 = vsel %vm1597_vm8, %v11704_v10, -inf }
0x1021   : > { %4744 = vmax.xlane.f32.xlu1 %v4743_v47  ;;  %4747 = vmax.xlane.f32.xlu0 %v4746_v20 }
0x1032   : > { %4854 = vrot.lane.b32.xlu1 %v13887_v16, %s9668_s21 }
0x1036   : > { %4852 = vrot.lane.b32.xlu1 %v13891_v6, %s9668_s21 }
0x1037   : > { %4856 = vrot.lane.b32.xlu0 %v11047_v49, %s9668_s21 }
0x103a   : > { %4850 = vrot.lane.b32.xlu1 %v13888_v27, %s9668_s21 }
0x1094   : > { %v4727_v42 = vpop.xlane.xlu0 %4726 }
0x1095   : > { %v4754_v1 = vsub.f32 %v4710_v3, %v4727_v42 }
0x1097   : > { %v4767_v5 = vmul.f32 1.442695, %v4754_v1 }
0x1098   : > { %v4721_v2 = vpop.xlane.xlu0 %4720 }
0x1099   : > { %9272 = vpow2.f32 %v4767_v5  ;;  %v4752_v25 = vsub.f32 %v4708_v40, %v4721_v2 }
0x109a   : > { %v4724_v56 = vpop.xlane.xlu1 %4723 }
0x109b   : > { %v4763_v47 = vmul.f32 1.442695, %v4752_v25  ;;  %v4753_v20 = vsub.f32 %v4709_v63, %v4724_v56 }
0x109c   : > { %v4730_v33 = vpop.xlane.xlu0 %4729 }
0x109d   : > { %9274 = vpow2.f32 %v4763_v47  ;;  %v4755_v16 = vsub.f32 %v4711_v62, %v4730_v33  ;;  %v4765_v38 = vmul.f32 1.442695, %v4753_v20 }
0x109e   : > { %v4739_v6 = vpop.xlane.xlu1 %4738 }
0x109f   : > { %v4769_v0 = vmul.f32 1.442695, %v4755_v16  ;;  %v4758_v41 = vsub.f32 %v4714_v26, %v4739_v6 }
0x10a0   : > { %v4742_v49 = vpop.xlane.xlu0 %4741 }
0x10a1   : > { %9276 = vpow2.f32 %v4769_v0  ;;  %v4775_v36 = vmul.f32 1.442695, %v4758_v41  ;;  %v4759_v27 = vsub.f32 %v4715_v17, %v4742_v49 }
0x10a2   : > { %9278 = vpow2.f32 %v4765_v38  ;;  %v4733_v3 = vpop.xlane.xlu1 %4732 }
0x10a3   : > { %9280 = vpow2.f32 %v4775_v36  ;;  %v4756_v42 = vsub.f32 %v4712_v4, %v4733_v3  ;;  %v4777_v1 = vmul.f32 1.442695, %v4759_v27 }
0x10a4   : > { %v4736_v40 = vpop.xlane.xlu0 %4735 }
0x10a5   : > { %v4771_v5 = vmul.f32 1.442695, %v4756_v42  ;;  %v4757_v2 = vsub.f32 %v4713_v14, %v4736_v40 }
0x10a6   : > { %v11718_v63 = vpop.eup %9272  ;;  %v4751_v25 = vpop.xlane.xlu1 %4750 }
0x10a7   : > { %9282 = vpow2.f32 %v4771_v5  ;;  %v4773_v33 = vmul.f32 1.442695, %v4757_v2  ;;  %v4791_v62 = vsel %vm1597_vm8, %v11718_v63, 0.0 }
0x10a8   : > { %9284 = vpow2.f32 %v4777_v1  ;;  %4792 = vadd.xlane.f32.xlu0 %v4791_v62 }
0x10a9   : > { %9286 = vpow2.f32 %v4773_v33 }
0x10aa   : > { %v11722_v41 = vpop.eup %9274  ;;  %v4745_v38 = vpop.xlane.xlu1 %4744 }
0x10ab   : > { %v4748_v36 = vpop.xlane.xlu0 %4747  ;;  %v4785_v0 = vsel %vm1597_vm8, %v11722_v41, 0.0  ;;  %v4760_v2 = vsub.f32 %v11700_v8, %v4745_v38 }
0x10ac   : > { %4786 = vadd.xlane.f32.xlu0 %v4785_v0  ;;  %v4761_v33 = vsub.f32 %v11704_v10, %v4748_v36  ;;  %v4762_v0 = vsub.f32 %v11696_v45, %v4751_v25  ;;  %v13921_v25 = vld [vmem:[#allocation22_spill] sm:$0xff]  ;;  %v8911_v36 = vld [vmem:[%s9830_s17] sm:$0xff]  }
0x10ad   : > { %v4779_v62 = vmul.f32 1.442695, %v4760_v2 }
0x10ae   : > { %v11726_v26 = vpop.eup %9276  ;;  %v4855_v4 = vpop.permute.xlu1 %4854 }
0x10af   : > { %v4857_v17 = vpop.permute.xlu0 %4856  ;;  %v11728_v14 = vpop.eup %9278  ;;  %v4794_v47 = vsel %vm1597_vm8, %v11726_v26, 0.0  ;;  %9288 = vpow2.f32 %v4779_v62 }
0x10b0   : > { %v4882_v56 = vand.u32 %v4857_v17, %v10447_v44  ;;  %v11733_v20 = vpop.eup %9280  ;;  %4795 = vadd.xlane.f32.xlu1 %v4794_v47  ;;  %v4788_v6 = vsel %vm1597_vm8, %v11728_v14, 0.0  ;;  %v4783_v17 = vmul.f32 1.442695, %v4762_v0 }
0x10b1   : > { %v4803_v16 = vsel %vm1597_vm8, %v11733_v20, 0.0 }
0x10b2   : > { %8558 = vmatprep.subr.bf16.mxu0 %v4882_v56  ;;  %4804 = vadd.xlane.f32.xlu0 %v4803_v16  ;;  %v4853_v27 = vpop.permute.xlu1 %4852 }
0x10b3   : > { %8559 = vmatpush3.bf16.msra.mxu0 %v4882_v56 }
0x10b4   : > { %8560 = vmatprep.subr.bf16.mxu0 %v4855_v4  ;;  %v11739_v49 = vpop.eup %9282  ;;  %4789 = vadd.xlane.f32.xlu1 %v4788_v6 }
0x10b5   : > { %v11741_v44 = vpop.eup %9284  ;;  %v4797_v3 = vsel %vm1597_vm8, %v11739_v49, 0.0 }
0x10b6   : > { %v11745_v42 = vpop.eup %9286  ;;  %4798 = vadd.xlane.f32.xlu0 %v4797_v3  ;;  %v4806_v40 = vsel %vm1597_vm8, %v11741_v44, 0.0  ;;  %v4851_v5 = vpop.permute.xlu1 %4850 }
0x10b7   : > { %8561 = vmatpush3.bf16.msra.mxu0 %v4855_v4  ;;  %v4800_v1 = vsel %vm1597_vm8, %v11745_v42, 0.0  ;;  %v4781_v4 = vmul.f32 1.442695, %v4761_v33 }
0x10b8   : > { %8562 = vmatprep.subr.bf16.mxu0 %v4853_v27  ;;  %4801 = vadd.xlane.f32.xlu1 %v4800_v1 }
0x10b9   : > { %9290 = vpow2.f32 %v4781_v4 }
0x10ba   : > { %4807 = vadd.xlane.f32.xlu0 %v4806_v40  ;;  %9292 = vpow2.f32 %v4783_v17 }
0x10bb   : > { %8563 = vmatpush3.bf16.msra.mxu0 %v4853_v27 }
0x10bc   : > { %8564 = vmatprep.subr.bf16.mxu0 %v4851_v5  ;;  %v11758_v56 = vpop.eup %9288 }
0x10bf   : > { %8565 = vmatpush3.bf16.msra.mxu0 %v4851_v5 }
0x10c6   : > { %v11760_v47 = vpop.eup %9290 }
0x10c7   : > { %v11766_v10 = vpop.eup %9292 }
0x10c8   : > { %v4815_v45 = vsel %vm1628_vm9, %v11766_v10, 0.0 }
0x10c9   : > { %4846 = vrot.lane.b32.xlu1 %v13890_v31, %s9668_s21  ;;  %v4809_v31 = vsel %vm1597_vm8, %v11758_v56, 0.0 }
0x10d0   : > { %4848 = vrot.lane.b32.xlu0 %v13889_v19, %s9668_s21  ;;  %v4812_v19 = vsel %vm1597_vm8, %v11760_v47, 0.0 }
0x10ed   : > { %4810 = vadd.xlane.f32.xlu1 %v4809_v31 }
0x10ef   : > { %4813 = vadd.xlane.f32.xlu0 %v4812_v19 }
0x10f3   : > { %4816 = vadd.xlane.f32.xlu0 %v4815_v45 }
0x10fe   : > { %2266 = vrot.lane.b32.xlu1 %v10988_v48, %s9669_s18 }
0x1102   : > { %2719 = vrot.lane.b32.xlu1 %v11010_v37, %s9670_s20 }
0x1106   : > { %2721 = vrot.lane.b32.xlu1 %v11014_v21, %s9670_s20 }
0x1109   : > { %2268 = vrot.lane.b32.xlu0 %v10992_v13, %s9669_s18 }
0x110a   : > { %3174 = vrot.lane.b32.xlu1 %v11178_v11, %s9671_s19 }
0x110d   : > { %3172 = vrot.lane.b32.xlu0 %v11174_v12, %s9671_s19 }
0x110e   : > { %2272 = vrot.lane.b32.xlu1 %v10990_v51, %s9669_s18 }
0x1111   : > { %2270 = vrot.lane.b32.xlu0 %v10986_v55, %s9669_s18 }
0x1112   : > { %2725 = vrot.lane.b32.xlu1 %v11012_v15, %s9670_s20  ;;  %v13918_v15 = vld [vmem:[#allocation16_spill] sm:$0xff] }
0x1115   : > { %2723 = vrot.lane.b32.xlu0 %v11008_v58, %s9670_s20  ;;  %v13917_v58 = vld [vmem:[#allocation19_spill] sm:$0xff] }
0x1116   : > { %3178 = vrot.lane.b32.xlu1 %v11176_v54, %s9671_s19 }
0x1119   : > { %3176 = vrot.lane.b32.xlu0 %v11172_v61, %s9671_s19 }
0x111a   : > { %2276 = vrot.lane.b32.xlu1 %v11000_v29, %s9669_s18 }
0x111d   : > { %2274 = vrot.lane.b32.xlu0 %v10996_v28, %s9669_s18  ;;  %v13914_v28 = vld [vmem:[#allocation24_spill] sm:$0xff] }
0x111e   : > { %2729 = vrot.lane.b32.xlu1 %v11022_v57, %s9670_s20 }
0x1121   : > { %2727 = vrot.lane.b32.xlu0 %v11018_v9, %s9670_s20 }
0x1122   : > { %3182 = vrot.lane.b32.xlu1 %v11186_v52, %s9671_s19  ;;  %v8910_v52 = vld [vmem:[%s9830_s17 + $0x8] sm:$0xff]  }
0x1125   : > { %3180 = vrot.lane.b32.xlu0 %v11182_v50, %s9671_s19  ;;  %v13920_v50 = vld [vmem:[#allocation18_spill] sm:$0xff] }
0x1126   : > { %2280 = vrot.lane.b32.xlu1 %v10998_v35, %s9669_s18  ;;  %v13915_v35 = vld [vmem:[#allocation21_spill] sm:$0xff] }
0x1129   : > { %2278 = vrot.lane.b32.xlu0 %v10994_v34, %s9669_s18 }
0x112a   : > { %2733 = vrot.lane.b32.xlu1 %v11020_v59, %s9670_s20 }
0x112d   : > { %2731 = vrot.lane.b32.xlu0 %v11016_v7, %s9670_s20 }
0x112e   : > { %3186 = vrot.lane.b32.xlu1 %v11184_v23, %s9671_s19 }
0x1131   : > { %3184 = vrot.lane.b32.xlu0 %v11180_v32, %s9671_s19  ;;  %v4793_v55 = vpop.xlane.xlu0 %4792 }
0x1132   : > { %2284 = vrot.lane.b32.xlu1 %v11006_v30, %s9669_s18  ;;  %v13916_v30 = vld [vmem:[#allocation23_spill] sm:$0xff] }
0x1135   : > { %2282 = vrot.lane.b32.xlu0 %v11004_v46, %s9669_s18  ;;  %v4787_v48 = vpop.xlane.xlu0 %4786 }
0x1136   : > { %2737 = vrot.lane.b32.xlu1 %v11028_v53, %s9670_s20 }
0x1139   : > { %v4796_v51 = vpop.xlane.xlu1 %4795  ;;  %2735 = vrot.lane.b32.xlu0 %v11026_v24, %s9670_s20  ;;  %v13919_v24 = vld [vmem:[#allocation20_spill] sm:$0xff] }
0x113a   : > { %3190 = vrot.lane.b32.xlu1 %v11192_v18, %s9671_s19  ;;  %9294 = vrcp.f32 %v4796_v51 }
0x113b   : > { %v4805_v13 = vpop.xlane.xlu0 %4804  ;;  %9296 = vrcp.f32 %v4787_v48 }
0x113c   : > { %9298 = vrcp.f32 %v4793_v55 }
0x113d   : > { %v4790_v34 = vpop.xlane.xlu1 %4789  ;;  %3188 = vrot.lane.b32.xlu0 %v13914_v28, %s9671_s19 }
0x113e   : > { %9300 = vrcp.f32 %v4790_v34  ;;  %4073 = vrot.lane.b32.xlu1 %v13915_v35, %s9669_s18 }
0x113f   : > { %v4799_v29 = vpop.xlane.xlu0 %4798 }
0x1140   : > { %9302 = vrcp.f32 %v4799_v29 }
0x1141   : > { %v4802_v46 = vpop.xlane.xlu1 %4801  ;;  %2286 = vrot.lane.b32.xlu0 %v13916_v30, %s9669_s18 }
0x1142   : > { %9304 = vrcp.f32 %v4802_v46  ;;  %2739 = vrot.lane.b32.xlu1 %v13917_v58, %s9670_s20 }
0x1143   : > { %v4808_v37 = vpop.xlane.xlu0 %4807 }
0x1144   : > { %9306 = vrcp.f32 %v4808_v37 }
0x1145   : > { %9308 = vrcp.f32 %v4805_v13  ;;  %4075 = vrot.lane.b32.xlu0 %v13918_v15, %s9669_s18  ;;  %v4847_v59 = vpop.permute.xlu1 %4846 }
0x1146   : > { %4526 = vrot.lane.b32.xlu1 %v11674_v43, %s9670_s20 }
0x1147   : > { %v4849_v21 = vpop.permute.xlu0 %4848  ;;  %v9295_v7 = vpop.eup %9294 }
0x1148   : > { %8566 = vmatprep.subr.bf16.mxu0 %v4849_v21  ;;  %v9297_v9 = vpop.eup %9296  ;;  %v4832_v61 = vmul.f32 %v9295_v7, %v11726_v26 }
0x1149   : > { %4524 = vrot.lane.b32.xlu0 %v11670_v22, %s9670_s20  ;;  %8567 = vmatpush3.bf16.msra.mxu0 %v4849_v21  ;;  %v9299_v57 = vpop.eup %9298  ;;  %v4829_v12 = vmul.f32 %v9297_v9, %v11722_v41  ;;  %v13922_v41 = vld [vmem:[#allocation14_spill] sm:$0xff] }
0x114a   : > { %4077 = vrot.lane.b32.xlu1 %v13919_v24, %s9669_s18  ;;  %8568 = vmatprep.subr.bf16.mxu0 %v4847_v59  ;;  %v4831_v32 = vmul.f32 %v9299_v57, %v11718_v63 }
0x114b   : > { %v9301_v53 = vpop.eup %9300 }
0x114c   : > { %v4830_v54 = vmul.f32 %v9301_v53, %v11728_v14  ;;  %v4841_v22 = vpack.c.bf16 %v4832_v61, %v4831_v32  ;;  %v13923_v14 = vld [vmem:[#allocation29_spill] sm:$0xff] }
0x114d   : > { %v9303_v11 = vpop.eup %9302  ;;  %3192 = vrot.lane.b32.xlu0 %v13920_v50, %s9671_s19  ;;  %8569 = vmatpush3.bf16.msra.mxu0 %v4847_v59 }
0x114e   : > { %4528 = vrot.lane.b32.xlu1 %v11668_v60, %s9670_s20  ;;  %v4840_v23 = vpack.c.bf16 %v4830_v54, %v4829_v12  ;;  %8582 = vmatprep.subr.bf16.mxu0 %v13905_v39  ;;  %v4833_v43 = vmul.f32 %v9303_v11, %v11739_v49  ;;  %v13924_v49 = vld [vmem:[#allocation25_spill] sm:$0xff] }
0x114f   : > { %v9305_v18 = vpop.eup %9304 }
0x1150   : > { %8570 = vmatprep.mubr.msk.bf16.mxu0 %vm1597_vm8, %v4840_v23  ;;  %v4834_v8 = vmul.f32 %v9305_v18, %v11745_v42 }
0x1151   : > { %v9307_v63 = vpop.eup %9306  ;;  %4079 = vrot.lane.b32.xlu0 %v13921_v25, %s9669_s18  ;;  %8571 = vmatmul.mubr.msk.bf16.vlgmr.msra.gmra.mxu0 %vm1597_vm8, %v4841_v22 }
0x1152   : > { %v9309_v60 = vpop.eup %9308  ;;  %4081 = vrot.lane.b32.xlu1 %v13922_v41, %s9669_s18  ;;  %v4842_v38 = vpack.c.bf16 %v4834_v8, %v4833_v43  ;;  %8583 = vmatpush3.bf16.msra.mxu0 %v8910_v52  ;;  %v4836_v26 = vmul.f32 %v9307_v63, %v11741_v44 }
0x1153   : > { %8584 = vmatprep.subr.bf16.mxu0 %v13905_v39  ;;  %v4835_v16 = vmul.f32 %v9309_v60, %v11733_v20 }
0x1154   : > { %8574 = vmatprep.mubr.msk.bf16.mxu0 %vm1597_vm8, %v4842_v38 }
0x1155   : > { %4530 = vrot.lane.b32.xlu0 %v13923_v14, %s9670_s20  ;;  %v4843_v6 = vpack.c.bf16 %v4836_v26, %v4835_v16 }
0x1156   : > { %8585 = vmatpush3.bf16.msra.mxu0 %v8911_v36 }
0x1157   : > { %8678 = vmatprep.subr.bf16.mxu0 %v13905_v39 }
0x1159   : > { %4083 = vrot.lane.b32.xlu0 %v13924_v49, %s9669_s18  ;;  %8575 = vmatmul.mubr.msk.bf16.gmra.mxu0 %vm1597_vm8, %v4843_v6 }
0x1176   : > { %v4811_v27 = vpop.xlane.xlu1 %4810 }
0x1177   : > { %9310 = vrcp.f32 %v4811_v27 }
0x1178   : > { %v4814_v44 = vpop.xlane.xlu0 %4813 }
0x1179   : > { %9312 = vrcp.f32 %v4814_v44 }
0x117a   : > { %v2267_v3 = vpop.permute.xlu1 %2266 }
0x117b   : > { %2300 = vst.msk [vmem:[#allocation3] sm:$0xff] %vm2299_vm11, %v2267_v3 }
0x117c   : > { %v4817_v42 = vpop.xlane.xlu0 %4816 }
0x117d   : > { %9314 = vrcp.f32 %v4817_v42 }
0x117e   : > { %v2720_v20 = vpop.permute.xlu1 %2719 }
0x117f   : > { %2753 = vst.msk [vmem:[#allocation3] sm:$0xff] %vm2752_vm12, %v2720_v20 }
0x1180   : > { %v2269_v1 = vpop.permute.xlu0 %2268 }
0x1181   : > { %2301 = vst.msk [vmem:[#allocation3 + $0x8] sm:$0xff] %vm2299_vm11, %v2269_v1 }
0x1182   : > { %v2722_v40 = vpop.permute.xlu1 %2721 }
0x1183   : > { %2754 = vst.msk [vmem:[#allocation3 + $0x8] sm:$0xff] %vm2752_vm12, %v2722_v40 }
0x1184   : > { %v9311_v5 = vpop.eup %9310  ;;  %v3173_v2 = vpop.permute.xlu0 %3172 }
0x1185   : > { %3206 = vst.msk [vmem:[#allocation3] sm:$0xff] %vm3205_vm13, %v3173_v2  ;;  %v4837_v0 = vmul.f32 %v9311_v5, %v11758_v56 }
0x1186   : > { %v9313_v33 = vpop.eup %9312  ;;  %v3175_v62 = vpop.permute.xlu1 %3174 }
0x1187   : > { %3207 = vst.msk [vmem:[#allocation3 + $0x8] sm:$0xff] %vm3205_vm13, %v3175_v62  ;;  %v4838_v4 = vmul.f32 %v9313_v33, %v11760_v47  ;;  %v13925_v62 = vld [vmem:[#allocation31_spill] sm:$0xff] }
0x1188   : > { %v2271_v17 = vpop.permute.xlu0 %2270 }
0x1189   : > { %2302 = vst.msk [vmem:[#allocation3 + $0x10] sm:$0xff] %vm2299_vm11, %v2271_v17  ;;  %v4844_v31 = vpack.c.bf16 %v4838_v4, %v4837_v0  ;;  %v13926_v4 = vld [vmem:[#allocation15_spill] sm:$0xff]  ;;  %v13927_v17 = vld [vmem:[#allocation33_spill] sm:$0xff] }
0x118a   : > { %v9315_v19 = vpop.eup %9314  ;;  %v2273_v45 = vpop.permute.xlu1 %2272 }
0x118b   : > { %2303 = vst.msk [vmem:[#allocation3 + $0x18] sm:$0xff] %vm2299_vm11, %v2273_v45  ;;  %8578 = vmatprep.mubr.msk.bf16.mxu0 %vm1597_vm8, %v4844_v31  ;;  %v4839_v55 = vmul.f32 %v9315_v19, %v11766_v10  ;;  %v13928_v19 = vld [vmem:[#allocation30_spill] sm:$0xff]  ;;  %v13929_v45 = vld [vmem:[#allocation17_spill] sm:$0xff] }
0x118c   : > { %v2724_v48 = vpop.permute.xlu0 %2723  ;;  %v5019_v28 = vld [vmem:[#allocation3] sm:$0xff] }
0x118d   : > { %2755 = vst.msk [vmem:[#allocation3 + $0x10] sm:$0xff] %vm2752_vm12, %v2724_v48  ;;  %v4845_v51 = vpack.c.bf16 %v4839_v55, %v4839_v55  ;;  %v13930_v48 = vld [vmem:[#allocation32_spill] sm:$0xff] }
0x118e   : > { %v2726_v13 = vpop.permute.xlu1 %2725  ;;  %v5020_v34 = vld [vmem:[#allocation3 + $0x8] sm:$0xff] }
0x118f   : > { %2756 = vst.msk [vmem:[#allocation3 + $0x18] sm:$0xff] %vm2752_vm12, %v2726_v13  ;;  %8579 = vmatmul.mubr.msk.bf16.gmra.mxu0 %vm1597_vm8, %v4845_v51  ;;  %v5040_v35 = vpack.c.bf16 %v5020_v34, %v5019_v28  ;;  %v13931_v13 = vld [vmem:[#allocation27_spill] sm:$0xff]  ;;  %v13934_v34 = vld [vmem:[#allocation36_spill] sm:$0xff] }
0x1190   : > { %v3177_v56 = vpop.permute.xlu0 %3176  ;;  %8586 = vmatprep.mubr.msk.bf16.mxu0 %vm9656_vm3, %v13905_v39 }
0x1191   : > { %3208 = vst.msk [vmem:[#allocation3 + $0x10] sm:$0xff] %vm3205_vm13, %v3177_v56  ;;  %v13932_v56 = vld [vmem:[#allocation35_spill] sm:$0xff] }
0x1192   : > { %v3179_v47 = vpop.permute.xlu1 %3178 }
0x1193   : > { %3209 = vst.msk [vmem:[#allocation3 + $0x18] sm:$0xff] %vm3205_vm13, %v3179_v47  ;;  %v13933_v47 = vld [vmem:[#allocation28_spill] sm:$0xff] }
0x1194   : > { %v2275_v10 = vpop.permute.xlu0 %2274 }
0x1195   : > { %2304 = vst.msk [vmem:[#allocation3 + $0x20] sm:$0xff] %vm2299_vm11, %v2275_v10 }
0x1196   : > { %v2277_v29 = vpop.permute.xlu1 %2276 }
0x1197   : > { %2305 = vst.msk [vmem:[#allocation3 + $0x28] sm:$0xff] %vm2299_vm11, %v2277_v29  ;;  %8587 = vmatmul.mubr.msk.bf16.vlgmr.msra.gmra.mxu0 %vm928_vm2, %v5040_v35 }
0x1198   : > { %v2728_v46 = vpop.permute.xlu0 %2727  ;;  %8590 = vmatprep.mubr.msk.bf16.mxu0 %vm9656_vm3, %v13905_v39  ;;  %v5021_v15 = vld [vmem:[#allocation3 + $0x10] sm:$0xff] }
0x1199   : > { %2757 = vst.msk [vmem:[#allocation3 + $0x20] sm:$0xff] %vm2752_vm12, %v2728_v46  ;;  %v13935_v46 = vld [vmem:[#allocation26_spill] sm:$0xff] }
0x119a   : > { %v2730_v30 = vpop.permute.xlu1 %2729  ;;  %v5022_v58 = vld [vmem:[#allocation3 + $0x18] sm:$0xff] }
0x119b   : > { %2758 = vst.msk [vmem:[#allocation3 + $0x28] sm:$0xff] %vm2752_vm12, %v2730_v30  ;;  %v5041_v21 = vpack.c.bf16 %v5022_v58, %v5021_v15 }
0x119c   : > { %v3181_v37 = vpop.permute.xlu0 %3180 }
0x119d   : > { %3210 = vst.msk [vmem:[#allocation3 + $0x20] sm:$0xff] %vm3205_vm13, %v3181_v37  ;;  %v13936_v37 = vld [vmem:[#allocation34_spill] sm:$0xff] }
0x119e   : > { %v3183_v7 = vpop.permute.xlu1 %3182 }
0x119f   : > { %3211 = vst.msk [vmem:[#allocation3 + $0x28] sm:$0xff] %vm3205_vm13, %v3183_v7  ;;  %8591 = vmatmul.mubr.msk.bf16.gmra.mxu0 %vm928_vm2, %v5041_v21 }
0x11a0   : > { %v2279_v9 = vpop.permute.xlu0 %2278  ;;  %8594 = vmatprep.mubr.msk.bf16.mxu0 %vm9656_vm3, %v13905_v39 }
0x11a1   : > { %2306 = vst.msk [vmem:[#allocation3 + $0x30] sm:$0xff] %vm2299_vm11, %v2279_v9 }
0x11a2   : > { %v2281_v59 = vpop.permute.xlu1 %2280 }
0x11a3   : > { %2307 = vst.msk [vmem:[#allocation3 + $0x38] sm:$0xff] %vm2299_vm11, %v2281_v59 }
0x11a4   : > { %v2732_v57 = vpop.permute.xlu0 %2731  ;;  %v5023_v53 = vld [vmem:[#allocation3 + $0x20] sm:$0xff] }
0x11a5   : > { %2759 = vst.msk [vmem:[#allocation3 + $0x30] sm:$0xff] %vm2752_vm12, %v2732_v57 }
0x11a6   : > { %v2734_v24 = vpop.permute.xlu1 %2733  ;;  %v5024_v61 = vld [vmem:[#allocation3 + $0x28] sm:$0xff] }
0x11a7   : > { %2760 = vst.msk [vmem:[#allocation3 + $0x38] sm:$0xff] %vm2752_vm12, %v2734_v24  ;;  %v5042_v12 = vpack.c.bf16 %v5024_v61, %v5023_v53 }
0x11a8   : > { %v3185_v54 = vpop.permute.xlu0 %3184 }
0x11a9   : > { %3212 = vst.msk [vmem:[#allocation3 + $0x30] sm:$0xff] %vm3205_vm13, %v3185_v54  ;;  %8595 = vmatmul.mubr.msk.bf16.gmra.mxu0 %vm928_vm2, %v5042_v12  ;;  %v9400_v54 = vld [vmem:[#allocation2] sm:$0xff] }
0x11aa   : > { %v3187_v11 = vpop.permute.xlu1 %3186  ;;  %8598 = vmatprep.mubr.msk.bf16.mxu0 %vm9656_vm3, %v13905_v39 }
0x11ab   : > { %3213 = vst.msk [vmem:[#allocation3 + $0x38] sm:$0xff] %vm3205_vm13, %v3187_v11 }
0x11ac   : > { %v2283_v32 = vpop.permute.xlu0 %2282 }
0x11ad   : > { %2308 = vst.msk [vmem:[#allocation3 + $0x40] sm:$0xff] %vm2299_vm11, %v2283_v32  ;;  %v11978_v32 = vld [vmem:[%s13937_s28] ss:$0 sm:$0xff] }
0x11ae   : > { %v2285_v50 = vpop.permute.xlu1 %2284 }
0x11af   : > { %2309 = vst.msk [vmem:[#allocation3 + $0x48] sm:$0xff] %vm2299_vm11, %v2285_v50 }
0x11b0   : > { %v2736_v23 = vpop.permute.xlu0 %2735  ;;  %v5025_v18 = vld [vmem:[#allocation3 + $0x30] sm:$0xff] }
0x11b1   : > { %2761 = vst.msk [vmem:[#allocation3 + $0x40] sm:$0xff] %vm2752_vm12, %v2736_v23  ;;  %v9401_v23 = vld [vmem:[#allocation2 + $0x10] sm:$0xff] }
0x11b2   : > { %v2738_v52 = vpop.permute.xlu1 %2737  ;;  %v5026_v22 = vld [vmem:[#allocation3 + $0x38] sm:$0xff] }
0x11b3   : > { %2762 = vst.msk [vmem:[#allocation3 + $0x48] sm:$0xff] %vm2752_vm12, %v2738_v52  ;;  %v5043_v43 = vpack.c.bf16 %v5026_v22, %v5025_v18  ;;  %v9402_v18 = vld [vmem:[#allocation2 + $0x8] sm:$0xff] }
0x11b4   : > { %v3189_v8 = vpop.permute.xlu0 %3188 }
0x11b5   : > { %3214 = vst.msk [vmem:[#allocation3 + $0x40] sm:$0xff] %vm3205_vm13, %v3189_v8  ;;  %8599 = vmatmul.mubr.msk.bf16.gmra.mxu0 %vm928_vm2, %v5043_v43 }
0x11b6   : > { %v3191_v63 = vpop.permute.xlu1 %3190  ;;  %8602 = vmatprep.mubr.msk.bf16.mxu0 %vm9656_vm3, %v13905_v39 }
0x11b7   : > { %3215 = vst.msk [vmem:[#allocation3 + $0x48] sm:$0xff] %vm3205_vm13, %v3191_v63 }
0x11b8   : > { %v2287_v25 = vpop.permute.xlu0 %2286 }
0x11b9   : > { %2311 = vst.msk [vmem:[#allocation3 + $0x50] sm:$0x1] %vm2310_vm14, %v2287_v25  ;;  %v9403_v25 = vld [vmem:[#allocation2 + $0x18] sm:$0xff] }
0x11ba   : > { %v4074_v60 = vpop.permute.xlu1 %4073 }
0x11bb   : > { %4106 = vst.msk [vmem:[#allocation3 + $0x51] sm:$0xff] %vm2299_vm11, %v4074_v60 }
0x11bc   : > { %v4076_v41 = vpop.permute.xlu0 %4075  ;;  %v5027_v36 = vld [vmem:[#allocation3 + $0x40] sm:$0xff] }
0x11bd   : > { %4107 = vst.msk [vmem:[#allocation3 + $0x59] sm:$0xff] %vm2299_vm11, %v4076_v41 }
0x11be   : > { %v2740_v38 = vpop.permute.xlu1 %2739  ;;  %v5028_v26 = vld [vmem:[#allocation3 + $0x48] sm:$0xff] }
0x11bf   : > { %2764 = vst.msk [vmem:[#allocation3 + $0x50] sm:$0x1] %vm2763_vm15, %v2740_v38  ;;  %v5044_v14 = vpack.c.bf16 %v5028_v26, %v5027_v36  ;;  %v9404_v36 = vld [vmem:[#allocation2 + $0x20] sm:$0xff] }
0x11c0   : > { %v4525_v16 = vpop.permute.xlu0 %4524 }
0x11c1   : > { %4557 = vst.msk [vmem:[#allocation3 + $0x51] sm:$0xff] %vm2752_vm12, %v4525_v16  ;;  %8603 = vmatmul.mubr.msk.bf16.gmra.mxu0 %vm928_vm2, %v5044_v14 }
0x11c2   : > { %v4527_v6 = vpop.permute.xlu1 %4526  ;;  %8606 = vmatprep.mubr.msk.bf16.mxu0 %vm9656_vm3, %v13905_v39 }
0x11c3   : > { %4558 = vst.msk [vmem:[#allocation3 + $0x59] sm:$0xff] %vm2752_vm12, %v4527_v6 }
0x11c4   : > { %v3193_v49 = vpop.permute.xlu0 %3192 }
0x11c5   : > { %3217 = vst.msk [vmem:[#allocation3 + $0x50] sm:$0x1] %vm3216_vm0, %v3193_v49  ;;  %v9405_v49 = vld [vmem:[#allocation2 + $0x28] sm:$0xff] }
0x11c6   : > { %v4078_v27 = vpop.permute.xlu1 %4077 }
0x11c7   : > { %4108 = vst.msk [vmem:[#allocation3 + $0x61] sm:$0xff] %vm2299_vm11, %v4078_v27 }
0x11c8   : > { %v4080_v44 = vpop.permute.xlu0 %4079 }
0x11c9   : > { %4109 = vst.msk [vmem:[#allocation3 + $0x69] sm:$0xff] %vm2299_vm11, %v4080_v44 }
0x11ca   : > { %v4529_v3 = vpop.permute.xlu1 %4528 }
0x11cb   : > { %4559 = vst.msk [vmem:[#allocation3 + $0x61] sm:$0xff] %vm2752_vm12, %v4529_v3 }
0x11cc   : > { %v4531_v42 = vpop.permute.xlu0 %4530 }
0x11cd   : > { %4560 = vst.msk [vmem:[#allocation3 + $0x69] sm:$0xff] %vm2752_vm12, %v4531_v42  ;;  %v9406_v42 = vld [vmem:[#allocation2 + $0x30] sm:$0xff] }
0x11ce   : > { %v4082_v20 = vpop.permute.xlu1 %4081 }
0x11cf   : > { %4110 = vst.msk [vmem:[#allocation3 + $0x71] sm:$0xff] %vm2299_vm11, %v4082_v20 }
0x11d0   : > { %v4084_v1 = vpop.permute.xlu0 %4083 }
0x11d1   : > { %4111 = vst.msk [vmem:[#allocation3 + $0x79] sm:$0xff] %vm2299_vm11, %v4084_v1 }
0x1211   : > { %v8572_v40 = vpop.f32.mrf.mxu0 }
0x1212   : > { %4979 = vrot.lane.b32.xlu1 %v8572_v40, %s9671_s19 }
0x1213   : > { %v4918_v5 = vpop.f32.mrf.mxu0 }
0x1215   : > { %v8573_v2 = vpop.f32.mrf.mxu0 }
0x1216   : > { %4975 = vrot.lane.b32.xlu1 %v4918_v5, %s9671_s19  ;;  %4981 = vrot.lane.b32.xlu0 %v8573_v2, %s9671_s19  ;;  %v9407_v5 = vld [vmem:[#allocation2 + $0x38] sm:$0xff] }
0x1217   : > { %v4921_v33 = vpop.f32.mrf.mxu0 }
0x1219   : > { %v8576_v0 = vpop.f32.mrf.mxu0 }
0x121a   : > { %4532 = vrot.lane.b32.xlu1 %v13925_v62, %s9670_s20  ;;  %4977 = vrot.lane.b32.xlu0 %v4921_v33, %s9671_s19 }
0x121b   : > { %v4934_v31 = vpop.f32.mrf.mxu0 }
0x121d   : > { %v8577_v55 = vpop.f32.mrf.mxu0 }
0x121e   : > { %4085 = vrot.lane.b32.xlu1 %v13926_v4, %s9669_s18  ;;  %4534 = vrot.lane.b32.xlu0 %v13927_v17, %s9670_s20  ;;  %v9408_v17 = vld [vmem:[#allocation2 + $0x40] sm:$0xff] }
0x121f   : > { %v4937_v51 = vpop.f32.mrf.mxu0 }
0x1222   : > { %4536 = vrot.lane.b32.xlu1 %v13928_v19, %s9670_s20  ;;  %4087 = vrot.lane.b32.xlu0 %v13929_v45, %s9669_s18 }
0x1226   : > { %4538 = vrot.lane.b32.xlu0 %v13930_v48, %s9670_s20  ;;  %4983 = vrot.lane.b32.xlu1 %v4934_v31, %s9671_s19 }
0x122a   : > { %4987 = vrot.lane.b32.xlu1 %v8576_v0, %s9671_s19  ;;  %4985 = vrot.lane.b32.xlu0 %v4937_v51, %s9671_s19 }
0x122e   : > { %4089 = vrot.lane.b32.xlu1 %v13931_v13, %s9669_s18  ;;  %4989 = vrot.lane.b32.xlu0 %v8577_v55, %s9671_s19 }
0x1232   : > { %4540 = vrot.lane.b32.xlu1 %v13932_v56, %s9670_s20  ;;  %4091 = vrot.lane.b32.xlu0 %v13933_v47, %s9669_s18  ;;  %v9409_v47 = vld [vmem:[#allocation2 + $0x48] sm:$0xff] }
0x1236   : > { %4542 = vrot.lane.b32.xlu0 %v13934_v34, %s9670_s20 }
0x124f   : > { %v8580_v10 = vpop.f32.mrf.mxu0 }
0x1251   : > { %v4950_v28 = vpop.f32.mrf.mxu0 }
0x1252   : > { %4991 = vrot.lane.b32.xlu1 %v4950_v28, %s9671_s19 }
0x1253   : > { %v8581_v35 = vpop.f32.mrf.mxu0 }
0x1255   : > { %v4953_v29 = vpop.f32.mrf.mxu0 }
0x1256   : > { %4093 = vrot.lane.b32.xlu1 %v13935_v46, %s9669_s18  ;;  %4993 = vrot.lane.b32.xlu0 %v4953_v29, %s9671_s19 }
0x1257   : > { %v5134_v30 = vpop.f32.mrf.mxu0 }
0x1258   : > { %v5220_v11 = vadd.f32 %v9400_v54, %v5134_v30 }
0x1259   : > { %v8588_v58 = vpop.f32.mrf.mxu0 }
0x125a   : > { %4995 = vrot.lane.b32.xlu1 %v8580_v10, %s9671_s19  ;;  %4544 = vrot.lane.b32.xlu0 %v13936_v37, %s9670_s20  ;;  %v11981_v50 = vadd.f32 %v11978_v32, %v5220_v11 }
0x125b   : > { %v5137_v15 = vpop.f32.mrf.mxu0 }
0x125c   : > { %v5221_v22 = vadd.f32 %v9402_v18, %v5137_v15  ;;  %v5271_v41 = vsel %vm928_vm2, %v11981_v50, 0.0 }
0x125d   : > { %v8589_v21 = vpop.f32.mrf.mxu0 }
0x125e   : > { %v11989_v38 = vadd.f32 %v11978_v32, %v5221_v22 }
0x125f   : > { %v5142_v7 = vpop.f32.mrf.mxu0 }
0x1260   : > { %v5222_v52 = vadd.f32 %v9401_v23, %v5142_v7  ;;  %v5274_v1 = vsel %vm928_vm2, %v11989_v38, 0.0 }
0x1261   : > { %v8592_v9 = vpop.f32.mrf.mxu0 }
0x1262   : > { %v11984_v63 = vadd.f32 %v11978_v32, %v5222_v52 }
0x1263   : > { %v5145_v59 = vpop.f32.mrf.mxu0 }
0x1264   : > { %v5223_v60 = vadd.f32 %v9403_v25, %v5145_v59  ;;  %v5277_v44 = vsel %vm928_vm2, %v11984_v63, 0.0 }
0x1265   : > { %v8593_v57 = vpop.f32.mrf.mxu0 }
0x1266   : > { %v11992_v6 = vadd.f32 %v11978_v32, %v5223_v60 }
0x1268   : > { %v5280_v33 = vsel %vm928_vm2, %v11992_v6, 0.0 }
0x1269   : > { %v5150_v24 = vpop.f32.mrf.mxu0 }
0x126a   : > { %v5224_v26 = vadd.f32 %v9404_v36, %v5150_v24 }
0x126b   : > { %v8596_v53 = vpop.f32.mrf.mxu0 }
0x126c   : > { %v11997_v3 = vadd.f32 %v11978_v32, %v5224_v26 }
0x126d   : > { %v5153_v61 = vpop.f32.mrf.mxu0 }
0x126e   : > { %v5225_v27 = vadd.f32 %v9405_v49, %v5153_v61  ;;  %v5283_v4 = vsel %vm928_vm2, %v11997_v3, 0.0 }
0x126f   : > { %v8597_v12 = vpop.f32.mrf.mxu0 }
0x1270   : > { %v12002_v40 = vadd.f32 %v11978_v32, %v5225_v27 }
0x1272   : > { %v5286_v48 = vsel %vm928_vm2, %v12002_v40, 0.0 }
0x1275   : > { %v5158_v43 = vpop.f32.mrf.mxu0 }
0x1276   : > { %v5226_v20 = vadd.f32 %v9406_v42, %v5158_v43 }
0x1277   : > { %v8600_v8 = vpop.f32.mrf.mxu0 }
0x1278   : > { %v12007_v62 = vadd.f32 %v11978_v32, %v5226_v20 }
0x1279   : > { %5272 = vadd.xlane.f32.xlu0 %v5271_v41  ;;  %v5161_v14 = vpop.f32.mrf.mxu0 }
0x127a   : > { %v5227_v2 = vadd.f32 %v9407_v5, %v5161_v14  ;;  %v5289_v56 = vsel %vm928_vm2, %v12007_v62, 0.0 }
0x127b   : > { %v8601_v16 = vpop.f32.mrf.mxu0 }
0x127c   : > { %v12012_v45 = vadd.f32 %v11978_v32, %v5227_v2 }
0x127d   : > { %5278 = vadd.xlane.f32.xlu0 %v5277_v44 }
0x127e   : > { %5275 = vadd.xlane.f32.xlu1 %v5274_v1  ;;  %v5292_v46 = vsel %vm928_vm2, %v12012_v45, 0.0 }
0x1281   : > { %5281 = vadd.xlane.f32.xlu0 %v5280_v33  ;;  %v5166_v0 = vpop.f32.mrf.mxu0 }
0x1282   : > { %v5228_v31 = vadd.f32 %v9408_v17, %v5166_v0  ;;  %5284 = vadd.xlane.f32.xlu1 %v5283_v4 }
0x1283   : > { %v8604_v19 = vpop.f32.mrf.mxu0 }
0x1284   : > { %v4980_v55 = vpop.permute.xlu1 %4979  ;;  %v12017_v51 = vadd.f32 %v11978_v32, %v5228_v31  ;;  %v9410_v31 = vld [vmem:[#allocation2 + $0x50] sm:$0xff] }
0x1285   : > { %5010 = vst.msk [vmem:[#allocation3 + $0x61] sm:$0xff] %vm3205_vm13, %v4980_v55  ;;  %5287 = vadd.xlane.f32.xlu0 %v5286_v48  ;;  %v5169_v13 = vpop.f32.mrf.mxu0 }
0x1286   : > { %v5229_v34 = vadd.f32 %v9409_v47, %v5169_v13  ;;  %5290 = vadd.xlane.f32.xlu1 %v5289_v56  ;;  %v5295_v30 = vsel %vm928_vm2, %v12017_v51, 0.0  ;;  %v9411_v56 = vld [vmem:[#allocation2 + $0x58] sm:$0xff] }
0x1287   : > { %v8605_v10 = vpop.f32.mrf.mxu0 }
0x1288   : > { %v12023_v28 = vadd.f32 %v11978_v32, %v5229_v34  ;;  %v4976_v35 = vpop.permute.xlu1 %4975  ;;  %v4982_v29 = vpop.permute.xlu0 %4981 }
0x1289   : > { %5008 = vst.msk [vmem:[#allocation3 + $0x51] sm:$0xff] %vm3205_vm13, %v4976_v35  ;;  %5011 = vst.msk [vmem:[#allocation3 + $0x69] sm:$0xff] %vm3205_vm13, %v4982_v29  ;;  %5293 = vadd.xlane.f32.xlu0 %v5292_v46  ;;  %v9412_v46 = vld [vmem:[#allocation2 + $0x60] sm:$0xff] }
0x128a   : > { %5296 = vadd.xlane.f32.xlu1 %v5295_v30  ;;  %v5298_v15 = vsel %vm928_vm2, %v12023_v28, 0.0 }
0x128c   : > { %v4533_v58 = vpop.permute.xlu1 %4532  ;;  %v4978_v37 = vpop.permute.xlu0 %4977 }
0x128d   : > { %4561 = vst.msk [vmem:[#allocation3 + $0x71] sm:$0xff] %vm2752_vm12, %v4533_v58  ;;  %5299 = vadd.xlane.f32.xlu0 %v5298_v15 }
0x128e   : > { %5009 = vst.msk [vmem:[#allocation3 + $0x59] sm:$0xff] %vm3205_vm13, %v4978_v37 }
0x1290   : > { %v4086_v21 = vpop.permute.xlu1 %4085  ;;  %v4535_v7 = vpop.permute.xlu0 %4534  ;;  %v5029_v57 = vld [vmem:[#allocation3 + $0x50] sm:$0xff]  ;;  %v5032_v52 = vld [vmem:[#allocation3 + $0x68] sm:$0xff] }
0x1291   : > { %4112 = vst.msk [vmem:[#allocation3 + $0x81] sm:$0xff] %vm2299_vm11, %v4086_v21 }
0x1292   : > { %4562 = vst.msk [vmem:[#allocation3 + $0x79] sm:$0xff] %vm2752_vm12, %v4535_v7  ;;  %v9413_v7 = vld [vmem:[#allocation2 + $0x68] sm:$0xff] }
0x1294   : > { %v4537_v9 = vpop.permute.xlu1 %4536  ;;  %v4088_v59 = vpop.permute.xlu0 %4087 }
0x1295   : > { %v5030_v24 = vld [vmem:[#allocation3 + $0x58] sm:$0xff]  ;;  %4563 = vst.msk [vmem:[#allocation3 + $0x81] sm:$0xff] %vm2752_vm12, %v4537_v9  ;;  %v5031_v54 = vld [vmem:[#allocation3 + $0x60] sm:$0xff] }
0x1296   : > { %4113 = vst.msk [vmem:[#allocation3 + $0x89] sm:$0xff] %vm2299_vm11, %v4088_v59  ;;  %v5045_v53 = vpack.c.bf16 %v5030_v24, %v5029_v57  ;;  %v5046_v18 = vpack.c.bf16 %v5032_v52, %v5031_v54 }
0x1298   : > { %8607 = vmatmul.mubr.msk.bf16.gmra.mxu0 %vm928_vm2, %v5045_v53  ;;  %v4984_v61 = vpop.permute.xlu1 %4983  ;;  %v4539_v12 = vpop.permute.xlu0 %4538 }
0x1299   : > { %8610 = vmatprep.mubr.msk.bf16.mxu0 %vm9656_vm3, %v13905_v39  ;;  %5012 = vst.msk [vmem:[#allocation3 + $0x71] sm:$0xff] %vm3205_vm13, %v4984_v61  ;;  %v9414_v61 = vld [vmem:[#allocation2 + $0x70] sm:$0xff] }
0x129a   : > { %4564 = vst.msk [vmem:[#allocation3 + $0x89] sm:$0xff] %vm2752_vm12, %v4539_v12 }
0x129c   : > { %v4988_v11 = vpop.permute.xlu1 %4987  ;;  %v4986_v23 = vpop.permute.xlu0 %4985 }
0x129d   : > { %5014 = vst.msk [vmem:[#allocation3 + $0x81] sm:$0xff] %vm3205_vm13, %v4988_v11  ;;  %5013 = vst.msk [vmem:[#allocation3 + $0x79] sm:$0xff] %vm3205_vm13, %v4986_v23 }
0x12a0   : > { %8611 = vmatmul.mubr.msk.bf16.gmra.mxu0 %vm928_vm2, %v5046_v18  ;;  %v4090_v22 = vpop.permute.xlu1 %4089  ;;  %v4990_v43 = vpop.permute.xlu0 %4989  ;;  %v5033_v60 = vld [vmem:[#allocation3 + $0x70] sm:$0xff] }
0x12a1   : > { %8614 = vmatprep.mubr.msk.bf16.mxu0 %vm9656_vm3, %v13905_v39  ;;  %4114 = vst.msk [vmem:[#allocation3 + $0x91] sm:$0xff] %vm2299_vm11, %v4090_v22  ;;  %v9415_v18 = vld [vmem:[#allocation2 + $0x78] sm:$0xff] }
0x12a2   : > { %5015 = vst.msk [vmem:[#allocation3 + $0x89] sm:$0xff] %vm3205_vm13, %v4990_v43 }
0x12a4   : > { %v4541_v8 = vpop.permute.xlu1 %4540  ;;  %v4092_v25 = vpop.permute.xlu0 %4091  ;;  %v5034_v41 = vld [vmem:[#allocation3 + $0x78] sm:$0xff]  ;;  %v5035_v16 = vld [vmem:[#allocation3 + $0x80] sm:$0xff] }
0x12a5   : > { %4565 = vst.msk [vmem:[#allocation3 + $0x91] sm:$0xff] %vm2752_vm12, %v4541_v8  ;;  %v5047_v36 = vpack.c.bf16 %v5034_v41, %v5033_v60  ;;  %v9416_v41 = vld [vmem:[#allocation2 + $0x80] sm:$0xff] }
0x12a6   : > { %4115 = vst.msk [vmem:[#allocation3 + $0x99] sm:$0xff] %vm2299_vm11, %v4092_v25 }
0x12a8   : > { %8615 = vmatmul.mubr.msk.bf16.gmra.mxu0 %vm928_vm2, %v5047_v36  ;;  %v4543_v26 = vpop.permute.xlu0 %4542 }
0x12a9   : > { %8618 = vmatprep.mubr.msk.bf16.mxu0 %vm9656_vm3, %v13905_v39  ;;  %4566 = vst.msk [vmem:[#allocation3 + $0x99] sm:$0xff] %vm2752_vm12, %v4543_v26  ;;  %v5036_v14 = vld [vmem:[#allocation3 + $0x88] sm:$0xff] }
0x12aa   : > { %v5048_v49 = vpack.c.bf16 %v5036_v14, %v5035_v16 }
0x12b0   : > { %8619 = vmatmul.mubr.msk.bf16.gmra.mxu0 %vm928_vm2, %v5048_v49 }
0x12b1   : > { %8622 = vmatprep.mubr.msk.bf16.mxu0 %vm9656_vm3, %v13905_v39 }
0x12c4   : > { %v4992_v27 = vpop.permute.xlu1 %4991 }
0x12c5   : > { %5016 = vst.msk [vmem:[#allocation3 + $0x91] sm:$0xff] %vm3205_vm13, %v4992_v27  ;;  %v9417_v27 = vld [vmem:[#allocation2 + $0x88] sm:$0xff] }
0x12c8   : > { %v4094_v44 = vpop.permute.xlu1 %4093  ;;  %v4994_v42 = vpop.permute.xlu0 %4993 }
0x12c9   : > { %4116 = vst.msk [vmem:[#allocation3 + $0xa1] sm:$0x1] %vm2310_vm14, %v4094_v44 }
0x12ca   : > { %5017 = vst.msk [vmem:[#allocation3 + $0x99] sm:$0xff] %vm3205_vm13, %v4994_v42 }
0x12cc   : > { %v4996_v20 = vpop.permute.xlu1 %4995  ;;  %v4545_v1 = vpop.permute.xlu0 %4544  ;;  %v5037_v5 = vld [vmem:[#allocation3 + $0x90] sm:$0xff] }
0x12cd   : > { %4567 = vst.msk [vmem:[#allocation3 + $0xa1] sm:$0x1] %vm2763_vm15, %v4545_v1 }
0x12ce   : > { %5018 = vst.msk [vmem:[#allocation3 + $0xa1] sm:$0x1] %vm3216_vm0, %v4996_v20 }
0x12d1   : > { %v5038_v2 = vld [vmem:[#allocation3 + $0x98] sm:$0xff] }
0x12d2   : > { %v5049_v33 = vpack.c.bf16 %v5038_v2, %v5037_v5 }
0x12d4   : > { %8623 = vmatmul.mubr.msk.bf16.gmra.mxu0 %vm928_vm2, %v5049_v33 }
0x12d5   : > { %8626 = vmatprep.mubr.msk.bf16.mxu0 %vm9656_vm3, %v13905_v39  ;;  %v5039_v0 = vld [vmem:[#allocation3 + $0xa0] sm:$0x3] }
0x12d6   : > { %v5050_v4 = vpack.c.bf16 %v5039_v0, %v5039_v0 }
0x12dc   : > { %8627 = vmatmul.mubr.msk.bf16.gmra.mxu0 %vm928_vm2, %v5050_v4 }
0x12dd   : > { %8694 = vmatprep.mubr.msk.bf16.mxu0 %vm9656_vm3, %v13905_v39 }
0x1302   : > { %v5273_v2 = vpop.xlane.xlu0 %5272 }
0x1303   : > { %v5334_v4 = vmul.f32 0.03125, %v5273_v2 }
0x1306   : > { %v5279_v33 = vpop.xlane.xlu0 %5278 }
0x1307   : > { %v5276_v0 = vpop.xlane.xlu1 %5275 }
0x1358   : > { %v5174_v17 = vpop.f32.mrf.mxu0 }
0x1359   : > { %v5230_v19 = vadd.f32 %v9410_v31, %v5174_v17  ;;  %v5282_v17 = vpop.xlane.xlu0 %5281  ;;  %v12112_v31 = vsub.f32 %v11981_v50, %v5334_v4 }
0x135a   : > { %v8608_v55 = vpop.f32.mrf.mxu0 }
0x135b   : > { %v12072_v48 = vadd.f32 %v11978_v32, %v5230_v19  ;;  %v5335_v55 = vmul.f32 0.03125, %v5276_v0 }
0x135c   : > { %v5177_v13 = vpop.f32.mrf.mxu0 }
0x135d   : > { %v5231_v47 = vadd.f32 %v9411_v56, %v5177_v13  ;;  %v5301_v34 = vsel %vm928_vm2, %v12072_v48, 0.0  ;;  %v5285_v13 = vpop.xlane.xlu1 %5284  ;;  %v9418_v56 = vld [vmem:[#allocation2 + $0x90] sm:$0xff] }
0x135e   : > { %5302 = vadd.xlane.f32.xlu1 %v5301_v34  ;;  %v8609_v10 = vpop.f32.mrf.mxu0  ;;  %v5288_v34 = vpop.xlane.xlu0 %5287 }
0x135f   : > { %v12077_v35 = vadd.f32 %v11978_v32, %v5231_v47 }
0x1360   : > { %v5182_v29 = vpop.f32.mrf.mxu0 }
0x1361   : > { %v5232_v30 = vadd.f32 %v9412_v46, %v5182_v29  ;;  %v5304_v58 = vsel %vm928_vm2, %v12077_v35, 0.0  ;;  %v5336_v46 = vmul.f32 0.03125, %v5279_v33 }
0x1362   : > { %5305 = vadd.xlane.f32.xlu0 %v5304_v58  ;;  %v8612_v37 = vpop.f32.mrf.mxu0 }
0x1363   : > { %v12082_v15 = vadd.f32 %v11978_v32, %v5232_v30  ;;  %v5337_v30 = vmul.f32 0.03125, %v5282_v17  ;;  %v5376_v37 = vmul.f32 %v12112_v31, %v12112_v31 }
0x1364   : > { %v5185_v21 = vpop.f32.mrf.mxu0 }
0x1365   : > { %v5233_v9 = vadd.f32 %v9413_v7, %v5185_v21  ;;  %v5307_v59 = vsel %vm928_vm2, %v12082_v15, 0.0  ;;  %v12120_v21 = vsub.f32 %v11989_v38, %v5335_v55  ;;  %v9419_v7 = vld [vmem:[#allocation2 + $0x98] sm:$0xff] }
0x1366   : > { %5308 = vadd.xlane.f32.xlu1 %v5307_v59  ;;  %v8613_v57 = vpop.f32.mrf.mxu0 }
0x1367   : > { %v12087_v24 = vadd.f32 %v11978_v32, %v5233_v9 }
0x1368   : > { %v5190_v53 = vpop.f32.mrf.mxu0 }
0x1369   : > { %v5234_v12 = vadd.f32 %v9414_v61, %v5190_v53  ;;  %v5310_v54 = vsel %vm928_vm2, %v12087_v24, 0.0  ;;  %v5291_v53 = vpop.xlane.xlu1 %5290 }
0x136a   : > { %5311 = vadd.xlane.f32.xlu0 %v5310_v54  ;;  %v8616_v11 = vpop.f32.mrf.mxu0  ;;  %v12131_v54 = vsub.f32 %v11992_v6, %v5337_v30 }
0x136b   : > { %v12092_v23 = vadd.f32 %v11978_v32, %v5234_v12  ;;  %v12128_v12 = vsub.f32 %v11984_v63, %v5336_v46  ;;  %v5338_v11 = vmul.f32 0.03125, %v5285_v13 }
0x136c   : > { %v5193_v52 = vpop.f32.mrf.mxu0 }
0x136d   : > { %v5235_v22 = vadd.f32 %v9415_v18, %v5193_v52  ;;  %v5313_v43 = vsel %vm928_vm2, %v12092_v23, 0.0  ;;  %v5294_v52 = vpop.xlane.xlu0 %5293  ;;  %v5297_v33 = vpop.xlane.xlu1 %5296 }
0x136e   : > { %5314 = vadd.xlane.f32.xlu1 %v5313_v43  ;;  %v8617_v8 = vpop.f32.mrf.mxu0  ;;  %v5339_v43 = vmul.f32 0.03125, %v5288_v34  ;;  %v5341_v2 = vmul.f32 0.03125, %v5294_v52  ;;  %v5342_v34 = vmul.f32 0.03125, %v5297_v33 }
0x136f   : > { %v12097_v25 = vadd.f32 %v11978_v32, %v5235_v22  ;;  %v5397_v22 = vsel %vm928_vm2, %v5376_v37, 0.0  ;;  %v9420_v8 = vld [vmem:[#allocation2 + $0xa0] sm:$0x3] }
0x1370   : > { %v5198_v60 = vpop.f32.mrf.mxu0  ;;  %v12170_v37 = vsub.f32 %v12017_v51, %v5342_v34 }
0x1371   : > { %v5236_v36 = vadd.f32 %v9416_v41, %v5198_v60  ;;  %v5316_v26 = vsel %vm928_vm2, %v12097_v25, 0.0  ;;  %v5300_v4 = vpop.xlane.xlu0 %5299 }
0x1372   : > { %5317 = vadd.xlane.f32.xlu0 %v5316_v26  ;;  %v8620_v14 = vpop.f32.mrf.mxu0 }
0x1373   : > { %v12102_v16 = vadd.f32 %v11978_v32, %v5236_v36  ;;  %v5377_v36 = vmul.f32 %v12120_v21, %v12120_v21 }
0x1374   : > { %v5201_v49 = vpop.f32.mrf.mxu0 }
0x1375   : > { %v5237_v44 = vadd.f32 %v9417_v27, %v5201_v49  ;;  %v5319_v42 = vsel %vm928_vm2, %v12102_v16, 0.0  ;;  %v12142_v49 = vsub.f32 %v11997_v3, %v5338_v11  ;;  %v5340_v27 = vmul.f32 0.03125, %v5291_v53 }
0x1376   : > { %5320 = vadd.xlane.f32.xlu1 %v5319_v42  ;;  %v8621_v20 = vpop.f32.mrf.mxu0  ;;  %v5378_v42 = vmul.f32 %v12128_v12, %v12128_v12  ;;  %v5400_v0 = vsel %vm928_vm2, %v5377_v36, 0.0  ;;  %v5384_v11 = vmul.f32 %v12170_v37, %v12170_v37 }
0x1377   : > { %v12107_v1 = vadd.f32 %v11978_v32, %v5237_v44  ;;  %v5379_v20 = vmul.f32 %v12131_v54, %v12131_v54 }
0x1378   : > { %v5403_v55 = vsel %vm928_vm2, %v5378_v42, 0.0 }
0x1379   : > { %v5322_v5 = vsel %vm928_vm2, %v12107_v1, 0.0  ;;  %v5406_v13 = vsel %vm928_vm2, %v5379_v20, 0.0 }
0x137a   : > { %5323 = vadd.xlane.f32.xlu0 %v5322_v5  ;;  %v12149_v5 = vsub.f32 %v12002_v40, %v5339_v43  ;;  %v8912_v43 = vld [vmem:[%s9847_s26 + $0x8] sm:$0xff]  }
0x137b   : > { %8631 = vmatpush3.bf16.msra.mxu1 %v8912_v43 }
0x137c   : > { %v5381_v46 = vmul.f32 %v12149_v5, %v12149_v5  ;;  %8632 = vmatprep.subr.bf16.mxu1 %v13905_v39 }
0x1394   : > { %v5206_v19 = vpop.f32.mrf.mxu0 }
0x1395   : > { %v5238_v47 = vadd.f32 %v9418_v56, %v5206_v19  ;;  %v12155_v19 = vsub.f32 %v12007_v62, %v5340_v27  ;;  %v5380_v56 = vmul.f32 %v12142_v49, %v12142_v49 }
0x1396   : > { %v8624_v10 = vpop.f32.mrf.mxu0 }
0x1397   : > { %v12115_v29 = vadd.f32 %v11978_v32, %v5238_v47  ;;  %v12162_v47 = vsub.f32 %v12012_v45, %v5341_v2  ;;  %v5343_v10 = vmul.f32 0.03125, %v5300_v4  ;;  %v5409_v30 = vsel %vm928_vm2, %v5380_v56, 0.0 }
0x1398   : > { %v5209_v58 = vpop.f32.mrf.mxu0 }
0x1399   : > { %v5239_v9 = vadd.f32 %v9419_v7, %v5209_v58  ;;  %v5325_v59 = vsel %vm928_vm2, %v12115_v29, 0.0  ;;  %v5382_v58 = vmul.f32 %v12155_v19, %v12155_v19  ;;  %v12173_v7 = vsub.f32 %v12023_v28, %v5343_v10 }
0x139a   : > { %5326 = vadd.xlane.f32.xlu1 %v5325_v59  ;;  %v8625_v57 = vpop.f32.mrf.mxu0  ;;  %v5383_v59 = vmul.f32 %v12162_v47, %v12162_v47 }
0x139b   : > { %v12125_v61 = vadd.f32 %v11978_v32, %v5239_v9  ;;  %v5412_v9 = vsel %vm928_vm2, %v5381_v46, 0.0  ;;  %v5415_v57 = vsel %vm928_vm2, %v5382_v58, 0.0  ;;  %v5385_v52 = vmul.f32 %v12173_v7, %v12173_v7 }
0x139c   : > { %v5214_v18 = vpop.f32.mrf.mxu0  ;;  %v5418_v53 = vsel %vm928_vm2, %v5383_v59, 0.0 }
0x139d   : > { %v5240_v60 = vadd.f32 %v9420_v8, %v5214_v18  ;;  %v5328_v41 = vsel %vm928_vm2, %v12125_v61, 0.0  ;;  %v5421_v18 = vsel %vm928_vm2, %v5384_v11, 0.0  ;;  %v8913_v8 = vld [vmem:[%s9847_s26] sm:$0xff]  }
0x139e   : > { %5329 = vadd.xlane.f32.xlu0 %v5328_v41  ;;  %v8628_v26 = vpop.f32.mrf.mxu0  ;;  %5398 = vadd.xlane.f32.xlu1 %v5397_v22  ;;  %v5424_v22 = vsel %vm928_vm2, %v5385_v52, 0.0 }
0x139f   : > { %v12139_v14 = vadd.f32 %v11978_v32, %v5240_v60  ;;  %8633 = vmatpush3.bf16.msra.mxu1 %v8913_v8 }
0x13a0   : > { %v5217_v44 = vpop.f32.mrf.mxu0 }
0x13a1   : > { %v5331_v32 = vsel %vm989_vm4, %v12139_v14, 0.0 }
0x13a2   : > { %5401 = vadd.xlane.f32.xlu0 %v5400_v0  ;;  %v8629_v17 = vpop.f32.mrf.mxu0  ;;  %5332 = vadd.xlane.f32.xlu1 %v5331_v32 }
0x13a6   : > { %5404 = vadd.xlane.f32.xlu0 %v5403_v55  ;;  %5407 = vadd.xlane.f32.xlu1 %v5406_v13 }
0x13aa   : > { %5410 = vadd.xlane.f32.xlu0 %v5409_v30  ;;  %5413 = vadd.xlane.f32.xlu1 %v5412_v9 }
0x13ae   : > { %5416 = vadd.xlane.f32.xlu0 %v5415_v57  ;;  %5419 = vadd.xlane.f32.xlu1 %v5418_v53 }
0x13b2   : > { %5422 = vadd.xlane.f32.xlu0 %v5421_v18  ;;  %5425 = vadd.xlane.f32.xlu1 %v5424_v22 }
0x13e7   : > { %v5303_v60 = vpop.xlane.xlu1 %5302 }
0x13e8   : > { %v5344_v41 = vmul.f32 0.03125, %v5303_v60 }
0x13ea   : > { %v12190_v36 = vsub.f32 %v12072_v48, %v5344_v41 }
0x13eb   : > { %v5306_v26 = vpop.xlane.xlu0 %5305 }
0x13ec   : > { %v5345_v27 = vmul.f32 0.03125, %v5306_v26  ;;  %v5386_v44 = vmul.f32 %v12190_v36, %v12190_v36 }
0x13ee   : > { %v12195_v42 = vsub.f32 %v12077_v35, %v5345_v27  ;;  %v5427_v20 = vsel %vm928_vm2, %v5386_v44, 0.0 }
0x13ef   : > { %v5309_v2 = vpop.xlane.xlu1 %5308  ;;  %5428 = vadd.xlane.f32.xlu0 %v5427_v20 }
0x13f0   : > { %v5346_v33 = vmul.f32 0.03125, %v5309_v2  ;;  %v5387_v0 = vmul.f32 %v12195_v42, %v12195_v42 }
0x13f2   : > { %v12201_v32 = vsub.f32 %v12082_v15, %v5346_v33  ;;  %v5430_v4 = vsel %vm928_vm2, %v5387_v0, 0.0 }
0x13f3   : > { %5431 = vadd.xlane.f32.xlu1 %v5430_v4  ;;  %v5312_v17 = vpop.xlane.xlu0 %5311 }
0x13f4   : > { %v5347_v55 = vmul.f32 0.03125, %v5312_v17  ;;  %v5388_v13 = vmul.f32 %v12201_v32, %v12201_v32 }
0x13f6   : > { %v12207_v56 = vsub.f32 %v12087_v24, %v5347_v55  ;;  %v5433_v34 = vsel %vm928_vm2, %v5388_v13, 0.0 }
0x13f7   : > { %v5315_v10 = vpop.xlane.xlu1 %5314  ;;  %5434 = vadd.xlane.f32.xlu0 %v5433_v34 }
0x13f8   : > { %v5348_v46 = vmul.f32 0.03125, %v5315_v10  ;;  %v5389_v30 = vmul.f32 %v12207_v56, %v12207_v56 }
0x13fa   : > { %v12213_v58 = vsub.f32 %v12092_v23, %v5348_v46  ;;  %v5436_v9 = vsel %vm928_vm2, %v5389_v30, 0.0 }
0x13fb   : > { %5437 = vadd.xlane.f32.xlu1 %v5436_v9  ;;  %v5318_v59 = vpop.xlane.xlu0 %5317 }
0x13fc   : > { %v5349_v57 = vmul.f32 0.03125, %v5318_v59  ;;  %v5390_v53 = vmul.f32 %v12213_v58, %v12213_v58 }
0x13fe   : > { %v12219_v11 = vsub.f32 %v12097_v25, %v5349_v57  ;;  %v5439_v52 = vsel %vm928_vm2, %v5390_v53, 0.0 }
0x13ff   : > { %v5321_v18 = vpop.xlane.xlu1 %5320  ;;  %5440 = vadd.xlane.f32.xlu0 %v5439_v52 }
0x1400   : > { %v5350_v22 = vmul.f32 0.03125, %v5321_v18  ;;  %v5391_v43 = vmul.f32 %v12219_v11, %v12219_v11 }
0x1402   : > { %v12225_v8 = vsub.f32 %v12102_v16, %v5350_v22  ;;  %v5442_v60 = vsel %vm928_vm2, %v5391_v43, 0.0 }
0x1403   : > { %5443 = vadd.xlane.f32.xlu1 %v5442_v60  ;;  %v5324_v41 = vpop.xlane.xlu0 %5323 }
0x1404   : > { %v5351_v26 = vmul.f32 0.03125, %v5324_v41  ;;  %v5392_v27 = vmul.f32 %v12225_v8, %v12225_v8 }
0x1406   : > { %v12231_v44 = vsub.f32 %v12107_v1, %v5351_v26  ;;  %v5445_v20 = vsel %vm928_vm2, %v5392_v27, 0.0 }
0x1407   : > { %5446 = vadd.xlane.f32.xlu0 %v5445_v20 }
0x1408   : > { %v5393_v2 = vmul.f32 %v12231_v44, %v12231_v44 }
0x140a   : > { %v5448_v33 = vsel %vm928_vm2, %v5393_v2, 0.0 }
0x140b   : > { %5449 = vadd.xlane.f32.xlu1 %v5448_v33 }
0x1423   : > { %v5327_v0 = vpop.xlane.xlu1 %5326 }
0x1424   : > { %v5352_v4 = vmul.f32 0.03125, %v5327_v0 }
0x1426   : > { %v12238_v17 = vsub.f32 %v12115_v29, %v5352_v4 }
0x1427   : > { %v5399_v55 = vpop.xlane.xlu1 %5398  ;;  %v5330_v13 = vpop.xlane.xlu0 %5329 }
0x1428   : > { %v5460_v34 = vmul.f32 0.03125, %v5399_v55  ;;  %v5353_v10 = vmul.f32 0.03125, %v5330_v13  ;;  %v5394_v46 = vmul.f32 %v12238_v17, %v12238_v17 }
0x142a   : > { %v5481_v30 = vadd.f32 1e-05, %v5460_v34  ;;  %v12243_v9 = vsub.f32 %v12125_v61, %v5353_v10  ;;  %v5451_v59 = vsel %vm928_vm2, %v5394_v46, 0.0 }
0x142b   : > { %v5333_v57 = vpop.xlane.xlu1 %5332  ;;  %5452 = vadd.xlane.f32.xlu0 %v5451_v59  ;;  %v5402_v53 = vpop.xlane.xlu0 %5401 }
0x142c   : > { %9316 = vrsqrt.f32 %v5481_v30  ;;  %v5354_v52 = vmul.f32 0.03125, %v5333_v57  ;;  %v5461_v18 = vmul.f32 0.03125, %v5402_v53  ;;  %v5395_v22 = vmul.f32 %v12243_v9, %v12243_v9 }
0x142e   : > { %v12249_v43 = vsub.f32 %v12139_v14, %v5354_v52  ;;  %v5482_v60 = vadd.f32 1e-05, %v5461_v18  ;;  %v5454_v41 = vsel %vm928_vm2, %v5395_v22, 0.0 }
0x142f   : > { %v5408_v26 = vpop.xlane.xlu1 %5407  ;;  %5455 = vadd.xlane.f32.xlu1 %v5454_v41  ;;  %v5405_v27 = vpop.xlane.xlu0 %5404  ;;  %v12261_v41 = vld [vmem:[%s835_s0] ss:$0 sm:$0xff] }
0x1430   : > { %9318 = vrsqrt.f32 %v5482_v60  ;;  %v5463_v20 = vmul.f32 0.03125, %v5408_v26  ;;  %v5462_v2 = vmul.f32 0.03125, %v5405_v27  ;;  %v5396_v33 = vmul.f32 %v12249_v43, %v12249_v43 }
0x1432   : > { %v5484_v0 = vadd.f32 1e-05, %v5463_v20  ;;  %v5483_v4 = vadd.f32 1e-05, %v5462_v2  ;;  %v5457_v55 = vsel %vm989_vm4, %v5396_v33, 0.0 }
0x1433   : > { %5458 = vadd.xlane.f32.xlu0 %v5457_v55  ;;  %v5414_v13 = vpop.xlane.xlu1 %5413  ;;  %v5411_v34 = vpop.xlane.xlu0 %5410 }
0x1434   : > { %9320 = vrsqrt.f32 %v5484_v0  ;;  %v5465_v10 = vmul.f32 0.03125, %v5414_v13  ;;  %v5464_v46 = vmul.f32 0.03125, %v5411_v34 }
0x1435   : > { %9322 = vrsqrt.f32 %v5483_v4 }
0x1436   : > { %v5486_v30 = vadd.f32 1e-05, %v5465_v10  ;;  %v5485_v59 = vadd.f32 1e-05, %v5464_v46 }
0x1437   : > { %v5420_v57 = vpop.xlane.xlu1 %5419  ;;  %v5417_v53 = vpop.xlane.xlu0 %5416 }
0x1438   : > { %9324 = vrsqrt.f32 %v5486_v30  ;;  %v5467_v52 = vmul.f32 0.03125, %v5420_v57  ;;  %v5466_v18 = vmul.f32 0.03125, %v5417_v53 }
0x1439   : > { %v9317_v22 = vpop.eup %9316  ;;  %9326 = vrsqrt.f32 %v5485_v59 }
0x143a   : > { %v5523_v60 = vmul.f32 %v9317_v22, %v12112_v31  ;;  %v5488_v26 = vadd.f32 1e-05, %v5467_v52  ;;  %v5487_v20 = vadd.f32 1e-05, %v5466_v18  ;;  %v12270_v31 = vld [vmem:[%s838_s22] ss:$0 sm:$0xff] }
0x143b   : > { %v5426_v27 = vpop.xlane.xlu1 %5425  ;;  %v5423_v2 = vpop.xlane.xlu0 %5422 }
0x143c   : > { %v5550_v0 = vmul.f32 %v12261_v41, %v5523_v60  ;;  %v5469_v55 = vmul.f32 0.03125, %v5426_v27  ;;  %9328 = vrsqrt.f32 %v5488_v26  ;;  %v5468_v13 = vmul.f32 0.03125, %v5423_v2 }
0x143d   : > { %v9319_v33 = vpop.eup %9318  ;;  %9330 = vrsqrt.f32 %v5487_v20 }
0x143e   : > { %v5524_v4 = vmul.f32 %v9319_v33, %v12120_v21  ;;  %v5577_v30 = vadd.f32 %v12270_v31, %v5550_v0  ;;  %v5490_v57 = vadd.f32 1e-05, %v5469_v55  ;;  %v5489_v52 = vadd.f32 1e-05, %v5468_v13 }
0x1440   : > { %v5551_v34 = vmul.f32 %v12261_v41, %v5524_v4  ;;  %9332 = vrsqrt.f32 %v5490_v57 }
0x1441   : > { %v9321_v10 = vpop.eup %9320  ;;  %9334 = vrsqrt.f32 %v5489_v52 }
0x1442   : > { %v9323_v46 = vpop.eup %9322  ;;  %v5578_v59 = vadd.f32 %v12270_v31, %v5551_v34  ;;  %v5526_v21 = vmul.f32 %v9321_v10, %v12131_v54 }
0x1443   : > { %v5525_v53 = vmul.f32 %v9323_v46, %v12128_v12 }
0x1444   : > { %v5598_v18 = vpack.c.bf16 %v5578_v59, %v5577_v30  ;;  %v5553_v22 = vmul.f32 %v12261_v41, %v5526_v21 }
0x1445   : > { %v9325_v60 = vpop.eup %9324  ;;  %v5552_v26 = vmul.f32 %v12261_v41, %v5525_v53 }
0x1446   : > { %v9327_v27 = vpop.eup %9326  ;;  %8635 = vmatmul.mubr.msk.bf16.vlgmr.msra.gmra.mxu1 %vm928_vm2, %v5598_v18  ;;  %v5528_v54 = vmul.f32 %v9325_v60, %v12149_v5  ;;  %v5580_v2 = vadd.f32 %v12270_v31, %v5553_v22 }
0x1447   : > { %8638 = vmatprep.mubr.msk.bf16.mxu1 %vm9656_vm3, %v13905_v39  ;;  %v5527_v20 = vmul.f32 %v9327_v27, %v12142_v49  ;;  %v5579_v12 = vadd.f32 %v12270_v31, %v5552_v26 }
0x1448   : > { %v5555_v55 = vmul.f32 %v12261_v41, %v5528_v54 }
0x1449   : > { %v9329_v33 = vpop.eup %9328  ;;  %v5599_v0 = vpack.c.bf16 %v5580_v2, %v5579_v12  ;;  %v5554_v4 = vmul.f32 %v12261_v41, %v5527_v20 }
0x144a   : > { %v9331_v13 = vpop.eup %9330  ;;  %v5530_v5 = vmul.f32 %v9329_v33, %v12162_v47  ;;  %v5582_v10 = vadd.f32 %v12270_v31, %v5555_v55 }
0x144b   : > { %v5529_v49 = vmul.f32 %v9331_v13, %v12155_v19  ;;  %v5581_v34 = vadd.f32 %v12270_v31, %v5554_v4 }
0x144c   : > { %v5557_v57 = vmul.f32 %v12261_v41, %v5530_v5 }
0x144d   : > { %v9333_v46 = vpop.eup %9332  ;;  %v5600_v59 = vpack.c.bf16 %v5582_v10, %v5581_v34  ;;  %v5556_v21 = vmul.f32 %v12261_v41, %v5529_v49 }
0x144e   : > { %8639 = vmatmul.mubr.msk.bf16.gmra.mxu1 %vm928_vm2, %v5599_v0  ;;  %v9335_v30 = vpop.eup %9334  ;;  %v5532_v47 = vmul.f32 %v9333_v46, %v12173_v7  ;;  %v5584_v52 = vadd.f32 %v12270_v31, %v5557_v57 }
0x144f   : > { %8642 = vmatprep.mubr.msk.bf16.mxu1 %vm9656_vm3, %v13905_v39  ;;  %v5531_v19 = vmul.f32 %v9335_v30, %v12170_v37  ;;  %v5583_v53 = vadd.f32 %v12270_v31, %v5556_v21 }
0x1450   : > { %v5559_v60 = vmul.f32 %v12261_v41, %v5532_v47 }
0x1451   : > { %v5601_v18 = vpack.c.bf16 %v5584_v52, %v5583_v53  ;;  %v5558_v22 = vmul.f32 %v12261_v41, %v5531_v19  ;;  %v8914_v19 = vld [vmem:[%s9857_s4 + $0x38] sm:$0xff]  }
0x1452   : > { %v5586_v7 = vadd.f32 %v12270_v31, %v5559_v60  ;;  %8679 = vmatpush3.bf16.msra.mxu0 %v8914_v19  ;;  %v8919_v19 = vld [vmem:[%s9857_s4 + $0x10] sm:$0xff]  }
0x1453   : > { %v5585_v26 = vadd.f32 %v12270_v31, %v5558_v22  ;;  %8680 = vmatprep.subr.bf16.mxu0 %v13905_v39 }
0x1455   : > { %v5602_v27 = vpack.c.bf16 %v5586_v7, %v5585_v26  ;;  %v8915_v7 = vld [vmem:[%s9857_s4 + $0x30] sm:$0xff]  }
0x1456   : > { %8643 = vmatmul.mubr.msk.bf16.gmra.mxu1 %vm928_vm2, %v5600_v59  ;;  %8681 = vmatpush3.bf16.msra.mxu0 %v8915_v7  ;;  %v8921_v7 = vld [vmem:[%s9857_s4] sm:$0xff]  }
0x1457   : > { %8646 = vmatprep.mubr.msk.bf16.mxu1 %vm9656_vm3, %v13905_v39  ;;  %8682 = vmatprep.subr.bf16.mxu0 %v13905_v39 }
0x145e   : > { %8647 = vmatmul.mubr.msk.bf16.gmra.mxu1 %vm928_vm2, %v5601_v18 }
0x145f   : > { %8650 = vmatprep.mubr.msk.bf16.mxu1 %vm9656_vm3, %v13905_v39 }
0x1466   : > { %8651 = vmatmul.mubr.msk.bf16.gmra.mxu1 %vm928_vm2, %v5602_v27 }
0x1467   : > { %8654 = vmatprep.mubr.msk.bf16.mxu1 %vm9656_vm3, %v13905_v39 }
0x1478   : > { %v5429_v37 = vpop.xlane.xlu0 %5428 }
0x1479   : > { %v5470_v54 = vmul.f32 0.03125, %v5429_v37 }
0x147b   : > { %v5491_v20 = vadd.f32 1e-05, %v5470_v54 }
0x147c   : > { %v5432_v12 = vpop.xlane.xlu1 %5431 }
0x147d   : > { %9336 = vrsqrt.f32 %v5491_v20  ;;  %v5471_v2 = vmul.f32 0.03125, %v5432_v12 }
0x147f   : > { %v5492_v33 = vadd.f32 1e-05, %v5471_v2 }
0x1480   : > { %v5435_v0 = vpop.xlane.xlu0 %5434 }
0x1481   : > { %9338 = vrsqrt.f32 %v5492_v33  ;;  %v5472_v4 = vmul.f32 0.03125, %v5435_v0  ;;  %v8916_v0 = vld [vmem:[%s9857_s4 + $0x28] sm:$0xff]  }
0x1482   : > { %8683 = vmatpush3.bf16.msra.mxu0 %v8916_v0 }
0x1483   : > { %v5493_v55 = vadd.f32 1e-05, %v5472_v4  ;;  %8684 = vmatprep.subr.bf16.mxu0 %v13905_v39 }
0x1484   : > { %v5438_v13 = vpop.xlane.xlu1 %5437 }
0x1485   : > { %9340 = vrsqrt.f32 %v5493_v55  ;;  %v5473_v5 = vmul.f32 0.03125, %v5438_v13 }
0x1487   : > { %v5494_v49 = vadd.f32 1e-05, %v5473_v5 }
0x1488   : > { %v5441_v34 = vpop.xlane.xlu0 %5440 }
0x1489   : > { %9342 = vrsqrt.f32 %v5494_v49  ;;  %v5474_v10 = vmul.f32 0.03125, %v5441_v34  ;;  %v8917_v49 = vld [vmem:[%s9857_s4 + $0x20] sm:$0xff]  }
0x148a   : > { %v9337_v46 = vpop.eup %9336  ;;  %8685 = vmatpush3.bf16.msra.mxu0 %v8917_v49 }
0x148b   : > { %v5533_v30 = vmul.f32 %v9337_v46, %v12190_v36  ;;  %v5495_v59 = vadd.f32 1e-05, %v5474_v10  ;;  %8686 = vmatprep.subr.bf16.mxu0 %v13905_v39 }
0x148c   : > { %v5444_v21 = vpop.xlane.xlu1 %5443 }
0x148d   : > { %9344 = vrsqrt.f32 %v5495_v59  ;;  %v5475_v57 = vmul.f32 0.03125, %v5444_v21  ;;  %v5560_v18 = vmul.f32 %v12261_v41, %v5533_v30  ;;  %v8918_v59 = vld [vmem:[%s9857_s4 + $0x18] sm:$0xff]  }
0x148e   : > { %v9339_v47 = vpop.eup %9338  ;;  %8687 = vmatpush3.bf16.msra.mxu0 %v8918_v59 }
0x148f   : > { %v5534_v53 = vmul.f32 %v9339_v47, %v12195_v42  ;;  %v5496_v52 = vadd.f32 1e-05, %v5475_v57  ;;  %v5587_v54 = vadd.f32 %v12270_v31, %v5560_v18  ;;  %8688 = vmatprep.subr.bf16.mxu0 %v13905_v39 }
0x1490   : > { %v5447_v22 = vpop.xlane.xlu0 %5446 }
0x1491   : > { %9346 = vrsqrt.f32 %v5496_v52  ;;  %v5476_v60 = vmul.f32 0.03125, %v5447_v22  ;;  %v5561_v26 = vmul.f32 %v12261_v41, %v5534_v53 }
0x1492   : > { %v9341_v36 = vpop.eup %9340  ;;  %8689 = vmatpush3.bf16.msra.mxu0 %v8919_v19 }
0x1493   : > { %v5535_v27 = vmul.f32 %v9341_v36, %v12201_v32  ;;  %v5497_v37 = vadd.f32 1e-05, %v5476_v60  ;;  %v5588_v42 = vadd.f32 %v12270_v31, %v5561_v26  ;;  %8690 = vmatprep.subr.bf16.mxu0 %v13905_v39  ;;  %v8920_v60 = vld [vmem:[%s9857_s4 + $0x8] sm:$0xff]  }
0x1494   : > { %v5450_v20 = vpop.xlane.xlu1 %5449 }
0x1495   : > { %9348 = vrsqrt.f32 %v5497_v37  ;;  %v5477_v12 = vmul.f32 0.03125, %v5450_v20  ;;  %v5603_v2 = vpack.c.bf16 %v5588_v42, %v5587_v54  ;;  %v5562_v32 = vmul.f32 %v12261_v41, %v5535_v27 }
0x1496   : > { %v9343_v33 = vpop.eup %9342  ;;  %8691 = vmatpush3.bf16.msra.mxu0 %v8920_v60 }
0x1497   : > { %v5536_v4 = vmul.f32 %v9343_v33, %v12207_v56  ;;  %v5498_v55 = vadd.f32 1e-05, %v5477_v12  ;;  %8655 = vmatmul.mubr.msk.bf16.gmra.mxu1 %vm928_vm2, %v5603_v2  ;;  %v5589_v56 = vadd.f32 %v12270_v31, %v5562_v32  ;;  %8692 = vmatprep.subr.bf16.mxu0 %v13905_v39 }
0x1498   : > { %8658 = vmatprep.mubr.msk.bf16.mxu1 %vm9656_vm3, %v13905_v39 }
0x1499   : > { %9350 = vrsqrt.f32 %v5498_v55  ;;  %v5563_v13 = vmul.f32 %v12261_v41, %v5536_v4 }
0x149a   : > { %v9345_v5 = vpop.eup %9344  ;;  %8693 = vmatpush3.bf16.msra.mxu0 %v8921_v7 }
0x149b   : > { %v5537_v34 = vmul.f32 %v9345_v5, %v12213_v58  ;;  %v5590_v10 = vadd.f32 %v12270_v31, %v5563_v13 }
0x149d   : > { %v5604_v46 = vpack.c.bf16 %v5590_v10, %v5589_v56  ;;  %v5564_v57 = vmul.f32 %v12261_v41, %v5537_v34 }
0x149e   : > { %v9347_v30 = vpop.eup %9346 }
0x149f   : > { %v5538_v21 = vmul.f32 %v9347_v30, %v12219_v11  ;;  %8659 = vmatmul.mubr.msk.bf16.gmra.mxu1 %vm928_vm2, %v5604_v46  ;;  %v5591_v11 = vadd.f32 %v12270_v31, %v5564_v57 }
0x14a0   : > { %8662 = vmatprep.mubr.msk.bf16.mxu1 %vm9656_vm3, %v13905_v39 }
0x14a1   : > { %v5565_v58 = vmul.f32 %v12261_v41, %v5538_v21 }
0x14a2   : > { %v9349_v47 = vpop.eup %9348 }
0x14a3   : > { %v5539_v53 = vmul.f32 %v9349_v47, %v12225_v8  ;;  %v5592_v52 = vadd.f32 %v12270_v31, %v5565_v58 }
0x14a5   : > { %v5605_v18 = vpack.c.bf16 %v5592_v52, %v5591_v11  ;;  %v5566_v36 = vmul.f32 %v12261_v41, %v5539_v53 }
0x14a6   : > { %v9351_v22 = vpop.eup %9350 }
0x14a7   : > { %v5540_v26 = vmul.f32 %v9351_v22, %v12231_v44  ;;  %8663 = vmatmul.mubr.msk.bf16.gmra.mxu1 %vm928_vm2, %v5605_v18  ;;  %v5593_v27 = vadd.f32 %v12270_v31, %v5566_v36 }
0x14a8   : > { %8666 = vmatprep.mubr.msk.bf16.mxu1 %vm9656_vm3, %v13905_v39 }
0x14a9   : > { %v5567_v8 = vmul.f32 %v12261_v41, %v5540_v26 }
0x14ab   : > { %v5594_v37 = vadd.f32 %v12270_v31, %v5567_v8 }
0x14ad   : > { %v5606_v54 = vpack.c.bf16 %v5594_v37, %v5593_v27 }
0x14af   : > { %8667 = vmatmul.mubr.msk.bf16.gmra.mxu1 %vm928_vm2, %v5606_v54 }
0x14b0   : > { %8670 = vmatprep.mubr.msk.bf16.mxu1 %vm9656_vm3, %v13905_v39 }
0x14b4   : > { %v5453_v44 = vpop.xlane.xlu0 %5452 }
0x14b5   : > { %v5478_v42 = vmul.f32 0.03125, %v5453_v44 }
0x14b7   : > { %v5499_v20 = vadd.f32 1e-05, %v5478_v42 }
0x14b8   : > { %v5456_v12 = vpop.xlane.xlu1 %5455 }
0x14b9   : > { %9352 = vrsqrt.f32 %v5499_v20  ;;  %v5479_v2 = vmul.f32 0.03125, %v5456_v12 }
0x14bb   : > { %v5500_v33 = vadd.f32 1e-05, %v5479_v2 }
0x14bc   : > { %v5459_v0 = vpop.xlane.xlu0 %5458 }
0x14bd   : > { %9354 = vrsqrt.f32 %v5500_v33  ;;  %v5480_v4 = vmul.f32 0.03125, %v5459_v0 }
0x14bf   : > { %v5501_v55 = vadd.f32 1e-05, %v5480_v4 }
0x14c1   : > { %9356 = vrsqrt.f32 %v5501_v55 }
0x14c6   : > { %v9353_v32 = vpop.eup %9352 }
0x14c7   : > { %v5541_v13 = vmul.f32 %v9353_v32, %v12238_v17 }
0x14c9   : > { %v5568_v34 = vmul.f32 %v12261_v41, %v5541_v13 }
0x14ca   : > { %v9355_v5 = vpop.eup %9354 }
0x14cb   : > { %v5542_v49 = vmul.f32 %v9355_v5, %v12243_v9  ;;  %v5595_v30 = vadd.f32 %v12270_v31, %v5568_v34 }
0x14cd   : > { %v5569_v56 = vmul.f32 %v12261_v41, %v5542_v49 }
0x14ce   : > { %v9357_v10 = vpop.eup %9356 }
0x14cf   : > { %v5543_v46 = vmul.f32 %v9357_v10, %v12249_v43  ;;  %v5596_v59 = vadd.f32 %v12270_v31, %v5569_v56  ;;  %v12383_v43 = vld [vmem:[%s846_s6] ss:$0 sm:$0xff] }
0x14d1   : > { %v5607_v21 = vpack.c.bf16 %v5596_v59, %v5595_v30  ;;  %v5570_v57 = vmul.f32 %v12261_v41, %v5543_v46 }
0x14d3   : > { %8671 = vmatmul.mubr.msk.bf16.gmra.mxu1 %vm928_vm2, %v5607_v21  ;;  %v5597_v17 = vadd.f32 %v12270_v31, %v5570_v57 }
0x14d4   : > { %8674 = vmatprep.mubr.msk.bf16.mxu1 %vm9656_vm3, %v13905_v39 }
0x14d5   : > { %v5608_v9 = vpack.c.bf16 %v5597_v17, %v5597_v17 }
0x14db   : > { %8675 = vmatmul.mubr.msk.bf16.gmra.mxu1 %vm928_vm2, %v5608_v9 }
0x1506   : > { %v5699_v58 = vpop.f32.mrf.mxu1 }
0x1507   : > { %v12386_v47 = vadd.f32 %v12383_v43, %v5699_v58 }
0x1508   : > { %v8636_v41 = vpop.f32.mrf.mxu1 }
0x1509   : > { %v5785_v19 = vmul.f32 %v12386_v47, %v12386_v47 }
0x150a   : > { %v5702_v53 = vpop.f32.mrf.mxu1 }
0x150b   : > { %v5806_v31 = vmul.f32 %v5785_v19, %v12386_v47  ;;  %v12392_v11 = vadd.f32 %v12383_v43, %v5702_v53 }
0x150c   : > { %v8637_v52 = vpop.f32.mrf.mxu1 }
0x150d   : > { %v5827_v18 = vmul.f32 0.044715, %v5806_v31  ;;  %v5786_v22 = vmul.f32 %v12392_v11, %v12392_v11 }
0x150e   : > { %v5707_v60 = vpop.f32.mrf.mxu1 }
0x150f   : > { %v5848_v26 = vadd.f32 %v5827_v18, %v12386_v47  ;;  %v5807_v36 = vmul.f32 %v5786_v22, %v12392_v11  ;;  %v12399_v8 = vadd.f32 %v12383_v43, %v5707_v60 }
0x1510   : > { %v8640_v7 = vpop.f32.mrf.mxu1 }
0x1511   : > { %v5869_v27 = vmul.f32 0.7978846, %v5848_v26  ;;  %v5828_v37 = vmul.f32 0.044715, %v5807_v36  ;;  %v5787_v54 = vmul.f32 %v12399_v8, %v12399_v8 }
0x1512   : > { %v5710_v44 = vpop.f32.mrf.mxu1 }
0x1513   : > { %9358 = vtanh.f32 %v5869_v27  ;;  %v5849_v42 = vadd.f32 %v5828_v37, %v12392_v11  ;;  %v5808_v20 = vmul.f32 %v5787_v54, %v12399_v8  ;;  %v12406_v12 = vadd.f32 %v12383_v43, %v5710_v44 }
0x1514   : > { %v8641_v2 = vpop.f32.mrf.mxu1 }
0x1515   : > { %v5870_v33 = vmul.f32 0.7978846, %v5849_v42  ;;  %v5829_v0 = vmul.f32 0.044715, %v5808_v20  ;;  %v5788_v4 = vmul.f32 %v12406_v12, %v12406_v12 }
0x1516   : > { %v5715_v55 = vpop.f32.mrf.mxu1 }
0x1517   : > { %9360 = vtanh.f32 %v5870_v33  ;;  %v5850_v32 = vadd.f32 %v5829_v0, %v12399_v8  ;;  %v5809_v13 = vmul.f32 %v5788_v4, %v12406_v12  ;;  %v12413_v5 = vadd.f32 %v12383_v43, %v5715_v55 }
0x1518   : > { %v8644_v49 = vpop.f32.mrf.mxu1 }
0x1519   : > { %v5871_v34 = vmul.f32 0.7978846, %v5850_v32  ;;  %v5830_v56 = vmul.f32 0.044715, %v5809_v13  ;;  %v5789_v10 = vmul.f32 %v12413_v5, %v12413_v5 }
0x151a   : > { %v5718_v46 = vpop.f32.mrf.mxu1 }
0x151b   : > { %9362 = vtanh.f32 %v5871_v34  ;;  %v5851_v30 = vadd.f32 %v5830_v56, %v12406_v12  ;;  %v5810_v59 = vmul.f32 %v5789_v10, %v12413_v5  ;;  %v12420_v21 = vadd.f32 %v12383_v43, %v5718_v46 }
0x151c   : > { %v8645_v57 = vpop.f32.mrf.mxu1 }
0x151d   : > { %v5872_v17 = vmul.f32 0.7978846, %v5851_v30  ;;  %v5831_v9 = vmul.f32 0.044715, %v5810_v59  ;;  %v5790_v58 = vmul.f32 %v12420_v21, %v12420_v21 }
0x151e   : > { %v5723_v41 = vpop.f32.mrf.mxu1 }
0x151f   : > { %9364 = vtanh.f32 %v5872_v17  ;;  %v5852_v19 = vadd.f32 %v5831_v9, %v12413_v5  ;;  %v5811_v53 = vmul.f32 %v5790_v58, %v12420_v21  ;;  %v12427_v31 = vadd.f32 %v12383_v43, %v5723_v41 }
0x1520   : > { %v9359_v52 = vpop.eup %9358  ;;  %v8648_v18 = vpop.f32.mrf.mxu1 }
0x1521   : > { %v5911_v22 = vadd.f32 1.0, %v9359_v52  ;;  %v5873_v60 = vmul.f32 0.7978846, %v5852_v19  ;;  %v5832_v26 = vmul.f32 0.044715, %v5811_v53  ;;  %v5791_v36 = vmul.f32 %v12427_v31, %v12427_v31 }
0x1522   : > { %v5726_v7 = vpop.f32.mrf.mxu1 }
0x1523   : > { %9366 = vtanh.f32 %v5873_v60  ;;  %v5853_v27 = vadd.f32 %v5832_v26, %v12420_v21  ;;  %v5812_v37 = vmul.f32 %v5791_v36, %v12427_v31  ;;  %v5932_v44 = vmul.f32 0.5, %v5911_v22 }
0x1524   : > { %v9361_v54 = vpop.eup %9360  ;;  %v12434_v42 = vadd.f32 %v12383_v43, %v5726_v7  ;;  %v8649_v20 = vpop.f32.mrf.mxu1 }
0x1525   : > { %v5912_v2 = vadd.f32 1.0, %v9361_v54  ;;  %v5874_v33 = vmul.f32 0.7978846, %v5853_v27  ;;  %v5833_v0 = vmul.f32 0.044715, %v5812_v37  ;;  %v5953_v56 = vmul.f32 %v5932_v44, %v12386_v47 }
0x1526   : > { %v5792_v4 = vmul.f32 %v12434_v42, %v12434_v42  ;;  %v5731_v55 = vpop.f32.mrf.mxu1 }
0x1527   : > { %v5933_v32 = vmul.f32 0.5, %v5912_v2  ;;  %9368 = vtanh.f32 %v5874_v33  ;;  %v5854_v13 = vadd.f32 %v5833_v0, %v12427_v31  ;;  %v12440_v49 = vadd.f32 %v12383_v43, %v5731_v55 }
0x1528   : > { %v9363_v34 = vpop.eup %9362  ;;  %v5813_v10 = vmul.f32 %v5792_v4, %v12434_v42  ;;  %v8652_v46 = vpop.f32.mrf.mxu1 }
0x1529   : > { %v5954_v30 = vmul.f32 %v5933_v32, %v12392_v11  ;;  %v5913_v59 = vadd.f32 1.0, %v9363_v34  ;;  %v5875_v57 = vmul.f32 0.7978846, %v5854_v13  ;;  %v5793_v17 = vmul.f32 %v12440_v49, %v12440_v49 }
0x152a   : > { %v5834_v9 = vmul.f32 0.044715, %v5813_v10  ;;  %v5734_v58 = vpop.f32.mrf.mxu1 }
0x152b   : > { %v5974_v41 = vpack.c.bf16 %v5954_v30, %v5953_v56  ;;  %9370 = vtanh.f32 %v5875_v57  ;;  %v5814_v19 = vmul.f32 %v5793_v17, %v12440_v49  ;;  %v5735_v47 = vadd.f32 %v12383_v43, %v5734_v58 }
0x152c   : > { %v9365_v53 = vpop.eup %9364  ;;  %v5855_v52 = vadd.f32 %v5834_v9, %v12434_v42  ;;  %v8653_v18 = vpop.f32.mrf.mxu1  ;;  %v5934_v22 = vmul.f32 0.5, %v5913_v59 }
0x152d   : > { %v5914_v60 = vadd.f32 1.0, %v9365_v53  ;;  %v5835_v11 = vmul.f32 0.044715, %v5814_v19  ;;  %8695 = vmatmul.mubr.bf16.vlgmr.msra.gmra.mxu0 %v5974_v41  ;;  %v5794_v36 = vmul.f32 %v5735_v47, %v5735_v47 }
0x152e   : > { %v5876_v26 = vmul.f32 0.7978846, %v5855_v52  ;;  %8698 = vmatprep.mubr.msk.bf16.mxu0 %vm9656_vm3, %v13905_v39  ;;  %v5955_v44 = vmul.f32 %v5934_v22, %v12399_v8 }
0x152f   : > { %v5935_v7 = vmul.f32 0.5, %v5914_v60  ;;  %v5856_v27 = vadd.f32 %v5835_v11, %v12440_v49  ;;  %v5815_v54 = vmul.f32 %v5794_v36, %v5735_v47 }
0x1530   : > { %v9367_v37 = vpop.eup %9366  ;;  %9372 = vtanh.f32 %v5876_v26 }
0x1531   : > { %v5956_v20 = vmul.f32 %v5935_v7, %v12406_v12  ;;  %v5915_v2 = vadd.f32 1.0, %v9367_v37  ;;  %v5877_v33 = vmul.f32 0.7978846, %v5856_v27  ;;  %v5836_v0 = vmul.f32 0.044715, %v5815_v54 }
0x1533   : > { %9374 = vtanh.f32 %v5877_v33  ;;  %v5975_v4 = vpack.c.bf16 %v5956_v20, %v5955_v44  ;;  %v5857_v32 = vadd.f32 %v5836_v0, %v5735_v47  ;;  %v5936_v13 = vmul.f32 0.5, %v5915_v2 }
0x1534   : > { %v9369_v55 = vpop.eup %9368 }
0x1535   : > { %v5916_v34 = vadd.f32 1.0, %v9369_v55  ;;  %8699 = vmatmul.mubr.bf16.gmra.mxu0 %v5975_v4  ;;  %v5878_v56 = vmul.f32 0.7978846, %v5857_v32  ;;  %v5957_v8 = vmul.f32 %v5936_v13, %v12413_v5 }
0x1536   : > { %8702 = vmatprep.mubr.msk.bf16.mxu0 %vm9656_vm3, %v13905_v39 }
0x1537   : > { %v5937_v10 = vmul.f32 0.5, %v5916_v34  ;;  %9376 = vtanh.f32 %v5878_v56 }
0x1538   : > { %v9371_v46 = vpop.eup %9370 }
0x1539   : > { %v5958_v12 = vmul.f32 %v5937_v10, %v12420_v21  ;;  %v5917_v30 = vadd.f32 1.0, %v9371_v46 }
0x153b   : > { %v5976_v59 = vpack.c.bf16 %v5958_v12, %v5957_v8  ;;  %v5938_v17 = vmul.f32 0.5, %v5917_v30 }
0x153d   : > { %v9373_v57 = vpop.eup %9372  ;;  %8703 = vmatmul.mubr.bf16.gmra.mxu0 %v5976_v59  ;;  %v5959_v19 = vmul.f32 %v5938_v17, %v12427_v31 }
0x153e   : > { %v5918_v9 = vadd.f32 1.0, %v9373_v57  ;;  %8706 = vmatprep.mubr.msk.bf16.mxu0 %vm9656_vm3, %v13905_v39 }
0x1540   : > { %v9375_v58 = vpop.eup %9374  ;;  %v5939_v41 = vmul.f32 0.5, %v5918_v9 }
0x1541   : > { %v5919_v52 = vadd.f32 1.0, %v9375_v58 }
0x1542   : > { %v5960_v53 = vmul.f32 %v5939_v41, %v12434_v42 }
0x1543   : > { %v5940_v22 = vmul.f32 0.5, %v5919_v52 }
0x1544   : > { %v5977_v18 = vpack.c.bf16 %v5960_v53, %v5959_v19  ;;  %v9377_v5 = vpop.eup %9376 }
0x1545   : > { %v5920_v21 = vadd.f32 1.0, %v9377_v5  ;;  %v5961_v11 = vmul.f32 %v5940_v22, %v12440_v49 }
0x1546   : > { %8707 = vmatmul.mubr.bf16.gmra.mxu0 %v5977_v18 }
0x1547   : > { %8710 = vmatprep.mubr.msk.bf16.mxu0 %vm9656_vm3, %v13905_v39  ;;  %v5941_v60 = vmul.f32 0.5, %v5920_v21 }
0x1549   : > { %v5962_v26 = vmul.f32 %v5941_v60, %v5735_v47 }
0x154b   : > { %v5978_v36 = vpack.c.bf16 %v5962_v26, %v5961_v11 }
0x154e   : > { %8711 = vmatmul.mubr.bf16.gmra.mxu0 %v5978_v36 }
0x154f   : > { %8714 = vmatprep.mubr.msk.bf16.mxu0 %vm9656_vm3, %v13905_v39 }
0x1557   : > { %v5739_v31 = vpop.f32.mrf.mxu1 }
0x1558   : > { %v12469_v42 = vadd.f32 %v12383_v43, %v5739_v31 }
0x1559   : > { %v8656_v7 = vpop.f32.mrf.mxu1 }
0x155a   : > { %v5795_v27 = vmul.f32 %v12469_v42, %v12469_v42 }
0x155b   : > { %v5742_v37 = vpop.f32.mrf.mxu1 }
0x155c   : > { %v5816_v54 = vmul.f32 %v5795_v27, %v12469_v42  ;;  %v12475_v44 = vadd.f32 %v12383_v43, %v5742_v37 }
0x155d   : > { %v8657_v49 = vpop.f32.mrf.mxu1 }
0x155e   : > { %v5837_v47 = vmul.f32 0.044715, %v5816_v54  ;;  %v5796_v20 = vmul.f32 %v12475_v44, %v12475_v44 }
0x155f   : > { %v5747_v2 = vpop.f32.mrf.mxu1 }
0x1560   : > { %v5858_v33 = vadd.f32 %v5837_v47, %v12469_v42  ;;  %v5817_v0 = vmul.f32 %v5796_v20, %v12475_v44  ;;  %v12482_v4 = vadd.f32 %v12383_v43, %v5747_v2 }
0x1561   : > { %v8660_v55 = vpop.f32.mrf.mxu1 }
0x1562   : > { %v5879_v32 = vmul.f32 0.7978846, %v5858_v33  ;;  %v5838_v13 = vmul.f32 0.044715, %v5817_v0  ;;  %v5797_v34 = vmul.f32 %v12482_v4, %v12482_v4 }
0x1563   : > { %v5750_v56 = vpop.f32.mrf.mxu1 }
0x1564   : > { %9378 = vtanh.f32 %v5879_v32  ;;  %v5859_v10 = vadd.f32 %v5838_v13, %v12475_v44  ;;  %v5818_v46 = vmul.f32 %v5797_v34, %v12482_v4  ;;  %v12489_v8 = vadd.f32 %v12383_v43, %v5750_v56 }
0x1565   : > { %v8661_v12 = vpop.f32.mrf.mxu1 }
0x1566   : > { %v5880_v30 = vmul.f32 0.7978846, %v5859_v10  ;;  %v5839_v59 = vmul.f32 0.044715, %v5818_v46  ;;  %v5798_v57 = vmul.f32 %v12489_v8, %v12489_v8 }
0x1567   : > { %v5755_v17 = vpop.f32.mrf.mxu1 }
0x1568   : > { %9380 = vtanh.f32 %v5880_v30  ;;  %v5860_v9 = vadd.f32 %v5839_v59, %v12482_v4  ;;  %v5819_v58 = vmul.f32 %v5798_v57, %v12489_v8  ;;  %v12496_v41 = vadd.f32 %v12383_v43, %v5755_v17 }
0x1569   : > { %v8664_v19 = vpop.f32.mrf.mxu1 }
0x156a   : > { %v5881_v53 = vmul.f32 0.7978846, %v5860_v9  ;;  %v5840_v52 = vmul.f32 0.044715, %v5819_v58  ;;  %v5799_v18 = vmul.f32 %v12496_v41, %v12496_v41 }
0x156b   : > { %v5758_v5 = vpop.f32.mrf.mxu1 }
0x156c   : > { %9382 = vtanh.f32 %v5881_v53  ;;  %v5861_v22 = vadd.f32 %v5840_v52, %v12489_v8  ;;  %v5820_v21 = vmul.f32 %v5799_v18, %v12496_v41  ;;  %v5759_v60 = vadd.f32 %v12383_v43, %v5758_v5 }
0x156d   : > { %v8665_v11 = vpop.f32.mrf.mxu1 }
0x156e   : > { %v5882_v26 = vmul.f32 0.7978846, %v5861_v22  ;;  %v5841_v36 = vmul.f32 0.044715, %v5820_v21  ;;  %v5800_v31 = vmul.f32 %v5759_v60, %v5759_v60 }
0x156f   : > { %v5763_v7 = vpop.f32.mrf.mxu1 }
0x1570   : > { %9384 = vtanh.f32 %v5882_v26  ;;  %v5862_v27 = vadd.f32 %v5841_v36, %v12496_v41  ;;  %v5821_v37 = vmul.f32 %v5800_v31, %v5759_v60  ;;  %v5764_v54 = vadd.f32 %v12383_v43, %v5763_v7 }
0x1571   : > { %v9379_v49 = vpop.eup %9378  ;;  %v8668_v47 = vpop.f32.mrf.mxu1 }
0x1572   : > { %v5921_v20 = vadd.f32 1.0, %v9379_v49  ;;  %v5883_v2 = vmul.f32 0.7978846, %v5862_v27  ;;  %v5842_v33 = vmul.f32 0.044715, %v5821_v37  ;;  %v5801_v0 = vmul.f32 %v5764_v54, %v5764_v54 }
0x1573   : > { %v5766_v55 = vpop.f32.mrf.mxu1 }
0x1574   : > { %9386 = vtanh.f32 %v5883_v2  ;;  %v5863_v32 = vadd.f32 %v5842_v33, %v5759_v60  ;;  %v5822_v13 = vmul.f32 %v5801_v0, %v5764_v54  ;;  %v5767_v56 = vadd.f32 %v12383_v43, %v5766_v55 }
0x1575   : > { %v9381_v34 = vpop.eup %9380  ;;  %v8669_v10 = vpop.f32.mrf.mxu1  ;;  %v5942_v46 = vmul.f32 0.5, %v5921_v20 }
0x1576   : > { %v5922_v12 = vadd.f32 1.0, %v9381_v34  ;;  %v5884_v30 = vmul.f32 0.7978846, %v5863_v32  ;;  %v5843_v59 = vmul.f32 0.044715, %v5822_v13  ;;  %v5802_v57 = vmul.f32 %v5767_v56, %v5767_v56 }
0x1577   : > { %v5963_v53 = vmul.f32 %v5942_v46, %v12469_v42 }
0x1578   : > { %v5943_v17 = vmul.f32 0.5, %v5922_v12  ;;  %9388 = vtanh.f32 %v5884_v30  ;;  %v5864_v9 = vadd.f32 %v5843_v59, %v5764_v54  ;;  %v5823_v19 = vmul.f32 %v5802_v57, %v5767_v56 }
0x1579   : > { %v9383_v58 = vpop.eup %9382 }
0x157a   : > { %v5964_v52 = vmul.f32 %v5943_v17, %v12475_v44  ;;  %v5923_v18 = vadd.f32 1.0, %v9383_v58  ;;  %v5885_v5 = vmul.f32 0.7978846, %v5864_v9  ;;  %v5844_v22 = vmul.f32 0.044715, %v5823_v19 }
0x157c   : > { %9390 = vtanh.f32 %v5885_v5  ;;  %v5979_v21 = vpack.c.bf16 %v5964_v52, %v5963_v53  ;;  %v5865_v26 = vadd.f32 %v5844_v22, %v5767_v56  ;;  %v5944_v36 = vmul.f32 0.5, %v5923_v18 }
0x157d   : > { %v9385_v11 = vpop.eup %9384 }
0x157e   : > { %v5924_v31 = vadd.f32 1.0, %v9385_v11  ;;  %8715 = vmatmul.mubr.bf16.gmra.mxu0 %v5979_v21  ;;  %v5886_v7 = vmul.f32 0.7978846, %v5865_v26  ;;  %v5965_v42 = vmul.f32 %v5944_v36, %v12482_v4 }
0x157f   : > { %8718 = vmatprep.mubr.msk.bf16.mxu0 %vm9656_vm3, %v13905_v39 }
0x1580   : > { %v5945_v27 = vmul.f32 0.5, %v5924_v31  ;;  %9392 = vtanh.f32 %v5886_v7 }
0x1581   : > { %v9387_v37 = vpop.eup %9386 }
0x1582   : > { %v5966_v44 = vmul.f32 %v5945_v27, %v12489_v8  ;;  %v5925_v49 = vadd.f32 1.0, %v9387_v37 }
0x1584   : > { %v5980_v47 = vpack.c.bf16 %v5966_v44, %v5965_v42  ;;  %v5946_v2 = vmul.f32 0.5, %v5925_v49 }
0x1585   : > { %v9389_v20 = vpop.eup %9388 }
0x1586   : > { %v5926_v33 = vadd.f32 1.0, %v9389_v20  ;;  %8719 = vmatmul.mubr.bf16.gmra.mxu0 %v5980_v47  ;;  %v5967_v32 = vmul.f32 %v5946_v2, %v12496_v41 }
0x1587   : > { %8722 = vmatprep.mubr.msk.bf16.mxu0 %vm9656_vm3, %v13905_v39 }
0x1588   : > { %v5947_v0 = vmul.f32 0.5, %v5926_v33 }
0x1589   : > { %v9391_v55 = vpop.eup %9390 }
0x158a   : > { %v5968_v13 = vmul.f32 %v5947_v0, %v5759_v60  ;;  %v5927_v34 = vadd.f32 1.0, %v9391_v55 }
0x158c   : > { %v5981_v10 = vpack.c.bf16 %v5968_v13, %v5967_v32  ;;  %v5948_v4 = vmul.f32 0.5, %v5927_v34 }
0x158d   : > { %v9393_v46 = vpop.eup %9392 }
0x158e   : > { %8723 = vmatmul.mubr.bf16.gmra.mxu0 %v5981_v10  ;;  %v5928_v8 = vadd.f32 1.0, %v9393_v46  ;;  %v5969_v30 = vmul.f32 %v5948_v4, %v5764_v54 }
0x158f   : > { %8726 = vmatprep.mubr.msk.bf16.mxu0 %vm9656_vm3, %v13905_v39 }
0x1590   : > { %v5949_v12 = vmul.f32 0.5, %v5928_v8 }
0x1592   : > { %v5970_v59 = vmul.f32 %v5949_v12, %v5767_v56 }
0x1593   : > { %v5771_v57 = vpop.f32.mrf.mxu1 }
0x1594   : > { %v5772_v17 = vadd.f32 %v12383_v43, %v5771_v57  ;;  %v5982_v58 = vpack.c.bf16 %v5970_v59, %v5969_v30  ;;  %v12529_v59 = vld [vmem:[%s854_s24] ss:$0 sm:$0xff] }
0x1595   : > { %v8672_v9 = vpop.f32.mrf.mxu1 }
0x1596   : > { %v5803_v19 = vmul.f32 %v5772_v17, %v5772_v17  ;;  %8727 = vmatmul.mubr.bf16.gmra.mxu0 %v5982_v58 }
0x1597   : > { %v5774_v41 = vpop.f32.mrf.mxu1  ;;  %8730 = vmatprep.mubr.msk.bf16.mxu0 %vm9656_vm3, %v13905_v39 }
0x1598   : > { %v5824_v60 = vmul.f32 %v5803_v19, %v5772_v17  ;;  %v5775_v53 = vadd.f32 %v12383_v43, %v5774_v41 }
0x1599   : > { %v8673_v52 = vpop.f32.mrf.mxu1 }
0x159a   : > { %v5845_v18 = vmul.f32 0.044715, %v5824_v60  ;;  %v5804_v5 = vmul.f32 %v5775_v53, %v5775_v53 }
0x159b   : > { %v5779_v22 = vpop.f32.mrf.mxu1 }
0x159c   : > { %v5866_v54 = vadd.f32 %v5845_v18, %v5772_v17  ;;  %v5825_v56 = vmul.f32 %v5804_v5, %v5775_v53  ;;  %v5780_v21 = vadd.f32 %v12383_v43, %v5779_v22 }
0x159d   : > { %v8676_v11 = vpop.f32.mrf.mxu1 }
0x159e   : > { %v5887_v26 = vmul.f32 0.7978846, %v5866_v54  ;;  %v5846_v36 = vmul.f32 0.044715, %v5825_v56  ;;  %v5805_v31 = vmul.f32 %v5780_v21, %v5780_v21 }
0x159f   : > { %v5782_v7 = vpop.f32.mrf.mxu1 }
0x15a0   : > { %9394 = vtanh.f32 %v5887_v26  ;;  %v5867_v27 = vadd.f32 %v5846_v36, %v5775_v53  ;;  %v5826_v37 = vmul.f32 %v5805_v31, %v5780_v21 }
0x15a1   : > { %v8677_v42 = vpop.f32.mrf.mxu1 }
0x15a2   : > { %v5888_v44 = vmul.f32 0.7978846, %v5867_v27  ;;  %v5847_v49 = vmul.f32 0.044715, %v5826_v37 }
0x15a4   : > { %9396 = vtanh.f32 %v5888_v44  ;;  %v5868_v47 = vadd.f32 %v5847_v49, %v5780_v21 }
0x15a6   : > { %v5889_v20 = vmul.f32 0.7978846, %v5868_v47 }
0x15a8   : > { %9398 = vtanh.f32 %v5889_v20 }
0x15ad   : > { %v9395_v2 = vpop.eup %9394 }
0x15ae   : > { %v5929_v33 = vadd.f32 1.0, %v9395_v2 }
0x15b0   : > { %v5950_v43 = vmul.f32 0.5, %v5929_v33 }
0x15b1   : > { %v9397_v0 = vpop.eup %9396 }
0x15b2   : > { %v5930_v55 = vadd.f32 1.0, %v9397_v0  ;;  %v5971_v34 = vmul.f32 %v5950_v43, %v5772_v17 }
0x15b4   : > { %v5951_v32 = vmul.f32 0.5, %v5930_v55 }
0x15b5   : > { %v9399_v13 = vpop.eup %9398 }
0x15b6   : > { %v5972_v10 = vmul.f32 %v5951_v32, %v5775_v53  ;;  %v5931_v46 = vadd.f32 1.0, %v9399_v13 }
0x15b8   : > { %v5983_v4 = vpack.c.bf16 %v5972_v10, %v5971_v34  ;;  %v5952_v8 = vmul.f32 0.5, %v5931_v46 }
0x15ba   : > { %8731 = vmatmul.mubr.bf16.gmra.mxu0 %v5983_v4  ;;  %v5973_v12 = vmul.f32 %v5952_v8, %v5780_v21 }
0x15bb   : > { %8734 = vmatprep.mubr.msk.bf16.mxu0 %vm9656_vm3, %v13905_v39 }
0x15bc   : > { %v5984_v30 = vpack.c.bf16 %v5973_v12, %v5973_v12 }
0x15c2   : > { %8735 = vmatmul.mubr.bf16.gmra.mxu0 %v5984_v30 }
0x15ed   : > { %v6090_v57 = vpop.f32.mrf.mxu0 }
0x15ee   : > { %v6091_v17 = vadd.f32 %v12529_v59, %v6090_v57 }
0x15ef   : > { %v8696_v9 = vpop.f32.mrf.mxu0 }
0x15f0   : > { %v12533_v58 = vadd.f32 %v6091_v17, %v11981_v50 }
0x15f1   : > { %v6093_v19 = vpop.f32.mrf.mxu0 }
0x15f2   : > { %6197 = vst.msk [vmem:[#allocation2] sm:$0xff] %vm928_vm2, %v12533_v58  ;;  %v6094_v39 = vadd.f32 %v12529_v59, %v6093_v19 }
0x15f3   : > { %v8697_v41 = vpop.f32.mrf.mxu0 }
0x15f4   : > { %v12539_v60 = vadd.f32 %v6094_v39, %v11989_v38 }
0x15f5   : > { %v6098_v53 = vpop.f32.mrf.mxu0 }
0x15f6   : > { %6198 = vst.msk [vmem:[#allocation2 + $0x8] sm:$0xff] %vm928_vm2, %v12539_v60  ;;  %v6099_v52 = vadd.f32 %v12529_v59, %v6098_v53 }
0x15f7   : > { %v8700_v18 = vpop.f32.mrf.mxu0 }
0x15f8   : > { %v12545_v50 = vadd.f32 %v6099_v52, %v11984_v63 }
0x15f9   : > { %v6101_v5 = vpop.f32.mrf.mxu0 }
0x15fa   : > { %6199 = vst.msk [vmem:[#allocation2 + $0x10] sm:$0xff] %vm928_vm2, %v12545_v50  ;;  %v6102_v22 = vadd.f32 %v12529_v59, %v6101_v5 }
0x15fb   : > { %v8701_v54 = vpop.f32.mrf.mxu0 }
0x15fc   : > { %v12551_v38 = vadd.f32 %v6102_v22, %v11992_v6 }
0x15fd   : > { %v6106_v56 = vpop.f32.mrf.mxu0 }
0x15fe   : > { %6200 = vst.msk [vmem:[#allocation2 + $0x18] sm:$0xff] %vm928_vm2, %v12551_v38  ;;  %v6107_v21 = vadd.f32 %v12529_v59, %v6106_v56 }
0x15ff   : > { %v8704_v11 = vpop.f32.mrf.mxu0 }
0x1600   : > { %v12557_v63 = vadd.f32 %v6107_v21, %v11997_v3 }
0x1601   : > { %v6109_v26 = vpop.f32.mrf.mxu0 }
0x1602   : > { %6201 = vst.msk [vmem:[#allocation2 + $0x20] sm:$0xff] %vm928_vm2, %v12557_v63  ;;  %v6110_v36 = vadd.f32 %v12529_v59, %v6109_v26 }
0x1603   : > { %v8705_v31 = vpop.f32.mrf.mxu0 }
0x1604   : > { %v12563_v6 = vadd.f32 %v6110_v36, %v12002_v40 }
0x1606   : > { %6202 = vst.msk [vmem:[#allocation2 + $0x28] sm:$0xff] %vm928_vm2, %v12563_v6  ;;  %v6114_v7 = vpop.f32.mrf.mxu0 }
0x1607   : > { %v6115_v27 = vadd.f32 %v12529_v59, %v6114_v7 }
0x1608   : > { %v8708_v37 = vpop.f32.mrf.mxu0 }
0x1609   : > { %v12569_v3 = vadd.f32 %v6115_v27, %v12007_v62 }
0x160a   : > { %v6117_v42 = vpop.f32.mrf.mxu0 }
0x160b   : > { %6203 = vst.msk [vmem:[#allocation2 + $0x30] sm:$0xff] %vm928_vm2, %v12569_v3  ;;  %v6118_v44 = vadd.f32 %v12529_v59, %v6117_v42 }
0x160c   : > { %v8709_v49 = vpop.f32.mrf.mxu0 }
0x160d   : > { %v12575_v40 = vadd.f32 %v6118_v44, %v12012_v45 }
0x160e   : > { %v6122_v47 = vpop.f32.mrf.mxu0 }
0x160f   : > { %6204 = vst.msk [vmem:[#allocation2 + $0x38] sm:$0xff] %vm928_vm2, %v12575_v40  ;;  %v6123_v20 = vadd.f32 %v12529_v59, %v6122_v47 }
0x1610   : > { %v8712_v2 = vpop.f32.mrf.mxu0 }
0x1611   : > { %v12581_v62 = vadd.f32 %v6123_v20, %v12017_v51 }
0x1612   : > { %v6125_v33 = vpop.f32.mrf.mxu0 }
0x1613   : > { %6205 = vst.msk [vmem:[#allocation2 + $0x40] sm:$0xff] %vm928_vm2, %v12581_v62  ;;  %v6126_v0 = vadd.f32 %v12529_v59, %v6125_v33 }
0x1614   : > { %v8713_v43 = vpop.f32.mrf.mxu0 }
0x1615   : > { %v12587_v45 = vadd.f32 %v6126_v0, %v12023_v28 }
0x1617   : > { %6206 = vst.msk [vmem:[#allocation2 + $0x48] sm:$0xff] %vm928_vm2, %v12587_v45 }
0x163e   : > { %v6130_v55 = vpop.f32.mrf.mxu0 }
0x163f   : > { %v6131_v32 = vadd.f32 %v12529_v59, %v6130_v55 }
0x1640   : > { %v8716_v13 = vpop.f32.mrf.mxu0 }
0x1641   : > { %v12593_v51 = vadd.f32 %v6131_v32, %v12072_v48 }
0x1642   : > { %v6133_v34 = vpop.f32.mrf.mxu0 }
0x1643   : > { %6207 = vst.msk [vmem:[#allocation2 + $0x50] sm:$0xff] %vm928_vm2, %v12593_v51  ;;  %v6134_v10 = vadd.f32 %v12529_v59, %v6133_v34 }
0x1644   : > { %v8717_v46 = vpop.f32.mrf.mxu0 }
0x1645   : > { %v12599_v28 = vadd.f32 %v6134_v10, %v12077_v35 }
0x1646   : > { %v6138_v4 = vpop.f32.mrf.mxu0 }
0x1647   : > { %6208 = vst.msk [vmem:[#allocation2 + $0x58] sm:$0xff] %vm928_vm2, %v12599_v28  ;;  %v6139_v8 = vadd.f32 %v12529_v59, %v6138_v4 }
0x1648   : > { %v8720_v12 = vpop.f32.mrf.mxu0 }
0x1649   : > { %v12605_v48 = vadd.f32 %v6139_v8, %v12082_v15 }
0x164a   : > { %v6141_v30 = vpop.f32.mrf.mxu0 }
0x164b   : > { %6209 = vst.msk [vmem:[#allocation2 + $0x60] sm:$0xff] %vm928_vm2, %v12605_v48  ;;  %v6142_v57 = vadd.f32 %v12529_v59, %v6141_v30 }
0x164c   : > { %v8721_v17 = vpop.f32.mrf.mxu0 }
0x164d   : > { %v12611_v35 = vadd.f32 %v6142_v57, %v12087_v24 }
0x164e   : > { %v6146_v9 = vpop.f32.mrf.mxu0 }
0x164f   : > { %6210 = vst.msk [vmem:[#allocation2 + $0x68] sm:$0xff] %vm928_vm2, %v12611_v35  ;;  %v6147_v19 = vadd.f32 %v12529_v59, %v6146_v9 }
0x1650   : > { %v8724_v39 = vpop.f32.mrf.mxu0 }
0x1651   : > { %v12617_v15 = vadd.f32 %v6147_v19, %v12092_v23 }
0x1652   : > { %v6149_v41 = vpop.f32.mrf.mxu0 }
0x1653   : > { %6211 = vst.msk [vmem:[#allocation2 + $0x70] sm:$0xff] %vm928_vm2, %v12617_v15  ;;  %v6150_v53 = vadd.f32 %v12529_v59, %v6149_v41 }
0x1654   : > { %v8725_v52 = vpop.f32.mrf.mxu0 }
0x1655   : > { %v12623_v24 = vadd.f32 %v6150_v53, %v12097_v25 }
0x1656   : > { %v6154_v18 = vpop.f32.mrf.mxu0 }
0x1657   : > { %6212 = vst.msk [vmem:[#allocation2 + $0x78] sm:$0xff] %vm928_vm2, %v12623_v24  ;;  %v6155_v5 = vadd.f32 %v12529_v59, %v6154_v18 }
0x1658   : > { %v8728_v22 = vpop.f32.mrf.mxu0 }
0x1659   : > { %v12629_v23 = vadd.f32 %v6155_v5, %v12102_v16 }
0x165a   : > { %v6157_v54 = vpop.f32.mrf.mxu0 }
0x165b   : > { %6213 = vst.msk [vmem:[#allocation2 + $0x80] sm:$0xff] %vm928_vm2, %v12629_v23  ;;  %v6158_v56 = vadd.f32 %v12529_v59, %v6157_v54 }
0x165c   : > { %v8729_v21 = vpop.f32.mrf.mxu0 }
0x165d   : > { %v12635_v25 = vadd.f32 %v6158_v56, %v12107_v1 }
0x165f   : > { %6214 = vst.msk [vmem:[#allocation2 + $0x88] sm:$0xff] %vm928_vm2, %v12635_v25 }
0x167a   : > { %v6162_v11 = vpop.f32.mrf.mxu0 }
0x167b   : > { %v6163_v26 = vadd.f32 %v12529_v59, %v6162_v11 }
0x167c   : > { %v8732_v36 = vpop.f32.mrf.mxu0 }
0x167d   : > { %v12641_v16 = vadd.f32 %v6163_v26, %v12115_v29 }
0x167e   : > { %v6165_v31 = vpop.f32.mrf.mxu0 }
0x167f   : > { %6215 = vst.msk [vmem:[#allocation2 + $0x90] sm:$0xff] %vm928_vm2, %v12641_v16  ;;  %v6166_v7 = vadd.f32 %v12529_v59, %v6165_v31 }
0x1680   : > { %v8733_v27 = vpop.f32.mrf.mxu0 }
0x1681   : > { %v12647_v1 = vadd.f32 %v6166_v7, %v12125_v61 }
0x1682   : > { %v6170_v37 = vpop.f32.mrf.mxu0 }
0x1683   : > { %6216 = vst.msk [vmem:[#allocation2 + $0x98] sm:$0xff] %vm928_vm2, %v12647_v1  ;;  %v6171_v42 = vadd.f32 %v12529_v59, %v6170_v37 }
0x1684   : > { %v8736_v44 = vpop.f32.mrf.mxu0  ;;  %6221 = sbr.rel (%p7837_p6) target bundleno = 6874 (0x1ada), region = 100 }
0x1685   : > { %v12653_v29 = vadd.f32 %v6171_v42, %v12139_v14 }
0x1686   : > { %v6173_v49 = vpop.f32.mrf.mxu0 }
0x1687   : > { %6217 = vst.msk [vmem:[#allocation2 + $0xa0] sm:$0x3] %vm989_vm4, %v12653_v29 }
0x1688   : > { %v8737_v47 = vpop.f32.mrf.mxu0 }
0x1689   : > { %v6224_v61 = vsel %vm928_vm2, %v12533_v58, 0.0  ;;  %v6230_v20 = vsel %vm928_vm2, %v12545_v50, 0.0  ;;  %v6227_v14 = vsel %vm928_vm2, %v12539_v60, 0.0  ;;  %v6233_v59 = vsel %vm928_vm2, %v12551_v38, 0.0  ;;  %s13938_s20 = sld [smem:[#allocation56_spill]] }
0x168a   : > { %6225 = vadd.xlane.f32.xlu0 %v6224_v61  ;;  %6231 = vadd.xlane.f32.xlu1 %v6230_v20  ;;  %v6236_v2 = vsel %vm928_vm2, %v12557_v63, 0.0  ;;  %v6239_v33 = vsel %vm928_vm2, %v12563_v6, 0.0  ;;  %v6242_v0 = vsel %vm928_vm2, %v12569_v3, 0.0  ;;  %v6245_v43 = vsel %vm928_vm2, %v12575_v40, 0.0  ;;  %s13943_s26 = sld [smem:[#allocation61_spill]] }
0x168b   : > { %v6260_v55 = vsel %vm928_vm2, %v12605_v48, 0.0  ;;  %v6263_v32 = vsel %vm928_vm2, %v12611_v35, 0.0  ;;  %v6248_v13 = vsel %vm928_vm2, %v12581_v62, 0.0  ;;  %v6251_v34 = vsel %vm928_vm2, %v12587_v45, 0.0  ;;  %s13944_s29 = sld [smem:[#allocation62_spill]] }
0x168c   : > { %v6266_v10 = vsel %vm928_vm2, %v12617_v15, 0.0  ;;  %v6269_v46 = vsel %vm928_vm2, %v12623_v24, 0.0  ;;  %v6254_v4 = vsel %vm928_vm2, %v12593_v51, 0.0  ;;  %v6257_v8 = vsel %vm928_vm2, %v12599_v28, 0.0 }
0x168d   : > { %v6272_v12 = vsel %vm928_vm2, %v12629_v23, 0.0  ;;  %v6275_v30 = vsel %vm928_vm2, %v12635_v25, 0.0  ;;  %v6278_v57 = vsel %vm928_vm2, %v12641_v16, 0.0  ;;  %v6281_v17 = vsel %vm928_vm2, %v12647_v1, 0.0 }
0x168e   : > { %6228 = vadd.xlane.f32.xlu0 %v6227_v14  ;;  %6234 = vadd.xlane.f32.xlu1 %v6233_v59  ;;  %v6284_v9 = vsel %vm989_vm4, %v12653_v29, 0.0  ;;  %vm9673_vm1 = vmmov 0  }
0x1692   : > { %6237 = vadd.xlane.f32.xlu0 %v6236_v2  ;;  %6240 = vadd.xlane.f32.xlu1 %v6239_v33 }
0x1696   : > { %6243 = vadd.xlane.f32.xlu0 %v6242_v0  ;;  %6246 = vadd.xlane.f32.xlu1 %v6245_v43 }
0x169a   : > { %6261 = vadd.xlane.f32.xlu0 %v6260_v55  ;;  %6264 = vadd.xlane.f32.xlu1 %v6263_v32 }
0x169e   : > { %6249 = vadd.xlane.f32.xlu0 %v6248_v13  ;;  %6252 = vadd.xlane.f32.xlu1 %v6251_v34 }
0x16a2   : > { %6267 = vadd.xlane.f32.xlu0 %v6266_v10  ;;  %6270 = vadd.xlane.f32.xlu1 %v6269_v46 }
0x16a6   : > { %6255 = vadd.xlane.f32.xlu0 %v6254_v4  ;;  %6258 = vadd.xlane.f32.xlu1 %v6257_v8 }
0x16aa   : > { %6273 = vadd.xlane.f32.xlu0 %v6272_v12  ;;  %6276 = vadd.xlane.f32.xlu1 %v6275_v30 }
0x16ae   : > { %6279 = vadd.xlane.f32.xlu0 %v6278_v57  ;;  %6282 = vadd.xlane.f32.xlu1 %v6281_v17 }
0x16b2   : > { %6285 = vadd.xlane.f32.xlu0 %v6284_v9 }
0x1713   : > { %v6226_v19 = vpop.xlane.xlu0 %6225  ;;  %v6232_v39 = vpop.xlane.xlu1 %6231 }
0x1714   : > { %v6287_v41 = vmul.f32 0.03125, %v6226_v19  ;;  %v6289_v53 = vmul.f32 0.03125, %v6232_v39 }
0x1716   : > { %v12701_v52 = vsub.f32 %v12533_v58, %v6287_v41  ;;  %v12704_v18 = vsub.f32 %v12545_v50, %v6289_v53 }
0x1717   : > { %v6229_v5 = vpop.xlane.xlu0 %6228  ;;  %v6235_v22 = vpop.xlane.xlu1 %6234 }
0x1718   : > { %v6288_v54 = vmul.f32 0.03125, %v6229_v5  ;;  %v6290_v56 = vmul.f32 0.03125, %v6235_v22  ;;  %v6329_v21 = vmul.f32 %v12701_v52, %v12701_v52  ;;  %v6331_v11 = vmul.f32 %v12704_v18, %v12704_v18 }
0x171a   : > { %v12711_v26 = vsub.f32 %v12539_v60, %v6288_v54  ;;  %v12714_v36 = vsub.f32 %v12551_v38, %v6290_v56  ;;  %v6350_v58 = vsel %vm928_vm2, %v6329_v21, 0.0  ;;  %v6356_v7 = vsel %vm928_vm2, %v6331_v11, 0.0 }
0x171b   : > { %6351 = vadd.xlane.f32.xlu1 %v6350_v58  ;;  %v6238_v50 = vpop.xlane.xlu0 %6237  ;;  %v6241_v31 = vpop.xlane.xlu1 %6240 }
0x171c   : > { %v6291_v27 = vmul.f32 0.03125, %v6238_v50  ;;  %v6292_v37 = vmul.f32 0.03125, %v6241_v31  ;;  %v6330_v42 = vmul.f32 %v12711_v26, %v12711_v26  ;;  %v6332_v44 = vmul.f32 %v12714_v36, %v12714_v36 }
0x171e   : > { %v12723_v60 = vsub.f32 %v12557_v63, %v6291_v27  ;;  %v12726_v38 = vsub.f32 %v12563_v6, %v6292_v37  ;;  %v6353_v49 = vsel %vm928_vm2, %v6330_v42, 0.0  ;;  %v6359_v20 = vsel %vm928_vm2, %v6332_v44, 0.0 }
0x171f   : > { %6357 = vadd.xlane.f32.xlu1 %v6356_v7  ;;  %6354 = vadd.xlane.f32.xlu0 %v6353_v49  ;;  %v6244_v47 = vpop.xlane.xlu0 %6243  ;;  %v6247_v61 = vpop.xlane.xlu1 %6246 }
0x1720   : > { %v6293_v14 = vmul.f32 0.03125, %v6244_v47  ;;  %v6294_v59 = vmul.f32 0.03125, %v6247_v61  ;;  %v6333_v2 = vmul.f32 %v12723_v60, %v12723_v60  ;;  %v6334_v63 = vmul.f32 %v12726_v38, %v12726_v38 }
0x1722   : > { %v12735_v33 = vsub.f32 %v12569_v3, %v6293_v14  ;;  %v12738_v6 = vsub.f32 %v12575_v40, %v6294_v59  ;;  %v6362_v0 = vsel %vm928_vm2, %v6333_v2, 0.0  ;;  %v6365_v32 = vsel %vm928_vm2, %v6334_v63, 0.0 }
0x1723   : > { %6360 = vadd.xlane.f32.xlu0 %v6359_v20  ;;  %6363 = vadd.xlane.f32.xlu1 %v6362_v0  ;;  %v6262_v43 = vpop.xlane.xlu0 %6261  ;;  %v6265_v55 = vpop.xlane.xlu1 %6264 }
0x1724   : > { %v6299_v13 = vmul.f32 0.03125, %v6262_v43  ;;  %v6300_v34 = vmul.f32 0.03125, %v6265_v55  ;;  %v6335_v10 = vmul.f32 %v12735_v33, %v12735_v33  ;;  %v6336_v3 = vmul.f32 %v12738_v6, %v12738_v6 }
0x1726   : > { %v12747_v46 = vsub.f32 %v12605_v48, %v6299_v13  ;;  %v12750_v40 = vsub.f32 %v12611_v35, %v6300_v34  ;;  %v6368_v4 = vsel %vm928_vm2, %v6335_v10, 0.0  ;;  %v6371_v30 = vsel %vm928_vm2, %v6336_v3, 0.0 }
0x1727   : > { %6366 = vadd.xlane.f32.xlu0 %v6365_v32  ;;  %6369 = vadd.xlane.f32.xlu1 %v6368_v4  ;;  %v6250_v8 = vpop.xlane.xlu0 %6249  ;;  %v6253_v12 = vpop.xlane.xlu1 %6252 }
0x1728   : > { %v6295_v57 = vmul.f32 0.03125, %v6250_v8  ;;  %v6296_v17 = vmul.f32 0.03125, %v6253_v12  ;;  %v6341_v9 = vmul.f32 %v12747_v46, %v12747_v46  ;;  %v6342_v48 = vmul.f32 %v12750_v40, %v12750_v40  ;;  %v9423_v8 = vld [vmem:[%s13786_s16 + $0x8] sm:$0xff]  }
0x172a   : > { %v12759_v19 = vsub.f32 %v12581_v62, %v6295_v57  ;;  %v12762_v35 = vsub.f32 %v12587_v45, %v6296_v17  ;;  %v6386_v39 = vsel %vm928_vm2, %v6341_v9, 0.0  ;;  %v6389_v5 = vsel %vm928_vm2, %v6342_v48, 0.0  ;;  %v9424_v48 = vld [vmem:[%s13786_s16] sm:$0xff]  }
0x172b   : > { %6372 = vadd.xlane.f32.xlu0 %v6371_v30  ;;  %6387 = vadd.xlane.f32.xlu1 %v6386_v39  ;;  %v6268_v41 = vpop.xlane.xlu0 %6267  ;;  %v6271_v53 = vpop.xlane.xlu1 %6270 }
0x172c   : > { %v6301_v22 = vmul.f32 0.03125, %v6268_v41  ;;  %v6302_v54 = vmul.f32 0.03125, %v6271_v53  ;;  %v6337_v56 = vmul.f32 %v12759_v19, %v12759_v19  ;;  %v6338_v62 = vmul.f32 %v12762_v35, %v12762_v35  ;;  %v12843_v53 = vld [vmem:[%s13938_s20] sm:$0xff] }
0x172d   : > { %vm7038_vm3 = vcmp.ge.s32.totalorder %v12843_v53, 0 }
0x172e   : > { %v12771_v21 = vsub.f32 %v12617_v15, %v6301_v22  ;;  %v12774_v45 = vsub.f32 %v12623_v24, %v6302_v54  ;;  %v6374_v11 = vsel %vm928_vm2, %v6337_v56, 0.0  ;;  %v6377_v31 = vsel %vm928_vm2, %v6338_v62, 0.0  ;;  %v12858_v56 = vld [vmem:[%s13938_s20 + $0x18] sm:$0xff]  ;;  %v12863_v62 = vld [vmem:[%s13938_s20 + $0x8] sm:$0xff] }
0x172f   : > { %6390 = vadd.xlane.f32.xlu0 %v6389_v5  ;;  %6375 = vadd.xlane.f32.xlu1 %v6374_v11  ;;  %v6256_v58 = vpop.xlane.xlu0 %6255  ;;  %v6259_v50 = vpop.xlane.xlu1 %6258  ;;  %v12849_v5 = vld [vmem:[%s13938_s20 + $0x10] sm:$0xff]  ;;  %v9674_v22 = vmov 0   ;;  %v7059_v54 = vsel %vm7038_vm3, %v12843_v53, 0  ;;  %vm7041_vm5 = vcmp.ge.s32.totalorder %v12858_v56, 0  ;;  %vm7039_vm6 = vcmp.ge.s32.totalorder %v12863_v62, 0 }
0x1730   : > { %v6297_v7 = vmul.f32 0.03125, %v6256_v58  ;;  %v6298_v27 = vmul.f32 0.03125, %v6259_v50  ;;  %v6343_v37 = vmul.f32 %v12771_v21, %v12771_v21  ;;  %v6344_v15 = vmul.f32 %v12774_v45, %v12774_v45  ;;  %9421 = vset.pattern.permute.xlu1 %v9674_v22  ;;  %9422 = vset.pattern.permute.xlu0 %v9674_v22  ;;  %v12872_v58 = vld [vmem:[%s13938_s20 + $0x20] sm:$0xff] }
0x1731   : > { %v7060_v50 = vsel %vm7039_vm6, %v12863_v62, 0  ;;  %vm7042_vm7 = vcmp.ge.s32.totalorder %v12872_v58, 0 }
0x1732   : > { %v12783_v42 = vsub.f32 %v12593_v51, %v6297_v7  ;;  %v12786_v24 = vsub.f32 %v12599_v28, %v6298_v27  ;;  %v6392_v44 = vsel %vm928_vm2, %v6343_v37, 0.0  ;;  %v6395_v61 = vsel %vm928_vm2, %v6344_v15, 0.0  ;;  %v12890_v27 = vld [vmem:[%s13938_s20 + $0x28] sm:$0xff]  ;;  %v12896_v37 = vld [vmem:[%s13938_s20 + $0x60] sm:$0xff] }
0x1733   : > { %6378 = vadd.xlane.f32.xlu0 %v6377_v31  ;;  %6393 = vadd.xlane.f32.xlu1 %v6392_v44  ;;  %v6274_v49 = vpop.xlane.xlu0 %6273  ;;  %v6277_v47 = vpop.xlane.xlu1 %6276  ;;  %v12881_v31 = vld [vmem:[%s13938_s20 + $0x50] sm:$0xff]  ;;  %v7062_v7 = vsel %vm7041_vm5, %v12858_v56, 0  ;;  %v7063_v44 = vsel %vm7042_vm7, %v12872_v58, 0  ;;  %vm7043_vm9 = vcmp.ge.s32.totalorder %v12890_v27, 0  ;;  %vm13811_vm10 = vcmp.ge.s32.totalorder %v12896_v37, 0 }
0x1734   : > { %v6303_v20 = vmul.f32 0.03125, %v6274_v49  ;;  %v6304_v14 = vmul.f32 0.03125, %v6277_v47  ;;  %v6339_v59 = vmul.f32 %v12783_v42, %v12783_v42  ;;  %v6340_v51 = vmul.f32 %v12786_v24, %v12786_v24  ;;  %v12909_v49 = vld [vmem:[%s13938_s20 + $0x70] sm:$0xff] }
0x1735   : > { %vm13834_vm8 = vcmp.ge.s32.totalorder %v12881_v31, 0  ;;  %v12914_v47 = vld [vmem:[%s13938_s20 + $0x30] sm:$0xff]  ;;  %vm13810_vm11 = vcmp.ge.s32.totalorder %v12909_v49, 0 }
0x1736   : > { %v12795_v2 = vsub.f32 %v12629_v23, %v6303_v20  ;;  %v12798_v28 = vsub.f32 %v12635_v25, %v6304_v14  ;;  %v6380_v63 = vsel %vm928_vm2, %v6339_v59, 0.0  ;;  %v6383_v55 = vsel %vm928_vm2, %v6340_v51, 0.0  ;;  %v12922_v20 = vld [vmem:[%s13938_s20 + $0x80] sm:$0xff]  ;;  %v12935_v51 = vld [vmem:[%s13938_s20 + $0x38] sm:$0xff] }
0x1737   : > { %6396 = vadd.xlane.f32.xlu0 %v6395_v61  ;;  %6381 = vadd.xlane.f32.xlu1 %v6380_v63  ;;  %v6280_v0 = vpop.xlane.xlu0 %6279  ;;  %v6283_v43 = vpop.xlane.xlu1 %6282  ;;  %v7069_v15 = vsel %vm13834_vm8, %v12881_v31, 0  ;;  %v7071_v61 = vsel %vm13811_vm10, %v12896_v37, 0  ;;  %13939 = vst [vmem:[#allocation37_spill] sm:$0xff] %v12922_v20  ;;  %v7064_v14 = vsel %vm7043_vm9, %v12890_v27, 0  ;;  %vm7044_vm12 = vcmp.ge.s32.totalorder %v12914_v47, 0  ;;  %v12941_v63 = vld [vmem:[%s13938_s20 + $0x90] sm:$0xff] }
0x1738   : > { %v6305_v32 = vmul.f32 0.03125, %v6280_v0  ;;  %v6306_v13 = vmul.f32 0.03125, %v6283_v43  ;;  %v6345_v34 = vmul.f32 %v12795_v2, %v12795_v2  ;;  %v6346_v23 = vmul.f32 %v12798_v28, %v12798_v28  ;;  %13940 = vst [vmem:[#allocation38_spill] sm:$0xff] %v12941_v63 }
0x1739   : > { %v7073_v59 = vsel %vm13810_vm11, %v12909_v49, 0  ;;  %vm13808_vm13 = vcmp.ge.s32.totalorder %v12922_v20, 0  ;;  %v7065_v0 = vsel %vm7044_vm12, %v12914_v47, 0  ;;  %vm7045_vm14 = vcmp.ge.s32.totalorder %v12935_v51, 0 }
0x173a   : > { %v12807_v10 = vsub.f32 %v12641_v16, %v6305_v32  ;;  %v12810_v25 = vsub.f32 %v12647_v1, %v6306_v13  ;;  %v6398_v3 = vsel %vm928_vm2, %v6345_v34, 0.0  ;;  %v6401_v30 = vsel %vm928_vm2, %v6346_v23, 0.0  ;;  %v12966_v34 = vld [vmem:[%s13938_s20 + $0x48] sm:$0xff] }
0x173b   : > { %6384 = vadd.xlane.f32.xlu0 %v6383_v55  ;;  %6399 = vadd.xlane.f32.xlu1 %v6398_v3  ;;  %v6286_v4 = vpop.xlane.xlu0 %6285  ;;  %v13815_v1 = vmov 0.0   ;;  %v7075_v43 = vsel %vm13808_vm13, %v12922_v20, 0  ;;  %v12953_v55 = vld [vmem:[%s13938_s20 + $0x40] sm:$0xff]  ;;  %vm13809_vm15 = vcmp.ge.s32.totalorder %v12941_v63, 0  ;;  %v7066_v32 = vsel %vm7045_vm14, %v12935_v51, 0  ;;  %v12975_v3 = vld [vmem:[%s13938_s20 + $0x58] sm:$0xff] }
0x173c   : > { %v6307_v12 = vmul.f32 0.03125, %v6286_v4  ;;  %v6347_v57 = vmul.f32 %v12807_v10, %v12807_v10  ;;  %v6348_v16 = vmul.f32 %v12810_v25, %v12810_v25  ;;  %8738 = vmatprep.subr.bf16.mxu0 %v13815_v1  ;;  %8786 = vmatprep.subr.bf16.mxu1 %v13815_v1  ;;  %vm13842_vm0 = vcmp.ge.s32.totalorder %v12953_v55, 0 }
0x173d   : > { %8739 = vmatpush3.bf16.msra.mxu0 %v9423_v8  ;;  %8788 = vmatpush3.bf16.msra.mxu1 %v9423_v8  ;;  %v7077_v13 = vsel %vm13809_vm15, %v12941_v63, 0  ;;  %v7067_v23 = vsel %vm13842_vm0, %v12953_v55, 0  ;;  %vm13841_vm13 = vcmp.ge.s32.totalorder %v12966_v34, 0  ;;  %vm13812_vm15 = vcmp.ge.s32.totalorder %v12975_v3, 0  ;;  %v12984_v8 = vld [vmem:[%s13938_s20 + $0x68] sm:$0xff] }
0x173e   : > { %v12824_v17 = vsub.f32 %v12653_v29, %v6307_v12  ;;  %v6404_v9 = vsel %vm928_vm2, %v6347_v57, 0.0  ;;  %8740 = vmatprep.subr.bf16.mxu0 %v13815_v1  ;;  %8787 = vmatprep.subr.bf16.mxu1 %v13815_v1  ;;  %v6407_v39 = vsel %vm928_vm2, %v6348_v16, 0.0  ;;  %v7068_v4 = vsel %vm13841_vm13, %v12966_v34, 0  ;;  %v13002_v16 = vld [vmem:[%s13938_s20 + $0x88] sm:$0xff] }
0x173f   : > { %6402 = vadd.xlane.f32.xlu0 %v6401_v30  ;;  %6405 = vadd.xlane.f32.xlu1 %v6404_v9  ;;  %v7070_v12 = vsel %vm13812_vm15, %v12975_v3, 0  ;;  %vm13828_vm11 = vcmp.ge.s32.totalorder %v12984_v8, 0  ;;  %v12993_v30 = vld [vmem:[%s13938_s20 + $0x78] sm:$0xff]  ;;  %13942 = vst [vmem:[#allocation40_spill] sm:$0xff] %v13002_v16  ;;  %vm13813_vm15 = vcmp.ge.s32.totalorder %v13002_v16, 0 }
0x1740   : > { %v6349_v41 = vmul.f32 %v12824_v17, %v12824_v17  ;;  %8742 = vmatprep.mubr.msk.bf16.mxu0 %vm9673_vm1, %v13815_v1  ;;  %8766 = vmatprep.mubr.msk.bf16.mxu1 %vm9673_vm1, %v13815_v1  ;;  %13941 = vst [vmem:[#allocation39_spill] sm:$0xff] %v12993_v30  ;;  %v7072_v57 = vsel %vm13828_vm11, %v12984_v8, 0  ;;  %vm13814_vm10 = vcmp.ge.s32.totalorder %v12993_v30, 0 }
0x1741   : > { %8741 = vmatpush3.bf16.msra.mxu0 %v9424_v48  ;;  %8789 = vmatpush3.bf16.msra.mxu1 %v9424_v48  ;;  %v7074_v9 = vsel %vm13814_vm10, %v12993_v30, 0  ;;  %v7076_v48 = vsel %vm13813_vm15, %v13002_v16, 0 }
0x1742   : > { %v6410_v29 = vsel %vm989_vm4, %v6349_v41, 0.0  ;;  %vm7040_vm4 = vcmp.ge.s32.totalorder %v12849_v5, 0 }
0x1743   : > { %6408 = vadd.xlane.f32.xlu0 %v6407_v39  ;;  %6411 = vadd.xlane.f32.xlu1 %v6410_v29  ;;  %v7061_v11 = vsel %vm7040_vm4, %v12849_v5, 0 }
0x1754   : > { %7081 = vperm.xlu1 %9421, %v7059_v54  }
0x1758   : > { %7087 = vperm.xlu1 %9421, %v7061_v11  }
0x1759   : > { %7084 = vperm.xlu0 %9422, %v7060_v50  }
0x175c   : > { %7090 = vperm.xlu1 %9421, %v7062_v7  }
0x175d   : > { %7111 = vperm.xlu0 %9422, %v7069_v15  }
0x1760   : > { %7093 = vperm.xlu1 %9421, %v7063_v44  }
0x1761   : > { %7117 = vperm.xlu0 %9422, %v7071_v61  }
0x1764   : > { %7096 = vperm.xlu1 %9421, %v7064_v14  }
0x1765   : > { %7123 = vperm.xlu0 %9422, %v7073_v59  }
0x1768   : > { %7099 = vperm.xlu1 %9421, %v7065_v0  }
0x1769   : > { %7129 = vperm.xlu0 %9422, %v7075_v43  }
0x176c   : > { %7102 = vperm.xlu1 %9421, %v7066_v32  }
0x176d   : > { %7135 = vperm.xlu0 %9422, %v7077_v13  }
0x1770   : > { %7105 = vperm.xlu1 %9421, %v7067_v23  }
0x1774   : > { %7108 = vperm.xlu1 %9421, %v7068_v4  }
0x1778   : > { %7114 = vperm.xlu1 %9421, %v7070_v12  }
0x177c   : > { %7120 = vperm.xlu1 %9421, %v7072_v57  }
0x1780   : > { %7126 = vperm.xlu1 %9421, %v7074_v9  }
0x1784   : > { %7132 = vperm.xlu1 %9421, %v7076_v48  }
0x17a4   : > { %v6352_v39 = vpop.xlane.xlu1 %6351 }
0x17a5   : > { %v6413_v41 = vmul.f32 0.03125, %v6352_v39 }
0x17a7   : > { %v6434_v29 = vadd.f32 1e-05, %v6413_v41 }
0x17a8   : > { %v6358_v22 = vpop.xlane.xlu1 %6357  ;;  %v6355_v54 = vpop.xlane.xlu0 %6354 }
0x17a9   : > { %9425 = vrsqrt.f32 %v6434_v29  ;;  %v6415_v11 = vmul.f32 0.03125, %v6358_v22  ;;  %v6414_v50 = vmul.f32 0.03125, %v6355_v54 }
0x17ab   : > { %v6435_v7 = vadd.f32 1e-05, %v6414_v50  ;;  %v6436_v15 = vadd.f32 1e-05, %v6415_v11 }
0x17ac   : > { %v6364_v44 = vpop.xlane.xlu1 %6363  ;;  %v6361_v61 = vpop.xlane.xlu0 %6360 }
0x17ad   : > { %v6416_v14 = vmul.f32 0.03125, %v6361_v61  ;;  %9427 = vrsqrt.f32 %v6435_v7  ;;  %v6417_v59 = vmul.f32 0.03125, %v6364_v44 }
0x17ae   : > { %9429 = vrsqrt.f32 %v6436_v15  ;;  %v13015_v15 = vld [vmem:[%s13784_s14] ss:$0 sm:$0xff] }
0x17af   : > { %v6437_v0 = vadd.f32 1e-05, %v6416_v14  ;;  %v6438_v23 = vadd.f32 1e-05, %v6417_v59 }
0x17b0   : > { %v6370_v43 = vpop.xlane.xlu1 %6369  ;;  %v6367_v32 = vpop.xlane.xlu0 %6366 }
0x17b1   : > { %v6418_v13 = vmul.f32 0.03125, %v6367_v32  ;;  %9431 = vrsqrt.f32 %v6437_v0  ;;  %v6419_v41 = vmul.f32 0.03125, %v6370_v43 }
0x17b3   : > { %v6439_v4 = vadd.f32 1e-05, %v6418_v13  ;;  %v6440_v61 = vadd.f32 1e-05, %v6419_v41 }
0x17b4   : > { %v6388_v12 = vpop.xlane.xlu1 %6387  ;;  %v6373_v57 = vpop.xlane.xlu0 %6372 }
0x17b5   : > { %v6425_v9 = vmul.f32 0.03125, %v6388_v12  ;;  %v6420_v48 = vmul.f32 0.03125, %v6373_v57  ;;  %9433 = vrsqrt.f32 %v6439_v4  ;;  %v13022_v4 = vld [vmem:[%s13943_s26] ss:$0 sm:$0xff] }
0x17b6   : > { %v9426_v39 = vpop.eup %9425  ;;  %9435 = vrsqrt.f32 %v6438_v23 }
0x17b7   : > { %v6446_v29 = vadd.f32 1e-05, %v6425_v9  ;;  %v6476_v11 = vmul.f32 %v9426_v39, %v12701_v52  ;;  %v6441_v50 = vadd.f32 1e-05, %v6420_v48 }
0x17b8   : > { %v6376_v22 = vpop.xlane.xlu1 %6375  ;;  %v6391_v54 = vpop.xlane.xlu0 %6390 }
0x17b9   : > { %9437 = vrsqrt.f32 %v6446_v29  ;;  %v6426_v7 = vmul.f32 0.03125, %v6391_v54  ;;  %v6503_v32 = vmul.f32 %v13015_v15, %v6476_v11  ;;  %v6421_v9 = vmul.f32 0.03125, %v6376_v22 }
0x17ba   : > { %v9428_v44 = vpop.eup %9427  ;;  %9439 = vrsqrt.f32 %v6441_v50 }
0x17bb   : > { %v6447_v14 = vadd.f32 1e-05, %v6426_v7  ;;  %v6477_v43 = vmul.f32 %v9428_v44, %v12711_v26  ;;  %v9430_v13 = vpop.eup %9429  ;;  %v6530_v41 = vadd.f32 %v13022_v4, %v6503_v32 }
0x17bc   : > { %v6394_v59 = vpop.xlane.xlu1 %6393  ;;  %v6379_v0 = vpop.xlane.xlu0 %6378  ;;  %v6478_v54 = vmul.f32 %v9430_v13, %v12704_v18 }
0x17bd   : > { %v6427_v52 = vmul.f32 0.03125, %v6394_v59  ;;  %v6422_v23 = vmul.f32 0.03125, %v6379_v0  ;;  %9441 = vrsqrt.f32 %v6447_v14  ;;  %v6504_v12 = vmul.f32 %v13015_v15, %v6477_v43 }
0x17be   : > { %v9432_v57 = vpop.eup %9431  ;;  %9443 = vrsqrt.f32 %v6440_v61  ;;  %v6442_v61 = vadd.f32 1e-05, %v6421_v9 }
0x17bf   : > { %v6448_v48 = vadd.f32 1e-05, %v6427_v52  ;;  %v6531_v29 = vadd.f32 %v13022_v4, %v6504_v12  ;;  %v6479_v11 = vmul.f32 %v9432_v57, %v12714_v36  ;;  %v6443_v50 = vadd.f32 1e-05, %v6422_v23 }
0x17c0   : > { %v6382_v39 = vpop.xlane.xlu1 %6381  ;;  %v6397_v26 = vpop.xlane.xlu0 %6396  ;;  %v6505_v52 = vmul.f32 %v13015_v15, %v6478_v54 }
0x17c1   : > { %9445 = vrsqrt.f32 %v6448_v48  ;;  %v6428_v7 = vmul.f32 0.03125, %v6397_v26  ;;  %v6551_v44 = vpack.c.bf16 %v6531_v29, %v6530_v41  ;;  %v6506_v14 = vmul.f32 %v13015_v15, %v6479_v11 }
0x17c2   : > { %v9434_v59 = vpop.eup %9433  ;;  %9447 = vrsqrt.f32 %v6443_v50  ;;  %v6423_v57 = vmul.f32 0.03125, %v6382_v39  ;;  %v6532_v29 = vadd.f32 %v13022_v4, %v6505_v52 }
0x17c3   : > { %v6449_v22 = vadd.f32 1e-05, %v6428_v7  ;;  %v9436_v0 = vpop.eup %9435  ;;  %8743 = vmatmul.mubr.msk.bf16.vlgmr.msra.gmra.mxu0 %vm928_vm2, %v6551_v44  ;;  %v6481_v18 = vmul.f32 %v9434_v59, %v12726_v38  ;;  %v6533_v12 = vadd.f32 %v13022_v4, %v6506_v14 }
0x17c4   : > { %v6400_v43 = vpop.xlane.xlu1 %6399  ;;  %v6385_v32 = vpop.xlane.xlu0 %6384  ;;  %8746 = vmatprep.mubr.msk.bf16.mxu0 %vm9673_vm1, %v13815_v1  ;;  %v6480_v48 = vmul.f32 %v9436_v0, %v12723_v60 }
0x17c5   : > { %v6429_v36 = vmul.f32 0.03125, %v6400_v43  ;;  %v6424_v13 = vmul.f32 0.03125, %v6385_v32  ;;  %9449 = vrsqrt.f32 %v6449_v22  ;;  %v6508_v38 = vmul.f32 %v13015_v15, %v6481_v18 }
0x17c6   : > { %v9438_v23 = vpop.eup %9437  ;;  %9451 = vrsqrt.f32 %v6442_v61  ;;  %v6552_v59 = vpack.c.bf16 %v6533_v12, %v6532_v29  ;;  %v6444_v61 = vadd.f32 1e-05, %v6423_v57  ;;  %v6507_v22 = vmul.f32 %v13015_v15, %v6480_v48 }
0x17c7   : > { %v6450_v9 = vadd.f32 1e-05, %v6429_v36  ;;  %v6488_v54 = vmul.f32 %v9438_v23, %v12747_v46  ;;  %v6445_v11 = vadd.f32 1e-05, %v6424_v13  ;;  %v9440_v44 = vpop.eup %9439  ;;  %v6535_v36 = vadd.f32 %v13022_v4, %v6508_v38 }
0x17c8   : > { %v6406_v26 = vpop.xlane.xlu1 %6405  ;;  %v6403_v41 = vpop.xlane.xlu0 %6402  ;;  %v6483_v57 = vmul.f32 %v9440_v44, %v12738_v6 }
0x17c9   : > { %9453 = vrsqrt.f32 %v6450_v9  ;;  %v6431_v50 = vmul.f32 0.03125, %v6406_v26  ;;  %v6430_v7 = vmul.f32 0.03125, %v6403_v41  ;;  %v6515_v46 = vmul.f32 %v13015_v15, %v6488_v54 }
0x17ca   : > { %v9442_v14 = vpop.eup %9441  ;;  %9455 = vrsqrt.f32 %v6445_v11  ;;  %v6510_v6 = vmul.f32 %v13015_v15, %v6483_v57 }
0x17cb   : > { %v6451_v39 = vadd.f32 1e-05, %v6430_v7  ;;  %v9444_v60 = vpop.eup %9443  ;;  %v6452_v0 = vadd.f32 1e-05, %v6431_v50  ;;  %8747 = vmatmul.mubr.msk.bf16.gmra.mxu0 %vm928_vm2, %v6552_v59  ;;  %v6489_v52 = vmul.f32 %v9442_v14, %v12750_v40  ;;  %v6534_v40 = vadd.f32 %v13022_v4, %v6507_v22 }
0x17cc   : > { %v6412_v43 = vpop.xlane.xlu1 %6411  ;;  %v6409_v32 = vpop.xlane.xlu0 %6408  ;;  %8750 = vmatprep.mubr.msk.bf16.mxu0 %vm9673_vm1, %v13815_v1  ;;  %v6482_v48 = vmul.f32 %v9444_v60, %v12735_v33  ;;  %v6542_v26 = vadd.f32 %v13022_v4, %v6515_v46 }
0x17cd   : > { %v6432_v18 = vmul.f32 0.03125, %v6409_v32  ;;  %9457 = vrsqrt.f32 %v6451_v39  ;;  %v6433_v23 = vmul.f32 0.03125, %v6412_v43  ;;  %v6516_v12 = vmul.f32 %v13015_v15, %v6489_v52 }
0x17ce   : > { %v9446_v13 = vpop.eup %9445  ;;  %9459 = vrsqrt.f32 %v6444_v61  ;;  %v6553_v38 = vpack.c.bf16 %v6535_v36, %v6534_v40  ;;  %v6509_v33 = vmul.f32 %v13015_v15, %v6482_v48  ;;  %v6537_v61 = vadd.f32 %v13022_v4, %v6510_v6 }
0x17cf   : > { %v6453_v9 = vadd.f32 1e-05, %v6432_v18  ;;  %9461 = vrsqrt.f32 %v6452_v0  ;;  %v6543_v41 = vadd.f32 %v13022_v4, %v6516_v12  ;;  %v6490_v29 = vmul.f32 %v9446_v13, %v12771_v21  ;;  %v9448_v54 = vpop.eup %9447 }
0x17d0   : > { %v6454_v11 = vadd.f32 1e-05, %v6433_v23  ;;  %v6485_v22 = vmul.f32 %v9448_v54, %v12762_v35 }
0x17d1   : > { %9463 = vrsqrt.f32 %v6453_v9  ;;  %v6557_v50 = vpack.c.bf16 %v6543_v41, %v6542_v26  ;;  %v6517_v14 = vmul.f32 %v13015_v15, %v6490_v29 }
0x17d2   : > { %v9450_v7 = vpop.eup %9449  ;;  %9465 = vrsqrt.f32 %v6454_v11  ;;  %v6512_v36 = vmul.f32 %v13015_v15, %v6485_v22 }
0x17d3   : > { %v9452_v44 = vpop.eup %9451  ;;  %8751 = vmatmul.mubr.msk.bf16.gmra.mxu0 %vm928_vm2, %v6553_v38  ;;  %8767 = vmatmul.mubr.msk.bf16.vlgmr.msra.gmra.mxu1 %vm928_vm2, %v6557_v50  ;;  %v6491_v59 = vmul.f32 %v9450_v7, %v12774_v45  ;;  %v6536_v45 = vadd.f32 %v13022_v4, %v6509_v33  ;;  %v6544_v0 = vadd.f32 %v13022_v4, %v6517_v14 }
0x17d4   : > { %8754 = vmatprep.mubr.msk.bf16.mxu0 %vm9673_vm1, %v13815_v1  ;;  %8770 = vmatprep.mubr.msk.bf16.mxu1 %vm9673_vm1, %v13815_v1  ;;  %v6484_v60 = vmul.f32 %v9452_v44, %v12759_v19 }
0x17d5   : > { %v6518_v39 = vmul.f32 %v13015_v15, %v6491_v59  ;;  %v6554_v46 = vpack.c.bf16 %v6537_v61, %v6536_v45 }
0x17d6   : > { %v9454_v21 = vpop.eup %9453  ;;  %v6511_v23 = vmul.f32 %v13015_v15, %v6484_v60 }
0x17d7   : > { %v6545_v43 = vadd.f32 %v13022_v4, %v6518_v39  ;;  %v6492_v32 = vmul.f32 %v9454_v21, %v12795_v2  ;;  %v9456_v52 = vpop.eup %9455  ;;  %v6539_v2 = vadd.f32 %v13022_v4, %v6512_v36 }
0x17d8   : > { %v6487_v40 = vmul.f32 %v9456_v52, %v12786_v24  ;;  %v6538_v26 = vadd.f32 %v13022_v4, %v6511_v23  ;;  %v6780_v52 = vlaneseq }
0x17d9   : > { %v6558_v18 = vpack.c.bf16 %v6545_v43, %v6544_v0  ;;  %v6519_v35 = vmul.f32 %v13015_v15, %v6492_v32 }
0x17da   : > { %v9458_v13 = vpop.eup %9457  ;;  %v6555_v11 = vpack.c.bf16 %v6539_v2, %v6538_v26  ;;  %v6514_v6 = vmul.f32 %v13015_v15, %v6487_v40 }
0x17db   : > { %v9460_v12 = vpop.eup %9459  ;;  %8755 = vmatmul.mubr.msk.bf16.gmra.mxu0 %vm928_vm2, %v6554_v46  ;;  %8771 = vmatmul.mubr.msk.bf16.gmra.mxu1 %vm928_vm2, %v6558_v18  ;;  %v6493_v19 = vmul.f32 %v9458_v13, %v12798_v28  ;;  %v6546_v41 = vadd.f32 %v13022_v4, %v6519_v35  ;;  %v13127_v18 = vand.u32 127, %v6780_v52  ;;  %v13146_v35 = vpop.permute.xlu0 %7084 }
0x17dc   : > { %v9462_v57 = vpop.eup %9461  ;;  %8758 = vmatprep.mubr.msk.bf16.mxu0 %vm9673_vm1, %v13815_v1  ;;  %8774 = vmatprep.mubr.msk.bf16.mxu1 %vm9673_vm1, %v13815_v1  ;;  %v6486_v28 = vmul.f32 %v9460_v12, %v12783_v42 }
0x17dd   : > { %v6520_v9 = vmul.f32 %v13015_v15, %v6493_v19  ;;  %v6494_v38 = vmul.f32 %v9462_v57, %v12807_v10  ;;  %v6541_v10 = vadd.f32 %v13022_v4, %v6514_v6 }
0x17de   : > { %v9464_v48 = vpop.eup %9463  ;;  %v6513_v42 = vmul.f32 %v13015_v15, %v6486_v28 }
0x17df   : > { %v6547_v29 = vadd.f32 %v13022_v4, %v6520_v9  ;;  %v6495_v54 = vmul.f32 %v9464_v48, %v12810_v25  ;;  %v9466_v24 = vpop.eup %9465  ;;  %v6521_v44 = vmul.f32 %v13015_v15, %v6494_v38  ;;  %v13160_v26 = vpop.permute.xlu0 %7111 }
0x17e0   : > { %v6496_v33 = vmul.f32 %v9466_v24, %v12824_v17  ;;  %v6540_v59 = vadd.f32 %v13022_v4, %v6513_v42  ;;  %v13113_v17 = vpop.permute.xlu1 %7081 }
0x17e1   : > { %v6559_v50 = vpack.c.bf16 %v6547_v29, %v6546_v41  ;;  %v6522_v7 = vmul.f32 %v13015_v15, %v6495_v54  ;;  %v6548_v14 = vadd.f32 %v13022_v4, %v6521_v44  ;;  %vm7143_vm11 = vcmp.eq.s32.totalorder %v13127_v18, %v13113_v17 }
0x17e2   : > { %v6556_v21 = vpack.c.bf16 %v6541_v10, %v6540_v59  ;;  %v6523_v39 = vmul.f32 %v13015_v15, %v6496_v33 }
0x17e3   : > { %8759 = vmatmul.mubr.msk.bf16.gmra.mxu0 %vm928_vm2, %v6555_v11  ;;  %8775 = vmatmul.mubr.msk.bf16.gmra.mxu1 %vm928_vm2, %v6559_v50  ;;  %v6549_v25 = vadd.f32 %v13022_v4, %v6522_v7  ;;  %v7118_v50 = vpop.permute.xlu0 %7117 }
0x17e4   : > { %8762 = vmatprep.mubr.msk.bf16.mxu0 %vm9673_vm1, %v13815_v1  ;;  %8778 = vmatprep.mubr.msk.bf16.mxu1 %vm9673_vm1, %v13815_v1  ;;  %v6550_v22 = vadd.f32 %v13022_v4, %v6523_v39  ;;  %v13115_v45 = vpop.permute.xlu1 %7087  ;;  %v13132_v4 = vld [vmem:[%s13944_s29] ss:$0 sm:$0xff] }
0x17e5   : > { %v6560_v61 = vpack.c.bf16 %v6549_v25, %v6548_v14 }
0x17e6   : > { %v6561_v60 = vpack.c.bf16 %v6550_v22, %v6550_v22 }
0x17e8   : > { %v13117_v0 = vpop.permute.xlu1 %7090 }
0x17eb   : > { %8763 = vmatmul.mubr.msk.bf16.gmra.mxu0 %vm928_vm2, %v6556_v21  ;;  %8779 = vmatmul.mubr.msk.bf16.gmra.mxu1 %vm928_vm2, %v6560_v61 }
0x17ec   : > { %8782 = vmatprep.mubr.msk.bf16.mxu1 %vm9673_vm1, %v13815_v1  ;;  %v13119_v43 = vpop.permute.xlu1 %7093  ;;  %vm7155_vm1 = vcmp.eq.s32.totalorder %v13127_v18, %v7118_v50 }
0x17ed   : > { %vm7147_vm8 = vcmp.eq.s32.totalorder %v13127_v18, %v13119_v43 }
0x17f0   : > { %v13121_v15 = vpop.permute.xlu1 %7096 }
0x17f3   : > { %8783 = vmatmul.mubr.msk.bf16.gmra.mxu1 %vm928_vm2, %v6561_v60  ;;  %vm6782_vm2 = vcmp.lt.s32.totalorder %v13127_v18, 10  ;;  %v7124_v60 = vpop.permute.xlu0 %7123 }
0x17f4   : > { %v13123_v32 = vpop.permute.xlu1 %7099 }
0x17f8   : > { %v13125_v46 = vpop.permute.xlu1 %7102 }
0x17fc   : > { %v13134_v36 = vpop.permute.xlu1 %7105 }
0x17fd   : > { %vm7151_vm10 = vcmp.eq.s32.totalorder %v13127_v18, %v13134_v36 }
0x1800   : > { %v13152_v9 = vpop.permute.xlu1 %7108 }
0x1804   : > { %v13167_v38 = vpop.permute.xlu1 %7114 }
0x1808   : > { %v7121_v10 = vpop.permute.xlu1 %7120 }
0x1809   : > { %vm7156_vm15 = vcmp.eq.s32.totalorder %v13127_v18, %v7121_v10 }
0x1883   : > { %v6652_v13 = vpop.f32.mrf.mxu0 }
0x1884   : > { %v13138_v23 = vadd.f32 %v13132_v4, %v6652_v13 }
0x1885   : > { %v8744_v12 = vpop.f32.mrf.mxu0 }
0x1886   : > { %6738 = vst [vmem:[#allocation4] sm:$0xff] %v13138_v23  ;;  %v13144_v19 = vsel %vm6782_vm2, %v13138_v23, -1e+30 }
0x1887   : > { %6804 = vmax.xlane.f32.xlu0 %v13144_v19  ;;  %v6655_v57 = vpop.f32.mrf.mxu0 }
0x1888   : > { %v13150_v2 = vadd.f32 %v13132_v4, %v6655_v57 }
0x1889   : > { %v8745_v40 = vpop.f32.mrf.mxu0 }
0x188a   : > { %6739 = vst [vmem:[#allocation4 + $0x8] sm:$0xff] %v13150_v2  ;;  %v13158_v48 = vsel %vm6782_vm2, %v13150_v2, -1e+30 }
0x188b   : > { %6806 = vmax.xlane.f32.xlu1 %v13158_v48  ;;  %v6660_v28 = vpop.f32.mrf.mxu0 }
0x188c   : > { %v13164_v41 = vadd.f32 %v13132_v4, %v6660_v28 }
0x188d   : > { %v8748_v29 = vpop.f32.mrf.mxu0 }
0x188e   : > { %6740 = vst [vmem:[#allocation4 + $0x10] sm:$0xff] %v13164_v41  ;;  %v13201_v40 = vsel %vm6782_vm2, %v13164_v41, -1e+30 }
0x188f   : > { %v6663_v54 = vpop.f32.mrf.mxu0 }
0x1890   : > { %v13170_v11 = vadd.f32 %v13132_v4, %v6663_v54 }
0x1891   : > { %v8749_v6 = vpop.f32.mrf.mxu0 }
0x1892   : > { %6741 = vst [vmem:[#allocation4 + $0x18] sm:$0xff] %v13170_v11  ;;  %v7127_v6 = vpop.permute.xlu1 %7126 }
0x1893   : > { %v6668_v7 = vpop.f32.mrf.mxu0  ;;  %v6700_v24 = vpop.f32.mrf.mxu1 }
0x1894   : > { %v13175_v42 = vadd.f32 %v13132_v4, %v6668_v7  ;;  %v6701_v44 = vadd.f32 %v13132_v4, %v6700_v24 }
0x1895   : > { %v8752_v25 = vpop.f32.mrf.mxu0  ;;  %v8768_v33 = vpop.f32.mrf.mxu1 }
0x1896   : > { %6742 = vst [vmem:[#allocation4 + $0x20] sm:$0xff] %v13175_v42  ;;  %6750 = vst [vmem:[#allocation4 + $0x60] sm:$0xff] %v6701_v44  ;;  %v13179_v59 = vsel %vm7155_vm1, %v6701_v44, 0.0  ;;  %v13183_v14 = vsel %vm6782_vm2, %v6701_v44, -1e+30  ;;  %vm7157_vm1 = vcmp.eq.s32.totalorder %v13127_v18, %v7124_v60  ;;  %v7130_v60 = vpop.permute.xlu0 %7129 }
0x1897   : > { %v6703_v21 = vpop.f32.mrf.mxu1  ;;  %6828 = vmax.xlane.f32.xlu0 %v13183_v14  ;;  %v6671_v61 = vpop.f32.mrf.mxu0  ;;  %v13220_v25 = vsel %vm6782_vm2, %v13170_v11, -1e+30 }
0x1898   : > { %v6704_v39 = vadd.f32 %v13132_v4, %v6703_v21  ;;  %v13189_v22 = vadd.f32 %v13132_v4, %v6671_v61 }
0x1899   : > { %v8753_v52 = vpop.f32.mrf.mxu0  ;;  %v8769_v13 = vpop.f32.mrf.mxu1 }
0x189a   : > { %6751 = vst [vmem:[#allocation4 + $0x68] sm:$0xff] %v6704_v39  ;;  %6743 = vst [vmem:[#allocation4 + $0x28] sm:$0xff] %v13189_v22  ;;  %v13192_v12 = vsel %vm7156_vm15, %v6704_v39, 0.0  ;;  %v13196_v57 = vsel %vm6782_vm2, %v6704_v39, -1e+30  ;;  %vm7150_vm15 = vcmp.eq.s32.totalorder %v13127_v18, %v13125_v46 }
0x189b   : > { %13945 = vst [vmem:[#allocation41_spill] sm:$0xff] %v13192_v12  ;;  %v6708_v28 = vpop.f32.mrf.mxu1  ;;  %6830 = vmax.xlane.f32.xlu1 %v13196_v57  ;;  %6808 = vmax.xlane.f32.xlu0 %v13201_v40  ;;  %v6676_v29 = vpop.f32.mrf.mxu0 }
0x189c   : > { %v6709_v54 = vadd.f32 %v13132_v4, %v6708_v28  ;;  %v13208_v50 = vadd.f32 %v13132_v4, %v6676_v29 }
0x189d   : > { %v8756_v7 = vpop.f32.mrf.mxu0  ;;  %v8772_v24 = vpop.f32.mrf.mxu1 }
0x189e   : > { %6752 = vst [vmem:[#allocation4 + $0x70] sm:$0xff] %v6709_v54  ;;  %6744 = vst [vmem:[#allocation4 + $0x30] sm:$0xff] %v13208_v50  ;;  %v13211_v44 = vsel %vm7157_vm1, %v6709_v54, 0.0  ;;  %v13215_v10 = vsel %vm6782_vm2, %v6709_v54, -1e+30  ;;  %vm7158_vm1 = vcmp.eq.s32.totalorder %v13127_v18, %v7127_v6 }
0x189f   : > { %v6711_v33 = vpop.f32.mrf.mxu1  ;;  %6832 = vmax.xlane.f32.xlu0 %v13215_v10  ;;  %6810 = vmax.xlane.f32.xlu1 %v13220_v25  ;;  %v6679_v21 = vpop.f32.mrf.mxu0  ;;  %v13238_v54 = vsel %vm6782_vm2, %v13175_v42, -1e+30  ;;  %v13282_v63 = vsel %vm6782_vm2, %v13208_v50, -1e+30 }
0x18a0   : > { %v6712_v61 = vadd.f32 %v13132_v4, %v6711_v33  ;;  %v6680_v39 = vadd.f32 %v13132_v4, %v6679_v21 }
0x18a1   : > { %v8757_v52 = vpop.f32.mrf.mxu0  ;;  %v8773_v13 = vpop.f32.mrf.mxu1 }
0x18a2   : > { %6753 = vst [vmem:[#allocation4 + $0x78] sm:$0xff] %v6712_v61  ;;  %6745 = vst [vmem:[#allocation4 + $0x38] sm:$0xff] %v6680_v39  ;;  %v13229_v28 = vsel %vm7158_vm1, %v6712_v61, 0.0  ;;  %v13233_v29 = vsel %vm6782_vm2, %v6712_v61, -1e+30  ;;  %v13243_v6 = vsel %vm7150_vm15, %v6680_v39, 0.0  ;;  %vm7159_vm1 = vcmp.eq.s32.totalorder %v13127_v18, %v7130_v60 }
0x18a3   : > { %13946 = vst [vmem:[#allocation42_spill] sm:$0xff] %v13229_v28  ;;  %v6716_v7 = vpop.f32.mrf.mxu1  ;;  %6834 = vmax.xlane.f32.xlu1 %v13233_v29  ;;  %6812 = vmax.xlane.f32.xlu0 %v13238_v54  ;;  %v6684_v24 = vpop.f32.mrf.mxu0  ;;  %v13261_v13 = vsel %vm6782_vm2, %v13189_v22, -1e+30  ;;  %vm7152_vm15 = vcmp.eq.s32.totalorder %v13127_v18, %v13152_v9  ;;  %v13302_v28 = vsel %vm6782_vm2, %v6680_v39, -1e+30 }
0x18a4   : > { %v6717_v33 = vadd.f32 %v13132_v4, %v6716_v7  ;;  %v6685_v21 = vadd.f32 %v13132_v4, %v6684_v24 }
0x18a5   : > { %v8760_v61 = vpop.f32.mrf.mxu0  ;;  %v8776_v52 = vpop.f32.mrf.mxu1 }
0x18a6   : > { %6754 = vst [vmem:[#allocation4 + $0x80] sm:$0xff] %v6717_v33  ;;  %6746 = vst [vmem:[#allocation4 + $0x40] sm:$0xff] %v6685_v21  ;;  %v13252_v46 = vsel %vm7159_vm1, %v6717_v33, 0.0  ;;  %v13256_v36 = vsel %vm6782_vm2, %v6717_v33, -1e+30  ;;  %v13263_v60 = vsel %vm7151_vm10, %v6685_v21, 0.0  ;;  %vm7153_vm10 = vcmp.eq.s32.totalorder %v13127_v18, %v13160_v26 }
0x18a7   : > { %13947 = vst [vmem:[#allocation43_spill] sm:$0xff] %v13252_v46  ;;  %v6719_v7 = vpop.f32.mrf.mxu1  ;;  %6836 = vmax.xlane.f32.xlu0 %v13256_v36  ;;  %6814 = vmax.xlane.f32.xlu1 %v13261_v13  ;;  %v6687_v24 = vpop.f32.mrf.mxu0  ;;  %vm7154_vm1 = vcmp.eq.s32.totalorder %v13127_v18, %v13167_v38  ;;  %v13322_v39 = vsel %vm6782_vm2, %v6685_v21, -1e+30 }
0x18a8   : > { %v13270_v61 = vadd.f32 %v13132_v4, %v6719_v7  ;;  %v6688_v33 = vadd.f32 %v13132_v4, %v6687_v24 }
0x18a9   : > { %v8761_v52 = vpop.f32.mrf.mxu0  ;;  %v8777_v1 = vpop.f32.mrf.mxu1 }
0x18aa   : > { %13948 = vst [vmem:[#allocation44_spill] sm:$0xff] %v13270_v61  ;;  %6755 = vst [vmem:[#allocation4 + $0x88] sm:$0xff] %v13270_v61  ;;  %v13277_v9 = vsel %vm6782_vm2, %v13270_v61, -1e+30  ;;  %v13284_v16 = vsel %vm7152_vm15, %v6688_v33, 0.0  ;;  %vm13829_vm15 = vcmask 1041408  }
0x18ab   : > { %6747 = vst [vmem:[#allocation4 + $0x48] sm:$0xff] %v6688_v33  ;;  %v6724_v7 = vpop.f32.mrf.mxu1  ;;  %6838 = vmax.xlane.f32.xlu1 %v13277_v9  ;;  %6816 = vmax.xlane.f32.xlu0 %v13282_v63  ;;  %v6692_v1 = vpop.f32.mrf.mxu0 }
0x18ac   : > { %v13291_v24 = vadd.f32 %v13132_v4, %v6724_v7  ;;  %v6693_v52 = vadd.f32 %v13132_v4, %v6692_v1 }
0x18ad   : > { %v8764_v61 = vpop.f32.mrf.mxu0  ;;  %v8780_v20 = vpop.f32.mrf.mxu1 }
0x18ae   : > { %13949 = vst [vmem:[#allocation45_spill] sm:$0xff] %v13291_v24  ;;  %6756 = vst [vmem:[#allocation4 + $0x90] sm:$0xff] %v13291_v24  ;;  %v13298_v26 = vsel %vm6782_vm2, %v13291_v24, -1e+30  ;;  %v13304_v46 = vsel %vm7153_vm10, %v6693_v52, 0.0 }
0x18af   : > { %6748 = vst [vmem:[#allocation4 + $0x50] sm:$0xff] %v6693_v52  ;;  %v6727_v7 = vpop.f32.mrf.mxu1  ;;  %6840 = vmax.xlane.f32.xlu0 %v13298_v26  ;;  %6818 = vmax.xlane.f32.xlu1 %v13302_v28  ;;  %v6695_v20 = vpop.f32.mrf.mxu0 }
0x18b0   : > { %v13311_v61 = vadd.f32 %v13132_v4, %v6727_v7  ;;  %v6696_v1 = vadd.f32 %v13132_v4, %v6695_v20  ;;  %v13334_v20 = vsel %vm6782_vm2, %v6688_v33, -1e+30  ;;  %v13351_v33 = vsel %vm6782_vm2, %v6693_v52, -1e+30 }
0x18b1   : > { %v8765_v24 = vpop.f32.mrf.mxu0  ;;  %v8781_v30 = vpop.f32.mrf.mxu1 }
0x18b2   : > { %13950 = vst [vmem:[#allocation46_spill] sm:$0xff] %v13311_v61  ;;  %6757 = vst [vmem:[#allocation4 + $0x98] sm:$0xff] %v13311_v61  ;;  %v13318_v38 = vsel %vm6782_vm2, %v13311_v61, -1e+30  ;;  %v13324_v12 = vsel %vm7154_vm1, %v6696_v1, 0.0 }
0x18b3   : > { %6749 = vst [vmem:[#allocation4 + $0x58] sm:$0xff] %v6696_v1  ;;  %v6732_v7 = vpop.f32.mrf.mxu1  ;;  %6842 = vmax.xlane.f32.xlu1 %v13318_v38  ;;  %6820 = vmax.xlane.f32.xlu0 %v13322_v39 }
0x18b4   : > { %v13329_v30 = vadd.f32 %v13132_v4, %v6732_v7 }
0x18b5   : > { %v8784_v24 = vpop.f32.mrf.mxu1 }
0x18b6   : > { %6758 = vst [vmem:[#allocation4 + $0xa0] sm:$0x3] %v13329_v30  ;;  %v13339_v21 = vsel %vm6782_vm2, %v13329_v30, -1e+30  ;;  %v13346_v24 = vsel %vm6782_vm2, %v6696_v1, -1e+30 }
0x18b7   : > { %v6735_v61 = vpop.f32.mrf.mxu1  ;;  %6822 = vmax.xlane.f32.xlu1 %v13334_v20  ;;  %v6845_v4 = vsel %vm13829_vm15, %v13339_v21, -inf  ;;  %vm7144_vm15 = vcmp.eq.s32.totalorder %v13127_v18, %v13146_v35  ;;  %v13393_v35 = vpop.permute.xlu0 %7135 }
0x18b8   : > { %6846 = vmax.xlane.f32.xlu0 %v6845_v4  ;;  %v13357_v61 = vld [vmem:[%s13938_s20 + $0x98] sm:$0xff]  ;;  %v13366_v4 = vld [vmem:[%s13938_s20 + $0xa0] sm:$0x3] }
0x18b9   : > { %v8785_v7 = vpop.f32.mrf.mxu1  ;;  %13951 = vst [vmem:[#allocation47_spill] sm:$0xff] %v13357_v61  ;;  %vm13832_vm10 = vcmp.ge.s32.totalorder %v13357_v61, 0  ;;  %13952 = vst [vmem:[#allocation48_spill] sm:$0xff] %v13366_v4  ;;  %vm13833_vm1 = vcmp.ge.s32.totalorder %v13366_v4, 0 }
0x18ba   : > { %v7078_v1 = vsel %vm13832_vm10, %v13357_v61, 0  ;;  %v7079_v52 = vsel %vm13833_vm1, %v13366_v4, 0  ;;  %v7164_v7 = vsel %vm7143_vm11, %v13138_v23, 0.0  ;;  %v7165_v61 = vsel %vm7144_vm15, %v13150_v2, 0.0  ;;  %v13395_v2 = vpop.permute.xlu1 %7132 }
0x18bb   : > { %6826 = vmax.xlane.f32.xlu1 %v13346_v24  ;;  %vm7145_vm10 = vcmp.eq.s32.totalorder %v13127_v18, %v13115_v45  ;;  %vm7146_vm1 = vcmp.eq.s32.totalorder %v13127_v18, %v13117_v0  ;;  %v7168_v23 = vsel %vm7147_vm8, %v13175_v42, 0.0  ;;  %vm7148_vm11 = vcmp.eq.s32.totalorder %v13127_v18, %v13121_v15 }
0x18bc   : > { %6824 = vmax.xlane.f32.xlu0 %v13351_v33  ;;  %v7167_v17 = vsel %vm7146_vm1, %v13170_v11, 0.0  ;;  %v7169_v45 = vsel %vm7148_vm11, %v13189_v22, 0.0  ;;  %vm7149_vm15 = vcmp.eq.s32.totalorder %v13127_v18, %v13123_v32  ;;  %vm7270_vm8 = vcmask 7168  }
0x18bd   : > { %v7170_v0 = vsel %vm7149_vm15, %v13208_v50, 0.0  ;;  %vm13961_vm1 = vcmp.ge.s32.totalorder %v12975_v3, 0  ;;  %vm13962_vm11 = vcmp.ge.s32.totalorder %v12896_v37, 0  ;;  %vm13963_vm15 = vcmask 1041408  }
0x18cc   : > { %7138 = vperm.xlu1 %9421, %v7078_v1   ;;  %v7166_v1 = vsel %vm7145_vm10, %v13164_v41, 0.0  ;;  %vm13960_vm10 = vcmp.ge.s32.totalorder %v12881_v31, 0 }
0x18d2   : > { %7141 = vperm.xlu0 %9422, %v7079_v52  }
0x18f0   : > { %7185 = vadd.xlane.f32.xlu1 %v7164_v7 }
0x18f1   : > { %7187 = vadd.xlane.f32.xlu0 %v7165_v61 }
0x18f5   : > { %7189 = vadd.xlane.f32.xlu0 %v7166_v1 }
0x18f9   : > { %7191 = vadd.xlane.f32.xlu0 %v7167_v17 }
0x18fd   : > { %7193 = vadd.xlane.f32.xlu0 %v7168_v23 }
0x1901   : > { %7195 = vadd.xlane.f32.xlu0 %v7169_v45 }
0x1905   : > { %7197 = vadd.xlane.f32.xlu0 %v7170_v0 }
0x1910   : > { %v13397_v43 = vpop.xlane.xlu0 %6804 }
0x1911   : > { %v6848_v41 = vsub.f32 %v13144_v19, %v13397_v43 }
0x1913   : > { %v6869_v15 = vmul.f32 1.442695, %v6848_v41 }
0x1914   : > { %v13401_v11 = vpop.xlane.xlu1 %6806 }
0x1915   : > { %9467 = vpow2.f32 %v6869_v15  ;;  %v6849_v32 = vsub.f32 %v13158_v48, %v13401_v11 }
0x1917   : > { %v6871_v42 = vmul.f32 1.442695, %v6849_v32 }
0x1919   : > { %9469 = vpow2.f32 %v6871_v42 }
0x1920   : > { %v13405_v22 = vpop.xlane.xlu0 %6828 }
0x1921   : > { %v6860_v50 = vsub.f32 %v13183_v14, %v13405_v22 }
0x1922   : > { %v9468_v61 = vpop.eup %9467 }
0x1923   : > { %v6893_v52 = vmul.f32 1.442695, %v6860_v50  ;;  %v6911_v7 = vsel %vm6782_vm2, %v9468_v61, 0.0 }
0x1924   : > { %v13411_v19 = vpop.xlane.xlu1 %6830  ;;  %v13413_v1 = vpop.xlane.xlu0 %6808  ;;  %6932 = vadd.xlane.f32.xlu1 %v6911_v7 }
0x1925   : > { %13953 = vst [vmem:[#allocation49_spill] sm:$0xff] %v13411_v19  ;;  %9471 = vpow2.f32 %v6893_v52  ;;  %v6861_v48 = vsub.f32 %v13196_v57, %v13411_v19  ;;  %v6850_v17 = vsub.f32 %v13201_v40, %v13413_v1 }
0x1926   : > { %v9470_v23 = vpop.eup %9469 }
0x1927   : > { %v6895_v45 = vmul.f32 1.442695, %v6861_v48  ;;  %v6873_v14 = vmul.f32 1.442695, %v6850_v17  ;;  %v6912_v0 = vsel %vm6782_vm2, %v9470_v23, 0.0 }
0x1928   : > { %v13421_v41 = vpop.xlane.xlu0 %6832  ;;  %v13423_v15 = vpop.xlane.xlu1 %6810  ;;  %6934 = vadd.xlane.f32.xlu0 %v6912_v0 }
0x1929   : > { %13954 = vst [vmem:[#allocation50_spill] sm:$0xff] %v13421_v41  ;;  %9473 = vpow2.f32 %v6895_v45  ;;  %v6862_v32 = vsub.f32 %v13215_v10, %v13421_v41  ;;  %v6851_v57 = vsub.f32 %v13220_v25, %v13423_v15 }
0x192a   : > { %9475 = vpow2.f32 %v6873_v14 }
0x192b   : > { %v6897_v40 = vmul.f32 1.442695, %v6862_v32  ;;  %v6875_v42 = vmul.f32 1.442695, %v6851_v57 }
0x192c   : > { %v13429_v50 = vpop.xlane.xlu1 %6834  ;;  %v13431_v61 = vpop.xlane.xlu0 %6812 }
0x192d   : > { %13955 = vst [vmem:[#allocation51_spill] sm:$0xff] %v13429_v50  ;;  %9477 = vpow2.f32 %v6897_v40  ;;  %v6863_v52 = vsub.f32 %v13233_v29, %v13429_v50  ;;  %v6852_v7 = vsub.f32 %v13238_v54, %v13431_v61 }
0x192e   : > { %9479 = vpow2.f32 %v6875_v42 }
0x192f   : > { %v6899_v48 = vmul.f32 1.442695, %v6863_v52  ;;  %v6877_v10 = vmul.f32 1.442695, %v6852_v7 }
0x1930   : > { %v13437_v17 = vpop.xlane.xlu0 %6836  ;;  %v13439_v25 = vpop.xlane.xlu1 %6814 }
0x1931   : > { %13956 = vst [vmem:[#allocation52_spill] sm:$0xff] %v13437_v17  ;;  %v6864_v23 = vsub.f32 %v13256_v36, %v13437_v17  ;;  %9481 = vpow2.f32 %v6877_v10  ;;  %v6853_v29 = vsub.f32 %v13261_v13, %v13439_v25 }
0x1932   : > { %v9472_v45 = vpop.eup %9471  ;;  %9483 = vpow2.f32 %v6899_v48 }
0x1933   : > { %v6901_v14 = vmul.f32 1.442695, %v6864_v23  ;;  %v6923_v54 = vsel %vm6782_vm2, %v9472_v45, 0.0  ;;  %v6879_v42 = vmul.f32 1.442695, %v6853_v29  ;;  %v13958_v45 = vmov 0.0  }
0x1934   : > { %v13447_v0 = vpop.xlane.xlu1 %6838  ;;  %v13449_v32 = vpop.xlane.xlu0 %6816  ;;  %6956 = vadd.xlane.f32.xlu1 %v6923_v54  ;;  %v7855_v29 = vsel %vm7039_vm6, 1.0, %v13958_v45 }
0x1935   : > { %13957 = vst [vmem:[#allocation53_spill] sm:$0xff] %v13447_v0  ;;  %v6854_v57 = vsub.f32 %v13282_v63, %v13449_v32  ;;  %9485 = vpow2.f32 %v6901_v14  ;;  %v7854_v14 = vsel %vm7038_vm3, 1.0, %v13958_v45 }
0x1936   : > { %v9474_v40 = vpop.eup %9473 }
0x1937   : > { %v9476_v36 = vpop.eup %9475  ;;  %v6881_v52 = vmul.f32 1.442695, %v6854_v57  ;;  %v6924_v7 = vsel %vm6782_vm2, %v9474_v40, 0.0 }
0x1938   : > { %v13455_v13 = vpop.xlane.xlu0 %6840  ;;  %v13457_v48 = vpop.xlane.xlu1 %6818  ;;  %v6913_v10 = vsel %vm6782_vm2, %v9476_v36, 0.0  ;;  %6958 = vadd.xlane.f32.xlu1 %v6924_v7  ;;  %v7367_v7 = vsel %vm7270_vm8, %v7854_v14, 0.0 }
0x1939   : > { %v6855_v23 = vsub.f32 %v13302_v28, %v13457_v48  ;;  %6936 = vadd.xlane.f32.xlu0 %v6913_v10  ;;  %9487 = vpow2.f32 %v6881_v52  ;;  %v7368_v10 = vsel %vm7270_vm8, %v7855_v29, 0.0 }
0x193a   : > { %v9478_v63 = vpop.eup %9477  ;;  %9489 = vpow2.f32 %v6879_v42  ;;  %v7856_v42 = vsel %vm7040_vm4, 1.0, %v13958_v45  ;;  %v7369_v19 = vadd.f32 %v7368_v10, %v7367_v7 }
0x193b   : > { %v6883_v54 = vmul.f32 1.442695, %v6855_v23  ;;  %v6925_v57 = vsel %vm6782_vm2, %v9478_v63, 0.0  ;;  %v9480_v40 = vpop.eup %9479 }
0x193c   : > { %v13471_v36 = vpop.xlane.xlu1 %6842  ;;  %v13473_v28 = vpop.xlane.xlu0 %6820  ;;  %6960 = vadd.xlane.f32.xlu1 %v6925_v57  ;;  %v6914_v63 = vsel %vm6782_vm2, %v9480_v40, 0.0 }
0x193d   : > { %v6856_v50 = vsub.f32 %v13322_v39, %v13473_v28  ;;  %9491 = vpow2.f32 %v6883_v54  ;;  %v7370_v39 = vsel %vm7270_vm8, %v7856_v42, 0.0  ;;  %v6865_v54 = vsub.f32 %v13277_v9, %v13447_v0 }
0x193e   : > { %v9482_v52 = vpop.eup %9481  ;;  %v7371_v42 = vadd.f32 %v7370_v39, %v7369_v19  ;;  %v7858_v9 = vsel %vm7042_vm7, 1.0, %v13958_v45  ;;  %v6866_v39 = vsub.f32 %v13298_v26, %v13455_v13 }
0x193f   : > { %v6885_v23 = vmul.f32 1.442695, %v6856_v50  ;;  %v9484_v17 = vpop.eup %9483  ;;  %v6915_v14 = vsel %vm6782_vm2, %v9482_v52, 0.0  ;;  %v7857_v50 = vsel %vm7041_vm5, 1.0, %v13958_v45  ;;  %v6903_v19 = vmul.f32 1.442695, %v6865_v54 }
0x1940   : > { %v13484_v57 = vpop.xlane.xlu1 %6822  ;;  %6938 = vadd.xlane.f32.xlu1 %v6914_v63  ;;  %6940 = vadd.xlane.f32.xlu0 %v6915_v14  ;;  %v6926_v7 = vsel %vm6782_vm2, %v9484_v17, 0.0  ;;  %v6905_v26 = vmul.f32 1.442695, %v6866_v39  ;;  %v6867_v54 = vsub.f32 %v13318_v38, %v13471_v36 }
0x1941   : > { %v6857_v29 = vsub.f32 %v13334_v20, %v13484_v57  ;;  %v13491_v41 = vpop.xlane.xlu0 %6846  ;;  %9493 = vpow2.f32 %v6885_v23  ;;  %v7372_v20 = vsel %vm7270_vm8, %v7857_v50, 0.0 }
0x1942   : > { %v9486_v10 = vpop.eup %9485 }
0x1943   : > { %v6887_v40 = vmul.f32 1.442695, %v6857_v29  ;;  %v6927_v50 = vsel %vm6782_vm2, %v9486_v10, 0.0 }
0x1944   : > { %6962 = vadd.xlane.f32.xlu1 %v6926_v7  ;;  %v13500_v52 = vpop.xlane.xlu1 %6826 }
0x1945   : > { %13959 = vst [vmem:[#allocation54_spill] sm:$0xff] %v13500_v52  ;;  %9495 = vpow2.f32 %v6887_v40  ;;  %v6859_v63 = vsub.f32 %v13346_v24, %v13500_v52  ;;  %v13505_v14 = vpop.xlane.xlu0 %6824  ;;  %v7373_v24 = vadd.f32 %v7372_v20, %v7371_v42  ;;  %v7374_v52 = vsel %vm7270_vm8, %v7858_v9, 0.0 }
0x1946   : > { %v6858_v17 = vsub.f32 %v13351_v33, %v13505_v14  ;;  %v9488_v23 = vpop.eup %9487  ;;  %v7859_v33 = vsel %vm7043_vm9, 1.0, %v13958_v45  ;;  %v7860_v9 = vsel %vm7044_vm12, 1.0, %v13958_v45 }
0x1947   : > { %v6891_v29 = vmul.f32 1.442695, %v6859_v63  ;;  %v9490_v40 = vpop.eup %9489  ;;  %v6917_v0 = vsel %vm6782_vm2, %v9488_v23, 0.0  ;;  %v7375_v20 = vadd.f32 %v7374_v52, %v7373_v24  ;;  %v6868_v63 = vsub.f32 %v13339_v21, %v13491_v41 }
0x1948   : > { %v6889_v7 = vmul.f32 1.442695, %v6858_v17  ;;  %6964 = vadd.xlane.f32.xlu1 %v6927_v50  ;;  %6944 = vadd.xlane.f32.xlu0 %v6917_v0  ;;  %v6916_v10 = vsel %vm6782_vm2, %v9490_v40, 0.0  ;;  %v7376_v0 = vsel %vm7270_vm8, %v7859_v33, 0.0  ;;  %v6907_v23 = vmul.f32 1.442695, %v6867_v54 }
0x1949   : > { %9497 = vpow2.f32 %v6891_v29  ;;  %v6909_v39 = vmul.f32 1.442695, %v6868_v63  ;;  %v7378_v21 = vsel %vm7270_vm8, %v7860_v9, 0.0  ;;  %v7861_v50 = vsel %vm7045_vm14, 1.0, %v13958_v45 }
0x194a   : > { %9499 = vpow2.f32 %v6889_v7  ;;  %v9492_v42 = vpop.eup %9491  ;;  %v7380_v7 = vsel %vm7270_vm8, %v7861_v50, 0.0  ;;  %v7863_v9 = vsel %vm13841_vm13, 1.0, %v13958_v45 }
0x194b   : > { %9501 = vpow2.f32 %v6903_v19  ;;  %v6918_v38 = vsel %vm6782_vm2, %v9492_v42, 0.0  ;;  %v7377_v19 = vadd.f32 %v7376_v0, %v7375_v20 }
0x194c   : > { %6942 = vadd.xlane.f32.xlu1 %v6916_v10  ;;  %9503 = vpow2.f32 %v6905_v26  ;;  %v7862_v26 = vsel %vm13842_vm0, 1.0, %v13958_v45  ;;  %vm13977_vm0 = vcmask 1041408  }
0x194d   : > { %9505 = vpow2.f32 %v6907_v23  ;;  %v7379_v24 = vadd.f32 %v7378_v21, %v7377_v19  ;;  %v7382_v0 = vsel %vm7270_vm8, %v7862_v26, 0.0  ;;  %v7384_v19 = vsel %vm7270_vm8, %v7863_v9, 0.0 }
0x194e   : > { %v9494_v17 = vpop.eup %9493  ;;  %9507 = vpow2.f32 %v6909_v39  ;;  %v7864_v39 = vsel %vm13960_vm10, 1.0, %v13958_v45  ;;  %vm13964_vm10 = vcmp.ge.s32.totalorder %v12984_v8, 0 }
0x194f   : > { %v6919_v52 = vsel %vm6782_vm2, %v9494_v17, 0.0  ;;  %v7381_v20 = vadd.f32 %v7380_v7, %v7379_v24  ;;  %v7865_v24 = vsel %vm13961_vm1, 1.0, %v13958_v45 }
0x1950   : > { %6946 = vadd.xlane.f32.xlu1 %v6918_v38  ;;  %6948 = vadd.xlane.f32.xlu0 %v6919_v52  ;;  %v7388_v26 = vsel %vm7270_vm8, %v7865_v24, 0.0 }
0x1951   : > { %v7383_v38 = vadd.f32 %v7382_v0, %v7381_v20  ;;  %v7867_v20 = vsel %vm13964_vm10, 1.0, %v13958_v45 }
0x1952   : > { %v9496_v29 = vpop.eup %9495 }
0x1953   : > { %v6920_v40 = vsel %vm6782_vm2, %v9496_v29, 0.0  ;;  %v7385_v29 = vadd.f32 %v7384_v19, %v7383_v38 }
0x1954   : > { %6950 = vadd.xlane.f32.xlu1 %v6920_v40  ;;  %v7386_v40 = vsel %vm7270_vm8, %v7864_v39, 0.0 }
0x1955   : > { %v7387_v7 = vadd.f32 %v7386_v40, %v7385_v29  ;;  %v7139_v29 = vpop.permute.xlu1 %7138 }
0x1956   : > { %v9498_v33 = vpop.eup %9497 }
0x1957   : > { %v9500_v54 = vpop.eup %9499  ;;  %v6922_v10 = vsel %vm6782_vm2, %v9498_v33, 0.0 }
0x1958   : > { %v9502_v42 = vpop.eup %9501  ;;  %6954 = vadd.xlane.f32.xlu1 %v6922_v10  ;;  %v6921_v63 = vsel %vm6782_vm2, %v9500_v54, 0.0  ;;  %v7389_v10 = vadd.f32 %v7388_v26, %v7387_v7 }
0x1959   : > { %6952 = vadd.xlane.f32.xlu0 %v6921_v63  ;;  %v6928_v17 = vsel %vm6782_vm2, %v9502_v42, 0.0  ;;  %v9504_v23 = vpop.eup %9503 }
0x195a   : > { %v6929_v52 = vsel %vm6782_vm2, %v9504_v23, 0.0  ;;  %v9506_v21 = vpop.eup %9505  ;;  %v13967_v23 = vld [vmem:[#allocation39_spill] sm:$0xff] }
0x195b   : > { %v9508_v50 = vpop.eup %9507  ;;  %vm13968_vm1 = vcmp.ge.s32.totalorder %v13967_v23, 0 }
0x195c   : > { %6966 = vadd.xlane.f32.xlu1 %v6928_v17  ;;  %v6931_v33 = vsel %vm6782_vm2, %v9508_v50, 0.0  ;;  %v13966_v17 = vld [vmem:[#allocation41_spill] sm:$0xff]  ;;  %v7869_v38 = vsel %vm13968_vm1, 1.0, %v13958_v45  ;;  %vm7162_vm1 = vcmp.eq.s32.totalorder %v13127_v18, %v7139_v29 }
0x195d   : > { %7199 = vadd.xlane.f32.xlu0 %v13243_v6  ;;  %v6930_v6 = vsel %vm6782_vm2, %v9506_v21, 0.0  ;;  %v6972_v54 = vsel %vm13963_vm15, %v6931_v33, 0.0  ;;  %vm13965_vm2 = vcmp.ge.s32.totalorder %v12909_v49, 0  ;;  %v7396_v39 = vsel %vm7270_vm8, %v7869_v38, 0.0  ;;  %v13973_v50 = vld [vmem:[#allocation45_spill] sm:$0xff] }
0x195e   : > { %v7868_v0 = vsel %vm13965_vm2, 1.0, %v13958_v45  ;;  %vm7160_vm15 = vcmp.eq.s32.totalorder %v13127_v18, %v13395_v2  ;;  %v13975_v2 = vld [vmem:[#allocation40_spill] sm:$0xff] }
0x195f   : > { %vm13976_vm13 = vcmp.ge.s32.totalorder %v13975_v2, 0 }
0x1960   : > { %6968 = vadd.xlane.f32.xlu1 %v6929_v52  ;;  %v13971_v52 = vld [vmem:[#allocation37_spill] sm:$0xff]  ;;  %v7871_v26 = vsel %vm13976_vm13, 1.0, %v13958_v45  ;;  %vm7310_vm13 = vcmask 1024  }
0x1961   : > { %7201 = vadd.xlane.f32.xlu0 %v13263_v60  ;;  %v7866_v60 = vsel %vm13962_vm11, 1.0, %v13958_v45  ;;  %vm7161_vm11 = vcmp.eq.s32.totalorder %v13127_v18, %v13393_v35  ;;  %vm13972_vm2 = vcmp.ge.s32.totalorder %v13971_v52, 0  ;;  %v13974_v35 = vld [vmem:[#allocation44_spill] sm:$0xff] }
0x1962   : > { %v7390_v42 = vsel %vm7270_vm8, %v7866_v60, 0.0  ;;  %v7870_v21 = vsel %vm13972_vm2, 1.0, %v13958_v45  ;;  %v7182_v40 = vsel %vm7161_vm11, %v13973_v50, 0.0 }
0x1963   : > { %v7391_v63 = vadd.f32 %v7390_v42, %v7389_v10  ;;  %v7398_v33 = vsel %vm7270_vm8, %v7870_v21, 0.0  ;;  %v13978_v10 = vld [vmem:[#allocation46_spill] sm:$0xff] }
0x1964   : > { %6970 = vadd.xlane.f32.xlu1 %v6930_v6  ;;  %v7181_v6 = vsel %vm7160_vm15, %v13974_v35, 0.0  ;;  %v7183_v42 = vsel %vm7162_vm1, %v13978_v10, 0.0  ;;  %vm14000_vm1 = vcmp.ge.s32.totalorder %v13975_v2, 0 }
0x1965   : > { %7203 = vadd.xlane.f32.xlu0 %v13284_v16  ;;  %v7392_v16 = vsel %vm7270_vm8, %v7867_v20, 0.0  ;;  %v7400_v20 = vsel %vm7270_vm8, %v7871_v26, 0.0 }
0x1966   : > { %v7393_v9 = vadd.f32 %v7392_v16, %v7391_v63 }
0x1968   : > { %6973 = vadd.xlane.f32.xlu1 %v6972_v54 }
0x1969   : > { %7205 = vadd.xlane.f32.xlu0 %v13304_v46  ;;  %v7394_v46 = vsel %vm7270_vm8, %v7868_v0, 0.0  ;;  %v13981_v0 = vld [vmem:[#allocation47_spill] sm:$0xff] }
0x196a   : > { %v7395_v19 = vadd.f32 %v7394_v46, %v7393_v9  ;;  %vm13982_vm15 = vcmp.ge.s32.totalorder %v13981_v0, 0 }
0x196b   : > { %v7873_v9 = vsel %vm13982_vm15, 1.0, %v13958_v45 }
0x196c   : > { %7209 = vadd.xlane.f32.xlu1 %v13179_v59  ;;  %v7142_v59 = vpop.permute.xlu0 %7141  ;;  %v7397_v24 = vadd.f32 %v7396_v39, %v7395_v19 }
0x196d   : > { %7207 = vadd.xlane.f32.xlu0 %v13324_v12  ;;  %v13969_v12 = vld [vmem:[#allocation43_spill] sm:$0xff]  ;;  %vm7163_vm10 = vcmp.eq.s32.totalorder %v13127_v18, %v7142_v59 }
0x196e   : > { %v7184_v7 = vsel %vm7163_vm10, %v13329_v30, 0.0  ;;  %v7399_v54 = vadd.f32 %v7398_v33, %v7397_v24  ;;  %v13979_v30 = vld [vmem:[#allocation38_spill] sm:$0xff]  ;;  %vm13998_vm10 = vcmp.ge.s32.totalorder %v13967_v23, 0 }
0x196f   : > { %v7225_v60 = vsel %vm13977_vm0, %v7184_v7, 0.0  ;;  %vm13980_vm11 = vcmp.ge.s32.totalorder %v13979_v30, 0  ;;  %vm13983_vm0 = vcmp.ge.s32.totalorder %v13366_v4, 0 }
0x1970   : > { %7213 = vadd.xlane.f32.xlu1 %v13211_v44  ;;  %v13970_v44 = vld [vmem:[#allocation42_spill] sm:$0xff]  ;;  %v7872_v63 = vsel %vm13980_vm11, 1.0, %v13958_v45  ;;  %v7401_v16 = vadd.f32 %v7400_v20, %v7399_v54  ;;  %v7874_v38 = vsel %vm13983_vm0, 1.0, %v13958_v45 }
0x1971   : > { %7211 = vadd.xlane.f32.xlu0 %v13966_v17  ;;  %v7402_v18 = vsel %vm7270_vm8, %v7872_v63, 0.0  ;;  %v7404_v17 = vsel %vm7270_vm8, %v7873_v9, 0.0  ;;  %v7406_v19 = vsel %vm7310_vm13, %v7874_v38, 0.0 }
0x1972   : > { %v7403_v46 = vadd.f32 %v7402_v18, %v7401_v16 }
0x1974   : > { %7217 = vadd.xlane.f32.xlu1 %v13969_v12  ;;  %v7405_v59 = vadd.f32 %v7404_v17, %v7403_v46 }
0x1975   : > { %7215 = vadd.xlane.f32.xlu0 %v13970_v44 }
0x1976   : > { %v7407_v12 = vadd.f32 %v7406_v19, %v7405_v59 }
0x1978   : > { %7221 = vadd.xlane.f32.xlu1 %v7182_v40 }
0x1979   : > { %7219 = vadd.xlane.f32.xlu0 %v7181_v6  ;;  %v7186_v40 = vpop.xlane.xlu1 %7185 }
0x197a   : > { %v7188_v39 = vpop.xlane.xlu0 %7187 }
0x197c   : > { %7226 = vadd.xlane.f32.xlu1 %v7225_v60 }
0x197d   : > { %7223 = vadd.xlane.f32.xlu0 %v7183_v42 }
0x197e   : > { %v7190_v44 = vpop.xlane.xlu0 %7189 }
0x1980   : > { %7408 = vadd.xlane.f32.xlu1 %v7407_v12 }
0x1982   : > { %v7192_v21 = vpop.xlane.xlu0 %7191 }
0x1986   : > { %v13629_v29 = vpop.xlane.xlu0 %7193 }
0x198a   : > { %v13631_v50 = vpop.xlane.xlu0 %7195 }
0x198e   : > { %v13633_v24 = vpop.xlane.xlu0 %7197 }
0x19ad   : > { %v6933_v35 = vpop.xlane.xlu1 %6932 }
0x19b1   : > { %v6935_v6 = vpop.xlane.xlu0 %6934 }
0x19b2   : > { %9509 = vlog2.f32 %v6935_v6 }
0x19b3   : > { %9511 = vlog2.f32 %v6933_v35 }
0x19bd   : > { %v6957_v7 = vpop.xlane.xlu1 %6956 }
0x19bf   : > { %v9510_v10 = vpop.eup %9509 }
0x19c0   : > { %v9512_v20 = vpop.eup %9511  ;;  %v6978_v16 = vmul.f32 0.6931472, %v9510_v10 }
0x19c1   : > { %v6959_v45 = vpop.xlane.xlu1 %6958  ;;  %v6976_v18 = vmul.f32 0.6931472, %v9512_v20 }
0x19c2   : > { %v6937_v33 = vpop.xlane.xlu0 %6936  ;;  %v7018_v38 = vadd.f32 %v6978_v16, %v13401_v11 }
0x19c3   : > { %9513 = vlog2.f32 %v6937_v33  ;;  %v7017_v59 = vadd.f32 %v6976_v18, %v13397_v43 }
0x19c4   : > { %v7229_v33 = vsub.f32 %v7018_v38, %v7188_v39 }
0x19c5   : > { %v6961_v26 = vpop.xlane.xlu1 %6960 }
0x19c6   : > { %v7250_v43 = vsel %vm7039_vm6, %v7229_v33, 0.0  ;;  %vm13990_vm6 = vcmp.ge.s32.totalorder %v12896_v37, 0 }
0x19c9   : > { %v6939_v60 = vpop.xlane.xlu1 %6938  ;;  %v6941_v54 = vpop.xlane.xlu0 %6940 }
0x19ca   : > { %9515 = vlog2.f32 %v6939_v60 }
0x19cb   : > { %9517 = vlog2.f32 %v6941_v54  ;;  %v7228_v54 = vsub.f32 %v7017_v59, %v7186_v40 }
0x19cd   : > { %v13635_v42 = vpop.xlane.xlu1 %6962 }
0x19d0   : > { %v9514_v63 = vpop.eup %9513 }
0x19d1   : > { %v6965_v9 = vpop.xlane.xlu1 %6964  ;;  %v6980_v46 = vmul.f32 0.6931472, %v9514_v63  ;;  %v6945_v17 = vpop.xlane.xlu0 %6944 }
0x19d2   : > { %9519 = vlog2.f32 %v6945_v17 }
0x19d3   : > { %v7019_v12 = vadd.f32 %v6980_v46, %v13413_v1  ;;  %v7249_v1 = vsel %vm7038_vm3, %v7228_v54, 0.0  ;;  %vm13984_vm3 = vcmp.ge.s32.totalorder %v12953_v55, 0 }
0x19d4   : > { %v7271_v62 = vsel %vm7270_vm8, %v7249_v1, 0.0 }
0x19d5   : > { %v6943_v19 = vpop.xlane.xlu1 %6942  ;;  %v7230_v10 = vsub.f32 %v7019_v12, %v7190_v44  ;;  %v7272_v44 = vsel %vm7270_vm8, %v7250_v43, 0.0 }
0x19d6   : > { %9521 = vlog2.f32 %v6943_v19  ;;  %v7273_v18 = vadd.f32 %v7272_v44, %v7271_v62 }
0x19d7   : > { %v9516_v35 = vpop.eup %9515  ;;  %v7251_v39 = vsel %vm7040_vm4, %v7230_v10, 0.0  ;;  %vm13985_vm4 = vcmp.ge.s32.totalorder %v12966_v34, 0 }
0x19d8   : > { %v9518_v6 = vpop.eup %9517  ;;  %v6982_v60 = vmul.f32 0.6931472, %v9516_v35 }
0x19d9   : > { %v6947_v0 = vpop.xlane.xlu1 %6946  ;;  %v6984_v20 = vmul.f32 0.6931472, %v9518_v6  ;;  %v6949_v4 = vpop.xlane.xlu0 %6948 }
0x19da   : > { %v7020_v63 = vadd.f32 %v6982_v60, %v13423_v15  ;;  %9523 = vlog2.f32 %v6947_v0  ;;  %v7274_v0 = vsel %vm7270_vm8, %v7251_v39, 0.0 }
0x19db   : > { %9525 = vlog2.f32 %v6949_v4  ;;  %v7021_v40 = vadd.f32 %v6984_v20, %v13431_v61  ;;  %v7275_v56 = vadd.f32 %v7274_v0, %v7273_v18 }
0x19dc   : > { %v7231_v11 = vsub.f32 %v7020_v63, %v7192_v21 }
0x19dd   : > { %v6951_v16 = vpop.xlane.xlu1 %6950  ;;  %v7232_v5 = vsub.f32 %v7021_v40, %v13629_v29 }
0x19de   : > { %9527 = vlog2.f32 %v6951_v16  ;;  %v7252_v4 = vsel %vm7041_vm5, %v7231_v11, 0.0  ;;  %vm13987_vm5 = vcmp.ge.s32.totalorder %v12881_v31, 0 }
0x19df   : > { %v9520_v15 = vpop.eup %9519  ;;  %9529 = vlog2.f32 %v6957_v7  ;;  %v7276_v17 = vsel %vm7270_vm8, %v7252_v4, 0.0 }
0x19e0   : > { %9531 = vlog2.f32 %v6959_v45  ;;  %v6988_v53 = vmul.f32 0.6931472, %v9520_v15  ;;  %v7253_v45 = vsel %vm7042_vm7, %v7232_v5, 0.0  ;;  %v7277_v19 = vadd.f32 %v7276_v17, %v7275_v56 }
0x19e1   : > { %v6955_v21 = vpop.xlane.xlu1 %6954  ;;  %v7278_v54 = vsel %vm7270_vm8, %v7253_v45, 0.0  ;;  %vm13991_vm7 = vcmp.ge.s32.totalorder %v12975_v3, 0 }
0x19e2   : > { %9533 = vlog2.f32 %v6955_v21  ;;  %v6953_v61 = vpop.xlane.xlu0 %6952  ;;  %v7023_v7 = vadd.f32 %v6988_v53, %v13449_v32  ;;  %v7279_v20 = vadd.f32 %v7278_v54, %v7277_v19 }
0x19e3   : > { %v9522_v46 = vpop.eup %9521  ;;  %9535 = vlog2.f32 %v6953_v61 }
0x19e4   : > { %9537 = vlog2.f32 %v6961_v26  ;;  %v6986_v38 = vmul.f32 0.6931472, %v9522_v46  ;;  %v7234_v12 = vsub.f32 %v7023_v7, %v13633_v24 }
0x19e5   : > { %v6967_v59 = vpop.xlane.xlu1 %6966  ;;  %9539 = vlog2.f32 %v6965_v9 }
0x19e6   : > { %v7022_v29 = vadd.f32 %v6986_v38, %v13439_v25  ;;  %v7200_v35 = vpop.xlane.xlu0 %7199  ;;  %9541 = vlog2.f32 %v13635_v42  ;;  %v7255_v24 = vsel %vm7044_vm12, %v7234_v12, 0.0  ;;  %vm13994_vm12 = vcmp.ge.s32.totalorder %v12984_v8, 0 }
0x19e7   : > { %v9524_v6 = vpop.eup %9523  ;;  %9543 = vlog2.f32 %v6967_v59  ;;  %v7282_v27 = vsel %vm7270_vm8, %v7255_v24, 0.0 }
0x19e8   : > { %v9526_v33 = vpop.eup %9525  ;;  %v7233_v60 = vsub.f32 %v7022_v29, %v13631_v50  ;;  %v6990_v32 = vmul.f32 0.6931472, %v9524_v6 }
0x19e9   : > { %v6992_v26 = vmul.f32 0.6931472, %v9526_v33  ;;  %v6969_v10 = vpop.xlane.xlu1 %6968  ;;  %v13986_v33 = vld [vmem:[#allocation54_spill] sm:$0xff] }
0x19ea   : > { %v7254_v58 = vsel %vm7043_vm9, %v7233_v60, 0.0  ;;  %v7024_v25 = vadd.f32 %v6990_v32, %v13457_v48  ;;  %v7202_v63 = vpop.xlane.xlu0 %7201  ;;  %9545 = vlog2.f32 %v6969_v10  ;;  %vm13993_vm9 = vcmp.ge.s32.totalorder %v12909_v49, 0 }
0x19eb   : > { %v9528_v9 = vpop.eup %9527  ;;  %v7280_v50 = vsel %vm7270_vm8, %v7254_v58, 0.0  ;;  %v7025_v43 = vadd.f32 %v6992_v26, %v13473_v28 }
0x19ec   : > { %v6994_v11 = vmul.f32 0.6931472, %v9528_v9  ;;  %v7235_v42 = vsub.f32 %v7024_v25, %v7200_v35  ;;  %v7281_v16 = vadd.f32 %v7280_v50, %v7279_v20  ;;  %v9530_v1 = vpop.eup %9529  ;;  %v13988_v20 = vld [vmem:[#allocation50_spill] sm:$0xff] }
0x19ed   : > { %v7236_v39 = vsub.f32 %v7025_v43, %v7202_v63  ;;  %v6971_v47 = vpop.xlane.xlu1 %6970  ;;  %v9532_v40 = vpop.eup %9531  ;;  %v7000_v21 = vmul.f32 0.6931472, %v9530_v1 }
0x19ee   : > { %v7256_v48 = vsel %vm7045_vm14, %v7235_v42, 0.0  ;;  %v7283_v44 = vadd.f32 %v7282_v27, %v7281_v16  ;;  %v7204_v15 = vpop.xlane.xlu0 %7203  ;;  %v7026_v4 = vadd.f32 %v6994_v11, %v13484_v57  ;;  %9547 = vlog2.f32 %v6971_v47  ;;  %vm13997_vm14 = vmmov %vm13972_vm2 }
0x19ef   : > { %v9534_v62 = vpop.eup %9533  ;;  %v7284_v28 = vsel %vm7270_vm8, %v7256_v48, 0.0  ;;  %v7257_v0 = vsel %vm13984_vm3, %v7236_v39, 0.0  ;;  %v7002_v59 = vmul.f32 0.6931472, %v9532_v40  ;;  %v7029_v12 = vadd.f32 %v7000_v21, %v13405_v22  ;;  %v13989_v22 = vld [vmem:[#allocation49_spill] sm:$0xff]  ;;  %vm13999_vm2 = vmmov %vm13980_vm11 }
0x19f0   : > { %v9536_v53 = vpop.eup %9535  ;;  %v7285_v18 = vadd.f32 %v7284_v28, %v7283_v44  ;;  %v7237_v5 = vsub.f32 %v7026_v4, %v7204_v15  ;;  %v6998_v46 = vmul.f32 0.6931472, %v9534_v62  ;;  %v7286_v7 = vsel %vm7270_vm8, %v7257_v0, 0.0  ;;  %v13992_v4 = vld [vmem:[#allocation52_spill] sm:$0xff]  ;;  %vm14002_vm11 = vmmov %vm13983_vm0 }
0x19f1   : > { %v9538_v61 = vpop.eup %9537  ;;  %v6996_v17 = vmul.f32 0.6931472, %v9536_v53  ;;  %v6974_v51 = vpop.xlane.xlu1 %6973  ;;  %v7030_v9 = vadd.f32 %v7002_v59, %v13989_v22  ;;  %v13995_v53 = vld [vmem:[#allocation51_spill] sm:$0xff] }
0x19f2   : > { %v7258_v57 = vsel %vm13985_vm4, %v7237_v5, 0.0  ;;  %9549 = vlog2.f32 %v6974_v51  ;;  %v7206_v56 = vpop.xlane.xlu0 %7205  ;;  %v7287_v38 = vadd.f32 %v7286_v7, %v7285_v18  ;;  %v7004_v45 = vmul.f32 0.6931472, %v9538_v61  ;;  %v9540_v29 = vpop.eup %9539 }
0x19f3   : > { %v7027_v55 = vadd.f32 %v6996_v17, %v13505_v14  ;;  %v7288_v19 = vsel %vm7270_vm8, %v7258_v57, 0.0  ;;  %v7028_v60 = vadd.f32 %v6998_v46, %v13986_v33  ;;  %v9542_v32 = vpop.eup %9541  ;;  %v7008_v24 = vmul.f32 0.6931472, %v9540_v29 }
0x19f4   : > { %v7289_v26 = vadd.f32 %v7288_v19, %v7287_v38  ;;  %v9544_v14 = vpop.eup %9543  ;;  %v7031_v63 = vadd.f32 %v7004_v45, %v13988_v20  ;;  %v7006_v43 = vmul.f32 0.6931472, %v9542_v32  ;;  %v13996_v38 = vld [vmem:[#allocation53_spill] sm:$0xff] }
0x19f5   : > { %v7238_v35 = vsub.f32 %v7027_v55, %v7206_v56  ;;  %v7210_v6 = vpop.xlane.xlu1 %7209  ;;  %v7010_v48 = vmul.f32 0.6931472, %v9544_v14  ;;  %v7033_v62 = vadd.f32 %v7008_v24, %v13992_v4 }
0x19f6   : > { %v7240_v54 = vsub.f32 %v7029_v12, %v7210_v6  ;;  %v7208_v34 = vpop.xlane.xlu0 %7207  ;;  %v7032_v21 = vadd.f32 %v7006_v43, %v13995_v53 }
0x19f7   : > { %v7259_v10 = vsel %vm13987_vm5, %v7238_v35, 0.0  ;;  %v7239_v58 = vsub.f32 %v7028_v60, %v7208_v34  ;;  %v9546_v50 = vpop.eup %9545  ;;  %v7034_v8 = vadd.f32 %v7010_v48, %v13996_v38 }
0x19f8   : > { %v7290_v25 = vsel %vm7270_vm8, %v7259_v10, 0.0  ;;  %v7261_v42 = vsel %vm13990_vm6, %v7240_v54, 0.0  ;;  %v7012_v44 = vmul.f32 0.6931472, %v9546_v50 }
0x19f9   : > { %v7291_v11 = vadd.f32 %v7290_v25, %v7289_v26  ;;  %v7260_v16 = vsel %vm13991_vm7, %v7239_v58, 0.0  ;;  %v7214_v31 = vpop.xlane.xlu1 %7213  ;;  %v7294_v15 = vsel %vm7270_vm8, %v7261_v42, 0.0 }
0x19fa   : > { %v7292_v1 = vsel %vm7270_vm8, %v7260_v16, 0.0  ;;  %v7242_v27 = vsub.f32 %v7031_v63, %v7214_v31  ;;  %v7212_v39 = vpop.xlane.xlu0 %7211  ;;  %v7035_v49 = vadd.f32 %v7012_v44, %v13455_v13 }
0x19fb   : > { %v7293_v47 = vadd.f32 %v7292_v1, %v7291_v11  ;;  %v7241_v40 = vsub.f32 %v7030_v9, %v7212_v39  ;;  %v9548_v18 = vpop.eup %9547 }
0x19fc   : > { %v7263_v37 = vsel %vm13993_vm9, %v7242_v27, 0.0  ;;  %v7014_v55 = vmul.f32 0.6931472, %v9548_v18 }
0x19fd   : > { %v7262_v3 = vsel %vm13994_vm12, %v7241_v40, 0.0  ;;  %v7295_v28 = vadd.f32 %v7294_v15, %v7293_v47  ;;  %v7218_v0 = vpop.xlane.xlu1 %7217  ;;  %v7298_v56 = vsel %vm7270_vm8, %v7263_v37, 0.0 }
0x19fe   : > { %v7296_v5 = vsel %vm7270_vm8, %v7262_v3, 0.0  ;;  %v7244_v61 = vsub.f32 %v7033_v62, %v7218_v0  ;;  %v7216_v46 = vpop.xlane.xlu0 %7215  ;;  %v7036_v26 = vadd.f32 %v7014_v55, %v13471_v36 }
0x19ff   : > { %v9550_v17 = vpop.eup %9549  ;;  %v7297_v51 = vadd.f32 %v7296_v5, %v7295_v28  ;;  %v7243_v7 = vsub.f32 %v7032_v21, %v7216_v46 }
0x1a00   : > { %v7016_v57 = vmul.f32 0.6931472, %v9550_v17  ;;  %v7265_v59 = vsel %vm13997_vm14, %v7244_v61, 0.0 }
0x1a01   : > { %v7264_v45 = vsel %vm13998_vm10, %v7243_v7, 0.0  ;;  %v7299_v19 = vadd.f32 %v7298_v56, %v7297_v51  ;;  %v7222_v12 = vpop.xlane.xlu1 %7221  ;;  %v7302_v32 = vsel %vm7270_vm8, %v7265_v59, 0.0 }
0x1a02   : > { %v7300_v29 = vsel %vm7270_vm8, %v7264_v45, 0.0  ;;  %v7246_v35 = vsub.f32 %v7035_v49, %v7222_v12  ;;  %v7220_v6 = vpop.xlane.xlu0 %7219  ;;  %v7037_v13 = vadd.f32 %v7016_v57, %v13491_v41 }
0x1a03   : > { %v7301_v33 = vadd.f32 %v7300_v29, %v7299_v19  ;;  %v7245_v60 = vsub.f32 %v7034_v8, %v7220_v6 }
0x1a04   : > { %v7267_v54 = vsel %vm13999_vm2, %v7246_v35, 0.0 }
0x1a05   : > { %v7266_v52 = vsel %vm14000_vm1, %v7245_v60, 0.0  ;;  %v7303_v23 = vadd.f32 %v7302_v32, %v7301_v33  ;;  %v7227_v34 = vpop.xlane.xlu1 %7226  ;;  %v7306_v20 = vsel %vm7270_vm8, %v7267_v54, 0.0 }
0x1a06   : > { %v7304_v10 = vsel %vm7270_vm8, %v7266_v52, 0.0  ;;  %v7248_v58 = vsub.f32 %v7037_v13, %v7227_v34  ;;  %v7224_v14 = vpop.xlane.xlu0 %7223 }
0x1a07   : > { %v7305_v24 = vadd.f32 %v7304_v10, %v7303_v23  ;;  %v7247_v25 = vsub.f32 %v7036_v26, %v7224_v14 }
0x1a08   : > { %v7269_v41 = vsel %vm14002_vm11, %v7248_v58, 0.0 }
0x1a09   : > { %v7268_v22 = vsel %vm13982_vm15, %v7247_v25, 0.0  ;;  %v7307_v2 = vadd.f32 %v7306_v20, %v7305_v24  ;;  %v7311_v36 = vsel %vm7310_vm13, %v7269_v41, 0.0  ;;  %v7409_v11 = vpop.xlane.xlu1 %7408 }
0x1a0a   : > { %v7308_v9 = vsel %vm7270_vm8, %v7268_v22, 0.0  ;;  %v7410_v42 = vrot.slane %v7409_v11, 4 }
0x1a0b   : > { %v7309_v50 = vadd.f32 %v7308_v9, %v7307_v2 }
0x1a0c   : > { %v7411_v16 = vadd.f32 %v7410_v42, %v7409_v11 }
0x1a0d   : > { %v7312_v43 = vadd.f32 %v7311_v36, %v7309_v50 }
0x1a0e   : > { %v7412_v31 = vrot.slane %v7411_v16, 2 }
0x1a0f   : > { %7313 = vadd.xlane.f32.xlu0 %v7312_v43 }
0x1a10   : > { %v7413_v47 = vadd.f32 %v7412_v31, %v7411_v16 }
0x1a12   : > { %v7414_v44 = vrot.slane %v7413_v47, 1 }
0x1a14   : > { %v7415_v62 = vadd.f32 %v7414_v44, %v7413_v47 }
0x1a98   : > { %v7314_v1 = vpop.xlane.xlu0 %7313 }
0x1a99   : > { %v7315_v27 = vrot.slane %v7314_v1, 4 }
0x1a9b   : > { %v7316_v39 = vadd.f32 %v7315_v27, %v7314_v1 }
0x1a9d   : > { %v7317_v40 = vrot.slane %v7316_v39, 2 }
0x1a9f   : > { %v7318_v48 = vadd.f32 %v7317_v40, %v7316_v39 }
0x1aa1   : > { %v7319_v15 = vrot.slane %v7318_v48, 1 }
0x1aa3   : > { %v7320_v4 = vadd.f32 %v7319_v15, %v7318_v48 }
0x1aa5   : > { %8838 = vpush %v7320_v4 }
0x1aa6   : > { %8840 = vpush %v7415_v62 }
0x1ad6   : > { %s8839_s1 = spop %8838 }
0x1ad7   : > { %v7322_v37 = vstv %s8839_s1  ;;  %s8841_s25 = spop %8840 }
0x1ad8   : > { %7324 = vst [vmem:[#allocation6] sm:$0xff] %v7322_v37  ;;  %v7417_v3 = vstv %s8841_s25 }
0x1ad9   : > { %7419 = vst [vmem:[#allocation8] sm:$0xff] %v7417_v3 }
0x1ada PF: > { %s14004_s24 = sld [smem:[#allocation12_spill]]  ;;  %s9675_s21 = smov [#allocation6]  }
0x1adb   : > { %s7445_s19 = sshll.u32 %s9675_s21, 4  ;;  %s7446_s19 = int_to_ptr.vmem [resolvable:$true] %s7445_s19 }
0x1adc   : > { %s9551_s17 = scalar_lea.vmem %s7446_s19, 128  ;;  %p9558_p11 = scmp.lt.s32.totalorder %s7446_s19, %s7446_s19 }
0x1add   : > { %p9552_p8 = scmp.ne.s32.totalorder %s7446_s19, %s9551_s17  ;;  %p9559_p12 = scmp.lt.s32.totalorder %s9551_s17, %s9551_s17 }
0x1adf   : > { %p9560_p13 = por %p9559_p12, %p9558_p11 }
0x1ae0   : > { %s14005_s30 = sadd.s32 4294967295, %s14004_s24  }
0x1ae1   : > { %p13727_p7 = scmp.eq.s32.totalorder %s14005_s30, 1 }
0x1ae3   : > { %p9553_p9 = pnand %p9552_p8, %p13727_p7 }
0x1ae5   : > { %p9554_p10 = pneg %p9553_p9 }
0x1ae7   : > { %p9561_p0 = pnand %p9560_p13, %p9554_p10 }
0x1ae9   : > { %9564 = shalt.err (!%p9561_p0)
}
0x1aea   : > { %s14007_s26 = sld [smem:[#allocation64_spill]]  ;;  %s9676_s15 = smov [#allocation4]  }
0x1aeb   : > { %s7429_s27 = sshll.u32 %s9676_s15, 4  ;;  %s7430_s27 = int_to_ptr.vmem [resolvable:$true] %s7429_s27 }
0x1aec   : > { %s9575_s29 = scalar_lea.vmem %s7430_s27, 2688  ;;  %p9582_p4 = scmp.lt.s32.totalorder %s7430_s27, %s7430_s27 }
0x1aed   : > { %p9576_p1 = scmp.ne.s32.totalorder %s7430_s27, %s9575_s29  ;;  %p9583_p5 = scmp.lt.s32.totalorder %s9575_s29, %s9575_s29 }
0x1aef   : > { %p9577_p2 = pnand %p9576_p1, %p13727_p7  ;;  %p9584_p6 = por %p9583_p5, %p9582_p4 }
0x1af0   : > { %8845 = dma.vmem_to_hbm [thread:$0]  (%p13727_p7), %s7446_s19, 128, %s14007_s26, [#allocation7]  }
0x1af1   : > { %p9578_p3 = pneg %p9577_p2 }
0x1af3   : > { %p9585_p8 = pnand %p9584_p6, %p9578_p3 }
0x1af5   : > { %9588 = shalt.err (!%p9585_p8)
}
0x1af6   : > { %s9677_s22 = smov 128   ;;  %s14008_s4 = sld [smem:[#allocation63_spill]] }
0x1af7   : > { %s9678_s1 = smov [#allocation8]  }
0x1af8   : > { %s7458_s25 = sshll.u32 %s9678_s1, 4  ;;  %s7459_s25 = int_to_ptr.vmem [resolvable:$true] %s7458_s25 }
0x1af9   : > { %s9599_s24 = scalar_lea.vmem %s7459_s25, 128  ;;  %p9606_p12 = scmp.lt.s32.totalorder %s7459_s25, %s7459_s25 }
0x1afa   : > { %p9600_p9 = scmp.ne.s32.totalorder %s7459_s25, %s9599_s24  ;;  %p9607_p13 = scmp.lt.s32.totalorder %s9599_s24, %s9599_s24 }
0x1afc   : > { %8843 = dma.vmem_to_hbm [thread:$0]  (%p13727_p7), %s7430_s27, 2688, %s14008_s4, [#allocation5], %s9677_s22, %s9677_s22, %s9669_s18  }
0x1afd   : > { %p9601_p10 = pnand %p9600_p9, %p13727_p7  ;;  %p9608_p0 = por %p9607_p13, %p9606_p12 }
0x1aff   : > { %p9602_p11 = pneg %p9601_p10 }
0x1b01   : > { %p9609_p1 = pnand %p9608_p0, %p9602_p11 }
0x1b03   : > { %9612 = shalt.err (!%p9609_p1)
}
0x1b04   : > { %s14009_s19 = sld [smem:[#allocation65_spill]] }
0x1b0a   : > { %8847 = dma.vmem_to_hbm [thread:$0]  (%p13727_p7), %s7459_s25, 128, %s14009_s19, [#allocation7]  }
0x1b0b   : > { %9636 = dma.done.wait (%p13727_p7), [#allocation5], 2688  }
0x1b0c   : > { %9638 = vsyncadd (%p13727_p7), [#allocation5], 4294964608 }
0x1b0d   : > { %9640 = dma.done.wait (%p13727_p7), [#allocation7], 256  }
0x1b0e   : > { %9642 = vsyncadd (%p13727_p7), [#allocation7], 4294967040 }
0x1b0f PF: > { %s14010_s18 = sld [smem:[#allocation12_spill]] }
0x1b10   : > { %s14011_s1 = sld [smem:[#allocation11_spill]] }
0x1b11   : > { %s14012_s22 = sld [smem:[#allocation13_spill]] }
0x1b15   : > { %s33_s23 = sadd.s32 1, %s14010_s18  }
0x1b16   : > { %p30_p2 = scmp.ge.s32.totalorder %s33_s23, 4  }
0x1b18   :  { %32 = sbr.rel (!%p30_p2) target bundleno = 15 (0xf), region = 185 }
0x1b1d   :  { %7479 = vsyncpa [#allocation5], 1 }
0x1b1e   :  { %7481 = vsyncpa [#allocation5 + $0x1], 1 }
0x1b1f   :  { %7482 = vsyncpa [#allocation7], 1 }

</bundles_post_ra>
